<compile_context>
chip_gen: v7x
topology: tpu7x:2x2x1
jax: 0.10.0
libtpu: 0.0.40
codegen_flags: <defaults>
</compile_context>

<pallas_src>
import functools

import jax
import jax.numpy as jnp
from jax.experimental import pallas as pl
from jax.experimental.pallas import tpu as pltpu

LRELU_SLOPE = 0.01        # nn.LeakyReLU default
BN_EPS = 1e-5             # nn.BatchNorm default
CONV_CFG = [(4, 4, 2), (3, 3, 1), (3, 3, 1), (3, 3, 1)]   # (kh, kw, stride)
CONV_OUT = 28             # conv channels in the torch model

LANE = 128                # lane-dense channel padding
IN_SPATIAL = 20           # 20x20 input -> 9 -> 7 -> 5 -> 3 (dense expects 28*3*3)
S2D = 10                  # canvas side / row stride (conv1 output grid)
IMG_ROWS = S2D * S2D      # canvas rows per image
OUT_ROWS = 8              # output rows padded to a full sublane tile
SLACK = 24                # canvas slack rows for shifted 3x3 reads (max 22)


# ----------------------------------------------------------------------------
# Fused kernel: conv1..conv4 + dense1 + dense2, everything VMEM-resident.
# ----------------------------------------------------------------------------
def _cnn_fused_kernel(x_ref, w1_ref, w2_ref, aff_ref,
                      w3_hbm, w4_hbm, wd1_hbm, wd2_hbm,
                      o_ref,
                      c1, c2, c3, c4, w3_v, w4_v, wd1_v, wd2_v, sems,
                      *, n_img):
    acc_rows = n_img * IMG_ROWS          # rows we actually accumulate over

    # Kick off DMA of the late-use weights; hides behind conv1/conv2 compute.
    cp_w3 = pltpu.make_async_copy(w3_hbm, w3_v, sems.at[0])
    cp_w4 = pltpu.make_async_copy(w4_hbm, w4_v, sems.at[1])
    cp_d1 = pltpu.make_async_copy(wd1_hbm, wd1_v, sems.at[2])
    cp_d2 = pltpu.make_async_copy(wd2_hbm, wd2_v, sems.at[3])
    cp_w3.start(); cp_w4.start(); cp_d1.start(); cp_d2.start()

    def lrelu(y):
        return jnp.where(y >= 0.0, y, LRELU_SLOPE * y)

    def affine(y, row):                  # y * scale + shift (f32, broadcast)
        return y * aff_ref[row:row + 1, :] + aff_ref[row + 1:row + 2, :]

    # Zero the slack rows once: the shifted 3x3 reads for the last image touch
    # rows [acc_rows, acc_rows+22]. Those rows never reach a valid output by
    # receptive-field math, but stale VMEM could hold NaN/Inf -- keep them
    # deterministic.
    zslack = jnp.zeros((SLACK, LANE), jnp.bfloat16)
    c1[acc_rows:acc_rows + SLACK, :] = zslack
    c2[acc_rows:acc_rows + SLACK, :] = zslack
    c3[acc_rows:acc_rows + SLACK, :] = zslack

    # -- conv1: 4x4 / stride-2 rewritten as a single K=64 im2col matmul ------
    acc = jnp.dot(x_ref[...], w1_ref[...], preferred_element_type=jnp.float32)
    c1[0:acc_rows, :] = lrelu(affine(acc, 0)).astype(c1.dtype)

    # -- conv2..conv4: 3x3 / stride-1, shift-and-accumulate on the canvas ----
    def conv3x3(src, w_ref, aff_row, dst):
        acc = None
        for ki in range(3):
            for kj in range(3):
                sh = ki * S2D + kj
                t = jnp.dot(src[sh:sh + acc_rows, :], w_ref[ki * 3 + kj],
                            preferred_element_type=jnp.float32)
                acc = t if acc is None else acc + t
        dst[0:acc_rows, :] = lrelu(affine(acc, aff_row)).astype(dst.dtype)

    conv3x3(c1, w2_ref, 2, c2)
    cp_w3.wait()
    conv3x3(c2, w3_v, 4, c3)
    cp_w4.wait()
    conv3x3(c3, w4_v, 6, c4)

    # -- dense head: 9 strided row-gathers folded into 9 MXU matmuls ---------
    # row for (image n, tap p=(hh,ww)) is n*IMG_ROWS + hh*S2D + ww, so one
    # pl.ds(start=hh*S2D+ww, size=n_img, stride=IMG_ROWS) load per tap.
    cp_d1.wait()
    h1 = None
    for hh in range(3):
        for ww in range(3):
            p = hh * 3 + ww
            lhs = c4[pl.ds(hh * S2D + ww, n_img, stride=IMG_ROWS), :]
            t = jnp.dot(lhs.astype(jnp.bfloat16), wd1_v[p],
                        preferred_element_type=jnp.float32)
            h1 = t if h1 is None else h1 + t
    h1 = lrelu(h1 + aff_ref[8:9, :])                       # bias -> LeakyReLU
    h1 = h1 * aff_ref[9:10, :] + aff_ref[10:11, :]         # BatchNorm1d (eval)

    cp_d2.wait()
    logits = jnp.dot(h1.astype(jnp.bfloat16), wd2_v[...],
                     preferred_element_type=jnp.float32)
    if n_img < OUT_ROWS:                                   # deterministic pad
        o_ref[...] = jnp.zeros_like(o_ref)
    o_ref[0:n_img, :] = logits + aff_ref[11:12, :]         # dense-2 bias


# ----------------------------------------------------------------------------
# Wrapper: layout prep + single pallas_call.
# ----------------------------------------------------------------------------
def cnn_forward(packed, x_nchw, class_num):
    n, c, h, w = x_nchw.shape
    assert h == IN_SPATIAL and w == IN_SPATIAL, "conv stack expects 20x20 input"
    assert 1 <= n <= OUT_ROWS
    assert 16 * c <= LANE
    acc_rows = n * IMG_ROWS

    # NCHW -> NHWC, zero-pad to 22x22, then im2col for the 4x4/stride-2 conv1:
    # canvas row = n*100 + oh*10 + ow, feature = (kh*4 + kw)*c + ci.
    # One-time pure permutation on a tiny tensor, done in XLA.
    x = jnp.transpose(x_nchw.astype(jnp.float32), (0, 2, 3, 1))
    xp = jnp.pad(x, ((0, 0), (0, 2), (0, 2), (0, 0)))
    taps = [xp[:, kh:kh + 2 * S2D:2, kw:kw + 2 * S2D:2, :]
            for kh in range(4) for kw in range(4)]
    xi = jnp.concatenate(taps, axis=-1).reshape(acc_rows, 16 * c)
    xi = jnp.pad(xi, ((0, 0), (0, LANE - 16 * c))).astype(jnp.bfloat16)

    vmem_ops = (xi, packed["w1"], packed["w2"], packed["aff"])
    hbm_ops = (packed["w3"], packed["w4"], packed["wd1"], packed["wd2"])
    in_specs = ([pl.BlockSpec(a.shape, lambda i, nd=a.ndim: (0,) * nd)
                 for a in vmem_ops]
                + [pl.BlockSpec(memory_space=pl.ANY) for _ in hbm_ops])

    out = pl.pallas_call(
        functools.partial(_cnn_fused_kernel, n_img=n),   # NOTE: recompiles per n
        out_shape=jax.ShapeDtypeStruct((OUT_ROWS, LANE), jnp.float32),
        grid=(1,),
        in_specs=in_specs,
        out_specs=pl.BlockSpec((OUT_ROWS, LANE), lambda i: (0, 0)),
        scratch_shapes=[
            pltpu.VMEM((acc_rows + SLACK, LANE), jnp.bfloat16),   # c1 canvas
            pltpu.VMEM((acc_rows + SLACK, LANE), jnp.bfloat16),   # c2 canvas
            pltpu.VMEM((acc_rows + SLACK, LANE), jnp.bfloat16),   # c3 canvas
            pltpu.VMEM((acc_rows, LANE), jnp.float32),            # c4 canvas
            pltpu.VMEM((9, LANE, LANE), jnp.bfloat16),            # w3 (DMA dst)
            pltpu.VMEM((9, LANE, LANE), jnp.bfloat16),            # w4 (DMA dst)
            pltpu.VMEM((9, LANE, LANE), jnp.bfloat16),            # wd1 (DMA dst)
            pltpu.VMEM((LANE, LANE), jnp.bfloat16),               # wd2 (DMA dst)
            pltpu.SemaphoreType.DMA((4,)),
        ],
        compiler_params=pltpu.CompilerParams(
            dimension_semantics=("arbitrary",)),
    )(*vmem_ops, *hbm_ops)
    # NOTE: for large batches on v7x, add a leading "parallel" grid axis over
    # the batch so both TensorCores are used; at batch<=8 a single step wins.
    return out[:n, :class_num]


# ----------------------------------------------------------------------------
# Parameter init (PyTorch layouts) and init-time packing/folding/padding.
# ----------------------------------------------------------------------------
def init_params(key, channels, h_dim, class_num):
    def nrm(k, shape, scale=0.1):
        return scale * jax.random.normal(k, shape, dtype=jnp.float32)

    params = {"convs": []}
    cin = channels
    for (kh, kw, _) in CONV_CFG:
        key, kw_, kb_, kg_, kbt_, km_, kv_ = jax.random.split(key, 7)
        wgt = nrm(kw_, (CONV_OUT, cin, kh, kw))                 # torch OIHW
        b = nrm(kb_, (CONV_OUT,))
        gamma = 1.0 + 0.1 * jax.random.normal(kg_, (CONV_OUT,), jnp.float32)
        beta = nrm(kbt_, (CONV_OUT,))
        mean = nrm(km_, (CONV_OUT,))
        var = 1.0 + 0.1 * jax.random.uniform(kv_, (CONV_OUT,), jnp.float32)
        params["convs"].append((wgt, b, gamma, beta, mean, var))
        cin = CONV_OUT

    feat = CONV_OUT * 3 * 3
    key, k1, k1b, kg1, kbt1, km1, kv1, k2, k2b = jax.random.split(key, 9)
    w1 = nrm(k1, (h_dim, feat))                                 # torch [out,in]
    b1 = nrm(k1b, (h_dim,))
    g1 = 1.0 + 0.1 * jax.random.normal(kg1, (h_dim,), jnp.float32)
    bt1 = nrm(kbt1, (h_dim,))
    mu1 = nrm(km1, (h_dim,))
    vr1 = 1.0 + 0.1 * jax.random.uniform(kv1, (h_dim,), jnp.float32)
    params["dense1"] = (w1, b1, g1, bt1, mu1, vr1)
    params["dense2"] = (nrm(k2, (class_num, h_dim)), nrm(k2b, (class_num,)))
    return params


def _pad_to(a, shape):
    return jnp.pad(a, [(0, t - s) for s, t in zip(a.shape, shape)])


def _pad_vec(v):
    return _pad_to(v.astype(jnp.float32), (LANE,))


def _fold_bn(bias, gamma, beta, mean, var):
    s = gamma * jax.lax.rsqrt(var + BN_EPS)
    return s, (bias - mean) * s + beta


def pack_params(params):
    """Fold BN, permute to matmul layouts, pad channels to 128, cast to bf16."""
    packed, aff_rows = {}, []

    # conv1: full 4x4/stride-2 im2col weight, feature order (kh, kw, ci).
    wgt, b, g, bt, mu, vr = params["convs"][0]
    cout, cin = wgt.shape[0], wgt.shape[1]
    assert 16 * cin <= LANE and cout <= LANE
    wr = wgt.transpose(2, 3, 1, 0).reshape(16 * cin, cout)
    packed["w1"] = _pad_to(wr, (LANE, LANE)).astype(jnp.bfloat16)
    s, t = _fold_bn(b, g, bt, mu, vr)
    aff_rows += [_pad_vec(s), _pad_vec(t)]

    # conv2..4: 3x3/stride-1 taps, [tap = ki*3+kj, cin_pad, cout_pad].
    for idx in (1, 2, 3):
        wgt, b, g, bt, mu, vr = params["convs"][idx]
        cout, cin = wgt.shape[0], wgt.shape[1]
        wr = wgt.transpose(2, 3, 1, 0).reshape(9, cin, cout)
        packed[f"w{idx + 1}"] = _pad_to(wr, (9, LANE, LANE)).astype(jnp.bfloat16)
        s, t = _fold_bn(b, g, bt, mu, vr)
        aff_rows += [_pad_vec(s), _pad_vec(t)]

    # dense1: fold PyTorch NCHW flatten order (feature = c*9 + hh*3 + ww) into
    # per-position weight slabs wd1[p = hh*3+ww, cin, h_dim].
    w1, b1, g1, bt1, mu1, vr1 = params["dense1"]
    h_dim = w1.shape[0]
    assert h_dim <= LANE
    wt = w1.T.reshape(CONV_OUT, 3, 3, h_dim).transpose(1, 2, 0, 3)   # [h,w,c,:]
    packed["wd1"] = _pad_to(wt.reshape(9, CONV_OUT, h_dim),
                            (9, LANE, LANE)).astype(jnp.bfloat16)
    s1 = g1 * jax.lax.rsqrt(vr1 + BN_EPS)
    aff_rows += [_pad_vec(b1), _pad_vec(s1), _pad_vec(bt1 - mu1 * s1)]

    # dense2
    w2, b2 = params["dense2"]
    assert w2.shape[0] <= LANE
    packed["wd2"] = _pad_to(w2.T, (LANE, LANE)).astype(jnp.bfloat16)
    aff_rows += [_pad_vec(b2)]

    while len(aff_rows) < 16:
        aff_rows.append(jnp.zeros((LANE,), jnp.float32))
    packed["aff"] = jnp.stack(aff_rows)               # [16, 128] f32 table
    return packed


# ----------------------------------------------------------------------------
# Pure-JAX reference (eval-mode PyTorch semantics) for a correctness check.
# ----------------------------------------------------------------------------
def cnn_reference(params, x_nchw):
    x = x_nchw.astype(jnp.float32)
    for (wgt, b, g, bt, mu, vr), (_, _, st) in zip(params["convs"], CONV_CFG):
        x = jax.lax.conv_general_dilated(
            x, wgt, window_strides=(st, st), padding="VALID",
            dimension_numbers=("NCHW", "OIHW", "NCHW"))
        s = g * jax.lax.rsqrt(vr + BN_EPS)
        x = (x + b[None, :, None, None] - mu[None, :, None, None]) \
            * s[None, :, None, None] + bt[None, :, None, None]
        x = jnp.where(x >= 0, x, LRELU_SLOPE * x)
    flat = x.reshape(x.shape[0], -1)
    w1, b1, g1, bt1, mu1, vr1 = params["dense1"]
    h = flat @ w1.T + b1
    h = jnp.where(h >= 0, h, LRELU_SLOPE * h)
    s1 = g1 * jax.lax.rsqrt(vr1 + BN_EPS)
    h = (h - mu1) * s1 + bt1
    w2, b2 = params["dense2"]
    return h @ w2.T + b2


if __name__ == "__main__":
    # Input spatial must be 20x20 so the conv stack ends at 3x3 (28*3*3 = 252).
    batch, channels, spatial = 2, 4, 20
    h_dim, class_num = 32, 10

    key = jax.random.PRNGKey(0)
    key, kx, kp = jax.random.split(key, 3)
    x = jax.random.normal(kx, (batch, channels, spatial, spatial), jnp.float32)

    params = init_params(kp, channels, h_dim, class_num)
    packed = pack_params(params)

    fwd = jax.jit(functools.partial(cnn_forward, packed, class_num=class_num))
    out = jax.block_until_ready(fwd(x))

    assert out.shape == (batch, class_num), out.shape
    assert bool(jnp.all(jnp.isfinite(out)))

    # Check the fused bf16/f32 kernel against the plain-JAX f32 reference.
    ref = jax.block_until_ready(cnn_reference(params, x))
    max_diff = float(jnp.max(jnp.abs(out - ref)))
    assert max_diff < 0.15, f"kernel vs reference max|diff| = {max_diff}"

    print("KERNEL_OK")
</pallas_src>

<mosaic_0001>
module attributes {stable_mosaic.version = 11 : i64} {
  func.func @_cnn_fused_kernel(%arg0: i32, %arg1: memref<200x128xbf16, #tpu.memory_space<vmem>>, %arg2: memref<128x128xbf16, #tpu.memory_space<vmem>>, %arg3: memref<9x128x128xbf16, #tpu.memory_space<vmem>>, %arg4: memref<16x128xf32, #tpu.memory_space<vmem>>, %arg5: memref<9x128x128xbf16, #tpu.memory_space<any>>, %arg6: memref<9x128x128xbf16, #tpu.memory_space<any>>, %arg7: memref<9x128x128xbf16, #tpu.memory_space<any>>, %arg8: memref<128x128xbf16, #tpu.memory_space<any>>, %arg9: memref<8x128xf32, #tpu.memory_space<vmem>>, %arg10: memref<224x128xbf16, #tpu.memory_space<vmem>>, %arg11: memref<224x128xbf16, #tpu.memory_space<vmem>>, %arg12: memref<224x128xbf16, #tpu.memory_space<vmem>>, %arg13: memref<200x128xf32, #tpu.memory_space<vmem>>, %arg14: memref<9x128x128xbf16, #tpu.memory_space<vmem>>, %arg15: memref<9x128x128xbf16, #tpu.memory_space<vmem>>, %arg16: memref<9x128x128xbf16, #tpu.memory_space<vmem>>, %arg17: memref<128x128xbf16, #tpu.memory_space<vmem>>, %arg18: memref<4x!tpu.dma_semaphore, #tpu.memory_space<semaphore_mem>>) attributes {dimension_semantics = [#tpu.dimension_semantics<arbitrary>], iteration_bounds = array<i64: 1>, scalar_prefetch = 0 : i64, scratch_operands = 9 : i64, tpu.core_type = #tpu.core_type<tc>, window_params = [{pipeline_mode = #tpu.pipeline_mode<synchronous>, transform_indices = @transform_0, window_bounds = array<i64: 200, 128>}, {pipeline_mode = #tpu.pipeline_mode<synchronous>, transform_indices = @transform_1, window_bounds = array<i64: 128, 128>}, {pipeline_mode = #tpu.pipeline_mode<synchronous>, transform_indices = @transform_2, window_bounds = array<i64: 9, 128, 128>}, {pipeline_mode = #tpu.pipeline_mode<synchronous>, transform_indices = @transform_3, window_bounds = array<i64: 16, 128>}, {}, {}, {}, {}, {pipeline_mode = #tpu.pipeline_mode<synchronous>, transform_indices = @transform_8, window_bounds = array<i64: 8, 128>}]} {
    %c0_i32 = arith.constant 0 : i32
    %0 = tpu.memref_slice %arg18[%c0_i32] : memref<4x!tpu.dma_semaphore, #tpu.memory_space<semaphore_mem>> -> memref<1x!tpu.dma_semaphore, #tpu.memory_space<semaphore_mem>>
    %1 = tpu.memref_squeeze %0 : memref<1x!tpu.dma_semaphore, #tpu.memory_space<semaphore_mem>> -> memref<!tpu.dma_semaphore, #tpu.memory_space<semaphore_mem>>
    tpu.enqueue_dma source(%arg5 : memref<9x128x128xbf16, #tpu.memory_space<any>>) target(%arg14 : memref<9x128x128xbf16, #tpu.memory_space<vmem>>) target_semaphore(%1 : memref<!tpu.dma_semaphore, #tpu.memory_space<semaphore_mem>>)
    %c1_i32 = arith.constant 1 : i32
    %2 = tpu.memref_slice %arg18[%c1_i32] : memref<4x!tpu.dma_semaphore, #tpu.memory_space<semaphore_mem>> -> memref<1x!tpu.dma_semaphore, #tpu.memory_space<semaphore_mem>>
    %3 = tpu.memref_squeeze %2 : memref<1x!tpu.dma_semaphore, #tpu.memory_space<semaphore_mem>> -> memref<!tpu.dma_semaphore, #tpu.memory_space<semaphore_mem>>
    tpu.enqueue_dma source(%arg6 : memref<9x128x128xbf16, #tpu.memory_space<any>>) target(%arg15 : memref<9x128x128xbf16, #tpu.memory_space<vmem>>) target_semaphore(%3 : memref<!tpu.dma_semaphore, #tpu.memory_space<semaphore_mem>>)
    %c2_i32 = arith.constant 2 : i32
    %4 = tpu.memref_slice %arg18[%c2_i32] : memref<4x!tpu.dma_semaphore, #tpu.memory_space<semaphore_mem>> -> memref<1x!tpu.dma_semaphore, #tpu.memory_space<semaphore_mem>>
    %5 = tpu.memref_squeeze %4 : memref<1x!tpu.dma_semaphore, #tpu.memory_space<semaphore_mem>> -> memref<!tpu.dma_semaphore, #tpu.memory_space<semaphore_mem>>
    tpu.enqueue_dma source(%arg7 : memref<9x128x128xbf16, #tpu.memory_space<any>>) target(%arg16 : memref<9x128x128xbf16, #tpu.memory_space<vmem>>) target_semaphore(%5 : memref<!tpu.dma_semaphore, #tpu.memory_space<semaphore_mem>>)
    %c3_i32 = arith.constant 3 : i32
    %6 = tpu.memref_slice %arg18[%c3_i32] : memref<4x!tpu.dma_semaphore, #tpu.memory_space<semaphore_mem>> -> memref<1x!tpu.dma_semaphore, #tpu.memory_space<semaphore_mem>>
    %7 = tpu.memref_squeeze %6 : memref<1x!tpu.dma_semaphore, #tpu.memory_space<semaphore_mem>> -> memref<!tpu.dma_semaphore, #tpu.memory_space<semaphore_mem>>
    tpu.enqueue_dma source(%arg8 : memref<128x128xbf16, #tpu.memory_space<any>>) target(%arg17 : memref<128x128xbf16, #tpu.memory_space<vmem>>) target_semaphore(%7 : memref<!tpu.dma_semaphore, #tpu.memory_space<semaphore_mem>>)
    %cst = arith.constant 0.000000e+00 : bf16
    %8 = vector.broadcast %cst : bf16 to vector<24x128xbf16>
    %c200 = arith.constant 200 : index
    %c0 = arith.constant 0 : index
    %9 = vector.load %arg10[%c200, %c0] : memref<224x128xbf16, #tpu.memory_space<vmem>>, vector<24x128xbf16>
    tpu.vector_store %arg10[%c200, %c0], %8 {strides = array<i32>} : memref<224x128xbf16, #tpu.memory_space<vmem>>, vector<24x128xbf16>,
    %c200_0 = arith.constant 200 : index
    %c0_1 = arith.constant 0 : index
    %10 = vector.load %arg11[%c200_0, %c0_1] : memref<224x128xbf16, #tpu.memory_space<vmem>>, vector<24x128xbf16>
    tpu.vector_store %arg11[%c200_0, %c0_1], %8 {strides = array<i32>} : memref<224x128xbf16, #tpu.memory_space<vmem>>, vector<24x128xbf16>,
    %c200_2 = arith.constant 200 : index
    %c0_3 = arith.constant 0 : index
    %11 = vector.load %arg12[%c200_2, %c0_3] : memref<224x128xbf16, #tpu.memory_space<vmem>>, vector<24x128xbf16>
    tpu.vector_store %arg12[%c200_2, %c0_3], %8 {strides = array<i32>} : memref<224x128xbf16, #tpu.memory_space<vmem>>, vector<24x128xbf16>,
    %c0_4 = arith.constant 0 : index
    %c0_5 = arith.constant 0 : index
    %12 = vector.load %arg1[%c0_4, %c0_5] : memref<200x128xbf16, #tpu.memory_space<vmem>>, vector<200x128xbf16>
    %c0_6 = arith.constant 0 : index
    %c0_7 = arith.constant 0 : index
    %13 = vector.load %arg2[%c0_6, %c0_7] : memref<128x128xbf16, #tpu.memory_space<vmem>>, vector<128x128xbf16>
    %cst_8 = arith.constant dense<0.000000e+00> : vector<200x128xf32>
    %14 = tpu.matmul %12, %13, %cst_8 {dimension_numbers = #tpu.dot_dimension_numbers<[1], [0], [0], [1], [0, 0, 1, 1], [], []>} : vector<200x128xbf16>, vector<128x128xbf16>, vector<200x128xf32> -> vector<200x128xf32>
    %c0_9 = arith.constant 0 : index
    %c0_10 = arith.constant 0 : index
    %15 = vector.load %arg4[%c0_9, %c0_10] : memref<16x128xf32, #tpu.memory_space<vmem>>, vector<1x128xf32>
    %16 = vector.broadcast %15 : vector<1x128xf32> to vector<200x128xf32>
    %17 = arith.mulf %14, %16 : vector<200x128xf32>
    %c1 = arith.constant 1 : index
    %c0_11 = arith.constant 0 : index
    %18 = vector.load %arg4[%c1, %c0_11] : memref<16x128xf32, #tpu.memory_space<vmem>>, vector<1x128xf32>
    %19 = vector.broadcast %18 : vector<1x128xf32> to vector<200x128xf32>
    %20 = arith.addf %17, %19 : vector<200x128xf32>
    %cst_12 = arith.constant 0.000000e+00 : f32
    %21 = vector.broadcast %cst_12 : f32 to vector<200x128xf32>
    %22 = arith.cmpf oge, %20, %21 : vector<200x128xf32>
    %cst_13 = arith.constant 0.00999999977 : f32
    %23 = vector.broadcast %cst_13 : f32 to vector<200x128xf32>
    %24 = arith.mulf %23, %20 : vector<200x128xf32>
    %25 = arith.select %22, %20, %24 : vector<200x128xi1>, vector<200x128xf32>
    %26 = arith.truncf %25 : vector<200x128xf32> to vector<200x128xbf16>
    %c0_14 = arith.constant 0 : index
    %c0_15 = arith.constant 0 : index
    %27 = vector.load %arg10[%c0_14, %c0_15] : memref<224x128xbf16, #tpu.memory_space<vmem>>, vector<200x128xbf16>
    tpu.vector_store %arg10[%c0_14, %c0_15], %26 {strides = array<i32>} : memref<224x128xbf16, #tpu.memory_space<vmem>>, vector<200x128xbf16>,
    %c0_16 = arith.constant 0 : index
    %c0_17 = arith.constant 0 : index
    %28 = vector.load %arg10[%c0_16, %c0_17] : memref<224x128xbf16, #tpu.memory_space<vmem>>, vector<200x128xbf16>
    %c0_18 = arith.constant 0 : index
    %c0_19 = arith.constant 0 : index
    %c0_20 = arith.constant 0 : index
    %29 = vector.load %arg3[%c0_18, %c0_19, %c0_20] : memref<9x128x128xbf16, #tpu.memory_space<vmem>>, vector<1x128x128xbf16>
    %30 = vector.shape_cast %29 : vector<1x128x128xbf16> to vector<128x128xbf16>
    %cst_21 = arith.constant dense<0.000000e+00> : vector<200x128xf32>
    %31 = tpu.matmul %28, %30, %cst_21 {dimension_numbers = #tpu.dot_dimension_numbers<[1], [0], [0], [1], [0, 0, 1, 1], [], []>} : vector<200x128xbf16>, vector<128x128xbf16>, vector<200x128xf32> -> vector<200x128xf32>
    %c1_22 = arith.constant 1 : index
    %c0_23 = arith.constant 0 : index
    %32 = vector.load %arg10[%c1_22, %c0_23] : memref<224x128xbf16, #tpu.memory_space<vmem>>, vector<200x128xbf16>
    %c1_24 = arith.constant 1 : index
    %c0_25 = arith.constant 0 : index
    %c0_26 = arith.constant 0 : index
    %33 = vector.load %arg3[%c1_24, %c0_25, %c0_26] : memref<9x128x128xbf16, #tpu.memory_space<vmem>>, vector<1x128x128xbf16>
    %34 = vector.shape_cast %33 : vector<1x128x128xbf16> to vector<128x128xbf16>
    %cst_27 = arith.constant dense<0.000000e+00> : vector<200x128xf32>
    %35 = tpu.matmul %32, %34, %cst_27 {dimension_numbers = #tpu.dot_dimension_numbers<[1], [0], [0], [1], [0, 0, 1, 1], [], []>} : vector<200x128xbf16>, vector<128x128xbf16>, vector<200x128xf32> -> vector<200x128xf32>
    %36 = arith.addf %31, %35 : vector<200x128xf32>
    %c2 = arith.constant 2 : index
    %c0_28 = arith.constant 0 : index
    %37 = vector.load %arg10[%c2, %c0_28] : memref<224x128xbf16, #tpu.memory_space<vmem>>, vector<200x128xbf16>
    %c2_29 = arith.constant 2 : index
    %c0_30 = arith.constant 0 : index
    %c0_31 = arith.constant 0 : index
    %38 = vector.load %arg3[%c2_29, %c0_30, %c0_31] : memref<9x128x128xbf16, #tpu.memory_space<vmem>>, vector<1x128x128xbf16>
    %39 = vector.shape_cast %38 : vector<1x128x128xbf16> to vector<128x128xbf16>
    %cst_32 = arith.constant dense<0.000000e+00> : vector<200x128xf32>
    %40 = tpu.matmul %37, %39, %cst_32 {dimension_numbers = #tpu.dot_dimension_numbers<[1], [0], [0], [1], [0, 0, 1, 1], [], []>} : vector<200x128xbf16>, vector<128x128xbf16>, vector<200x128xf32> -> vector<200x128xf32>
    %41 = arith.addf %36, %40 : vector<200x128xf32>
    %c10 = arith.constant 10 : index
    %c0_33 = arith.constant 0 : index
    %42 = vector.load %arg10[%c10, %c0_33] : memref<224x128xbf16, #tpu.memory_space<vmem>>, vector<200x128xbf16>
    %c3 = arith.constant 3 : index
    %c0_34 = arith.constant 0 : index
    %c0_35 = arith.constant 0 : index
    %43 = vector.load %arg3[%c3, %c0_34, %c0_35] : memref<9x128x128xbf16, #tpu.memory_space<vmem>>, vector<1x128x128xbf16>
    %44 = vector.shape_cast %43 : vector<1x128x128xbf16> to vector<128x128xbf16>
    %cst_36 = arith.constant dense<0.000000e+00> : vector<200x128xf32>
    %45 = tpu.matmul %42, %44, %cst_36 {dimension_numbers = #tpu.dot_dimension_numbers<[1], [0], [0], [1], [0, 0, 1, 1], [], []>} : vector<200x128xbf16>, vector<128x128xbf16>, vector<200x128xf32> -> vector<200x128xf32>
    %46 = arith.addf %41, %45 : vector<200x128xf32>
    %c11 = arith.constant 11 : index
    %c0_37 = arith.constant 0 : index
    %47 = vector.load %arg10[%c11, %c0_37] : memref<224x128xbf16, #tpu.memory_space<vmem>>, vector<200x128xbf16>
    %c4 = arith.constant 4 : index
    %c0_38 = arith.constant 0 : index
    %c0_39 = arith.constant 0 : index
    %48 = vector.load %arg3[%c4, %c0_38, %c0_39] : memref<9x128x128xbf16, #tpu.memory_space<vmem>>, vector<1x128x128xbf16>
    %49 = vector.shape_cast %48 : vector<1x128x128xbf16> to vector<128x128xbf16>
    %cst_40 = arith.constant dense<0.000000e+00> : vector<200x128xf32>
    %50 = tpu.matmul %47, %49, %cst_40 {dimension_numbers = #tpu.dot_dimension_numbers<[1], [0], [0], [1], [0, 0, 1, 1], [], []>} : vector<200x128xbf16>, vector<128x128xbf16>, vector<200x128xf32> -> vector<200x128xf32>
    %51 = arith.addf %46, %50 : vector<200x128xf32>
    %c12 = arith.constant 12 : index
    %c0_41 = arith.constant 0 : index
    %52 = vector.load %arg10[%c12, %c0_41] : memref<224x128xbf16, #tpu.memory_space<vmem>>, vector<200x128xbf16>
    %c5 = arith.constant 5 : index
    %c0_42 = arith.constant 0 : index
    %c0_43 = arith.constant 0 : index
    %53 = vector.load %arg3[%c5, %c0_42, %c0_43] : memref<9x128x128xbf16, #tpu.memory_space<vmem>>, vector<1x128x128xbf16>
    %54 = vector.shape_cast %53 : vector<1x128x128xbf16> to vector<128x128xbf16>
    %cst_44 = arith.constant dense<0.000000e+00> : vector<200x128xf32>
    %55 = tpu.matmul %52, %54, %cst_44 {dimension_numbers = #tpu.dot_dimension_numbers<[1], [0], [0], [1], [0, 0, 1, 1], [], []>} : vector<200x128xbf16>, vector<128x128xbf16>, vector<200x128xf32> -> vector<200x128xf32>
    %56 = arith.addf %51, %55 : vector<200x128xf32>
    %c20 = arith.constant 20 : index
    %c0_45 = arith.constant 0 : index
    %57 = vector.load %arg10[%c20, %c0_45] : memref<224x128xbf16, #tpu.memory_space<vmem>>, vector<200x128xbf16>
    %c6 = arith.constant 6 : index
    %c0_46 = arith.constant 0 : index
    %c0_47 = arith.constant 0 : index
    %58 = vector.load %arg3[%c6, %c0_46, %c0_47] : memref<9x128x128xbf16, #tpu.memory_space<vmem>>, vector<1x128x128xbf16>
    %59 = vector.shape_cast %58 : vector<1x128x128xbf16> to vector<128x128xbf16>
    %cst_48 = arith.constant dense<0.000000e+00> : vector<200x128xf32>
    %60 = tpu.matmul %57, %59, %cst_48 {dimension_numbers = #tpu.dot_dimension_numbers<[1], [0], [0], [1], [0, 0, 1, 1], [], []>} : vector<200x128xbf16>, vector<128x128xbf16>, vector<200x128xf32> -> vector<200x128xf32>
    %61 = arith.addf %56, %60 : vector<200x128xf32>
    %c21 = arith.constant 21 : index
    %c0_49 = arith.constant 0 : index
    %62 = vector.load %arg10[%c21, %c0_49] : memref<224x128xbf16, #tpu.memory_space<vmem>>, vector<200x128xbf16>
    %c7 = arith.constant 7 : index
    %c0_50 = arith.constant 0 : index
    %c0_51 = arith.constant 0 : index
    %63 = vector.load %arg3[%c7, %c0_50, %c0_51] : memref<9x128x128xbf16, #tpu.memory_space<vmem>>, vector<1x128x128xbf16>
    %64 = vector.shape_cast %63 : vector<1x128x128xbf16> to vector<128x128xbf16>
    %cst_52 = arith.constant dense<0.000000e+00> : vector<200x128xf32>
    %65 = tpu.matmul %62, %64, %cst_52 {dimension_numbers = #tpu.dot_dimension_numbers<[1], [0], [0], [1], [0, 0, 1, 1], [], []>} : vector<200x128xbf16>, vector<128x128xbf16>, vector<200x128xf32> -> vector<200x128xf32>
    %66 = arith.addf %61, %65 : vector<200x128xf32>
    %c22 = arith.constant 22 : index
    %c0_53 = arith.constant 0 : index
    %67 = vector.load %arg10[%c22, %c0_53] : memref<224x128xbf16, #tpu.memory_space<vmem>>, vector<200x128xbf16>
    %c8 = arith.constant 8 : index
    %c0_54 = arith.constant 0 : index
    %c0_55 = arith.constant 0 : index
    %68 = vector.load %arg3[%c8, %c0_54, %c0_55] : memref<9x128x128xbf16, #tpu.memory_space<vmem>>, vector<1x128x128xbf16>
    %69 = vector.shape_cast %68 : vector<1x128x128xbf16> to vector<128x128xbf16>
    %cst_56 = arith.constant dense<0.000000e+00> : vector<200x128xf32>
    %70 = tpu.matmul %67, %69, %cst_56 {dimension_numbers = #tpu.dot_dimension_numbers<[1], [0], [0], [1], [0, 0, 1, 1], [], []>} : vector<200x128xbf16>, vector<128x128xbf16>, vector<200x128xf32> -> vector<200x128xf32>
    %71 = arith.addf %66, %70 : vector<200x128xf32>
    %c2_57 = arith.constant 2 : index
    %c0_58 = arith.constant 0 : index
    %72 = vector.load %arg4[%c2_57, %c0_58] : memref<16x128xf32, #tpu.memory_space<vmem>>, vector<1x128xf32>
    %73 = vector.broadcast %72 : vector<1x128xf32> to vector<200x128xf32>
    %74 = arith.mulf %71, %73 : vector<200x128xf32>
    %c3_59 = arith.constant 3 : index
    %c0_60 = arith.constant 0 : index
    %75 = vector.load %arg4[%c3_59, %c0_60] : memref<16x128xf32, #tpu.memory_space<vmem>>, vector<1x128xf32>
    %76 = vector.broadcast %75 : vector<1x128xf32> to vector<200x128xf32>
    %77 = arith.addf %74, %76 : vector<200x128xf32>
    %cst_61 = arith.constant 0.000000e+00 : f32
    %78 = vector.broadcast %cst_61 : f32 to vector<200x128xf32>
    %79 = arith.cmpf oge, %77, %78 : vector<200x128xf32>
    %cst_62 = arith.constant 0.00999999977 : f32
    %80 = vector.broadcast %cst_62 : f32 to vector<200x128xf32>
    %81 = arith.mulf %80, %77 : vector<200x128xf32>
    %82 = arith.select %79, %77, %81 : vector<200x128xi1>, vector<200x128xf32>
    %83 = arith.truncf %82 : vector<200x128xf32> to vector<200x128xbf16>
    %c0_63 = arith.constant 0 : index
    %c0_64 = arith.constant 0 : index
    %84 = vector.load %arg11[%c0_63, %c0_64] : memref<224x128xbf16, #tpu.memory_space<vmem>>, vector<200x128xbf16>
    tpu.vector_store %arg11[%c0_63, %c0_64], %83 {strides = array<i32>} : memref<224x128xbf16, #tpu.memory_space<vmem>>, vector<200x128xbf16>,
    %c0_i32_65 = arith.constant 0 : i32
    %85 = tpu.memref_slice %arg18[%c0_i32_65] : memref<4x!tpu.dma_semaphore, #tpu.memory_space<semaphore_mem>> -> memref<1x!tpu.dma_semaphore, #tpu.memory_space<semaphore_mem>>
    %86 = tpu.memref_squeeze %85 : memref<1x!tpu.dma_semaphore, #tpu.memory_space<semaphore_mem>> -> memref<!tpu.dma_semaphore, #tpu.memory_space<semaphore_mem>>
    tpu.wait_dma2 semaphore(%86 : memref<!tpu.dma_semaphore, #tpu.memory_space<semaphore_mem>>) src(%arg5 : memref<9x128x128xbf16, #tpu.memory_space<any>>) dst(%arg14 : memref<9x128x128xbf16, #tpu.memory_space<vmem>>)
    %c0_66 = arith.constant 0 : index
    %c0_67 = arith.constant 0 : index
    %87 = vector.load %arg11[%c0_66, %c0_67] : memref<224x128xbf16, #tpu.memory_space<vmem>>, vector<200x128xbf16>
    %c0_68 = arith.constant 0 : index
    %c0_69 = arith.constant 0 : index
    %c0_70 = arith.constant 0 : index
    %88 = vector.load %arg14[%c0_68, %c0_69, %c0_70] : memref<9x128x128xbf16, #tpu.memory_space<vmem>>, vector<1x128x128xbf16>
    %89 = vector.shape_cast %88 : vector<1x128x128xbf16> to vector<128x128xbf16>
    %cst_71 = arith.constant dense<0.000000e+00> : vector<200x128xf32>
    %90 = tpu.matmul %87, %89, %cst_71 {dimension_numbers = #tpu.dot_dimension_numbers<[1], [0], [0], [1], [0, 0, 1, 1], [], []>} : vector<200x128xbf16>, vector<128x128xbf16>, vector<200x128xf32> -> vector<200x128xf32>
    %c1_72 = arith.constant 1 : index
    %c0_73 = arith.constant 0 : index
    %91 = vector.load %arg11[%c1_72, %c0_73] : memref<224x128xbf16, #tpu.memory_space<vmem>>, vector<200x128xbf16>
    %c1_74 = arith.constant 1 : index
    %c0_75 = arith.constant 0 : index
    %c0_76 = arith.constant 0 : index
    %92 = vector.load %arg14[%c1_74, %c0_75, %c0_76] : memref<9x128x128xbf16, #tpu.memory_space<vmem>>, vector<1x128x128xbf16>
    %93 = vector.shape_cast %92 : vector<1x128x128xbf16> to vector<128x128xbf16>
    %cst_77 = arith.constant dense<0.000000e+00> : vector<200x128xf32>
    %94 = tpu.matmul %91, %93, %cst_77 {dimension_numbers = #tpu.dot_dimension_numbers<[1], [0], [0], [1], [0, 0, 1, 1], [], []>} : vector<200x128xbf16>, vector<128x128xbf16>, vector<200x128xf32> -> vector<200x128xf32>
    %95 = arith.addf %90, %94 : vector<200x128xf32>
    %c2_78 = arith.constant 2 : index
    %c0_79 = arith.constant 0 : index
    %96 = vector.load %arg11[%c2_78, %c0_79] : memref<224x128xbf16, #tpu.memory_space<vmem>>, vector<200x128xbf16>
    %c2_80 = arith.constant 2 : index
    %c0_81 = arith.constant 0 : index
    %c0_82 = arith.constant 0 : index
    %97 = vector.load %arg14[%c2_80, %c0_81, %c0_82] : memref<9x128x128xbf16, #tpu.memory_space<vmem>>, vector<1x128x128xbf16>
    %98 = vector.shape_cast %97 : vector<1x128x128xbf16> to vector<128x128xbf16>
    %cst_83 = arith.constant dense<0.000000e+00> : vector<200x128xf32>
    %99 = tpu.matmul %96, %98, %cst_83 {dimension_numbers = #tpu.dot_dimension_numbers<[1], [0], [0], [1], [0, 0, 1, 1], [], []>} : vector<200x128xbf16>, vector<128x128xbf16>, vector<200x128xf32> -> vector<200x128xf32>
    %100 = arith.addf %95, %99 : vector<200x128xf32>
    %c10_84 = arith.constant 10 : index
    %c0_85 = arith.constant 0 : index
    %101 = vector.load %arg11[%c10_84, %c0_85] : memref<224x128xbf16, #tpu.memory_space<vmem>>, vector<200x128xbf16>
    %c3_86 = arith.constant 3 : index
    %c0_87 = arith.constant 0 : index
    %c0_88 = arith.constant 0 : index
    %102 = vector.load %arg14[%c3_86, %c0_87, %c0_88] : memref<9x128x128xbf16, #tpu.memory_space<vmem>>, vector<1x128x128xbf16>
    %103 = vector.shape_cast %102 : vector<1x128x128xbf16> to vector<128x128xbf16>
    %cst_89 = arith.constant dense<0.000000e+00> : vector<200x128xf32>
    %104 = tpu.matmul %101, %103, %cst_89 {dimension_numbers = #tpu.dot_dimension_numbers<[1], [0], [0], [1], [0, 0, 1, 1], [], []>} : vector<200x128xbf16>, vector<128x128xbf16>, vector<200x128xf32> -> vector<200x128xf32>
    %105 = arith.addf %100, %104 : vector<200x128xf32>
    %c11_90 = arith.constant 11 : index
    %c0_91 = arith.constant 0 : index
    %106 = vector.load %arg11[%c11_90, %c0_91] : memref<224x128xbf16, #tpu.memory_space<vmem>>, vector<200x128xbf16>
    %c4_92 = arith.constant 4 : index
    %c0_93 = arith.constant 0 : index
    %c0_94 = arith.constant 0 : index
    %107 = vector.load %arg14[%c4_92, %c0_93, %c0_94] : memref<9x128x128xbf16, #tpu.memory_space<vmem>>, vector<1x128x128xbf16>
    %108 = vector.shape_cast %107 : vector<1x128x128xbf16> to vector<128x128xbf16>
    %cst_95 = arith.constant dense<0.000000e+00> : vector<200x128xf32>
    %109 = tpu.matmul %106, %108, %cst_95 {dimension_numbers = #tpu.dot_dimension_numbers<[1], [0], [0], [1], [0, 0, 1, 1], [], []>} : vector<200x128xbf16>, vector<128x128xbf16>, vector<200x128xf32> -> vector<200x128xf32>
    %110 = arith.addf %105, %109 : vector<200x128xf32>
    %c12_96 = arith.constant 12 : index
    %c0_97 = arith.constant 0 : index
    %111 = vector.load %arg11[%c12_96, %c0_97] : memref<224x128xbf16, #tpu.memory_space<vmem>>, vector<200x128xbf16>
    %c5_98 = arith.constant 5 : index
    %c0_99 = arith.constant 0 : index
    %c0_100 = arith.constant 0 : index
    %112 = vector.load %arg14[%c5_98, %c0_99, %c0_100] : memref<9x128x128xbf16, #tpu.memory_space<vmem>>, vector<1x128x128xbf16>
    %113 = vector.shape_cast %112 : vector<1x128x128xbf16> to vector<128x128xbf16>
    %cst_101 = arith.constant dense<0.000000e+00> : vector<200x128xf32>
    %114 = tpu.matmul %111, %113, %cst_101 {dimension_numbers = #tpu.dot_dimension_numbers<[1], [0], [0], [1], [0, 0, 1, 1], [], []>} : vector<200x128xbf16>, vector<128x128xbf16>, vector<200x128xf32> -> vector<200x128xf32>
    %115 = arith.addf %110, %114 : vector<200x128xf32>
    %c20_102 = arith.constant 20 : index
    %c0_103 = arith.constant 0 : index
    %116 = vector.load %arg11[%c20_102, %c0_103] : memref<224x128xbf16, #tpu.memory_space<vmem>>, vector<200x128xbf16>
    %c6_104 = arith.constant 6 : index
    %c0_105 = arith.constant 0 : index
    %c0_106 = arith.constant 0 : index
    %117 = vector.load %arg14[%c6_104, %c0_105, %c0_106] : memref<9x128x128xbf16, #tpu.memory_space<vmem>>, vector<1x128x128xbf16>
    %118 = vector.shape_cast %117 : vector<1x128x128xbf16> to vector<128x128xbf16>
    %cst_107 = arith.constant dense<0.000000e+00> : vector<200x128xf32>
    %119 = tpu.matmul %116, %118, %cst_107 {dimension_numbers = #tpu.dot_dimension_numbers<[1], [0], [0], [1], [0, 0, 1, 1], [], []>} : vector<200x128xbf16>, vector<128x128xbf16>, vector<200x128xf32> -> vector<200x128xf32>
    %120 = arith.addf %115, %119 : vector<200x128xf32>
    %c21_108 = arith.constant 21 : index
    %c0_109 = arith.constant 0 : index
    %121 = vector.load %arg11[%c21_108, %c0_109] : memref<224x128xbf16, #tpu.memory_space<vmem>>, vector<200x128xbf16>
    %c7_110 = arith.constant 7 : index
    %c0_111 = arith.constant 0 : index
    %c0_112 = arith.constant 0 : index
    %122 = vector.load %arg14[%c7_110, %c0_111, %c0_112] : memref<9x128x128xbf16, #tpu.memory_space<vmem>>, vector<1x128x128xbf16>
    %123 = vector.shape_cast %122 : vector<1x128x128xbf16> to vector<128x128xbf16>
    %cst_113 = arith.constant dense<0.000000e+00> : vector<200x128xf32>
    %124 = tpu.matmul %121, %123, %cst_113 {dimension_numbers = #tpu.dot_dimension_numbers<[1], [0], [0], [1], [0, 0, 1, 1], [], []>} : vector<200x128xbf16>, vector<128x128xbf16>, vector<200x128xf32> -> vector<200x128xf32>
    %125 = arith.addf %120, %124 : vector<200x128xf32>
    %c22_114 = arith.constant 22 : index
    %c0_115 = arith.constant 0 : index
    %126 = vector.load %arg11[%c22_114, %c0_115] : memref<224x128xbf16, #tpu.memory_space<vmem>>, vector<200x128xbf16>
    %c8_116 = arith.constant 8 : index
    %c0_117 = arith.constant 0 : index
    %c0_118 = arith.constant 0 : index
    %127 = vector.load %arg14[%c8_116, %c0_117, %c0_118] : memref<9x128x128xbf16, #tpu.memory_space<vmem>>, vector<1x128x128xbf16>
    %128 = vector.shape_cast %127 : vector<1x128x128xbf16> to vector<128x128xbf16>
    %cst_119 = arith.constant dense<0.000000e+00> : vector<200x128xf32>
    %129 = tpu.matmul %126, %128, %cst_119 {dimension_numbers = #tpu.dot_dimension_numbers<[1], [0], [0], [1], [0, 0, 1, 1], [], []>} : vector<200x128xbf16>, vector<128x128xbf16>, vector<200x128xf32> -> vector<200x128xf32>
    %130 = arith.addf %125, %129 : vector<200x128xf32>
    %c4_120 = arith.constant 4 : index
    %c0_121 = arith.constant 0 : index
    %131 = vector.load %arg4[%c4_120, %c0_121] : memref<16x128xf32, #tpu.memory_space<vmem>>, vector<1x128xf32>
    %132 = vector.broadcast %131 : vector<1x128xf32> to vector<200x128xf32>
    %133 = arith.mulf %130, %132 : vector<200x128xf32>
    %c5_122 = arith.constant 5 : index
    %c0_123 = arith.constant 0 : index
    %134 = vector.load %arg4[%c5_122, %c0_123] : memref<16x128xf32, #tpu.memory_space<vmem>>, vector<1x128xf32>
    %135 = vector.broadcast %134 : vector<1x128xf32> to vector<200x128xf32>
    %136 = arith.addf %133, %135 : vector<200x128xf32>
    %cst_124 = arith.constant 0.000000e+00 : f32
    %137 = vector.broadcast %cst_124 : f32 to vector<200x128xf32>
    %138 = arith.cmpf oge, %136, %137 : vector<200x128xf32>
    %cst_125 = arith.constant 0.00999999977 : f32
    %139 = vector.broadcast %cst_125 : f32 to vector<200x128xf32>
    %140 = arith.mulf %139, %136 : vector<200x128xf32>
    %141 = arith.select %138, %136, %140 : vector<200x128xi1>, vector<200x128xf32>
    %142 = arith.truncf %141 : vector<200x128xf32> to vector<200x128xbf16>
    %c0_126 = arith.constant 0 : index
    %c0_127 = arith.constant 0 : index
    %143 = vector.load %arg12[%c0_126, %c0_127] : memref<224x128xbf16, #tpu.memory_space<vmem>>, vector<200x128xbf16>
    tpu.vector_store %arg12[%c0_126, %c0_127], %142 {strides = array<i32>} : memref<224x128xbf16, #tpu.memory_space<vmem>>, vector<200x128xbf16>,
    %c1_i32_128 = arith.constant 1 : i32
    %144 = tpu.memref_slice %arg18[%c1_i32_128] : memref<4x!tpu.dma_semaphore, #tpu.memory_space<semaphore_mem>> -> memref<1x!tpu.dma_semaphore, #tpu.memory_space<semaphore_mem>>
    %145 = tpu.memref_squeeze %144 : memref<1x!tpu.dma_semaphore, #tpu.memory_space<semaphore_mem>> -> memref<!tpu.dma_semaphore, #tpu.memory_space<semaphore_mem>>
    tpu.wait_dma2 semaphore(%145 : memref<!tpu.dma_semaphore, #tpu.memory_space<semaphore_mem>>) src(%arg6 : memref<9x128x128xbf16, #tpu.memory_space<any>>) dst(%arg15 : memref<9x128x128xbf16, #tpu.memory_space<vmem>>)
    %c0_129 = arith.constant 0 : index
    %c0_130 = arith.constant 0 : index
    %146 = vector.load %arg12[%c0_129, %c0_130] : memref<224x128xbf16, #tpu.memory_space<vmem>>, vector<200x128xbf16>
    %c0_131 = arith.constant 0 : index
    %c0_132 = arith.constant 0 : index
    %c0_133 = arith.constant 0 : index
    %147 = vector.load %arg15[%c0_131, %c0_132, %c0_133] : memref<9x128x128xbf16, #tpu.memory_space<vmem>>, vector<1x128x128xbf16>
    %148 = vector.shape_cast %147 : vector<1x128x128xbf16> to vector<128x128xbf16>
    %cst_134 = arith.constant dense<0.000000e+00> : vector<200x128xf32>
    %149 = tpu.matmul %146, %148, %cst_134 {dimension_numbers = #tpu.dot_dimension_numbers<[1], [0], [0], [1], [0, 0, 1, 1], [], []>} : vector<200x128xbf16>, vector<128x128xbf16>, vector<200x128xf32> -> vector<200x128xf32>
    %c1_135 = arith.constant 1 : index
    %c0_136 = arith.constant 0 : index
    %150 = vector.load %arg12[%c1_135, %c0_136] : memref<224x128xbf16, #tpu.memory_space<vmem>>, vector<200x128xbf16>
    %c1_137 = arith.constant 1 : index
    %c0_138 = arith.constant 0 : index
    %c0_139 = arith.constant 0 : index
    %151 = vector.load %arg15[%c1_137, %c0_138, %c0_139] : memref<9x128x128xbf16, #tpu.memory_space<vmem>>, vector<1x128x128xbf16>
    %152 = vector.shape_cast %151 : vector<1x128x128xbf16> to vector<128x128xbf16>
    %cst_140 = arith.constant dense<0.000000e+00> : vector<200x128xf32>
    %153 = tpu.matmul %150, %152, %cst_140 {dimension_numbers = #tpu.dot_dimension_numbers<[1], [0], [0], [1], [0, 0, 1, 1], [], []>} : vector<200x128xbf16>, vector<128x128xbf16>, vector<200x128xf32> -> vector<200x128xf32>
    %154 = arith.addf %149, %153 : vector<200x128xf32>
    %c2_141 = arith.constant 2 : index
    %c0_142 = arith.constant 0 : index
    %155 = vector.load %arg12[%c2_141, %c0_142] : memref<224x128xbf16, #tpu.memory_space<vmem>>, vector<200x128xbf16>
    %c2_143 = arith.constant 2 : index
    %c0_144 = arith.constant 0 : index
    %c0_145 = arith.constant 0 : index
    %156 = vector.load %arg15[%c2_143, %c0_144, %c0_145] : memref<9x128x128xbf16, #tpu.memory_space<vmem>>, vector<1x128x128xbf16>
    %157 = vector.shape_cast %156 : vector<1x128x128xbf16> to vector<128x128xbf16>
    %cst_146 = arith.constant dense<0.000000e+00> : vector<200x128xf32>
    %158 = tpu.matmul %155, %157, %cst_146 {dimension_numbers = #tpu.dot_dimension_numbers<[1], [0], [0], [1], [0, 0, 1, 1], [], []>} : vector<200x128xbf16>, vector<128x128xbf16>, vector<200x128xf32> -> vector<200x128xf32>
    %159 = arith.addf %154, %158 : vector<200x128xf32>
    %c10_147 = arith.constant 10 : index
    %c0_148 = arith.constant 0 : index
    %160 = vector.load %arg12[%c10_147, %c0_148] : memref<224x128xbf16, #tpu.memory_space<vmem>>, vector<200x128xbf16>
    %c3_149 = arith.constant 3 : index
    %c0_150 = arith.constant 0 : index
    %c0_151 = arith.constant 0 : index
    %161 = vector.load %arg15[%c3_149, %c0_150, %c0_151] : memref<9x128x128xbf16, #tpu.memory_space<vmem>>, vector<1x128x128xbf16>
    %162 = vector.shape_cast %161 : vector<1x128x128xbf16> to vector<128x128xbf16>
    %cst_152 = arith.constant dense<0.000000e+00> : vector<200x128xf32>
    %163 = tpu.matmul %160, %162, %cst_152 {dimension_numbers = #tpu.dot_dimension_numbers<[1], [0], [0], [1], [0, 0, 1, 1], [], []>} : vector<200x128xbf16>, vector<128x128xbf16>, vector<200x128xf32> -> vector<200x128xf32>
    %164 = arith.addf %159, %163 : vector<200x128xf32>
    %c11_153 = arith.constant 11 : index
    %c0_154 = arith.constant 0 : index
    %165 = vector.load %arg12[%c11_153, %c0_154] : memref<224x128xbf16, #tpu.memory_space<vmem>>, vector<200x128xbf16>
    %c4_155 = arith.constant 4 : index
    %c0_156 = arith.constant 0 : index
    %c0_157 = arith.constant 0 : index
    %166 = vector.load %arg15[%c4_155, %c0_156, %c0_157] : memref<9x128x128xbf16, #tpu.memory_space<vmem>>, vector<1x128x128xbf16>
    %167 = vector.shape_cast %166 : vector<1x128x128xbf16> to vector<128x128xbf16>
    %cst_158 = arith.constant dense<0.000000e+00> : vector<200x128xf32>
    %168 = tpu.matmul %165, %167, %cst_158 {dimension_numbers = #tpu.dot_dimension_numbers<[1], [0], [0], [1], [0, 0, 1, 1], [], []>} : vector<200x128xbf16>, vector<128x128xbf16>, vector<200x128xf32> -> vector<200x128xf32>
    %169 = arith.addf %164, %168 : vector<200x128xf32>
    %c12_159 = arith.constant 12 : index
    %c0_160 = arith.constant 0 : index
    %170 = vector.load %arg12[%c12_159, %c0_160] : memref<224x128xbf16, #tpu.memory_space<vmem>>, vector<200x128xbf16>
    %c5_161 = arith.constant 5 : index
    %c0_162 = arith.constant 0 : index
    %c0_163 = arith.constant 0 : index
    %171 = vector.load %arg15[%c5_161, %c0_162, %c0_163] : memref<9x128x128xbf16, #tpu.memory_space<vmem>>, vector<1x128x128xbf16>
    %172 = vector.shape_cast %171 : vector<1x128x128xbf16> to vector<128x128xbf16>
    %cst_164 = arith.constant dense<0.000000e+00> : vector<200x128xf32>
    %173 = tpu.matmul %170, %172, %cst_164 {dimension_numbers = #tpu.dot_dimension_numbers<[1], [0], [0], [1], [0, 0, 1, 1], [], []>} : vector<200x128xbf16>, vector<128x128xbf16>, vector<200x128xf32> -> vector<200x128xf32>
    %174 = arith.addf %169, %173 : vector<200x128xf32>
    %c20_165 = arith.constant 20 : index
    %c0_166 = arith.constant 0 : index
    %175 = vector.load %arg12[%c20_165, %c0_166] : memref<224x128xbf16, #tpu.memory_space<vmem>>, vector<200x128xbf16>
    %c6_167 = arith.constant 6 : index
    %c0_168 = arith.constant 0 : index
    %c0_169 = arith.constant 0 : index
    %176 = vector.load %arg15[%c6_167, %c0_168, %c0_169] : memref<9x128x128xbf16, #tpu.memory_space<vmem>>, vector<1x128x128xbf16>
    %177 = vector.shape_cast %176 : vector<1x128x128xbf16> to vector<128x128xbf16>
    %cst_170 = arith.constant dense<0.000000e+00> : vector<200x128xf32>
    %178 = tpu.matmul %175, %177, %cst_170 {dimension_numbers = #tpu.dot_dimension_numbers<[1], [0], [0], [1], [0, 0, 1, 1], [], []>} : vector<200x128xbf16>, vector<128x128xbf16>, vector<200x128xf32> -> vector<200x128xf32>
    %179 = arith.addf %174, %178 : vector<200x128xf32>
    %c21_171 = arith.constant 21 : index
    %c0_172 = arith.constant 0 : index
    %180 = vector.load %arg12[%c21_171, %c0_172] : memref<224x128xbf16, #tpu.memory_space<vmem>>, vector<200x128xbf16>
    %c7_173 = arith.constant 7 : index
    %c0_174 = arith.constant 0 : index
    %c0_175 = arith.constant 0 : index
    %181 = vector.load %arg15[%c7_173, %c0_174, %c0_175] : memref<9x128x128xbf16, #tpu.memory_space<vmem>>, vector<1x128x128xbf16>
    %182 = vector.shape_cast %181 : vector<1x128x128xbf16> to vector<128x128xbf16>
    %cst_176 = arith.constant dense<0.000000e+00> : vector<200x128xf32>
    %183 = tpu.matmul %180, %182, %cst_176 {dimension_numbers = #tpu.dot_dimension_numbers<[1], [0], [0], [1], [0, 0, 1, 1], [], []>} : vector<200x128xbf16>, vector<128x128xbf16>, vector<200x128xf32> -> vector<200x128xf32>
    %184 = arith.addf %179, %183 : vector<200x128xf32>
    %c22_177 = arith.constant 22 : index
    %c0_178 = arith.constant 0 : index
    %185 = vector.load %arg12[%c22_177, %c0_178] : memref<224x128xbf16, #tpu.memory_space<vmem>>, vector<200x128xbf16>
    %c8_179 = arith.constant 8 : index
    %c0_180 = arith.constant 0 : index
    %c0_181 = arith.constant 0 : index
    %186 = vector.load %arg15[%c8_179, %c0_180, %c0_181] : memref<9x128x128xbf16, #tpu.memory_space<vmem>>, vector<1x128x128xbf16>
    %187 = vector.shape_cast %186 : vector<1x128x128xbf16> to vector<128x128xbf16>
    %cst_182 = arith.constant dense<0.000000e+00> : vector<200x128xf32>
    %188 = tpu.matmul %185, %187, %cst_182 {dimension_numbers = #tpu.dot_dimension_numbers<[1], [0], [0], [1], [0, 0, 1, 1], [], []>} : vector<200x128xbf16>, vector<128x128xbf16>, vector<200x128xf32> -> vector<200x128xf32>
    %189 = arith.addf %184, %188 : vector<200x128xf32>
    %c6_183 = arith.constant 6 : index
    %c0_184 = arith.constant 0 : index
    %190 = vector.load %arg4[%c6_183, %c0_184] : memref<16x128xf32, #tpu.memory_space<vmem>>, vector<1x128xf32>
    %191 = vector.broadcast %190 : vector<1x128xf32> to vector<200x128xf32>
    %192 = arith.mulf %189, %191 : vector<200x128xf32>
    %c7_185 = arith.constant 7 : index
    %c0_186 = arith.constant 0 : index
    %193 = vector.load %arg4[%c7_185, %c0_186] : memref<16x128xf32, #tpu.memory_space<vmem>>, vector<1x128xf32>
    %194 = vector.broadcast %193 : vector<1x128xf32> to vector<200x128xf32>
    %195 = arith.addf %192, %194 : vector<200x128xf32>
    %cst_187 = arith.constant 0.000000e+00 : f32
    %196 = vector.broadcast %cst_187 : f32 to vector<200x128xf32>
    %197 = arith.cmpf oge, %195, %196 : vector<200x128xf32>
    %cst_188 = arith.constant 0.00999999977 : f32
    %198 = vector.broadcast %cst_188 : f32 to vector<200x128xf32>
    %199 = arith.mulf %198, %195 : vector<200x128xf32>
    %200 = arith.select %197, %195, %199 : vector<200x128xi1>, vector<200x128xf32>
    %c0_189 = arith.constant 0 : index
    %c0_190 = arith.constant 0 : index
    %201 = vector.load %arg13[%c0_189, %c0_190] : memref<200x128xf32, #tpu.memory_space<vmem>>, vector<200x128xf32>
    tpu.vector_store %arg13[%c0_189, %c0_190], %200 {strides = array<i32>} : memref<200x128xf32, #tpu.memory_space<vmem>>, vector<200x128xf32>,
    %c2_i32_191 = arith.constant 2 : i32
    %202 = tpu.memref_slice %arg18[%c2_i32_191] : memref<4x!tpu.dma_semaphore, #tpu.memory_space<semaphore_mem>> -> memref<1x!tpu.dma_semaphore, #tpu.memory_space<semaphore_mem>>
    %203 = tpu.memref_squeeze %202 : memref<1x!tpu.dma_semaphore, #tpu.memory_space<semaphore_mem>> -> memref<!tpu.dma_semaphore, #tpu.memory_space<semaphore_mem>>
    tpu.wait_dma2 semaphore(%203 : memref<!tpu.dma_semaphore, #tpu.memory_space<semaphore_mem>>) src(%arg7 : memref<9x128x128xbf16, #tpu.memory_space<any>>) dst(%arg16 : memref<9x128x128xbf16, #tpu.memory_space<vmem>>)
    %c0_192 = arith.constant 0 : index
    %c0_193 = arith.constant 0 : index
    %204 = tpu.strided_load %arg13[%c0_192, %c0_193] {strides = array<i32: 100, 1>} : memref<200x128xf32, #tpu.memory_space<vmem>>, vector<2x128xf32>
    %205 = arith.truncf %204 : vector<2x128xf32> to vector<2x128xbf16>
    %c0_194 = arith.constant 0 : index
    %c0_195 = arith.constant 0 : index
    %c0_196 = arith.constant 0 : index
    %206 = vector.load %arg16[%c0_194, %c0_195, %c0_196] : memref<9x128x128xbf16, #tpu.memory_space<vmem>>, vector<1x128x128xbf16>
    %207 = vector.shape_cast %206 : vector<1x128x128xbf16> to vector<128x128xbf16>
    %cst_197 = arith.constant dense<0.000000e+00> : vector<2x128xf32>
    %208 = tpu.matmul %205, %207, %cst_197 {dimension_numbers = #tpu.dot_dimension_numbers<[1], [0], [0], [1], [0, 0, 1, 1], [], []>} : vector<2x128xbf16>, vector<128x128xbf16>, vector<2x128xf32> -> vector<2x128xf32>
    %c1_198 = arith.constant 1 : index
    %c0_199 = arith.constant 0 : index
    %209 = tpu.strided_load %arg13[%c1_198, %c0_199] {strides = array<i32: 100, 1>} : memref<200x128xf32, #tpu.memory_space<vmem>>, vector<2x128xf32>
    %210 = arith.truncf %209 : vector<2x128xf32> to vector<2x128xbf16>
    %c1_200 = arith.constant 1 : index
    %c0_201 = arith.constant 0 : index
    %c0_202 = arith.constant 0 : index
    %211 = vector.load %arg16[%c1_200, %c0_201, %c0_202] : memref<9x128x128xbf16, #tpu.memory_space<vmem>>, vector<1x128x128xbf16>
    %212 = vector.shape_cast %211 : vector<1x128x128xbf16> to vector<128x128xbf16>
    %cst_203 = arith.constant dense<0.000000e+00> : vector<2x128xf32>
    %213 = tpu.matmul %210, %212, %cst_203 {dimension_numbers = #tpu.dot_dimension_numbers<[1], [0], [0], [1], [0, 0, 1, 1], [], []>} : vector<2x128xbf16>, vector<128x128xbf16>, vector<2x128xf32> -> vector<2x128xf32>
    %214 = arith.addf %208, %213 : vector<2x128xf32>
    %c2_204 = arith.constant 2 : index
    %c0_205 = arith.constant 0 : index
    %215 = tpu.strided_load %arg13[%c2_204, %c0_205] {strides = array<i32: 100, 1>} : memref<200x128xf32, #tpu.memory_space<vmem>>, vector<2x128xf32>
    %216 = arith.truncf %215 : vector<2x128xf32> to vector<2x128xbf16>
    %c2_206 = arith.constant 2 : index
    %c0_207 = arith.constant 0 : index
    %c0_208 = arith.constant 0 : index
    %217 = vector.load %arg16[%c2_206, %c0_207, %c0_208] : memref<9x128x128xbf16, #tpu.memory_space<vmem>>, vector<1x128x128xbf16>
    %218 = vector.shape_cast %217 : vector<1x128x128xbf16> to vector<128x128xbf16>
    %cst_209 = arith.constant dense<0.000000e+00> : vector<2x128xf32>
    %219 = tpu.matmul %216, %218, %cst_209 {dimension_numbers = #tpu.dot_dimension_numbers<[1], [0], [0], [1], [0, 0, 1, 1], [], []>} : vector<2x128xbf16>, vector<128x128xbf16>, vector<2x128xf32> -> vector<2x128xf32>
    %220 = arith.addf %214, %219 : vector<2x128xf32>
    %c10_210 = arith.constant 10 : index
    %c0_211 = arith.constant 0 : index
    %221 = tpu.strided_load %arg13[%c10_210, %c0_211] {strides = array<i32: 100, 1>} : memref<200x128xf32, #tpu.memory_space<vmem>>, vector<2x128xf32>
    %222 = arith.truncf %221 : vector<2x128xf32> to vector<2x128xbf16>
    %c3_212 = arith.constant 3 : index
    %c0_213 = arith.constant 0 : index
    %c0_214 = arith.constant 0 : index
    %223 = vector.load %arg16[%c3_212, %c0_213, %c0_214] : memref<9x128x128xbf16, #tpu.memory_space<vmem>>, vector<1x128x128xbf16>
    %224 = vector.shape_cast %223 : vector<1x128x128xbf16> to vector<128x128xbf16>
    %cst_215 = arith.constant dense<0.000000e+00> : vector<2x128xf32>
    %225 = tpu.matmul %222, %224, %cst_215 {dimension_numbers = #tpu.dot_dimension_numbers<[1], [0], [0], [1], [0, 0, 1, 1], [], []>} : vector<2x128xbf16>, vector<128x128xbf16>, vector<2x128xf32> -> vector<2x128xf32>
    %226 = arith.addf %220, %225 : vector<2x128xf32>
    %c11_216 = arith.constant 11 : index
    %c0_217 = arith.constant 0 : index
    %227 = tpu.strided_load %arg13[%c11_216, %c0_217] {strides = array<i32: 100, 1>} : memref<200x128xf32, #tpu.memory_space<vmem>>, vector<2x128xf32>
    %228 = arith.truncf %227 : vector<2x128xf32> to vector<2x128xbf16>
    %c4_218 = arith.constant 4 : index
    %c0_219 = arith.constant 0 : index
    %c0_220 = arith.constant 0 : index
    %229 = vector.load %arg16[%c4_218, %c0_219, %c0_220] : memref<9x128x128xbf16, #tpu.memory_space<vmem>>, vector<1x128x128xbf16>
    %230 = vector.shape_cast %229 : vector<1x128x128xbf16> to vector<128x128xbf16>
    %cst_221 = arith.constant dense<0.000000e+00> : vector<2x128xf32>
    %231 = tpu.matmul %228, %230, %cst_221 {dimension_numbers = #tpu.dot_dimension_numbers<[1], [0], [0], [1], [0, 0, 1, 1], [], []>} : vector<2x128xbf16>, vector<128x128xbf16>, vector<2x128xf32> -> vector<2x128xf32>
    %232 = arith.addf %226, %231 : vector<2x128xf32>
    %c12_222 = arith.constant 12 : index
    %c0_223 = arith.constant 0 : index
    %233 = tpu.strided_load %arg13[%c12_222, %c0_223] {strides = array<i32: 100, 1>} : memref<200x128xf32, #tpu.memory_space<vmem>>, vector<2x128xf32>
    %234 = arith.truncf %233 : vector<2x128xf32> to vector<2x128xbf16>
    %c5_224 = arith.constant 5 : index
    %c0_225 = arith.constant 0 : index
    %c0_226 = arith.constant 0 : index
    %235 = vector.load %arg16[%c5_224, %c0_225, %c0_226] : memref<9x128x128xbf16, #tpu.memory_space<vmem>>, vector<1x128x128xbf16>
    %236 = vector.shape_cast %235 : vector<1x128x128xbf16> to vector<128x128xbf16>
    %cst_227 = arith.constant dense<0.000000e+00> : vector<2x128xf32>
    %237 = tpu.matmul %234, %236, %cst_227 {dimension_numbers = #tpu.dot_dimension_numbers<[1], [0], [0], [1], [0, 0, 1, 1], [], []>} : vector<2x128xbf16>, vector<128x128xbf16>, vector<2x128xf32> -> vector<2x128xf32>
    %238 = arith.addf %232, %237 : vector<2x128xf32>
    %c20_228 = arith.constant 20 : index
    %c0_229 = arith.constant 0 : index
    %239 = tpu.strided_load %arg13[%c20_228, %c0_229] {strides = array<i32: 100, 1>} : memref<200x128xf32, #tpu.memory_space<vmem>>, vector<2x128xf32>
    %240 = arith.truncf %239 : vector<2x128xf32> to vector<2x128xbf16>
    %c6_230 = arith.constant 6 : index
    %c0_231 = arith.constant 0 : index
    %c0_232 = arith.constant 0 : index
    %241 = vector.load %arg16[%c6_230, %c0_231, %c0_232] : memref<9x128x128xbf16, #tpu.memory_space<vmem>>, vector<1x128x128xbf16>
    %242 = vector.shape_cast %241 : vector<1x128x128xbf16> to vector<128x128xbf16>
    %cst_233 = arith.constant dense<0.000000e+00> : vector<2x128xf32>
    %243 = tpu.matmul %240, %242, %cst_233 {dimension_numbers = #tpu.dot_dimension_numbers<[1], [0], [0], [1], [0, 0, 1, 1], [], []>} : vector<2x128xbf16>, vector<128x128xbf16>, vector<2x128xf32> -> vector<2x128xf32>
    %244 = arith.addf %238, %243 : vector<2x128xf32>
    %c21_234 = arith.constant 21 : index
    %c0_235 = arith.constant 0 : index
    %245 = tpu.strided_load %arg13[%c21_234, %c0_235] {strides = array<i32: 100, 1>} : memref<200x128xf32, #tpu.memory_space<vmem>>, vector<2x128xf32>
    %246 = arith.truncf %245 : vector<2x128xf32> to vector<2x128xbf16>
    %c7_236 = arith.constant 7 : index
    %c0_237 = arith.constant 0 : index
    %c0_238 = arith.constant 0 : index
    %247 = vector.load %arg16[%c7_236, %c0_237, %c0_238] : memref<9x128x128xbf16, #tpu.memory_space<vmem>>, vector<1x128x128xbf16>
    %248 = vector.shape_cast %247 : vector<1x128x128xbf16> to vector<128x128xbf16>
    %cst_239 = arith.constant dense<0.000000e+00> : vector<2x128xf32>
    %249 = tpu.matmul %246, %248, %cst_239 {dimension_numbers = #tpu.dot_dimension_numbers<[1], [0], [0], [1], [0, 0, 1, 1], [], []>} : vector<2x128xbf16>, vector<128x128xbf16>, vector<2x128xf32> -> vector<2x128xf32>
    %250 = arith.addf %244, %249 : vector<2x128xf32>
    %c22_240 = arith.constant 22 : index
    %c0_241 = arith.constant 0 : index
    %251 = tpu.strided_load %arg13[%c22_240, %c0_241] {strides = array<i32: 100, 1>} : memref<200x128xf32, #tpu.memory_space<vmem>>, vector<2x128xf32>
    %252 = arith.truncf %251 : vector<2x128xf32> to vector<2x128xbf16>
    %c8_242 = arith.constant 8 : index
    %c0_243 = arith.constant 0 : index
    %c0_244 = arith.constant 0 : index
    %253 = vector.load %arg16[%c8_242, %c0_243, %c0_244] : memref<9x128x128xbf16, #tpu.memory_space<vmem>>, vector<1x128x128xbf16>
    %254 = vector.shape_cast %253 : vector<1x128x128xbf16> to vector<128x128xbf16>
    %cst_245 = arith.constant dense<0.000000e+00> : vector<2x128xf32>
    %255 = tpu.matmul %252, %254, %cst_245 {dimension_numbers = #tpu.dot_dimension_numbers<[1], [0], [0], [1], [0, 0, 1, 1], [], []>} : vector<2x128xbf16>, vector<128x128xbf16>, vector<2x128xf32> -> vector<2x128xf32>
    %256 = arith.addf %250, %255 : vector<2x128xf32>
    %c8_246 = arith.constant 8 : index
    %c0_247 = arith.constant 0 : index
    %257 = vector.load %arg4[%c8_246, %c0_247] : memref<16x128xf32, #tpu.memory_space<vmem>>, vector<1x128xf32>
    %258 = vector.broadcast %257 : vector<1x128xf32> to vector<2x128xf32>
    %259 = arith.addf %256, %258 : vector<2x128xf32>
    %cst_248 = arith.constant 0.000000e+00 : f32
    %260 = vector.broadcast %cst_248 : f32 to vector<2x128xf32>
    %261 = arith.cmpf oge, %259, %260 : vector<2x128xf32>
    %cst_249 = arith.constant 0.00999999977 : f32
    %262 = vector.broadcast %cst_249 : f32 to vector<2x128xf32>
    %263 = arith.mulf %262, %259 : vector<2x128xf32>
    %264 = arith.select %261, %259, %263 : vector<2x128xi1>, vector<2x128xf32>
    %c9 = arith.constant 9 : index
    %c0_250 = arith.constant 0 : index
    %265 = vector.load %arg4[%c9, %c0_250] : memref<16x128xf32, #tpu.memory_space<vmem>>, vector<1x128xf32>
    %266 = vector.broadcast %265 : vector<1x128xf32> to vector<2x128xf32>
    %267 = arith.mulf %264, %266 : vector<2x128xf32>
    %c10_251 = arith.constant 10 : index
    %c0_252 = arith.constant 0 : index
    %268 = vector.load %arg4[%c10_251, %c0_252] : memref<16x128xf32, #tpu.memory_space<vmem>>, vector<1x128xf32>
    %269 = vector.broadcast %268 : vector<1x128xf32> to vector<2x128xf32>
    %270 = arith.addf %267, %269 : vector<2x128xf32>
    %c3_i32_253 = arith.constant 3 : i32
    %271 = tpu.memref_slice %arg18[%c3_i32_253] : memref<4x!tpu.dma_semaphore, #tpu.memory_space<semaphore_mem>> -> memref<1x!tpu.dma_semaphore, #tpu.memory_space<semaphore_mem>>
    %272 = tpu.memref_squeeze %271 : memref<1x!tpu.dma_semaphore, #tpu.memory_space<semaphore_mem>> -> memref<!tpu.dma_semaphore, #tpu.memory_space<semaphore_mem>>
    tpu.wait_dma2 semaphore(%272 : memref<!tpu.dma_semaphore, #tpu.memory_space<semaphore_mem>>) src(%arg8 : memref<128x128xbf16, #tpu.memory_space<any>>) dst(%arg17 : memref<128x128xbf16, #tpu.memory_space<vmem>>)
    %273 = arith.truncf %270 : vector<2x128xf32> to vector<2x128xbf16>
    %c0_254 = arith.constant 0 : index
    %c0_255 = arith.constant 0 : index
    %274 = vector.load %arg17[%c0_254, %c0_255] : memref<128x128xbf16, #tpu.memory_space<vmem>>, vector<128x128xbf16>
    %cst_256 = arith.constant dense<0.000000e+00> : vector<2x128xf32>
    %275 = tpu.matmul %273, %274, %cst_256 {dimension_numbers = #tpu.dot_dimension_numbers<[1], [0], [0], [1], [0, 0, 1, 1], [], []>} : vector<2x128xbf16>, vector<128x128xbf16>, vector<2x128xf32> -> vector<2x128xf32>
    %cst_257 = arith.constant 0.000000e+00 : f32
    %276 = vector.broadcast %cst_257 : f32 to vector<8x128xf32>
    %c0_258 = arith.constant 0 : index
    %c0_259 = arith.constant 0 : index
    %277 = vector.load %arg9[%c0_258, %c0_259] : memref<8x128xf32, #tpu.memory_space<vmem>>, vector<8x128xf32>
    tpu.vector_store %arg9[%c0_258, %c0_259], %276 {strides = array<i32>} : memref<8x128xf32, #tpu.memory_space<vmem>>, vector<8x128xf32>,
    %c11_260 = arith.constant 11 : index
    %c0_261 = arith.constant 0 : index
    %278 = vector.load %arg4[%c11_260, %c0_261] : memref<16x128xf32, #tpu.memory_space<vmem>>, vector<1x128xf32>
    %279 = vector.broadcast %278 : vector<1x128xf32> to vector<2x128xf32>
    %280 = arith.addf %275, %279 : vector<2x128xf32>
    %c0_262 = arith.constant 0 : index
    %c0_263 = arith.constant 0 : index
    %281 = vector.load %arg9[%c0_262, %c0_263] : memref<8x128xf32, #tpu.memory_space<vmem>>, vector<2x128xf32>
    tpu.vector_store %arg9[%c0_262, %c0_263], %280 {strides = array<i32>} : memref<8x128xf32, #tpu.memory_space<vmem>>, vector<2x128xf32>,
    return
  }
  func.func @transform_0(%arg0: i32) -> (i32, i32) {
    %c0_i32 = arith.constant 0 : i32
    %c0_i32_0 = arith.constant 0 : i32
    %c0_i32_1 = arith.constant 0 : i32
    return %c0_i32, %c0_i32_0 : i32, i32
  }
  func.func @transform_1(%arg0: i32) -> (i32, i32) {
    %c0_i32 = arith.constant 0 : i32
    %c0_i32_0 = arith.constant 0 : i32
    %c0_i32_1 = arith.constant 0 : i32
    return %c0_i32, %c0_i32_0 : i32, i32
  }
  func.func @transform_2(%arg0: i32) -> (i32, i32, i32) {
    %c0_i32 = arith.constant 0 : i32
    %c0_i32_0 = arith.constant 0 : i32
    %c0_i32_1 = arith.constant 0 : i32
    %c0_i32_2 = arith.constant 0 : i32
    return %c0_i32, %c0_i32_0, %c0_i32_1 : i32, i32, i32
  }
  func.func @transform_3(%arg0: i32) -> (i32, i32) {
    %c0_i32 = arith.constant 0 : i32
    %c0_i32_0 = arith.constant 0 : i32
    %c0_i32_1 = arith.constant 0 : i32
    return %c0_i32, %c0_i32_0 : i32, i32
  }
  func.func @transform_8(%arg0: i32) -> (i32, i32) {
    %c0_i32 = arith.constant 0 : i32
    %c0_i32_0 = arith.constant 0 : i32
    %c0_i32_1 = arith.constant 0 : i32
    return %c0_i32, %c0_i32_0 : i32, i32
  }
}

</mosaic_0001>

<bundles_post_ra>
// kernel: cnn_forward.1
= control target key start
LH: loop header
LB: loop body
LE: loop exit
PB: predicated region body
PF: predicated region fallthrough
CT: control target
= control target key end

     0   :  { %s17555_s0 = inlined_call_operand.vmem [shape: bf16[200,128], index: 0, kind: input, shape index: {}]   ;;  %s17556_s1 = inlined_call_operand.vmem [shape: bf16[128,128], index: 1, kind: input, shape index: {}]   ;;  %s17557_s2 = inlined_call_operand.vmem [shape: bf16[9,128,128], index: 2, kind: input, shape index: {}]   ;;  %s17558_s3 = inlined_call_operand.vmem [shape: f32[16,128], index: 3, kind: input, shape index: {}]   ;;  %s17559_s4 = inlined_call_operand.vmem [shape: bf16[9,128,128], index: 4, kind: input, shape index: {}]   ;;  %s17560_s5 = inlined_call_operand.vmem [shape: bf16[9,128,128], index: 5, kind: input, shape index: {}]   ;;  %s17561_s6 = inlined_call_operand.vmem [shape: bf16[9,128,128], index: 6, kind: input, shape index: {}]   ;;  %s17562_s7 = inlined_call_operand.vmem [shape: bf16[128,128], index: 7, kind: input, shape index: {}]   ;;  %s17563_s8 = inlined_call_operand.vmem [shape: f32[8,128], index: 8, kind: output, shape index: {}]  }
   0x1   :  { %v13378_v0 = vld [vmem:[%s17559_s4] sm:$0xff]  ;;  %v13383_v1 = vld [vmem:[%s17559_s4 + $0x8] sm:$0xff]  ;;  %v13388_v2 = vld [vmem:[%s17559_s4 + $0x10] sm:$0xff] }
   0x2   :  { %17569 = vst [vmem:[#allocation19_spill] sm:$0xff] %v13378_v0  ;;  %17570 = vst [vmem:[#allocation20_spill] sm:$0xff] %v13383_v1  ;;  %v13393_v3 = vld [vmem:[%s17559_s4 + $0x18] sm:$0xff]  ;;  %v13398_v4 = vld [vmem:[%s17559_s4 + $0x20] sm:$0xff] }
   0x3   :  { %17571 = vst [vmem:[#allocation21_spill] sm:$0xff] %v13388_v2  ;;  %17572 = vst [vmem:[#allocation22_spill] sm:$0xff] %v13393_v3  ;;  %v13403_v5 = vld [vmem:[%s17559_s4 + $0x28] sm:$0xff]  ;;  %v13408_v6 = vld [vmem:[%s17559_s4 + $0x30] sm:$0xff] }
   0x4   :  { %17573 = vst [vmem:[#allocation23_spill] sm:$0xff] %v13398_v4  ;;  %17574 = vst [vmem:[#allocation24_spill] sm:$0xff] %v13403_v5  ;;  %v13413_v7 = vld [vmem:[%s17559_s4 + $0x38] sm:$0xff]  ;;  %v13418_v8 = vld [vmem:[%s17559_s4 + $0x40] sm:$0xff] }
   0x5   :  { %17575 = vst [vmem:[#allocation25_spill] sm:$0xff] %v13408_v6  ;;  %17576 = vst [vmem:[#allocation26_spill] sm:$0xff] %v13413_v7  ;;  %v13423_v9 = vld [vmem:[%s17559_s4 + $0x48] sm:$0xff]  ;;  %v13428_v10 = vld [vmem:[%s17559_s4 + $0x50] sm:$0xff] }
   0x6   :  { %v13433_v11 = vld [vmem:[%s17559_s4 + $0x58] sm:$0xff]  ;;  %v13438_v12 = vld [vmem:[%s17559_s4 + $0x60] sm:$0xff]  ;;  %v13443_v13 = vld [vmem:[%s17559_s4 + $0x68] sm:$0xff] }
   0x7   :  { %17577 = vst [vmem:[#allocation27_spill] sm:$0xff] %v13433_v11  ;;  %17578 = vst [vmem:[#allocation28_spill] sm:$0xff] %v13438_v12  ;;  %v13448_v14 = vld [vmem:[%s17559_s4 + $0x70] sm:$0xff]  ;;  %v13453_v15 = vld [vmem:[%s17559_s4 + $0x78] sm:$0xff] }
   0x8   :  { %17579 = vst [vmem:[#allocation29_spill] sm:$0xff] %v13443_v13  ;;  %17580 = vst [vmem:[#allocation30_spill] sm:$0xff] %v13448_v14  ;;  %v13458_v16 = vld [vmem:[%s17559_s4 + $0x80] sm:$0xff]  ;;  %v13463_v17 = vld [vmem:[%s17559_s4 + $0x88] sm:$0xff] }
   0x9   :  { %17581 = vst [vmem:[#allocation31_spill] sm:$0xff] %v13453_v15  ;;  %17582 = vst [vmem:[#allocation32_spill] sm:$0xff] %v13458_v16  ;;  %v13468_v18 = vld [vmem:[%s17559_s4 + $0x90] sm:$0xff]  ;;  %v13473_v19 = vld [vmem:[%s17559_s4 + $0x98] sm:$0xff] }
   0xa   :  { %17583 = vst [vmem:[#allocation33_spill] sm:$0xff] %v13463_v17  ;;  %17584 = vst [vmem:[#allocation34_spill] sm:$0xff] %v13468_v18  ;;  %v13478_v20 = vld [vmem:[%s17559_s4 + $0xa0] sm:$0xff]  ;;  %v13483_v21 = vld [vmem:[%s17559_s4 + $0xa8] sm:$0xff] }
   0xb   :  { %17585 = vst [vmem:[#allocation35_spill] sm:$0xff] %v13473_v19  ;;  %17586 = vst [vmem:[#allocation36_spill] sm:$0xff] %v13478_v20  ;;  %v13488_v22 = vld [vmem:[%s17559_s4 + $0xb0] sm:$0xff]  ;;  %v13493_v23 = vld [vmem:[%s17559_s4 + $0xb8] sm:$0xff] }
   0xc   :  { %17587 = vst [vmem:[#allocation37_spill] sm:$0xff] %v13483_v21  ;;  %17588 = vst [vmem:[#allocation38_spill] sm:$0xff] %v13488_v22  ;;  %v13498_v24 = vld [vmem:[%s17559_s4 + $0xc0] sm:$0xff]  ;;  %v13503_v25 = vld [vmem:[%s17559_s4 + $0xc8] sm:$0xff] }
   0xd   :  { %17589 = vst [vmem:[#allocation39_spill] sm:$0xff] %v13493_v23  ;;  %17590 = vst [vmem:[#allocation40_spill] sm:$0xff] %v13498_v24  ;;  %v13508_v26 = vld [vmem:[%s17559_s4 + $0xd0] sm:$0xff]  ;;  %v13513_v27 = vld [vmem:[%s17559_s4 + $0xd8] sm:$0xff] }
   0xe   :  { %17591 = vst [vmem:[#allocation41_spill] sm:$0xff] %v13503_v25  ;;  %17592 = vst [vmem:[#allocation42_spill] sm:$0xff] %v13508_v26  ;;  %v13518_v28 = vld [vmem:[%s17559_s4 + $0xe0] sm:$0xff]  ;;  %v13523_v29 = vld [vmem:[%s17559_s4 + $0xe8] sm:$0xff] }
   0xf   :  { %17593 = vst [vmem:[#allocation43_spill] sm:$0xff] %v13513_v27  ;;  %17594 = vst [vmem:[#allocation44_spill] sm:$0xff] %v13518_v28  ;;  %v13528_v30 = vld [vmem:[%s17559_s4 + $0xf0] sm:$0xff]  ;;  %v13533_v31 = vld [vmem:[%s17559_s4 + $0xf8] sm:$0xff] }
  0x10   :  { %17595 = vst [vmem:[#allocation45_spill] sm:$0xff] %v13523_v29  ;;  %17596 = vst [vmem:[#allocation46_spill] sm:$0xff] %v13528_v30  ;;  %v13538_v32 = vld [vmem:[%s17559_s4 + $0x100] sm:$0xff]  ;;  %v13543_v33 = vld [vmem:[%s17559_s4 + $0x108] sm:$0xff] }
  0x11   :  { %17597 = vst [vmem:[#allocation47_spill] sm:$0xff] %v13533_v31  ;;  %17598 = vst [vmem:[#allocation48_spill] sm:$0xff] %v13538_v32  ;;  %v13548_v34 = vld [vmem:[%s17559_s4 + $0x110] sm:$0xff]  ;;  %v13553_v35 = vld [vmem:[%s17559_s4 + $0x118] sm:$0xff] }
  0x12   :  { %17599 = vst [vmem:[#allocation49_spill] sm:$0xff] %v13543_v33  ;;  %17600 = vst [vmem:[#allocation50_spill] sm:$0xff] %v13548_v34  ;;  %v13558_v36 = vld [vmem:[%s17559_s4 + $0x120] sm:$0xff]  ;;  %v13563_v37 = vld [vmem:[%s17559_s4 + $0x128] sm:$0xff] }
  0x13   :  { %17601 = vst [vmem:[#allocation51_spill] sm:$0xff] %v13553_v35  ;;  %17602 = vst [vmem:[#allocation52_spill] sm:$0xff] %v13558_v36  ;;  %v13568_v38 = vld [vmem:[%s17559_s4 + $0x130] sm:$0xff]  ;;  %v13573_v39 = vld [vmem:[%s17559_s4 + $0x138] sm:$0xff] }
  0x14   :  { %17603 = vst [vmem:[#allocation53_spill] sm:$0xff] %v13563_v37  ;;  %17604 = vst [vmem:[#allocation54_spill] sm:$0xff] %v13568_v38  ;;  %v13578_v40 = vld [vmem:[%s17559_s4 + $0x140] sm:$0xff]  ;;  %v13583_v41 = vld [vmem:[%s17559_s4 + $0x148] sm:$0xff] }
  0x15   :  { %17605 = vst [vmem:[#allocation55_spill] sm:$0xff] %v13573_v39  ;;  %17606 = vst [vmem:[#allocation56_spill] sm:$0xff] %v13578_v40  ;;  %v13588_v42 = vld [vmem:[%s17559_s4 + $0x150] sm:$0xff]  ;;  %v13593_v43 = vld [vmem:[%s17559_s4 + $0x158] sm:$0xff] }
  0x16   :  { %17607 = vst [vmem:[#allocation57_spill] sm:$0xff] %v13583_v41  ;;  %17608 = vst [vmem:[#allocation58_spill] sm:$0xff] %v13588_v42  ;;  %v13598_v44 = vld [vmem:[%s17559_s4 + $0x160] sm:$0xff]  ;;  %v13603_v45 = vld [vmem:[%s17559_s4 + $0x168] sm:$0xff] }
  0x17   :  { %17609 = vst [vmem:[#allocation59_spill] sm:$0xff] %v13593_v43  ;;  %17610 = vst [vmem:[#allocation60_spill] sm:$0xff] %v13598_v44  ;;  %v13608_v46 = vld [vmem:[%s17559_s4 + $0x170] sm:$0xff]  ;;  %v13613_v47 = vld [vmem:[%s17559_s4 + $0x178] sm:$0xff] }
  0x18   :  { %17611 = vst [vmem:[#allocation61_spill] sm:$0xff] %v13603_v45  ;;  %17612 = vst [vmem:[#allocation62_spill] sm:$0xff] %v13608_v46  ;;  %v13618_v48 = vld [vmem:[%s17559_s4 + $0x180] sm:$0xff]  ;;  %v13623_v49 = vld [vmem:[%s17559_s4 + $0x188] sm:$0xff] }
  0x19   :  { %17613 = vst [vmem:[#allocation63_spill] sm:$0xff] %v13613_v47  ;;  %17614 = vst [vmem:[#allocation64_spill] sm:$0xff] %v13618_v48  ;;  %v13628_v50 = vld [vmem:[%s17559_s4 + $0x190] sm:$0xff]  ;;  %v13633_v51 = vld [vmem:[%s17559_s4 + $0x198] sm:$0xff] }
  0x1a   :  { %17615 = vst [vmem:[#allocation65_spill] sm:$0xff] %v13623_v49  ;;  %17616 = vst [vmem:[#allocation66_spill] sm:$0xff] %v13628_v50  ;;  %v13638_v52 = vld [vmem:[%s17559_s4 + $0x1a0] sm:$0xff]  ;;  %v13643_v53 = vld [vmem:[%s17559_s4 + $0x1a8] sm:$0xff] }
  0x1b   :  { %17617 = vst [vmem:[#allocation67_spill] sm:$0xff] %v13633_v51  ;;  %17618 = vst [vmem:[#allocation68_spill] sm:$0xff] %v13638_v52  ;;  %v13648_v54 = vld [vmem:[%s17559_s4 + $0x1b0] sm:$0xff]  ;;  %v13653_v55 = vld [vmem:[%s17559_s4 + $0x1b8] sm:$0xff] }
  0x1c   :  { %17619 = vst [vmem:[#allocation69_spill] sm:$0xff] %v13643_v53  ;;  %17620 = vst [vmem:[#allocation70_spill] sm:$0xff] %v13648_v54  ;;  %v13658_v56 = vld [vmem:[%s17559_s4 + $0x1c0] sm:$0xff]  ;;  %v13663_v57 = vld [vmem:[%s17559_s4 + $0x1c8] sm:$0xff] }
  0x1d   :  { %17621 = vst [vmem:[#allocation71_spill] sm:$0xff] %v13653_v55  ;;  %17622 = vst [vmem:[#allocation72_spill] sm:$0xff] %v13658_v56  ;;  %v13668_v58 = vld [vmem:[%s17559_s4 + $0x1d0] sm:$0xff]  ;;  %v13673_v59 = vld [vmem:[%s17559_s4 + $0x1d8] sm:$0xff] }
  0x1e   :  { %17623 = vst [vmem:[#allocation73_spill] sm:$0xff] %v13663_v57  ;;  %17624 = vst [vmem:[#allocation74_spill] sm:$0xff] %v13668_v58  ;;  %v13678_v60 = vld [vmem:[%s17559_s4 + $0x1e0] sm:$0xff]  ;;  %v13683_v61 = vld [vmem:[%s17559_s4 + $0x1e8] sm:$0xff] }
  0x1f   :  { %17625 = vst [vmem:[#allocation75_spill] sm:$0xff] %v13673_v59  ;;  %17626 = vst [vmem:[#allocation76_spill] sm:$0xff] %v13678_v60  ;;  %v13688_v62 = vld [vmem:[%s17559_s4 + $0x1f0] sm:$0xff]  ;;  %v13693_v63 = vld [vmem:[%s17559_s4 + $0x1f8] sm:$0xff] }
  0x20   :  { %17627 = vst [vmem:[#allocation77_spill] sm:$0xff] %v13683_v61  ;;  %17628 = vst [vmem:[#allocation78_spill] sm:$0xff] %v13688_v62  ;;  %v13698_v59 = vld [vmem:[%s17559_s4 + $0x200] sm:$0xff]  ;;  %v13703_v60 = vld [vmem:[%s17559_s4 + $0x208] sm:$0xff] }
  0x21   :  { %17629 = vst [vmem:[#allocation79_spill] sm:$0xff] %v13693_v63  ;;  %17630 = vst [vmem:[#allocation80_spill] sm:$0xff] %v13698_v59  ;;  %v13708_v61 = vld [vmem:[%s17559_s4 + $0x210] sm:$0xff]  ;;  %v13713_v62 = vld [vmem:[%s17559_s4 + $0x218] sm:$0xff] }
  0x22   :  { %17631 = vst [vmem:[#allocation81_spill] sm:$0xff] %v13703_v60  ;;  %17632 = vst [vmem:[#allocation82_spill] sm:$0xff] %v13708_v61  ;;  %v13718_v63 = vld [vmem:[%s17559_s4 + $0x220] sm:$0xff]  ;;  %v13723_v59 = vld [vmem:[%s17559_s4 + $0x228] sm:$0xff] }
  0x23   :  { %17633 = vst [vmem:[#allocation83_spill] sm:$0xff] %v13713_v62  ;;  %17634 = vst [vmem:[#allocation84_spill] sm:$0xff] %v13718_v63  ;;  %v13728_v60 = vld [vmem:[%s17559_s4 + $0x230] sm:$0xff]  ;;  %v13733_v61 = vld [vmem:[%s17559_s4 + $0x238] sm:$0xff] }
  0x24   :  { %17635 = vst [vmem:[#allocation85_spill] sm:$0xff] %v13723_v59  ;;  %17636 = vst [vmem:[#allocation86_spill] sm:$0xff] %v13728_v60 }
  0x25   :  { %17637 = vst [vmem:[#allocation87_spill] sm:$0xff] %v13733_v61 }
  0x26   :  { %205 = vsyncadd [#allocation10], 9216  ;;  %v13738_v63 = vld [vmem:[%s17560_s5] sm:$0xff]  ;;  %v13743_v59 = vld [vmem:[%s17560_s5 + $0x8] sm:$0xff] }
  0x27   :  { %17638 = vst [vmem:[#allocation88_spill] sm:$0xff] %v13738_v63  ;;  %17639 = vst [vmem:[#allocation89_spill] sm:$0xff] %v13743_v59  ;;  %v13748_v60 = vld [vmem:[%s17560_s5 + $0x10] sm:$0xff]  ;;  %v13753_v61 = vld [vmem:[%s17560_s5 + $0x18] sm:$0xff] }
  0x28   :  { %17640 = vst [vmem:[#allocation90_spill] sm:$0xff] %v13748_v60  ;;  %17641 = vst [vmem:[#allocation91_spill] sm:$0xff] %v13753_v61  ;;  %v13758_v62 = vld [vmem:[%s17560_s5 + $0x20] sm:$0xff]  ;;  %v13763_v63 = vld [vmem:[%s17560_s5 + $0x28] sm:$0xff] }
  0x29   :  { %17642 = vst [vmem:[#allocation92_spill] sm:$0xff] %v13758_v62  ;;  %17643 = vst [vmem:[#allocation93_spill] sm:$0xff] %v13763_v63  ;;  %v13768_v59 = vld [vmem:[%s17560_s5 + $0x30] sm:$0xff]  ;;  %v13773_v60 = vld [vmem:[%s17560_s5 + $0x38] sm:$0xff] }
  0x2a   :  { %17644 = vst [vmem:[#allocation94_spill] sm:$0xff] %v13768_v59  ;;  %17645 = vst [vmem:[#allocation95_spill] sm:$0xff] %v13773_v60  ;;  %v13778_v61 = vld [vmem:[%s17560_s5 + $0x40] sm:$0xff]  ;;  %v13783_v62 = vld [vmem:[%s17560_s5 + $0x48] sm:$0xff] }
  0x2b   :  { %17646 = vst [vmem:[#allocation96_spill] sm:$0xff] %v13778_v61  ;;  %17647 = vst [vmem:[#allocation97_spill] sm:$0xff] %v13783_v62  ;;  %v13788_v63 = vld [vmem:[%s17560_s5 + $0x50] sm:$0xff]  ;;  %v13793_v59 = vld [vmem:[%s17560_s5 + $0x58] sm:$0xff] }
  0x2c   :  { %17648 = vst [vmem:[#allocation98_spill] sm:$0xff] %v13788_v63  ;;  %17649 = vst [vmem:[#allocation99_spill] sm:$0xff] %v13793_v59  ;;  %v13798_v60 = vld [vmem:[%s17560_s5 + $0x60] sm:$0xff]  ;;  %v13803_v61 = vld [vmem:[%s17560_s5 + $0x68] sm:$0xff] }
  0x2d   :  { %17650 = vst [vmem:[#allocation100_spill] sm:$0xff] %v13798_v60  ;;  %17651 = vst [vmem:[#allocation101_spill] sm:$0xff] %v13803_v61  ;;  %v13808_v62 = vld [vmem:[%s17560_s5 + $0x70] sm:$0xff]  ;;  %v13813_v63 = vld [vmem:[%s17560_s5 + $0x78] sm:$0xff] }
  0x2e   :  { %17652 = vst [vmem:[#allocation102_spill] sm:$0xff] %v13808_v62  ;;  %17653 = vst [vmem:[#allocation103_spill] sm:$0xff] %v13813_v63  ;;  %v13818_v59 = vld [vmem:[%s17560_s5 + $0x80] sm:$0xff]  ;;  %v13823_v60 = vld [vmem:[%s17560_s5 + $0x88] sm:$0xff] }
  0x2f   :  { %17654 = vst [vmem:[#allocation104_spill] sm:$0xff] %v13818_v59  ;;  %17655 = vst [vmem:[#allocation105_spill] sm:$0xff] %v13823_v60  ;;  %v13828_v61 = vld [vmem:[%s17560_s5 + $0x90] sm:$0xff]  ;;  %v13833_v62 = vld [vmem:[%s17560_s5 + $0x98] sm:$0xff] }
  0x30   :  { %17656 = vst [vmem:[#allocation106_spill] sm:$0xff] %v13828_v61  ;;  %17657 = vst [vmem:[#allocation107_spill] sm:$0xff] %v13833_v62  ;;  %v13838_v63 = vld [vmem:[%s17560_s5 + $0xa0] sm:$0xff]  ;;  %v13843_v59 = vld [vmem:[%s17560_s5 + $0xa8] sm:$0xff] }
  0x31   :  { %17658 = vst [vmem:[#allocation108_spill] sm:$0xff] %v13838_v63  ;;  %17659 = vst [vmem:[#allocation109_spill] sm:$0xff] %v13843_v59  ;;  %v13848_v60 = vld [vmem:[%s17560_s5 + $0xb0] sm:$0xff]  ;;  %v13853_v61 = vld [vmem:[%s17560_s5 + $0xb8] sm:$0xff] }
  0x32   :  { %17660 = vst [vmem:[#allocation110_spill] sm:$0xff] %v13848_v60  ;;  %17661 = vst [vmem:[#allocation111_spill] sm:$0xff] %v13853_v61  ;;  %v13858_v62 = vld [vmem:[%s17560_s5 + $0xc0] sm:$0xff]  ;;  %v13863_v63 = vld [vmem:[%s17560_s5 + $0xc8] sm:$0xff] }
  0x33   :  { %17662 = vst [vmem:[#allocation112_spill] sm:$0xff] %v13858_v62  ;;  %17663 = vst [vmem:[#allocation113_spill] sm:$0xff] %v13863_v63  ;;  %v13868_v59 = vld [vmem:[%s17560_s5 + $0xd0] sm:$0xff]  ;;  %v13873_v60 = vld [vmem:[%s17560_s5 + $0xd8] sm:$0xff] }
  0x34   :  { %17664 = vst [vmem:[#allocation114_spill] sm:$0xff] %v13868_v59  ;;  %17665 = vst [vmem:[#allocation115_spill] sm:$0xff] %v13873_v60  ;;  %v13878_v61 = vld [vmem:[%s17560_s5 + $0xe0] sm:$0xff]  ;;  %v13883_v62 = vld [vmem:[%s17560_s5 + $0xe8] sm:$0xff] }
  0x35   :  { %17666 = vst [vmem:[#allocation116_spill] sm:$0xff] %v13878_v61  ;;  %17667 = vst [vmem:[#allocation117_spill] sm:$0xff] %v13883_v62  ;;  %v13888_v63 = vld [vmem:[%s17560_s5 + $0xf0] sm:$0xff]  ;;  %v13893_v59 = vld [vmem:[%s17560_s5 + $0xf8] sm:$0xff] }
  0x36   :  { %17668 = vst [vmem:[#allocation118_spill] sm:$0xff] %v13888_v63  ;;  %17669 = vst [vmem:[#allocation119_spill] sm:$0xff] %v13893_v59  ;;  %v13898_v60 = vld [vmem:[%s17560_s5 + $0x100] sm:$0xff]  ;;  %v13903_v61 = vld [vmem:[%s17560_s5 + $0x108] sm:$0xff] }
  0x37   :  { %17670 = vst [vmem:[#allocation120_spill] sm:$0xff] %v13898_v60  ;;  %17671 = vst [vmem:[#allocation121_spill] sm:$0xff] %v13903_v61  ;;  %v13908_v62 = vld [vmem:[%s17560_s5 + $0x110] sm:$0xff]  ;;  %v13913_v63 = vld [vmem:[%s17560_s5 + $0x118] sm:$0xff] }
  0x38   :  { %17672 = vst [vmem:[#allocation122_spill] sm:$0xff] %v13908_v62  ;;  %17673 = vst [vmem:[#allocation123_spill] sm:$0xff] %v13913_v63  ;;  %v13918_v59 = vld [vmem:[%s17560_s5 + $0x120] sm:$0xff]  ;;  %v13923_v60 = vld [vmem:[%s17560_s5 + $0x128] sm:$0xff] }
  0x39   :  { %17674 = vst [vmem:[#allocation124_spill] sm:$0xff] %v13918_v59  ;;  %17675 = vst [vmem:[#allocation125_spill] sm:$0xff] %v13923_v60  ;;  %v13928_v61 = vld [vmem:[%s17560_s5 + $0x130] sm:$0xff]  ;;  %v13933_v62 = vld [vmem:[%s17560_s5 + $0x138] sm:$0xff] }
  0x3a   :  { %17676 = vst [vmem:[#allocation126_spill] sm:$0xff] %v13928_v61  ;;  %17677 = vst [vmem:[#allocation127_spill] sm:$0xff] %v13933_v62  ;;  %v13938_v63 = vld [vmem:[%s17560_s5 + $0x140] sm:$0xff]  ;;  %v13943_v59 = vld [vmem:[%s17560_s5 + $0x148] sm:$0xff] }
  0x3b   :  { %17678 = vst [vmem:[#allocation128_spill] sm:$0xff] %v13938_v63  ;;  %17679 = vst [vmem:[#allocation129_spill] sm:$0xff] %v13943_v59  ;;  %v13948_v60 = vld [vmem:[%s17560_s5 + $0x150] sm:$0xff]  ;;  %v13953_v61 = vld [vmem:[%s17560_s5 + $0x158] sm:$0xff] }
  0x3c   :  { %17680 = vst [vmem:[#allocation130_spill] sm:$0xff] %v13948_v60  ;;  %17681 = vst [vmem:[#allocation131_spill] sm:$0xff] %v13953_v61  ;;  %v13958_v62 = vld [vmem:[%s17560_s5 + $0x160] sm:$0xff]  ;;  %v13963_v63 = vld [vmem:[%s17560_s5 + $0x168] sm:$0xff] }
  0x3d   :  { %17682 = vst [vmem:[#allocation132_spill] sm:$0xff] %v13958_v62  ;;  %17683 = vst [vmem:[#allocation133_spill] sm:$0xff] %v13963_v63  ;;  %v13968_v59 = vld [vmem:[%s17560_s5 + $0x170] sm:$0xff]  ;;  %v13973_v60 = vld [vmem:[%s17560_s5 + $0x178] sm:$0xff] }
  0x3e   :  { %17684 = vst [vmem:[#allocation134_spill] sm:$0xff] %v13968_v59  ;;  %17685 = vst [vmem:[#allocation135_spill] sm:$0xff] %v13973_v60  ;;  %v13978_v61 = vld [vmem:[%s17560_s5 + $0x180] sm:$0xff]  ;;  %v13983_v62 = vld [vmem:[%s17560_s5 + $0x188] sm:$0xff] }
  0x3f   :  { %17686 = vst [vmem:[#allocation136_spill] sm:$0xff] %v13978_v61  ;;  %17687 = vst [vmem:[#allocation137_spill] sm:$0xff] %v13983_v62  ;;  %v13988_v63 = vld [vmem:[%s17560_s5 + $0x190] sm:$0xff]  ;;  %v13993_v59 = vld [vmem:[%s17560_s5 + $0x198] sm:$0xff] }
  0x40   :  { %17688 = vst [vmem:[#allocation138_spill] sm:$0xff] %v13988_v63  ;;  %17689 = vst [vmem:[#allocation139_spill] sm:$0xff] %v13993_v59  ;;  %v13998_v60 = vld [vmem:[%s17560_s5 + $0x1a0] sm:$0xff]  ;;  %v14003_v61 = vld [vmem:[%s17560_s5 + $0x1a8] sm:$0xff] }
  0x41   :  { %17690 = vst [vmem:[#allocation140_spill] sm:$0xff] %v13998_v60  ;;  %17691 = vst [vmem:[#allocation141_spill] sm:$0xff] %v14003_v61  ;;  %v14008_v62 = vld [vmem:[%s17560_s5 + $0x1b0] sm:$0xff]  ;;  %v14013_v63 = vld [vmem:[%s17560_s5 + $0x1b8] sm:$0xff] }
  0x42   :  { %17692 = vst [vmem:[#allocation142_spill] sm:$0xff] %v14008_v62  ;;  %17693 = vst [vmem:[#allocation143_spill] sm:$0xff] %v14013_v63  ;;  %v14018_v59 = vld [vmem:[%s17560_s5 + $0x1c0] sm:$0xff]  ;;  %v14023_v60 = vld [vmem:[%s17560_s5 + $0x1c8] sm:$0xff] }
  0x43   :  { %17694 = vst [vmem:[#allocation144_spill] sm:$0xff] %v14018_v59  ;;  %17695 = vst [vmem:[#allocation145_spill] sm:$0xff] %v14023_v60  ;;  %v14028_v61 = vld [vmem:[%s17560_s5 + $0x1d0] sm:$0xff]  ;;  %v14033_v62 = vld [vmem:[%s17560_s5 + $0x1d8] sm:$0xff] }
  0x44   :  { %17696 = vst [vmem:[#allocation146_spill] sm:$0xff] %v14028_v61  ;;  %17697 = vst [vmem:[#allocation147_spill] sm:$0xff] %v14033_v62  ;;  %v14038_v63 = vld [vmem:[%s17560_s5 + $0x1e0] sm:$0xff]  ;;  %v14043_v59 = vld [vmem:[%s17560_s5 + $0x1e8] sm:$0xff] }
  0x45   :  { %17698 = vst [vmem:[#allocation148_spill] sm:$0xff] %v14038_v63  ;;  %17699 = vst [vmem:[#allocation149_spill] sm:$0xff] %v14043_v59  ;;  %v14048_v60 = vld [vmem:[%s17560_s5 + $0x1f0] sm:$0xff]  ;;  %v14053_v61 = vld [vmem:[%s17560_s5 + $0x1f8] sm:$0xff] }
  0x46   :  { %17700 = vst [vmem:[#allocation150_spill] sm:$0xff] %v14048_v60  ;;  %17701 = vst [vmem:[#allocation151_spill] sm:$0xff] %v14053_v61  ;;  %v14058_v62 = vld [vmem:[%s17560_s5 + $0x200] sm:$0xff]  ;;  %v14063_v63 = vld [vmem:[%s17560_s5 + $0x208] sm:$0xff] }
  0x47   :  { %17702 = vst [vmem:[#allocation152_spill] sm:$0xff] %v14058_v62  ;;  %17703 = vst [vmem:[#allocation153_spill] sm:$0xff] %v14063_v63  ;;  %v14068_v59 = vld [vmem:[%s17560_s5 + $0x210] sm:$0xff]  ;;  %v14073_v60 = vld [vmem:[%s17560_s5 + $0x218] sm:$0xff] }
  0x48   :  { %17704 = vst [vmem:[#allocation154_spill] sm:$0xff] %v14068_v59  ;;  %17705 = vst [vmem:[#allocation155_spill] sm:$0xff] %v14073_v60  ;;  %v14078_v61 = vld [vmem:[%s17560_s5 + $0x220] sm:$0xff]  ;;  %v14083_v62 = vld [vmem:[%s17560_s5 + $0x228] sm:$0xff] }
  0x49   :  { %17706 = vst [vmem:[#allocation156_spill] sm:$0xff] %v14078_v61  ;;  %17707 = vst [vmem:[#allocation157_spill] sm:$0xff] %v14083_v62  ;;  %v14088_v63 = vld [vmem:[%s17560_s5 + $0x230] sm:$0xff]  ;;  %v14093_v59 = vld [vmem:[%s17560_s5 + $0x238] sm:$0xff] }
  0x4a   :  { %17708 = vst [vmem:[#allocation158_spill] sm:$0xff] %v14088_v63  ;;  %17709 = vst [vmem:[#allocation159_spill] sm:$0xff] %v14093_v59 }
  0x4b   :  { %390 = vsyncadd [#allocation10 + $0x1], 9216  ;;  %v14098_v61 = vld [vmem:[%s17561_s6] sm:$0xff]  ;;  %v14103_v62 = vld [vmem:[%s17561_s6 + $0x8] sm:$0xff] }
  0x4c   :  { %17710 = vst [vmem:[#allocation160_spill] sm:$0xff] %v14098_v61  ;;  %17711 = vst [vmem:[#allocation161_spill] sm:$0xff] %v14103_v62  ;;  %v14108_v63 = vld [vmem:[%s17561_s6 + $0x10] sm:$0xff]  ;;  %v14113_v59 = vld [vmem:[%s17561_s6 + $0x18] sm:$0xff] }
  0x4d   :  { %17712 = vst [vmem:[#allocation162_spill] sm:$0xff] %v14108_v63  ;;  %17713 = vst [vmem:[#allocation163_spill] sm:$0xff] %v14113_v59  ;;  %v14118_v60 = vld [vmem:[%s17561_s6 + $0x20] sm:$0xff]  ;;  %v14123_v61 = vld [vmem:[%s17561_s6 + $0x28] sm:$0xff] }
  0x4e   :  { %17714 = vst [vmem:[#allocation164_spill] sm:$0xff] %v14118_v60  ;;  %17715 = vst [vmem:[#allocation165_spill] sm:$0xff] %v14123_v61  ;;  %v14128_v62 = vld [vmem:[%s17561_s6 + $0x30] sm:$0xff]  ;;  %v14133_v63 = vld [vmem:[%s17561_s6 + $0x38] sm:$0xff] }
  0x4f   :  { %17716 = vst [vmem:[#allocation166_spill] sm:$0xff] %v14128_v62  ;;  %17717 = vst [vmem:[#allocation167_spill] sm:$0xff] %v14133_v63  ;;  %v14138_v59 = vld [vmem:[%s17561_s6 + $0x40] sm:$0xff]  ;;  %v14143_v60 = vld [vmem:[%s17561_s6 + $0x48] sm:$0xff] }
  0x50   :  { %17718 = vst [vmem:[#allocation168_spill] sm:$0xff] %v14138_v59  ;;  %17719 = vst [vmem:[#allocation169_spill] sm:$0xff] %v14143_v60  ;;  %v14148_v61 = vld [vmem:[%s17561_s6 + $0x50] sm:$0xff]  ;;  %v14153_v62 = vld [vmem:[%s17561_s6 + $0x58] sm:$0xff] }
  0x51   :  { %17720 = vst [vmem:[#allocation170_spill] sm:$0xff] %v14148_v61  ;;  %17721 = vst [vmem:[#allocation171_spill] sm:$0xff] %v14153_v62  ;;  %v14158_v63 = vld [vmem:[%s17561_s6 + $0x60] sm:$0xff]  ;;  %v14163_v59 = vld [vmem:[%s17561_s6 + $0x68] sm:$0xff] }
  0x52   :  { %17722 = vst [vmem:[#allocation172_spill] sm:$0xff] %v14158_v63  ;;  %17723 = vst [vmem:[#allocation173_spill] sm:$0xff] %v14163_v59  ;;  %v14168_v60 = vld [vmem:[%s17561_s6 + $0x70] sm:$0xff]  ;;  %v14173_v61 = vld [vmem:[%s17561_s6 + $0x78] sm:$0xff] }
  0x53   :  { %17724 = vst [vmem:[#allocation174_spill] sm:$0xff] %v14168_v60  ;;  %17725 = vst [vmem:[#allocation175_spill] sm:$0xff] %v14173_v61  ;;  %v14178_v62 = vld [vmem:[%s17561_s6 + $0x80] sm:$0xff]  ;;  %v14183_v63 = vld [vmem:[%s17561_s6 + $0x88] sm:$0xff] }
  0x54   :  { %17726 = vst [vmem:[#allocation176_spill] sm:$0xff] %v14178_v62  ;;  %17727 = vst [vmem:[#allocation177_spill] sm:$0xff] %v14183_v63  ;;  %v14188_v59 = vld [vmem:[%s17561_s6 + $0x90] sm:$0xff]  ;;  %v14193_v60 = vld [vmem:[%s17561_s6 + $0x98] sm:$0xff] }
  0x55   :  { %17728 = vst [vmem:[#allocation178_spill] sm:$0xff] %v14188_v59  ;;  %17729 = vst [vmem:[#allocation179_spill] sm:$0xff] %v14193_v60  ;;  %v14198_v61 = vld [vmem:[%s17561_s6 + $0xa0] sm:$0xff]  ;;  %v14203_v62 = vld [vmem:[%s17561_s6 + $0xa8] sm:$0xff] }
  0x56   :  { %17730 = vst [vmem:[#allocation180_spill] sm:$0xff] %v14198_v61  ;;  %17731 = vst [vmem:[#allocation181_spill] sm:$0xff] %v14203_v62  ;;  %v14208_v63 = vld [vmem:[%s17561_s6 + $0xb0] sm:$0xff]  ;;  %v14213_v59 = vld [vmem:[%s17561_s6 + $0xb8] sm:$0xff] }
  0x57   :  { %17732 = vst [vmem:[#allocation182_spill] sm:$0xff] %v14208_v63  ;;  %17733 = vst [vmem:[#allocation183_spill] sm:$0xff] %v14213_v59  ;;  %v14218_v60 = vld [vmem:[%s17561_s6 + $0xc0] sm:$0xff]  ;;  %v14223_v61 = vld [vmem:[%s17561_s6 + $0xc8] sm:$0xff] }
  0x58   :  { %17734 = vst [vmem:[#allocation184_spill] sm:$0xff] %v14218_v60  ;;  %17735 = vst [vmem:[#allocation185_spill] sm:$0xff] %v14223_v61  ;;  %v14228_v62 = vld [vmem:[%s17561_s6 + $0xd0] sm:$0xff]  ;;  %v14233_v63 = vld [vmem:[%s17561_s6 + $0xd8] sm:$0xff] }
  0x59   :  { %17736 = vst [vmem:[#allocation186_spill] sm:$0xff] %v14228_v62  ;;  %17737 = vst [vmem:[#allocation187_spill] sm:$0xff] %v14233_v63  ;;  %v14238_v59 = vld [vmem:[%s17561_s6 + $0xe0] sm:$0xff]  ;;  %v14243_v60 = vld [vmem:[%s17561_s6 + $0xe8] sm:$0xff] }
  0x5a   :  { %17738 = vst [vmem:[#allocation188_spill] sm:$0xff] %v14238_v59  ;;  %17739 = vst [vmem:[#allocation189_spill] sm:$0xff] %v14243_v60  ;;  %v14248_v61 = vld [vmem:[%s17561_s6 + $0xf0] sm:$0xff]  ;;  %v14253_v62 = vld [vmem:[%s17561_s6 + $0xf8] sm:$0xff] }
  0x5b   :  { %17740 = vst [vmem:[#allocation190_spill] sm:$0xff] %v14248_v61  ;;  %17741 = vst [vmem:[#allocation191_spill] sm:$0xff] %v14253_v62  ;;  %v14258_v63 = vld [vmem:[%s17561_s6 + $0x100] sm:$0xff]  ;;  %v14263_v59 = vld [vmem:[%s17561_s6 + $0x108] sm:$0xff] }
  0x5c   :  { %17742 = vst [vmem:[#allocation192_spill] sm:$0xff] %v14258_v63  ;;  %17743 = vst [vmem:[#allocation193_spill] sm:$0xff] %v14263_v59  ;;  %v14268_v60 = vld [vmem:[%s17561_s6 + $0x110] sm:$0xff]  ;;  %v14273_v61 = vld [vmem:[%s17561_s6 + $0x118] sm:$0xff] }
  0x5d   :  { %17744 = vst [vmem:[#allocation194_spill] sm:$0xff] %v14268_v60  ;;  %17745 = vst [vmem:[#allocation195_spill] sm:$0xff] %v14273_v61  ;;  %v14278_v62 = vld [vmem:[%s17561_s6 + $0x120] sm:$0xff]  ;;  %v14283_v63 = vld [vmem:[%s17561_s6 + $0x128] sm:$0xff] }
  0x5e   :  { %17746 = vst [vmem:[#allocation196_spill] sm:$0xff] %v14278_v62  ;;  %17747 = vst [vmem:[#allocation197_spill] sm:$0xff] %v14283_v63  ;;  %v14288_v59 = vld [vmem:[%s17561_s6 + $0x130] sm:$0xff]  ;;  %v14293_v60 = vld [vmem:[%s17561_s6 + $0x138] sm:$0xff] }
  0x5f   :  { %17748 = vst [vmem:[#allocation198_spill] sm:$0xff] %v14288_v59  ;;  %17749 = vst [vmem:[#allocation199_spill] sm:$0xff] %v14293_v60  ;;  %v14298_v61 = vld [vmem:[%s17561_s6 + $0x140] sm:$0xff]  ;;  %v14303_v62 = vld [vmem:[%s17561_s6 + $0x148] sm:$0xff] }
  0x60   :  { %17750 = vst [vmem:[#allocation200_spill] sm:$0xff] %v14298_v61  ;;  %17751 = vst [vmem:[#allocation201_spill] sm:$0xff] %v14303_v62  ;;  %v14308_v63 = vld [vmem:[%s17561_s6 + $0x150] sm:$0xff]  ;;  %v14313_v59 = vld [vmem:[%s17561_s6 + $0x158] sm:$0xff] }
  0x61   :  { %17752 = vst [vmem:[#allocation202_spill] sm:$0xff] %v14308_v63  ;;  %17753 = vst [vmem:[#allocation203_spill] sm:$0xff] %v14313_v59  ;;  %v14318_v60 = vld [vmem:[%s17561_s6 + $0x160] sm:$0xff]  ;;  %v14323_v61 = vld [vmem:[%s17561_s6 + $0x168] sm:$0xff] }
  0x62   :  { %17754 = vst [vmem:[#allocation204_spill] sm:$0xff] %v14318_v60  ;;  %17755 = vst [vmem:[#allocation205_spill] sm:$0xff] %v14323_v61  ;;  %v14328_v62 = vld [vmem:[%s17561_s6 + $0x170] sm:$0xff]  ;;  %v14333_v63 = vld [vmem:[%s17561_s6 + $0x178] sm:$0xff] }
  0x63   :  { %17756 = vst [vmem:[#allocation206_spill] sm:$0xff] %v14328_v62  ;;  %17757 = vst [vmem:[#allocation207_spill] sm:$0xff] %v14333_v63  ;;  %v14338_v59 = vld [vmem:[%s17561_s6 + $0x180] sm:$0xff]  ;;  %v14343_v60 = vld [vmem:[%s17561_s6 + $0x188] sm:$0xff] }
  0x64   :  { %17758 = vst [vmem:[#allocation208_spill] sm:$0xff] %v14338_v59  ;;  %17759 = vst [vmem:[#allocation209_spill] sm:$0xff] %v14343_v60  ;;  %v14348_v61 = vld [vmem:[%s17561_s6 + $0x190] sm:$0xff]  ;;  %v14353_v62 = vld [vmem:[%s17561_s6 + $0x198] sm:$0xff] }
  0x65   :  { %17760 = vst [vmem:[#allocation210_spill] sm:$0xff] %v14348_v61  ;;  %17761 = vst [vmem:[#allocation211_spill] sm:$0xff] %v14353_v62  ;;  %v14358_v63 = vld [vmem:[%s17561_s6 + $0x1a0] sm:$0xff]  ;;  %v14363_v59 = vld [vmem:[%s17561_s6 + $0x1a8] sm:$0xff] }
  0x66   :  { %17762 = vst [vmem:[#allocation212_spill] sm:$0xff] %v14358_v63  ;;  %17763 = vst [vmem:[#allocation213_spill] sm:$0xff] %v14363_v59  ;;  %v14368_v60 = vld [vmem:[%s17561_s6 + $0x1b0] sm:$0xff]  ;;  %v14373_v61 = vld [vmem:[%s17561_s6 + $0x1b8] sm:$0xff] }
  0x67   :  { %17764 = vst [vmem:[#allocation214_spill] sm:$0xff] %v14368_v60  ;;  %17765 = vst [vmem:[#allocation215_spill] sm:$0xff] %v14373_v61  ;;  %v14378_v62 = vld [vmem:[%s17561_s6 + $0x1c0] sm:$0xff]  ;;  %v14383_v63 = vld [vmem:[%s17561_s6 + $0x1c8] sm:$0xff] }
  0x68   :  { %17766 = vst [vmem:[#allocation216_spill] sm:$0xff] %v14378_v62  ;;  %17767 = vst [vmem:[#allocation217_spill] sm:$0xff] %v14383_v63  ;;  %v14388_v59 = vld [vmem:[%s17561_s6 + $0x1d0] sm:$0xff]  ;;  %v14393_v60 = vld [vmem:[%s17561_s6 + $0x1d8] sm:$0xff] }
  0x69   :  { %17768 = vst [vmem:[#allocation218_spill] sm:$0xff] %v14388_v59  ;;  %17769 = vst [vmem:[#allocation219_spill] sm:$0xff] %v14393_v60  ;;  %v14398_v61 = vld [vmem:[%s17561_s6 + $0x1e0] sm:$0xff]  ;;  %v14403_v62 = vld [vmem:[%s17561_s6 + $0x1e8] sm:$0xff] }
  0x6a   :  { %17770 = vst [vmem:[#allocation220_spill] sm:$0xff] %v14398_v61  ;;  %17771 = vst [vmem:[#allocation221_spill] sm:$0xff] %v14403_v62  ;;  %v14408_v63 = vld [vmem:[%s17561_s6 + $0x1f0] sm:$0xff]  ;;  %v14413_v59 = vld [vmem:[%s17561_s6 + $0x1f8] sm:$0xff] }
  0x6b   :  { %17772 = vst [vmem:[#allocation222_spill] sm:$0xff] %v14408_v63  ;;  %17773 = vst [vmem:[#allocation223_spill] sm:$0xff] %v14413_v59  ;;  %v14418_v60 = vld [vmem:[%s17561_s6 + $0x200] sm:$0xff]  ;;  %v14423_v61 = vld [vmem:[%s17561_s6 + $0x208] sm:$0xff] }
  0x6c   :  { %17774 = vst [vmem:[#allocation224_spill] sm:$0xff] %v14418_v60  ;;  %17775 = vst [vmem:[#allocation225_spill] sm:$0xff] %v14423_v61  ;;  %v14428_v62 = vld [vmem:[%s17561_s6 + $0x210] sm:$0xff]  ;;  %v14433_v63 = vld [vmem:[%s17561_s6 + $0x218] sm:$0xff] }
  0x6d   :  { %17776 = vst [vmem:[#allocation226_spill] sm:$0xff] %v14428_v62  ;;  %17777 = vst [vmem:[#allocation227_spill] sm:$0xff] %v14433_v63  ;;  %v14438_v59 = vld [vmem:[%s17561_s6 + $0x220] sm:$0xff]  ;;  %v14443_v60 = vld [vmem:[%s17561_s6 + $0x228] sm:$0xff] }
  0x6e   :  { %17778 = vst [vmem:[#allocation228_spill] sm:$0xff] %v14438_v59  ;;  %17779 = vst [vmem:[#allocation229_spill] sm:$0xff] %v14443_v60  ;;  %v14448_v61 = vld [vmem:[%s17561_s6 + $0x230] sm:$0xff]  ;;  %v14453_v62 = vld [vmem:[%s17561_s6 + $0x238] sm:$0xff] }
  0x6f   :  { %17780 = vst [vmem:[#allocation230_spill] sm:$0xff] %v14448_v61  ;;  %17781 = vst [vmem:[#allocation231_spill] sm:$0xff] %v14453_v62 }
  0x70   :  { %575 = vsyncadd [#allocation10 + $0x2], 9216  ;;  %v14458_v59 = vld [vmem:[%s17562_s7] sm:$0xff]  ;;  %v14463_v60 = vld [vmem:[%s17562_s7 + $0x8] sm:$0xff] }
  0x71   :  { %17782 = vst [vmem:[#allocation232_spill] sm:$0xff] %v14458_v59  ;;  %17783 = vst [vmem:[#allocation233_spill] sm:$0xff] %v14463_v60  ;;  %v14468_v61 = vld [vmem:[%s17562_s7 + $0x10] sm:$0xff]  ;;  %v14473_v62 = vld [vmem:[%s17562_s7 + $0x18] sm:$0xff] }
  0x72   :  { %17784 = vst [vmem:[#allocation234_spill] sm:$0xff] %v14468_v61  ;;  %17785 = vst [vmem:[#allocation235_spill] sm:$0xff] %v14473_v62  ;;  %v14478_v63 = vld [vmem:[%s17562_s7 + $0x20] sm:$0xff]  ;;  %v14483_v59 = vld [vmem:[%s17562_s7 + $0x28] sm:$0xff] }
  0x73   :  { %17786 = vst [vmem:[#allocation236_spill] sm:$0xff] %v14478_v63  ;;  %17787 = vst [vmem:[#allocation237_spill] sm:$0xff] %v14483_v59  ;;  %v14488_v60 = vld [vmem:[%s17562_s7 + $0x30] sm:$0xff]  ;;  %v14493_v61 = vld [vmem:[%s17562_s7 + $0x38] sm:$0xff] }
  0x74   :  { %17788 = vst [vmem:[#allocation238_spill] sm:$0xff] %v14488_v60  ;;  %17789 = vst [vmem:[#allocation239_spill] sm:$0xff] %v14493_v61 }
  0x75   :  { %632 = vsyncadd [#allocation10 + $0x3], 1024  ;;  %v13187_v63 = vld [vmem:[%s17556_s1] sm:$0xff]   ;;  %v17564_v62 = vmov 0.0   ;;  %v13188_v60 = vld [vmem:[%s17556_s1 + $0x8] sm:$0xff]   ;;  %vm13328_vm0 = vmmov 0  }
  0x76   :  { %9843 = vmatprep.subr.bf16.mxu0 %v17564_v62  ;;  %11947 = vmatprep.subr.bf16.mxu1 %v17564_v62  ;;  %v13189_v61 = vld [vmem:[%s17556_s1 + $0x10] sm:$0xff]   ;;  %v13191_v59 = vld [vmem:[%s17556_s1 + $0x20] sm:$0xff]   ;;  %vm1148_vm5 = vsmask.f32 7424  ;;  %vm2225_vm12 = vsmask.f32 2304 }
  0x77   :  { %9844 = vmatpush3.bf16.msra.mxu0 %v13187_v63  ;;  %9859 = vmatprep.mubr.msk.bf16.mxu0 %vm13328_vm0, %v17564_v62  ;;  %v13190_v63 = vld [vmem:[%s17556_s1 + $0x18] sm:$0xff]   ;;  %v14670_v58 = vld [vmem:[%s17558_s3 + $0x1] ss:$0 sm:$0xff] }
  0x78   :  { %9845 = vmatprep.subr.bf16.mxu0 %v17564_v62  ;;  %10091 = vmatprep.mubr.msk.bf16.mxu1 %vm13328_vm0, %v17564_v62  ;;  %v13239_v28 = vld [vmem:[%s17557_s2 + $0x38] sm:$0xff]  }
  0x7b   :  { %9846 = vmatpush3.bf16.msra.mxu0 %v13188_v60  ;;  %v13192_v60 = vld [vmem:[%s17556_s1 + $0x28] sm:$0xff]  }
  0x7c   :  { %9847 = vmatprep.subr.bf16.mxu0 %v17564_v62 }
  0x7f   :  { %9848 = vmatpush3.bf16.msra.mxu0 %v13189_v61  ;;  %v13193_v61 = vld [vmem:[%s17556_s1 + $0x30] sm:$0xff]  }
  0x80   :  { %9849 = vmatprep.subr.bf16.mxu0 %v17564_v62 }
  0x83   :  { %9850 = vmatpush3.bf16.msra.mxu0 %v13190_v63  ;;  %v13194_v63 = vld [vmem:[%s17556_s1 + $0x38] sm:$0xff]  }
  0x84   :  { %9851 = vmatprep.subr.bf16.mxu0 %v17564_v62 }
  0x87   :  { %9852 = vmatpush3.bf16.msra.mxu0 %v13191_v59  ;;  %v13195_v59 = vld [vmem:[%s17555_s0] sm:$0xff]  }
  0x88   :  { %9853 = vmatprep.subr.bf16.mxu0 %v17564_v62 }
  0x8b   :  { %9854 = vmatpush3.bf16.msra.mxu0 %v13192_v60  ;;  %v13196_v60 = vld [vmem:[%s17555_s0 + $0x8] sm:$0xff]  }
  0x8c   :  { %9855 = vmatprep.subr.bf16.mxu0 %v17564_v62 }
  0x8f   :  { %9856 = vmatpush3.bf16.msra.mxu0 %v13193_v61  ;;  %v13197_v61 = vld [vmem:[%s17555_s0 + $0x10] sm:$0xff]  }
  0x90   :  { %9857 = vmatprep.subr.bf16.mxu0 %v17564_v62 }
  0x93   :  { %9858 = vmatpush3.bf16.msra.mxu0 %v13194_v63  ;;  %v13198_v63 = vld [vmem:[%s17555_s0 + $0x18] sm:$0xff]  }
  0x94   :  { %9911 = vmatprep.subr.bf16.mxu0 %v17564_v62 }
  0x96   :  { %9860 = vmatmul.mubr.bf16.vlgmr.msra.gmra.mrb[0].mxu0 %v13195_v59  ;;  %v13199_v59 = vld [vmem:[%s17555_s0 + $0x20] sm:$0xff]  }
  0x97   :  { %9863 = vmatprep.mubr.msk.bf16.mxu0 %vm13328_vm0, %v17564_v62 }
  0x9e   :  { %9864 = vmatmul.mubr.bf16.gmra.mrb[4].mxu0 %v13196_v60  ;;  %v13200_v60 = vld [vmem:[%s17555_s0 + $0x28] sm:$0xff]  }
  0x9f   :  { %9867 = vmatprep.mubr.msk.bf16.mxu0 %vm13328_vm0, %v17564_v62 }
  0xa6   :  { %9868 = vmatmul.mubr.bf16.gmra.mrb[8].mxu0 %v13197_v61  ;;  %v13201_v61 = vld [vmem:[%s17555_s0 + $0x30] sm:$0xff]  }
  0xa7   :  { %9871 = vmatprep.mubr.msk.bf16.mxu0 %vm13328_vm0, %v17564_v62 }
  0xae   :  { %9872 = vmatmul.mubr.bf16.gmra.mrb[12].mxu0 %v13198_v63  ;;  %v13202_v63 = vld [vmem:[%s17555_s0 + $0x38] sm:$0xff]  }
  0xaf   :  { %9875 = vmatprep.mubr.msk.bf16.mxu0 %vm13328_vm0, %v17564_v62 }
  0xb6   :  { %9876 = vmatmul.mubr.bf16.gmra.mrb[16].mxu0 %v13199_v59  ;;  %v13203_v59 = vld [vmem:[%s17555_s0 + $0x40] sm:$0xff]  }
  0xb7   :  { %9879 = vmatprep.mubr.msk.bf16.mxu0 %vm13328_vm0, %v17564_v62 }
  0xbe   :  { %9880 = vmatmul.mubr.bf16.gmra.mrb[20].mxu0 %v13200_v60  ;;  %v13204_v60 = vld [vmem:[%s17555_s0 + $0x48] sm:$0xff]  }
  0xbf   :  { %9883 = vmatprep.mubr.msk.bf16.mxu0 %vm13328_vm0, %v17564_v62 }
  0xc6   :  { %9884 = vmatmul.mubr.bf16.gmra.mrb[24].mxu0 %v13201_v61  ;;  %v13208_v61 = vld [vmem:[%s17557_s2 + $0x40] sm:$0xff]  }
  0xc7   :  { %9887 = vmatprep.mubr.msk.bf16.mxu0 %vm13328_vm0, %v17564_v62  ;;  %9912 = vmatpush3.bf16.msra.mxu0 %v13208_v61  ;;  %v13206_v61 = vld [vmem:[%s17555_s0 + $0x58] sm:$0xff]  }
  0xc8   :  { %9913 = vmatprep.subr.bf16.mxu0 %v17564_v62 }
  0xce   :  { %9888 = vmatmul.mubr.bf16.gmra.mrb[28].mxu0 %v13202_v63  ;;  %v13205_v63 = vld [vmem:[%s17555_s0 + $0x50] sm:$0xff]  }
  0xcf   :  { %9891 = vmatprep.mubr.msk.bf16.mxu0 %vm13328_vm0, %v17564_v62 }
  0xd6   :  { %9892 = vmatmul.mubr.bf16.gmra.mrb[32].mxu0 %v13203_v59  ;;  %v13209_v59 = vld [vmem:[%s17557_s2 + $0x48] sm:$0xff]  }
  0xd7   :  { %9895 = vmatprep.mubr.msk.bf16.mxu0 %vm13328_vm0, %v17564_v62  ;;  %9914 = vmatpush3.bf16.msra.mxu0 %v13209_v59  ;;  %v13212_v59 = vld [vmem:[%s17557_s2 + $0x60] sm:$0xff]  }
  0xd8   :  { %9915 = vmatprep.subr.bf16.mxu0 %v17564_v62 }
  0xde   :  { %9896 = vmatmul.mubr.bf16.gmra.mrb[36].mxu0 %v13204_v60  ;;  %v13210_v60 = vld [vmem:[%s17557_s2 + $0x50] sm:$0xff]  }
  0xdf   :  { %9899 = vmatprep.mubr.msk.bf16.mxu0 %vm13328_vm0, %v17564_v62  ;;  %9916 = vmatpush3.bf16.msra.mxu0 %v13210_v60  ;;  %v13207_v60 = vld [vmem:[%s17555_s0 + $0x60] ss:$0 sps:$4 sm:$0xff]  }
  0xe0   :  { %9917 = vmatprep.subr.bf16.mxu0 %v17564_v62 }
  0xe6   :  { %9900 = vmatmul.mubr.bf16.gmra.mrb[40].mxu0 %v13205_v63  ;;  %v13211_v63 = vld [vmem:[%s17557_s2 + $0x58] sm:$0xff]  }
  0xe7   :  { %9903 = vmatprep.mubr.msk.bf16.mxu0 %vm13328_vm0, %v17564_v62  ;;  %9918 = vmatpush3.bf16.msra.mxu0 %v13211_v63  ;;  %v13214_v63 = vld [vmem:[%s17557_s2 + $0x70] sm:$0xff]  }
  0xe8   :  { %9919 = vmatprep.subr.bf16.mxu0 %v17564_v62 }
  0xeb   :  { %9920 = vmatpush3.bf16.msra.mxu0 %v13212_v59  ;;  %v13215_v59 = vld [vmem:[%s17557_s2 + $0x78] sm:$0xff]  }
  0xec   :  { %9921 = vmatprep.subr.bf16.mxu0 %v17564_v62 }
  0xee   :  { %9904 = vmatmul.mubr.bf16.gmra.mrb[44].mxu0 %v13206_v61  ;;  %v13213_v61 = vld [vmem:[%s17557_s2 + $0x68] sm:$0xff]  }
  0xef   :  { %9907 = vmatprep.mubr.msk.bf16.mxu0 %vm13328_vm0, %v17564_v62  ;;  %9922 = vmatpush3.bf16.msra.mxu0 %v13213_v61  ;;  %v13217_v61 = vld [vmem:[%s17557_s2 + $0x88] sm:$0xff]  }
  0xf0   :  { %9923 = vmatprep.subr.bf16.mxu0 %v17564_v62 }
  0xf3   :  { %9924 = vmatpush3.bf16.msra.mxu0 %v13214_v63  ;;  %v13218_v63 = vld [vmem:[%s17557_s2 + $0x90] sm:$0xff]  }
  0xf4   :  { %9925 = vmatprep.subr.bf16.mxu0 %v17564_v62 }
  0xf6   :  { %9908 = vmatmul.mubr.bf16.gmra.mrb[48].mxu0 %v13207_v60  ;;  %v13216_v60 = vld [vmem:[%s17557_s2 + $0x80] sm:$0xff]  }
  0xf7   :  { %9927 = vmatprep.mubr.msk.bf16.mxu0 %vm13328_vm0, %v17564_v62  ;;  %9926 = vmatpush3.bf16.msra.mxu0 %v13215_v59  ;;  %v13219_v59 = vld [vmem:[%s17557_s2 + $0x98] sm:$0xff]  }
  0xf8   :  { %9979 = vmatprep.subr.bf16.mxu0 %v17564_v62  ;;  %11955 = vmatpush3.bf16.msra.mxu1 %v13216_v60  ;;  %v13220_v60 = vld [vmem:[%s17557_s2 + $0xa0] sm:$0xff]  }
  0xf9   :  { %11948 = vmatprep.subr.bf16.mxu1 %v17564_v62 }
  0xfc   :  { %11956 = vmatpush3.bf16.msra.mxu1 %v13217_v61  ;;  %v13221_v61 = vld [vmem:[%s17557_s2 + $0xa8] sm:$0xff]  }
  0xfd   :  { %11949 = vmatprep.subr.bf16.mxu1 %v17564_v62 }
 0x100   :  { %11957 = vmatpush3.bf16.msra.mxu1 %v13218_v63  ;;  %v13222_v63 = vld [vmem:[%s17557_s2 + $0xb0] sm:$0xff]  }
 0x101   :  { %11950 = vmatprep.subr.bf16.mxu1 %v17564_v62 }
 0x104   :  { %11958 = vmatpush3.bf16.msra.mxu1 %v13219_v59  ;;  %v13223_v59 = vld [vmem:[%s17557_s2 + $0xb8] sm:$0xff]  }
 0x105   :  { %11951 = vmatprep.subr.bf16.mxu1 %v17564_v62 }
 0x108   :  { %11959 = vmatpush3.bf16.msra.mxu1 %v13220_v60  ;;  %v13329_v60 = vmov 0  }
 0x109   :  { %11952 = vmatprep.subr.bf16.mxu1 %v17564_v62  ;;  %633 = vst [vmem:[#allocation2 + $0x60] sm:$0xf0] %v13329_v60  ;;  %635 = vst [vmem:[#allocation3 + $0x60] sm:$0xf0] %v13329_v60 }
 0x10a   :  { %636 = vst [vmem:[#allocation3 + $0x68] sm:$0xff] %v13329_v60  ;;  %637 = vst [vmem:[#allocation4 + $0x60] sm:$0xf0] %v13329_v60 }
 0x10b   :  { %638 = vst [vmem:[#allocation4 + $0x68] sm:$0xff] %v13329_v60  ;;  %634 = vst [vmem:[#allocation2 + $0x68] sm:$0xff] %v13329_v60 }
 0x10c   :  { %11960 = vmatpush3.bf16.msra.mxu1 %v13221_v61  ;;  %v14665_v61 = vld [vmem:[%s17558_s3] ss:$0 sm:$0xff] }
 0x10d   :  { %11953 = vmatprep.subr.bf16.mxu1 %v17564_v62 }
 0x110   :  { %11961 = vmatpush3.bf16.msra.mxu1 %v13222_v63 }
 0x111   :  { %11954 = vmatprep.subr.bf16.mxu1 %v17564_v62 }
 0x114   :  { %11962 = vmatpush3.bf16.msra.mxu1 %v13223_v59 }
 0x115   :  { %10115 = vmatprep.subr.bf16.mxu1 %v17564_v62 }
 0x169   :  { %v838_v63 = vpop.f32.mrb[0].mxu0 }
 0x16a   :  { %v945_v59 = vmul.f32 %v14665_v61, %v838_v63  ;;  %v9861_v62 = vpop.f32.mrb[1].mxu0 }
 0x16b   :  { %v841_v57 = vpop.f32.mrb[2].mxu0 }
 0x16c   :  { %v975_v56 = vadd.f32 %v14670_v58, %v945_v59  ;;  %v946_v55 = vmul.f32 %v14665_v61, %v841_v57  ;;  %v9862_v60 = vpop.f32.mrb[3].mxu0 }
 0x16e   :  { %v1025_v54 = vmul.f32 0.01, %v975_v56  ;;  %v976_v53 = vadd.f32 %v14670_v58, %v946_v55  ;;  %vm1000_vm1 = vcmp.ge.f32.partialorder %v975_v56, 0.0 }
 0x170   :  { %vm1001_vm2 = vcmp.ge.f32.partialorder %v976_v53, 0.0  ;;  %v1026_v52 = vmul.f32 0.01, %v976_v53  ;;  %v1050_v50 = vsel %vm1000_vm1, %v975_v56, %v1025_v54 }
 0x171   :  { %v846_v51 = vpop.f32.mrb[4].mxu0 }
 0x172   :  { %v1051_v49 = vsel %vm1001_vm2, %v976_v53, %v1026_v52  ;;  %v947_v48 = vmul.f32 %v14665_v61, %v846_v51  ;;  %v9865_v47 = vpop.f32.mrb[5].mxu0 }
 0x173   :  { %v14677_v63 = vpack.c.bf16 %v1051_v49, %v1050_v50  ;;  %v849_v62 = vpop.f32.mrb[6].mxu0 }
 0x174   :  { %v977_v59 = vadd.f32 %v14670_v58, %v947_v48  ;;  %v948_v57 = vmul.f32 %v14665_v61, %v849_v62  ;;  %v9866_v60 = vpop.f32.mrb[7].mxu0 }
 0x175   :  { %1088 = vst [vmem:[#allocation2] sm:$0xff] %v14677_v63  ;;  %v1152_v54 = vshll.u32 %v14677_v63, 16  ;;  %v1150_v44 = vshrl.u32 %v14677_v63, 16 }
 0x176   :  { %v1027_v55 = vmul.f32 0.01, %v977_v59  ;;  %v978_v46 = vadd.f32 %v14670_v58, %v948_v57  ;;  %vm1002_vm3 = vcmp.ge.f32.partialorder %v977_v59, 0.0 }
 0x177   :  { %v1154_v62 = vrot.slane %v1152_v54, 1  ;;  %v13228_v54 = vld [vmem:[%s17557_s2] sm:$0xff]  }
 0x178   :  { %vm1003_vm4 = vcmp.ge.f32.partialorder %v978_v46, 0.0  ;;  %v1028_v52 = vmul.f32 0.01, %v978_v46  ;;  %v1052_v47 = vsel %vm1002_vm3, %v977_v59, %v1027_v55 }
 0x179   :  { %v854_v51 = vpop.f32.mrb[8].mxu0  ;;  %v1155_v55 = vor.u32 %v1154_v62, %v1150_v44  ;;  %v17790_v44 = vmov 0.0  }
 0x17a   :  { %v1053_v49 = vsel %vm1003_vm4, %v978_v46, %v1028_v52  ;;  %v949_v50 = vmul.f32 %v14665_v61, %v854_v51  ;;  %v9869_v53 = vpop.f32.mrb[9].mxu0  ;;  %vm3130_vm4 = vsmask.f32 5376 }
 0x17b   :  { %v14685_v48 = vpack.c.bf16 %v1053_v49, %v1052_v47  ;;  %v857_v56 = vpop.f32.mrb[10].mxu0 }
 0x17c   :  { %v979_v60 = vadd.f32 %v14670_v58, %v949_v50  ;;  %v950_v45 = vmul.f32 %v14665_v61, %v857_v56  ;;  %v9870_v57 = vpop.f32.mrb[11].mxu0 }
 0x17d   :  { %1089 = vst [vmem:[#allocation2 + $0x8] sm:$0xff] %v14685_v48  ;;  %v1157_v43 = vshll.u32 %v14685_v48, 16 }
 0x17e   :  { %v1029_v59 = vmul.f32 0.01, %v979_v60  ;;  %v980_v46 = vadd.f32 %v14670_v58, %v950_v45  ;;  %vm1004_vm6 = vcmp.ge.f32.partialorder %v979_v60, 0.0 }
 0x17f   :  { %v1159_v52 = vrot.slane %v1157_v43, 1  ;;  %v13229_v43 = vld [vmem:[%s17557_s2 + $0x8] sm:$0xff]  }
 0x180   :  { %vm1005_vm7 = vcmp.ge.f32.partialorder %v980_v46, 0.0  ;;  %v1030_v51 = vmul.f32 0.01, %v980_v46  ;;  %v1054_v50 = vsel %vm1004_vm6, %v979_v60, %v1029_v59 }
 0x181   :  { %v862_v47 = vpop.f32.mrb[12].mxu0  ;;  %v1160_v49 = vsel %vm1148_vm5, %v1155_v55, %v1159_v52 }
 0x182   :  { %v1055_v53 = vsel %vm1005_vm7, %v980_v46, %v1030_v51  ;;  %v951_v56 = vmul.f32 %v14665_v61, %v862_v47  ;;  %v9873_v57 = vpop.f32.mrb[13].mxu0  ;;  %9928 = vmatmul.mubr.bf16.vlgmr.msra.gmra.mrb[52].mxu0 %v1160_v49  ;;  %v1161_v46 = vshrl.u32 %v14685_v48, 16 }
 0x183   :  { %v14698_v45 = vpack.c.bf16 %v1055_v53, %v1054_v50  ;;  %v865_v42 = vpop.f32.mrb[14].mxu0  ;;  %9931 = vmatprep.mubr.msk.bf16.mxu0 %vm13328_vm0, %v17790_v44  ;;  %9980 = vmatpush3.bf16.msra.mxu0 %v13228_v54 }
 0x184   :  { %v981_v62 = vadd.f32 %v14670_v58, %v951_v56  ;;  %v952_v60 = vmul.f32 %v14665_v61, %v865_v42  ;;  %v9874_v59 = vpop.f32.mrb[15].mxu0  ;;  %9981 = vmatprep.subr.bf16.mxu0 %v17790_v44  ;;  %v1163_v47 = vor.u32 %v1161_v46, %v1159_v52  ;;  %v13231_v42 = vld [vmem:[%s17557_s2 + $0x10] sm:$0xff]  }
 0x185   :  { %1090 = vst [vmem:[#allocation2 + $0x10] sm:$0xff] %v14698_v45  ;;  %v14711_v55 = vshll.u32 %v14698_v45, 16  ;;  %v14721_v57 = vshrl.u32 %v14698_v45, 16 }
 0x186   :  { %v1031_v51 = vmul.f32 0.01, %v981_v62  ;;  %v982_v54 = vadd.f32 %v14670_v58, %v952_v60  ;;  %vm1006_vm8 = vcmp.ge.f32.partialorder %v981_v62, 0.0 }
 0x187   :  { %v1167_v49 = vrot.slane %v14711_v55, 1  ;;  %9982 = vmatpush3.bf16.msra.mxu0 %v13229_v43 }
 0x188   :  { %vm1007_vm9 = vcmp.ge.f32.partialorder %v982_v54, 0.0  ;;  %v1032_v50 = vmul.f32 0.01, %v982_v54  ;;  %9983 = vmatprep.subr.bf16.mxu0 %v17790_v44  ;;  %v1056_v60 = vsel %vm1006_vm8, %v981_v62, %v1031_v51  ;;  %vm1664_vm8 = vcmask 1046528  }
 0x189   :  { %v870_v53 = vpop.f32.mrb[16].mxu0  ;;  %v1168_v56 = vsel %vm1148_vm5, %v1163_v47, %v1167_v49  ;;  %v13233_v47 = vld [vmem:[%s17557_s2 + $0x18] sm:$0xff]  }
 0x18a   :  { %v1057_v59 = vsel %vm1007_vm9, %v982_v54, %v1032_v50  ;;  %v953_v52 = vmul.f32 %v14665_v61, %v870_v53  ;;  %v9877_v46 = vpop.f32.mrb[17].mxu0  ;;  %9932 = vmatmul.mubr.bf16.gmra.mrb[56].mxu0 %v1168_v56  ;;  %v2249_v53 = vrot.slane %v14711_v55, 6 }
 0x18b   :  { %v14724_v43 = vpack.c.bf16 %v1057_v59, %v1056_v60  ;;  %v873_v41 = vpop.f32.mrb[18].mxu0  ;;  %9935 = vmatprep.mubr.msk.bf16.mxu0 %vm13328_vm0, %v17790_v44  ;;  %9984 = vmatpush3.bf16.msra.mxu0 %v13231_v42  ;;  %v2246_v42 = vrot.slane %v14721_v57, 5 }
 0x18c   :  { %v983_v40 = vadd.f32 %v14670_v58, %v953_v52  ;;  %v954_v62 = vmul.f32 %v14665_v61, %v873_v41  ;;  %v9878_v51 = vpop.f32.mrb[19].mxu0  ;;  %9985 = vmatprep.subr.bf16.mxu0 %v17790_v44  ;;  %v1171_v41 = vor.u32 %v14721_v57, %v1167_v49  ;;  %v13234_v52 = vld [vmem:[%s17557_s2 + $0x20] sm:$0xff]  }
 0x18d   :  { %1091 = vst [vmem:[#allocation2 + $0x18] sm:$0xff] %v14724_v43  ;;  %v14736_v54 = vshll.u32 %v14724_v43, 16  ;;  %v14739_v50 = vshrl.u32 %v14724_v43, 16  ;;  %v14753_v37 = vor.u32 %v2249_v53, %v2246_v42 }
 0x18e   :  { %v1033_v56 = vmul.f32 0.01, %v983_v40  ;;  %v984_v60 = vadd.f32 %v14670_v58, %v954_v62  ;;  %vm1008_vm10 = vcmp.ge.f32.partialorder %v983_v40, 0.0 }
 0x18f   :  { %v1175_v59 = vrot.slane %v14736_v54, 1  ;;  %9986 = vmatpush3.bf16.msra.mxu0 %v13233_v47  ;;  %v2255_v46 = vrot.slane %v14739_v50, 5  ;;  %v2258_v39 = vrot.slane %v14736_v54, 6 }
 0x190   :  { %vm1009_vm11 = vcmp.ge.f32.partialorder %v984_v60, 0.0  ;;  %v1034_v51 = vmul.f32 0.01, %v984_v60  ;;  %9987 = vmatprep.subr.bf16.mxu0 %v17790_v44  ;;  %v1058_v49 = vsel %vm1008_vm10, %v983_v40, %v1033_v56 }
 0x191   :  { %v878_v38 = vpop.f32.mrb[20].mxu0  ;;  %v1176_v62 = vsel %vm1148_vm5, %v1171_v41, %v1175_v59  ;;  %v2259_v34 = vor.u32 %v2258_v39, %v2255_v46  ;;  %v13236_v41 = vld [vmem:[%s17557_s2 + $0x28] sm:$0xff]  }
 0x192   :  { %v1059_v36 = vsel %vm1009_vm11, %v984_v60, %v1034_v51  ;;  %v955_v47 = vmul.f32 %v14665_v61, %v878_v38  ;;  %v9881_v35 = vpop.f32.mrb[21].mxu0  ;;  %9936 = vmatmul.mubr.bf16.gmra.mrb[60].mxu0 %v1176_v62 }
 0x193   :  { %v14756_v33 = vpack.c.bf16 %v1059_v36, %v1058_v49  ;;  %v881_v32 = vpop.f32.mrb[22].mxu0  ;;  %9939 = vmatprep.mubr.msk.bf16.mxu0 %vm13328_vm0, %v17790_v44  ;;  %9988 = vmatpush3.bf16.msra.mxu0 %v13234_v52  ;;  %v14768_v35 = vsel %vm2225_vm12, %v14753_v37, %v2259_v34  ;;  %v13238_v52 = vld [vmem:[%s17557_s2 + $0x30] sm:$0xff]  }
 0x194   :  { %v985_v40 = vadd.f32 %v14670_v58, %v955_v47  ;;  %v956_v42 = vmul.f32 %v14665_v61, %v881_v32  ;;  %v9882_v38 = vpop.f32.mrb[23].mxu0  ;;  %9989 = vmatprep.subr.bf16.mxu0 %v17790_v44  ;;  %v1179_v32 = vor.u32 %v14739_v50, %v1175_v59 }
 0x195   :  { %1092 = vst [vmem:[#allocation2 + $0x20] sm:$0xff] %v14756_v33  ;;  %v14772_v36 = vshll.u32 %v14756_v33, 16  ;;  %v14775_v39 = vshrl.u32 %v14756_v33, 16 }
 0x196   :  { %v1035_v53 = vmul.f32 0.01, %v985_v40  ;;  %v986_v56 = vadd.f32 %v14670_v58, %v956_v42  ;;  %vm1010_vm13 = vcmp.ge.f32.partialorder %v985_v40, 0.0 }
 0x197   :  { %v1183_v60 = vrot.slane %v14772_v36, 1  ;;  %9990 = vmatpush3.bf16.msra.mxu0 %v13236_v41  ;;  %v2264_v46 = vrot.slane %v14775_v39, 5  ;;  %v2267_v51 = vrot.slane %v14772_v36, 6 }
 0x198   :  { %vm1011_vm14 = vcmp.ge.f32.partialorder %v986_v56, 0.0  ;;  %v1036_v62 = vmul.f32 0.01, %v986_v56  ;;  %9991 = vmatprep.subr.bf16.mxu0 %v17790_v44  ;;  %v1060_v42 = vsel %vm1010_vm13, %v985_v40, %v1035_v53  ;;  %v2843_v40 = vld [vmem:[#allocation2 + $0x8] sm:$0xfc] }
 0x199   :  { %v886_v49 = vpop.f32.mrb[24].mxu0  ;;  %v1184_v47 = vsel %vm1148_vm5, %v1179_v32, %v1183_v60  ;;  %v2268_v59 = vor.u32 %v2267_v51, %v2264_v46 }
 0x19a   :  { %v1061_v38 = vsel %vm1011_vm14, %v986_v56, %v1036_v62  ;;  %v957_v41 = vmul.f32 %v14665_v61, %v886_v49  ;;  %v9885_v31 = vpop.f32.mrb[25].mxu0  ;;  %9940 = vmatmul.mubr.bf16.gmra.mrb[64].mxu0 %v1184_v47  ;;  %v1187_v62 = vor.u32 %v14775_v39, %v1183_v60  ;;  %v3132_v49 = vshrl.u32 %v2843_v40, 16 }
 0x19b   :  { %v14788_v30 = vpack.c.bf16 %v1061_v38, %v1060_v42  ;;  %v889_v29 = vpop.f32.mrb[26].mxu0  ;;  %9943 = vmatprep.mubr.msk.bf16.mxu0 %vm13328_vm0, %v17790_v44  ;;  %9992 = vmatpush3.bf16.msra.mxu0 %v13238_v52  ;;  %v14796_v32 = vsel %vm2225_vm12, %v2259_v34, %v2268_v59 }
 0x19c   :  { %v987_v53 = vadd.f32 %v14670_v58, %v957_v41  ;;  %v958_v31 = vmul.f32 %v14665_v61, %v889_v29  ;;  %v9886_v56 = vpop.f32.mrb[27].mxu0  ;;  %9993 = vmatprep.subr.bf16.mxu0 %v17790_v44  ;;  %v3135_v41 = vshll.u32 %v2843_v40, 16  ;;  %v3134_v40 = vrot.slane %v3132_v49, 2 }
 0x19d   :  { %1093 = vst [vmem:[#allocation2 + $0x28] sm:$0xff] %v14788_v30  ;;  %v14803_v46 = vshll.u32 %v14788_v30, 16  ;;  %v14806_v52 = vshrl.u32 %v14788_v30, 16 }
 0x19e   :  { %v1037_v51 = vmul.f32 0.01, %v987_v53  ;;  %v988_v34 = vadd.f32 %v14670_v58, %v958_v31  ;;  %vm1012_vm15 = vcmp.ge.f32.partialorder %v987_v53, 0.0 }
 0x19f   :  { %v1191_v29 = vrot.slane %v14803_v46, 1  ;;  %9994 = vmatpush3.bf16.msra.mxu0 %v13239_v28  ;;  %v2273_v47 = vrot.slane %v14806_v52, 5  ;;  %v2276_v42 = vrot.slane %v14803_v46, 6 }
 0x1a0   :  { %vm1013_vm1 = vcmp.ge.f32.partialorder %v988_v34, 0.0  ;;  %v1038_v38 = vmul.f32 0.01, %v988_v34  ;;  %10047 = vmatprep.subr.bf16.mxu0 %v17790_v44  ;;  %v1062_v26 = vsel %vm1012_vm15, %v987_v53, %v1037_v51  ;;  %v3137_v51 = vrot.slane %v3135_v41, 3 }
 0x1a1   :  { %v894_v56 = vpop.f32.mrb[28].mxu0  ;;  %v1192_v27 = vsel %vm1148_vm5, %v1187_v62, %v1191_v29  ;;  %v2277_v31 = vor.u32 %v2276_v42, %v2273_v47  ;;  %v3144_v47 = vrot.slane %v14736_v54, 3 }
 0x1a2   :  { %v1063_v60 = vsel %vm1013_vm1, %v988_v34, %v1038_v38  ;;  %v959_v25 = vmul.f32 %v14665_v61, %v894_v56  ;;  %v9889_v24 = vpop.f32.mrb[29].mxu0  ;;  %9944 = vmatmul.mubr.bf16.gmra.mrb[68].mxu0 %v1192_v27  ;;  %v3139_v34 = vrot.slane %v14721_v57, 2  ;;  %v3138_v41 = vor.u32 %v3137_v51, %v3134_v40 }
 0x1a3   :  { %v14816_v28 = vpack.c.bf16 %v1063_v60, %v1062_v26  ;;  %v897_v23 = vpop.f32.mrb[30].mxu0  ;;  %9947 = vmatprep.mubr.msk.bf16.mxu0 %vm13328_vm0, %v17790_v44  ;;  %v14821_v22 = vsel %vm2225_vm12, %v2268_v59, %v2277_v31  ;;  %v1195_v24 = vor.u32 %v14806_v52, %v1191_v29  ;;  %v3140_v59 = vrot.slane %v14711_v55, 3 }
 0x1a4   :  { %v989_v21 = vadd.f32 %v14670_v58, %v959_v25  ;;  %v960_v62 = vmul.f32 %v14665_v61, %v897_v23  ;;  %v9890_v53 = vpop.f32.mrb[31].mxu0  ;;  %v3143_v23 = vrot.slane %v14739_v50, 2 }
 0x1a5   :  { %1094 = vst [vmem:[#allocation2 + $0x30] sm:$0xff] %v14816_v28  ;;  %v14829_v26 = vshll.u32 %v14816_v28, 16  ;;  %v14832_v27 = vshrl.u32 %v14816_v28, 16  ;;  %v3141_v20 = vor.u32 %v3140_v59, %v3139_v34 }
 0x1a6   :  { %v1039_v49 = vmul.f32 0.01, %v989_v21  ;;  %v990_v25 = vadd.f32 %v14670_v58, %v960_v62  ;;  %vm1014_vm2 = vcmp.ge.f32.partialorder %v989_v21, 0.0  ;;  %v14850_v51 = vor.u32 %v3144_v47, %v3143_v23 }
 0x1a7   :  { %v1199_v57 = vrot.slane %v14829_v26, 1  ;;  %v2282_v29 = vrot.slane %v14832_v27, 5  ;;  %v2285_v42 = vrot.slane %v14829_v26, 6 }
 0x1a8   :  { %vm1015_vm3 = vcmp.ge.f32.partialorder %v990_v25, 0.0  ;;  %v1040_v38 = vmul.f32 0.01, %v990_v25  ;;  %v1064_v62 = vsel %vm1014_vm2, %v989_v21, %v1039_v49  ;;  %vm2593_vm2 = vcmask 1041408  }
 0x1a9   :  { %v902_v56 = vpop.f32.mrb[32].mxu0  ;;  %v1200_v55 = vsel %vm1148_vm5, %v1195_v24, %v1199_v57  ;;  %v2286_v60 = vor.u32 %v2285_v42, %v2282_v29  ;;  %v1203_v47 = vor.u32 %v14832_v27, %v1199_v57  ;;  %v14873_v57 = vsel %vm3130_vm4, %v3141_v20, %v14850_v51 }
 0x1aa   :  { %v1065_v53 = vsel %vm1015_vm3, %v990_v25, %v1040_v38  ;;  %v961_v50 = vmul.f32 %v14665_v61, %v902_v56  ;;  %v9893_v54 = vpop.f32.mrb[33].mxu0  ;;  %9948 = vmatmul.mubr.bf16.gmra.mrb[72].mxu0 %v1200_v55  ;;  %v14855_v25 = vsel %vm3130_vm4, %v3138_v41, %v3141_v20  ;;  %vm3434_vm3 = vcmask 1044480  }
 0x1ab   :  { %v14843_v19 = vpack.c.bf16 %v1065_v53, %v1064_v62  ;;  %v905_v18 = vpop.f32.mrb[34].mxu0  ;;  %9951 = vmatprep.mubr.msk.bf16.mxu0 %vm13328_vm0, %v17790_v44  ;;  %v14848_v40 = vsel %vm2225_vm12, %v2277_v31, %v2286_v60 }
 0x1ac   :  { %v991_v24 = vadd.f32 %v14670_v58, %v961_v50  ;;  %v962_v21 = vmul.f32 %v14665_v61, %v905_v18  ;;  %v9894_v49 = vpop.f32.mrb[35].mxu0 }
 0x1ad   :  { %1095 = vst [vmem:[#allocation2 + $0x38] sm:$0xff] %v14843_v19  ;;  %v14859_v34 = vshll.u32 %v14843_v19, 16  ;;  %v14862_v59 = vshrl.u32 %v14843_v19, 16  ;;  %v17566_v20 = vrot.slane %v14843_v19, 1 }
 0x1ae   :  { %v1041_v31 = vmul.f32 0.01, %v991_v24  ;;  %v992_v23 = vadd.f32 %v14670_v58, %v962_v21  ;;  %vm1016_vm6 = vcmp.ge.f32.partialorder %v991_v24, 0.0 }
 0x1af   :  { %v1207_v18 = vrot.slane %v14859_v34, 1  ;;  %v2291_v29 = vrot.slane %v14862_v59, 5  ;;  %v2294_v42 = vrot.slane %v14859_v34, 6 }
 0x1b0   :  { %vm1017_vm7 = vcmp.ge.f32.partialorder %v992_v23, 0.0  ;;  %v1042_v38 = vmul.f32 0.01, %v992_v23  ;;  %v1066_v62 = vsel %vm1016_vm6, %v991_v24, %v1041_v31  ;;  %v3147_v24 = vrot.slane %v14775_v39, 2 }
 0x1b1   :  { %v910_v41 = vpop.f32.mrb[36].mxu0  ;;  %v1208_v56 = vsel %vm1148_vm5, %v1203_v47, %v1207_v18  ;;  %v2295_v55 = vor.u32 %v2294_v42, %v2291_v29  ;;  %v1211_v42 = vor.u32 %v14862_v59, %v1207_v18  ;;  %vm1957_vm6 = vcmask 1042432  }
 0x1b2   :  { %v1067_v53 = vsel %vm1017_vm7, %v992_v23, %v1042_v38  ;;  %v963_v50 = vmul.f32 %v14665_v61, %v910_v41  ;;  %v9897_v54 = vpop.f32.mrb[37].mxu0  ;;  %9952 = vmatmul.mubr.bf16.gmra.mrb[76].mxu0 %v1208_v56  ;;  %v3148_v56 = vrot.slane %v14772_v36, 3  ;;  %vm2864_vm7 = vcmask 1045504  }
 0x1b3   :  { %v14875_v21 = vpack.c.bf16 %v1067_v53, %v1066_v62  ;;  %v913_v49 = vpop.f32.mrb[38].mxu0  ;;  %9955 = vmatprep.mubr.msk.bf16.mxu0 %vm13328_vm0, %v17790_v44  ;;  %v14880_v47 = vsel %vm2225_vm12, %v2286_v60, %v2295_v55  ;;  %v13224_v60 = vld [vmem:[%s17557_s2 + $0xc0] sm:$0xff]   ;;  %v3151_v53 = vrot.slane %v14806_v52, 2 }
 0x1b4   :  { %v993_v31 = vadd.f32 %v14670_v58, %v963_v50  ;;  %v964_v23 = vmul.f32 %v14665_v61, %v913_v49  ;;  %v9898_v29 = vpop.f32.mrb[39].mxu0 }
 0x1b5   :  { %1096 = vst [vmem:[#allocation2 + $0x40] sm:$0xff] %v14875_v21  ;;  %v1680_v38 = vrot.slane %v14875_v21, 1  ;;  %v14893_v41 = vshll.u32 %v14875_v21, 16  ;;  %v14896_v39 = vshrl.u32 %v14875_v21, 16  ;;  %v3152_v29 = vrot.slane %v14803_v46, 3 }
 0x1b6   :  { %vm1018_vm9 = vcmp.ge.f32.partialorder %v993_v31, 0.0  ;;  %v1043_v62 = vmul.f32 0.01, %v993_v31  ;;  %v994_v18 = vadd.f32 %v14670_v58, %v964_v23  ;;  %v13225_v23 = vld [vmem:[%s17557_s2 + $0xc8] sm:$0xff]  }
 0x1b7   :  { %v1681_v50 = vsel %vm1664_vm8, %v17566_v20, %v1680_v38  ;;  %v1215_v54 = vrot.slane %v14893_v41, 1  ;;  %v2300_v49 = vrot.slane %v14896_v39, 5  ;;  %v2303_v36 = vrot.slane %v14893_v41, 6 }
 0x1b8   :  { %vm1019_vm10 = vcmp.ge.f32.partialorder %v994_v18, 0.0  ;;  %v1044_v17 = vmul.f32 0.01, %v994_v18  ;;  %10092 = vmatmul.mubr.bf16.vlgmr.msra.gmra.mrb[0].mxu1 %v1681_v50  ;;  %v1068_v16 = vsel %vm1018_vm9, %v993_v31, %v1043_v62  ;;  %v14920_v62 = vor.u32 %v3152_v29, %v3151_v53 }
 0x1b9   :  { %v918_v7 = vpop.f32.mrb[40].mxu0  ;;  %10116 = vmatpush3.bf16.msra.mxu1 %v13224_v60  ;;  %v1216_v52 = vsel %vm1148_vm5, %v1211_v42, %v1215_v54  ;;  %10095 = vmatprep.mubr.msk.bf16.mxu1 %vm13328_vm0, %v17790_v44  ;;  %v2304_v50 = vor.u32 %v2303_v36, %v2300_v49  ;;  %v3149_v42 = vor.u32 %v3148_v56, %v3147_v24  ;;  %v13226_v24 = vld [vmem:[%s17557_s2 + $0xd0] sm:$0xff]  }
 0x1ba   :  { %v1069_v20 = vsel %vm1019_vm10, %v994_v18, %v1044_v17  ;;  %v965_v46 = vmul.f32 %v14665_v61, %v918_v7  ;;  %v9901_v6 = vpop.f32.mrb[41].mxu0  ;;  %9956 = vmatmul.mubr.bf16.gmra.mrb[80].mxu0 %v1216_v52  ;;  %10117 = vmatprep.subr.bf16.mxu1 %v17790_v44  ;;  %v1219_v53 = vor.u32 %v14896_v39, %v1215_v54  ;;  %v3155_v52 = vrot.slane %v14832_v27, 2 }
 0x1bb   :  { %v14916_v31 = vpack.c.bf16 %v1069_v20, %v1068_v16  ;;  %v921_v60 = vpop.f32.mrb[42].mxu0  ;;  %9959 = vmatprep.mubr.msk.bf16.mxu0 %vm13328_vm0, %v17790_v44  ;;  %v14925_v6 = vsel %vm2225_vm12, %v2295_v55, %v2304_v50 }
 0x1bc   :  { %v995_v5 = vadd.f32 %v14670_v58, %v965_v46  ;;  %v966_v17 = vmul.f32 %v14665_v61, %v921_v60  ;;  %v9902_v18 = vpop.f32.mrb[43].mxu0  ;;  %v3156_v60 = vrot.slane %v14829_v26, 3 }
 0x1bd   :  { %1097 = vst [vmem:[#allocation2 + $0x48] sm:$0xff] %v14916_v31  ;;  %10118 = vmatpush3.bf16.msra.mxu1 %v13225_v23  ;;  %v1682_v7 = vrot.slane %v14916_v31, 1  ;;  %v14930_v16 = vshll.u32 %v14916_v31, 16  ;;  %v14936_v20 = vshrl.u32 %v14916_v31, 16 }
 0x1be   :  { %vm1020_vm11 = vcmp.ge.f32.partialorder %v995_v5, 0.0  ;;  %v1045_v56 = vmul.f32 0.01, %v995_v5  ;;  %v996_v55 = vadd.f32 %v14670_v58, %v966_v17  ;;  %10119 = vmatprep.subr.bf16.mxu1 %v17790_v44 }
 0x1bf   :  { %v1683_v49 = vsel %vm1664_vm8, %v1680_v38, %v1682_v7  ;;  %v1223_v29 = vrot.slane %v14930_v16, 1  ;;  %v2309_v36 = vrot.slane %v14936_v20, 5  ;;  %v2312_v46 = vrot.slane %v14930_v16, 6  ;;  %v13227_v38 = vld [vmem:[%s17557_s2 + $0xd8] sm:$0xff]  }
 0x1c0   :  { %vm1021_vm13 = vcmp.ge.f32.partialorder %v996_v55, 0.0  ;;  %v1046_v23 = vmul.f32 0.01, %v996_v55  ;;  %10096 = vmatmul.mubr.bf16.gmra.mrb[4].mxu1 %v1683_v49  ;;  %v1070_v17 = vsel %vm1020_vm11, %v995_v5, %v1045_v56 }
 0x1c1   :  { %v926_v18 = vpop.f32.mrb[44].mxu0  ;;  %v1224_v54 = vsel %vm1148_vm5, %v1219_v53, %v1223_v29  ;;  %10120 = vmatpush3.bf16.msra.mxu1 %v13226_v24  ;;  %10099 = vmatprep.mubr.msk.bf16.mxu1 %vm13328_vm0, %v17790_v44  ;;  %v2313_v26 = vor.u32 %v2312_v46, %v2309_v36  ;;  %v14961_v24 = vsel %vm3130_vm4, %v14850_v51, %v3149_v42 }
 0x1c2   :  { %v1071_v27 = vsel %vm1021_vm13, %v996_v55, %v1046_v23  ;;  %v967_v4 = vmul.f32 %v14665_v61, %v926_v18  ;;  %v9905_v49 = vpop.f32.mrb[45].mxu0  ;;  %9960 = vmatmul.mubr.bf16.gmra.mrb[84].mxu0 %v1224_v54  ;;  %10121 = vmatprep.subr.bf16.mxu1 %v17790_v44  ;;  %v14965_v55 = vsel %vm3130_vm4, %v3149_v42, %v14920_v62 }
 0x1c3   :  { %v14955_v5 = vpack.c.bf16 %v1071_v27, %v1070_v17  ;;  %v929_v56 = vpop.f32.mrb[46].mxu0  ;;  %9963 = vmatprep.mubr.msk.bf16.mxu0 %vm13328_vm0, %v17790_v44  ;;  %v14970_v36 = vsel %vm2225_vm12, %v2304_v50, %v2313_v26  ;;  %v14972_v46 = vor.u32 %v3156_v60, %v3155_v52  ;;  %v1227_v54 = vor.u32 %v14936_v20, %v1223_v29 }
 0x1c4   :  { %v997_v53 = vadd.f32 %v14670_v58, %v967_v4  ;;  %v968_v23 = vmul.f32 %v14665_v61, %v929_v56  ;;  %v9906_v18 = vpop.f32.mrb[47].mxu0  ;;  %v13230_v4 = vld [vmem:[%s17557_s2 + $0xe0] sm:$0xff]  }
 0x1c5   :  { %1098 = vst [vmem:[#allocation2 + $0x50] sm:$0xff] %v14955_v5  ;;  %v1684_v17 = vrot.slane %v14955_v5, 1  ;;  %v14977_v51 = vshll.u32 %v14955_v5, 16  ;;  %10122 = vmatpush3.bf16.msra.mxu1 %v13227_v38  ;;  %v14983_v42 = vshrl.u32 %v14955_v5, 16  ;;  %v3159_v18 = vrot.slane %v14862_v59, 2 }
 0x1c6   :  { %vm1022_vm14 = vcmp.ge.f32.partialorder %v997_v53, 0.0  ;;  %v1047_v50 = vmul.f32 0.01, %v997_v53  ;;  %v998_v52 = vadd.f32 %v14670_v58, %v968_v23  ;;  %10123 = vmatprep.subr.bf16.mxu1 %v17790_v44 }
 0x1c7   :  { %v1685_v60 = vsel %vm1664_vm8, %v1682_v7, %v1684_v17  ;;  %v1231_v27 = vrot.slane %v14977_v51, 1  ;;  %v2318_v38 = vrot.slane %v14983_v42, 5  ;;  %v2321_v56 = vrot.slane %v14977_v51, 6  ;;  %v13232_v7 = vld [vmem:[%s17557_s2 + $0xe8] sm:$0xff]  }
 0x1c8   :  { %vm1023_vm15 = vcmp.ge.f32.partialorder %v998_v52, 0.0  ;;  %v1048_v49 = vmul.f32 0.01, %v998_v52  ;;  %10100 = vmatmul.mubr.bf16.gmra.mrb[8].mxu1 %v1685_v60  ;;  %v1072_v3 = vsel %vm1022_vm14, %v997_v53, %v1047_v50  ;;  %v3160_v53 = vrot.slane %v14859_v34, 3 }
 0x1c9   :  { %v934_v2 = vpop.f32.mrb[48].mxu0  ;;  %v1232_v23 = vsel %vm1148_vm5, %v1227_v54, %v1231_v27  ;;  %10103 = vmatprep.mubr.msk.bf16.mxu1 %vm13328_vm0, %v17790_v44  ;;  %10124 = vmatpush3.bf16.msra.mxu1 %v13230_v4  ;;  %v2322_v59 = vor.u32 %v2321_v56, %v2318_v38  ;;  %v15009_v4 = vsel %vm3130_vm4, %v14920_v62, %v14972_v46  ;;  %v13235_v56 = vld [vmem:[%s17557_s2 + $0xf0] sm:$0xff]  }
 0x1ca   :  { %v1073_v29 = vsel %vm1023_vm15, %v998_v52, %v1048_v49  ;;  %v969_v1 = vmul.f32 %v14665_v61, %v934_v2  ;;  %v9909_v60 = vpop.f32.mrb[49].mxu0  ;;  %9964 = vmatmul.mubr.bf16.gmra.mrb[88].mxu0 %v1232_v23  ;;  %10125 = vmatprep.subr.bf16.mxu1 %v17790_v44  ;;  %v3161_v38 = vor.u32 %v3160_v53, %v3159_v18 }
 0x1cb   :  { %v15002_v50 = vpack.c.bf16 %v1073_v29, %v1072_v3  ;;  %v937_v54 = vpop.f32.mrb[50].mxu0  ;;  %9967 = vmatprep.mubr.msk.bf16.mxu0 %vm13328_vm0, %v17790_v44  ;;  %v15013_v52 = vsel %vm2225_vm12, %v2313_v26, %v2322_v59  ;;  %v1235_v18 = vor.u32 %v14983_v42, %v1231_v27 }
 0x1cc   :  { %v999_v2 = vadd.f32 %v14670_v58, %v969_v1  ;;  %v9910_v61 = vpop.f32.mrb[51].mxu0  ;;  %v3163_v1 = vrot.slane %v14896_v39, 2  ;;  %v3164_v58 = vrot.slane %v14893_v41, 3  ;;  %v13237_v41 = vld [vmem:[%s17557_s2 + $0xf8] sm:$0xff]   ;;  %v3167_v39 = vrot.slane %v14936_v20, 2 }
 0x1cd   :  { %v1686_v34 = vrot.slane %v15002_v50, 1  ;;  %v1237_v3 = vshll.u32 %v15002_v50, 16  ;;  %10126 = vmatpush3.bf16.msra.mxu1 %v13232_v7  ;;  %v1241_v49 = vshrl.u32 %v15002_v50, 16  ;;  %v15036_v27 = vsel %vm3130_vm4, %v14972_v46, %v3161_v38 }
 0x1ce   :  { %vm1024_vm1 = vcmp.ge.f32.partialorder %v999_v2, 0.0  ;;  %v1049_v62 = vmul.f32 0.01, %v999_v2  ;;  %10127 = vmatprep.subr.bf16.mxu1 %v17790_v44  ;;  %v3168_v61 = vrot.slane %v14930_v16, 3 }
 0x1cf   :  { %v1687_v26 = vsel %vm1664_vm8, %v1684_v17, %v1686_v34  ;;  %v1239_v23 = vrot.slane %v1237_v3, 1  ;;  %v2327_v7 = vrot.slane %v1241_v49, 5  ;;  %v2330_v60 = vrot.slane %v1237_v3, 6 }
 0x1d0   :  { %v1074_v29 = vsel %vm1024_vm1, %v999_v2, %v1049_v62  ;;  %10104 = vmatmul.mubr.bf16.gmra.mrb[12].mxu1 %v1687_v26  ;;  %v3165_v2 = vor.u32 %v3164_v58, %v3163_v1  ;;  %v3172_v62 = vrot.slane %v14977_v51, 3  ;;  %v3175_v20 = vrot.slane %v1241_v49, 2  ;;  %v15049_v1 = vld [vmem:[#allocation2 + $0x68] sm:$0x7f] }
 0x1d1   :  { %v1087_v53 = vpack.c.bf16 %v1074_v29, %v1074_v29  ;;  %v1240_v54 = vsel %vm1148_vm5, %v1235_v18, %v1239_v23  ;;  %10107 = vmatprep.mubr.msk.bf16.mxu1 %vm13328_vm0, %v17790_v44  ;;  %10128 = vmatpush3.bf16.msra.mxu1 %v13235_v56  ;;  %v2331_v17 = vor.u32 %v2330_v60, %v2327_v7  ;;  %v3171_v56 = vrot.slane %v14983_v42, 2  ;;  %v15055_v51 = vld [vmem:[#allocation2 + $0x68] sm:$0x3] }
 0x1d2   :  { %9968 = vmatmul.mubr.bf16.gmra.mrb[92].mxu0 %v1240_v54  ;;  %10129 = vmatprep.subr.bf16.mxu1 %v17790_v44  ;;  %v3176_v26 = vrot.slane %v1237_v3, 3  ;;  %v15047_v7 = vsel %vm3130_vm4, %v3161_v38, %v3165_v2  ;;  %v3169_v46 = vor.u32 %v3168_v61, %v3167_v39  ;;  %v3184_v38 = vshrl.u32 %v15049_v1, 16 }
 0x1d3   :  { %1100 = vst [vmem:[#allocation2 + $0x60] sm:$0xf] %v1087_v53  ;;  %9971 = vmatprep.mubr.msk.bf16.mxu0 %vm13328_vm0, %v17790_v44  ;;  %v15044_v18 = vsel %vm2225_vm12, %v2322_v59, %v2331_v17  ;;  %v3173_v16 = vor.u32 %v3172_v62, %v3171_v56  ;;  %v3187_v29 = vshll.u32 %v15049_v1, 16  ;;  %v2619_v54 = vrot.slane %v15055_v51, 6 }
 0x1d4   :  { %v3177_v58 = vor.u32 %v3176_v26, %v3175_v20  ;;  %v15053_v42 = vsel %vm3130_vm4, %v3165_v2, %v3169_v46  ;;  %v3186_v2 = vrot.slane %v3184_v38, 2 }
 0x1d5   :  { %10130 = vmatpush3.bf16.msra.mxu1 %v13237_v41  ;;  %v15058_v3 = vsel %vm3130_vm4, %v3169_v46, %v3173_v16  ;;  %v3189_v20 = vrot.slane %v3187_v29, 3  ;;  %v1243_v46 = vor.u32 %v1241_v49, %v1239_v23 }
 0x1d6   :  { %10183 = vmatprep.subr.bf16.mxu1 %v17790_v44  ;;  %v15061_v59 = vsel %vm3130_vm4, %v3173_v16, %v3177_v58 }
 0x1d7   :  { %v15082_v23 = vor.u32 %v3189_v20, %v3186_v2 }
 0x1da   :  { %v1130_v60 = vld [vmem:[#allocation2 + $0x60] sm:$0x1f] }
 0x1db   :  { %v15065_v53 = vld [vmem:[#allocation2 + $0x60] sm:$0xff]  ;;  %v1688_v41 = vrot.slane %v1130_v60, 1  ;;  %v1245_v39 = vshll.u32 %v1130_v60, 16 }
 0x1dc   :  { %v2334_v61 = vshrl.u32 %v15065_v53, 16  ;;  %v2337_v56 = vshll.u32 %v15065_v53, 16  ;;  %v2617_v62 = vrot.slane %v15065_v53, 6 }
 0x1dd   :  { %v1689_v26 = vsel %vm1664_vm8, %v1686_v34, %v1688_v41  ;;  %v1247_v16 = vrot.slane %v1245_v39, 1 }
 0x1de   :  { %10108 = vmatmul.mubr.bf16.gmra.mrb[16].mxu1 %v1689_v26  ;;  %v2336_v0 = vrot.slane %v2334_v61, 5  ;;  %v2339_v15 = vrot.slane %v2337_v56, 6  ;;  %v15075_v14 = vsel %vm2593_vm2, %v2617_v62, %v2619_v54  ;;  %v3179_v34 = vrot.slane %v2334_v61, 2 }
 0x1df   :  { %v1248_v38 = vsel %vm1148_vm5, %v1243_v46, %v1247_v16  ;;  %10111 = vmatprep.mubr.msk.bf16.mxu1 %vm13328_vm0, %v17790_v44  ;;  %v3180_v49 = vrot.slane %v2337_v56, 3  ;;  %v17568_v26 = vrot.slane %v15002_v50, 3  ;;  %v3456_v46 = vrot.slane %v15065_v53, 3 }
 0x1e0   :  { %9972 = vmatmul.mubr.bf16.gmra.mrb[96].mxu0 %v1248_v38  ;;  %v15080_v29 = vor.u32 %v2339_v15, %v2336_v0  ;;  %v17567_v0 = vrot.slane %v15049_v1, 3  ;;  %v1249_v15 = vshrl.u32 %v1130_v60, 16  ;;  %v15110_v60 = vld [vmem:[#allocation2] sm:$0xe0]  ;;  %v1959_v38 = vrot.slane %v14685_v48, 5 }
 0x1e1   :  { %9975 = vmatprep.mubr.msk.bf16.mxu0 %vm13328_vm0, %v17790_v44  ;;  %v3181_v54 = vor.u32 %v3180_v49, %v3179_v34  ;;  %v13240_v34 = vld [vmem:[%s17557_s2 + $0x100] sm:$0xff]   ;;  %v1961_v49 = vrot.slane %v14698_v45, 5 }
 0x1e2   :  { %v15088_v39 = vsel %vm2225_vm12, %v2331_v17, %v15080_v29  ;;  %v15103_v17 = vsel %vm3434_vm3, %v17568_v26, %v3456_v46  ;;  %v15108_v56 = vsel %vm3434_vm3, %v3456_v46, %v17567_v0  ;;  %v1251_v20 = vor.u32 %v1249_v15, %v1247_v16  ;;  %v13241_v16 = vld [vmem:[%s17557_s2 + $0x108] sm:$0xff]   ;;  %v13242_v46 = vld [vmem:[%s17557_s2 + $0x110] sm:$0xff]  }
 0x1e3   :  { %v15094_v61 = vsel %vm3130_vm4, %v3177_v58, %v3181_v54  ;;  %v15098_v2 = vsel %vm3130_vm4, %v3181_v54, %v15082_v23  ;;  %v1958_v58 = vrot.slane %v15110_v60, 5  ;;  %v13280_v54 = vld [vmem:[%s17557_s2 + $0x80] sm:$0xff]   ;;  %v13281_v15 = vld [vmem:[%s17557_s2 + $0x88] sm:$0xff]  }
 0x1e6   :  { %10112 = vmatmul.mubr.bf16.gmra.mrb[20].mxu1 %v1688_v41  ;;  %v1960_v41 = vsel %vm1957_vm6, %v1958_v58, %v1959_v38  ;;  %v1963_v58 = vrot.slane %v14724_v43, 5 }
 0x1e7   :  { %10131 = vmatprep.mubr.msk.bf16.mxu1 %vm13328_vm0, %v17790_v44 }
 0x1e8   :  { %9976 = vmatmul.mubr.bf16.gmra.mrb[100].mxu0 %v1251_v20  ;;  %v13243_v20 = vld [vmem:[%s17557_s2 + $0x118] sm:$0xff]  }
 0x1e9   :  { %9995 = vmatprep.mubr.msk.bf16.mxu0 %vm13328_vm0, %v17790_v44 }
 0x1ee   :  { %10132 = vmatmul.mubr.bf16.vlgmr.msra.gmra.mrb[24].mxu1 %v1960_v41  ;;  %v13283_v41 = vld [vmem:[%s17557_s2 + $0x98] sm:$0xff]  }
 0x1ef   :  { %10184 = vmatpush3.bf16.msra.mxu1 %v13240_v34  ;;  %10135 = vmatprep.mubr.msk.bf16.mxu1 %vm13328_vm0, %v17790_v44  ;;  %v13244_v34 = vld [vmem:[%s17557_s2 + $0x120] sm:$0xff]  }
 0x1f0   :  { %9996 = vmatmul.mubr.bf16.vlgmr.msra.gmra.mrb[52].mxu0 %v14677_v63  ;;  %10185 = vmatprep.subr.bf16.mxu1 %v17790_v44  ;;  %v1962_v63 = vsel %vm1957_vm6, %v1959_v38, %v1961_v49  ;;  %v13282_v38 = vld [vmem:[%s17557_s2 + $0x90] sm:$0xff]  }
 0x1f1   :  { %9999 = vmatprep.mubr.msk.bf16.mxu0 %vm13328_vm0, %v17790_v44  ;;  %10048 = vmatpush3.bf16.msra.mxu0 %v13280_v54  ;;  %v13284_v54 = vld [vmem:[%s17557_s2 + $0xa0] sm:$0xff]  }
 0x1f2   :  { %10049 = vmatprep.subr.bf16.mxu0 %v17790_v44 }
 0x1f3   :  { %10186 = vmatpush3.bf16.msra.mxu1 %v13241_v16  ;;  %v13245_v16 = vld [vmem:[%s17557_s2 + $0x128] sm:$0xff]  }
 0x1f4   :  { %10187 = vmatprep.subr.bf16.mxu1 %v17790_v44 }
 0x1f5   :  { %10050 = vmatpush3.bf16.msra.mxu0 %v13281_v15  ;;  %v13247_v15 = vld [vmem:[%s17557_s2 + $0x138] sm:$0xff]  }
 0x1f6   :  { %10136 = vmatmul.mubr.bf16.gmra.mrb[28].mxu1 %v1962_v63  ;;  %10051 = vmatprep.subr.bf16.mxu0 %v17790_v44  ;;  %v13285_v63 = vld [vmem:[%s17557_s2 + $0xa8] sm:$0xff]  }
 0x1f7   :  { %10139 = vmatprep.mubr.msk.bf16.mxu1 %vm13328_vm0, %v17790_v44  ;;  %10188 = vmatpush3.bf16.msra.mxu1 %v13242_v46  ;;  %v13246_v46 = vld [vmem:[%s17557_s2 + $0x130] sm:$0xff]  }
 0x1f8   :  { %10000 = vmatmul.mubr.bf16.gmra.mrb[56].mxu0 %v14685_v48  ;;  %10189 = vmatprep.subr.bf16.mxu1 %v17790_v44  ;;  %v1964_v48 = vsel %vm1957_vm6, %v1961_v49, %v1963_v58  ;;  %v1965_v49 = vrot.slane %v14756_v33, 5 }
 0x1f9   :  { %10003 = vmatprep.mubr.msk.bf16.mxu0 %vm13328_vm0, %v17790_v44  ;;  %10052 = vmatpush3.bf16.msra.mxu0 %v13282_v38 }
 0x1fa   :  { %10053 = vmatprep.subr.bf16.mxu0 %v17790_v44 }
 0x1fb   :  { %10190 = vmatpush3.bf16.msra.mxu1 %v13243_v20  ;;  %v1967_v20 = vrot.slane %v14788_v30, 5 }
 0x1fc   :  { %10191 = vmatprep.subr.bf16.mxu1 %v17790_v44 }
 0x1fd   :  { %10054 = vmatpush3.bf16.msra.mxu0 %v13283_v41  ;;  %v1968_v38 = vsel %vm1957_vm6, %v1965_v49, %v1967_v20  ;;  %v1971_v41 = vrot.slane %v14843_v19, 5 }
 0x1fe   :  { %10140 = vmatmul.mubr.bf16.gmra.mrb[32].mxu1 %v1964_v48  ;;  %10055 = vmatprep.subr.bf16.mxu0 %v17790_v44 }
 0x1ff   :  { %10143 = vmatprep.mubr.msk.bf16.mxu1 %vm13328_vm0, %v17790_v44  ;;  %10192 = vmatpush3.bf16.msra.mxu1 %v13244_v34  ;;  %v1969_v34 = vrot.slane %v14816_v28, 5 }
 0x200   :  { %10004 = vmatmul.mubr.bf16.gmra.mrb[60].mxu0 %v14698_v45  ;;  %10193 = vmatprep.subr.bf16.mxu1 %v17790_v44  ;;  %v1966_v45 = vsel %vm1957_vm6, %v1963_v58, %v1965_v49  ;;  %v13286_v58 = vld [vmem:[%s17557_s2 + $0xb0] sm:$0xff]  }
 0x201   :  { %10007 = vmatprep.mubr.msk.bf16.mxu0 %vm13328_vm0, %v17790_v44  ;;  %10056 = vmatpush3.bf16.msra.mxu0 %v13284_v54  ;;  %v1970_v48 = vsel %vm1957_vm6, %v1967_v20, %v1969_v34  ;;  %v1975_v54 = vrot.slane %v14916_v31, 5 }
 0x202   :  { %10057 = vmatprep.subr.bf16.mxu0 %v17790_v44 }
 0x203   :  { %10194 = vmatpush3.bf16.msra.mxu1 %v13245_v16  ;;  %v1973_v16 = vrot.slane %v14875_v21, 5 }
 0x204   :  { %10195 = vmatprep.subr.bf16.mxu1 %v17790_v44 }
 0x205   :  { %10058 = vmatpush3.bf16.msra.mxu0 %v13285_v63  ;;  %v1974_v49 = vsel %vm1957_vm6, %v1971_v41, %v1973_v16 }
 0x206   :  { %10144 = vmatmul.mubr.bf16.gmra.mrb[36].mxu1 %v1966_v45  ;;  %10059 = vmatprep.subr.bf16.mxu0 %v17790_v44  ;;  %v1977_v45 = vrot.slane %v14955_v5, 5 }
 0x207   :  { %10147 = vmatprep.mubr.msk.bf16.mxu1 %vm13328_vm0, %v17790_v44  ;;  %10196 = vmatpush3.bf16.msra.mxu1 %v13246_v46  ;;  %v1976_v46 = vsel %vm1957_vm6, %v1973_v16, %v1975_v54 }
 0x208   :  { %10008 = vmatmul.mubr.bf16.gmra.mrb[64].mxu0 %v14724_v43  ;;  %10197 = vmatprep.subr.bf16.mxu1 %v17790_v44  ;;  %v13287_v43 = vld [vmem:[%s17557_s2 + $0xb8] sm:$0xff]   ;;  %v1978_v63 = vsel %vm1957_vm6, %v1975_v54, %v1977_v45 }
 0x209   :  { %10011 = vmatprep.mubr.msk.bf16.mxu0 %vm13328_vm0, %v17790_v44  ;;  %10060 = vmatpush3.bf16.msra.mxu0 %v13286_v58  ;;  %v1981_v58 = vrot.slane %v15065_v53, 5 }
 0x20a   :  { %10061 = vmatprep.subr.bf16.mxu0 %v17790_v44 }
 0x20b   :  { %10198 = vmatpush3.bf16.msra.mxu1 %v13247_v15  ;;  %v1979_v15 = vrot.slane %v15002_v50, 5 }
 0x20c   :  { %10251 = vmatprep.subr.bf16.mxu1 %v17790_v44 }
 0x20d   :  { %10062 = vmatpush3.bf16.msra.mxu0 %v13287_v43  ;;  %v1980_v20 = vsel %vm1957_vm6, %v1977_v45, %v1979_v15  ;;  %v1925_v43 = vld [vmem:[#allocation2 + $0x68] sm:$0x1] }
 0x20e   :  { %10148 = vmatmul.mubr.bf16.gmra.mrb[40].mxu1 %v1968_v38  ;;  %v1982_v38 = vsel %vm1957_vm6, %v1979_v15, %v1981_v58  ;;  %10523 = vmatprep.subr.bf16.mxu0 %v17790_v44 }
 0x20f   :  { %10151 = vmatprep.mubr.msk.bf16.mxu1 %vm13328_vm0, %v17790_v44 }
 0x210   :  { %10012 = vmatmul.mubr.bf16.gmra.mrb[68].mxu0 %v14756_v33  ;;  %v1972_v33 = vsel %vm1957_vm6, %v1969_v34, %v1971_v41  ;;  %v2227_v34 = vshrl.u32 %v15110_v60, 16  ;;  %v2230_v41 = vshll.u32 %v15110_v60, 16 }
 0x211   :  { %10015 = vmatprep.mubr.msk.bf16.mxu0 %vm13328_vm0, %v17790_v44 }
 0x212   :  { %v2229_v54 = vrot.slane %v2227_v34, 5  ;;  %v2232_v45 = vrot.slane %v2230_v41, 6  ;;  %v13248_v34 = vld [vmem:[%s17557_s2 + $0x140] sm:$0xff]  }
 0x214   :  { %v2233_v60 = vor.u32 %v2232_v45, %v2229_v54  ;;  %v15289_v54 = vld [vmem:[#allocation2 + $0x10] sm:$0xff] }
 0x215   :  { %v13250_v45 = vld [vmem:[%s17557_s2 + $0x150] sm:$0xff]  }
 0x216   :  { %10152 = vmatmul.mubr.bf16.gmra.mrb[44].mxu1 %v1970_v48  ;;  %v1983_v48 = vrot.slane %v1925_v43, 5 }
 0x217   :  { %10155 = vmatprep.mubr.msk.bf16.mxu1 %vm13328_vm0, %v17790_v44 }
 0x218   :  { %10016 = vmatmul.mubr.bf16.gmra.mrb[72].mxu0 %v14788_v30 }
 0x219   :  { %10019 = vmatprep.mubr.msk.bf16.mxu0 %vm13328_vm0, %v17790_v44 }
 0x21e   :  { %10156 = vmatmul.mubr.bf16.gmra.mrb[48].mxu1 %v1972_v33  ;;  %v15266_v33 = vld [vmem:[#allocation2 + $0x8] sm:$0xff] }
 0x21f   :  { %10159 = vmatprep.mubr.msk.bf16.mxu1 %vm13328_vm0, %v17790_v44  ;;  %v2235_v16 = vshrl.u32 %v15266_v33, 16 }
 0x220   :  { %10020 = vmatmul.mubr.bf16.gmra.mrb[76].mxu0 %v14816_v28 }
 0x221   :  { %10023 = vmatprep.mubr.msk.bf16.mxu0 %vm13328_vm0, %v17790_v44 }
 0x226   :  { %10160 = vmatmul.mubr.bf16.gmra.mrb[0].mxu1 %v1974_v49  ;;  %v2238_v49 = vshll.u32 %v15266_v33, 16 }
 0x227   :  { %10163 = vmatprep.mubr.msk.bf16.mxu1 %vm13328_vm0, %v17790_v44 }
 0x228   :  { %10024 = vmatmul.mubr.bf16.gmra.mrb[80].mxu0 %v14843_v19  ;;  %v2240_v15 = vrot.slane %v2238_v49, 6  ;;  %v13249_v49 = vld [vmem:[%s17557_s2 + $0x148] sm:$0xff]  }
 0x229   :  { %10027 = vmatprep.mubr.msk.bf16.mxu0 %vm13328_vm0, %v17790_v44 }
 0x22e   :  { %10164 = vmatmul.mubr.bf16.gmra.mrb[4].mxu1 %v1976_v46  ;;  %v1984_v46 = vsel %vm1957_vm6, %v1981_v58, %v1983_v48  ;;  %v1666_v48 = vrot.slane %v15266_v33, 1 }
 0x22f   :  { %10167 = vmatprep.mubr.msk.bf16.mxu1 %vm13328_vm0, %v17790_v44 }
 0x230   :  { %10028 = vmatmul.mubr.bf16.gmra.mrb[84].mxu0 %v14875_v21 }
 0x231   :  { %10031 = vmatprep.mubr.msk.bf16.mxu0 %vm13328_vm0, %v17790_v44 }
 0x236   :  { %10168 = vmatmul.mubr.bf16.gmra.mrb[8].mxu1 %v1978_v63  ;;  %v2237_v63 = vrot.slane %v2235_v16, 5 }
 0x237   :  { %10171 = vmatprep.mubr.msk.bf16.mxu1 %vm13328_vm0, %v17790_v44 }
 0x238   :  { %10032 = vmatmul.mubr.bf16.gmra.mrb[88].mxu0 %v14916_v31  ;;  %v2241_v43 = vor.u32 %v2240_v15, %v2237_v63 }
 0x239   :  { %10035 = vmatprep.mubr.msk.bf16.mxu0 %vm13328_vm0, %v17790_v44 }
 0x23a   :  { %v2242_v41 = vsel %vm2225_vm12, %v2233_v60, %v2241_v43  ;;  %v2251_v63 = vsel %vm2225_vm12, %v2241_v43, %v14753_v37  ;;  %v13252_v60 = vld [vmem:[%s17557_s2 + $0x160] sm:$0xff]  }
 0x23e   :  { %10172 = vmatmul.mubr.bf16.gmra.mrb[12].mxu1 %v1980_v20  ;;  %v1113_v20 = vld [vmem:[#allocation2 + $0x60] sm:$0xf] }
 0x23f   :  { %10175 = vmatprep.mubr.msk.bf16.mxu1 %vm13328_vm0, %v17790_v44 }
 0x240   :  { %10036 = vmatmul.mubr.bf16.gmra.mrb[92].mxu0 %v14955_v5 }
 0x241   :  { %10039 = vmatprep.mubr.msk.bf16.mxu0 %vm13328_vm0, %v17790_v44 }
 0x246   :  { %10176 = vmatmul.mubr.bf16.gmra.mrb[16].mxu1 %v1982_v38  ;;  %v1633_v38 = vld [vmem:[#allocation2] sm:$0xfe] }
 0x247   :  { %10179 = vmatprep.mubr.msk.bf16.mxu1 %vm13328_vm0, %v17790_v44  ;;  %v1665_v58 = vrot.slane %v1633_v38, 1  ;;  %v15307_v38 = vld [vmem:[#allocation2 + $0x18] sm:$0xff] }
 0x248   :  { %10040 = vmatmul.mubr.bf16.gmra.mrb[96].mxu0 %v15002_v50  ;;  %v1670_v37 = vrot.slane %v15307_v38, 1 }
 0x249   :  { %10043 = vmatprep.mubr.msk.bf16.mxu0 %vm13328_vm0, %v17790_v44  ;;  %v1667_v16 = vsel %vm1664_vm8, %v1665_v58, %v1666_v48  ;;  %v15324_v58 = vld [vmem:[#allocation2 + $0x20] sm:$0xff] }
 0x24e   :  { %10180 = vmatmul.mubr.bf16.gmra.mrb[20].mxu1 %v1984_v46  ;;  %v1668_v46 = vrot.slane %v15289_v54, 1 }
 0x24f   :  { %10199 = vmatprep.mubr.msk.bf16.mxu1 %vm13328_vm0, %v17790_v44 }
 0x250   :  { %10044 = vmatmul.mubr.bf16.gmra.mrb[100].mxu0 %v1113_v20  ;;  %v1669_v15 = vsel %vm1664_vm8, %v1666_v48, %v1668_v46  ;;  %v13251_v20 = vld [vmem:[%s17557_s2 + $0x158] sm:$0xff]   ;;  %v1671_v43 = vsel %vm1664_vm8, %v1668_v46, %v1670_v37  ;;  %v13254_v48 = vld [vmem:[%s17557_s2 + $0x170] sm:$0xff]   ;;  %v1676_v46 = vrot.slane %v14816_v28, 1  ;;  %v2346_v28 = vshll.u32 %v15055_v51, 16 }
 0x251   :  { %10063 = vmatprep.mubr.msk.bf16.mxu0 %vm13328_vm0, %v17790_v44 }
 0x256   :  { %10200 = vmatmul.mubr.bf16.vlgmr.msra.gmra.mrb[24].mxu1 %v2242_v41 }
 0x257   :  { %10252 = vmatpush3.bf16.msra.mxu1 %v13248_v34  ;;  %10203 = vmatprep.mubr.msk.bf16.mxu1 %vm13328_vm0, %v17790_v44  ;;  %v13253_v34 = vld [vmem:[%s17557_s2 + $0x168] sm:$0xff]  }
 0x258   :  { %10064 = vmatmul.mubr.bf16.vlgmr.msra.gmra.mrb[52].mxu0 %v1667_v16  ;;  %10253 = vmatprep.subr.bf16.mxu1 %v17790_v44  ;;  %v13255_v16 = vld [vmem:[%s17557_s2 + $0x178] sm:$0xff]  }
 0x259   :  { %10067 = vmatprep.mubr.msk.bf16.mxu0 %vm13328_vm0, %v17790_v44 }
 0x25b   :  { %10254 = vmatpush3.bf16.msra.mxu1 %v13249_v49  ;;  %v1674_v49 = vrot.slane %v14788_v30, 1 }
 0x25c   :  { %10255 = vmatprep.subr.bf16.mxu1 %v17790_v44 }
 0x25d   :  { %v1677_v30 = vsel %vm1664_vm8, %v1674_v49, %v1676_v46 }
 0x25e   :  { %10204 = vmatmul.mubr.bf16.gmra.mrb[28].mxu1 %v2251_v63  ;;  %v2595_v63 = vrot.slane %v15266_v33, 6  ;;  %v13258_v33 = vld [vmem:[%s17557_s2 + $0x190] sm:$0xff]  }
 0x25f   :  { %10207 = vmatprep.mubr.msk.bf16.mxu1 %vm13328_vm0, %v17790_v44  ;;  %10256 = vmatpush3.bf16.msra.mxu1 %v13250_v45 }
 0x260   :  { %10068 = vmatmul.mubr.bf16.gmra.mrb[56].mxu0 %v1669_v15  ;;  %10257 = vmatprep.subr.bf16.mxu1 %v17790_v44  ;;  %v2597_v15 = vrot.slane %v15289_v54, 6 }
 0x261   :  { %10071 = vmatprep.mubr.msk.bf16.mxu0 %vm13328_vm0, %v17790_v44 }
 0x263   :  { %10258 = vmatpush3.bf16.msra.mxu1 %v13251_v20  ;;  %v2598_v20 = vsel %vm2593_vm2, %v2595_v63, %v2597_v15 }
 0x264   :  { %10259 = vmatprep.subr.bf16.mxu1 %v17790_v44 }
 0x266   :  { %10208 = vmatmul.mubr.bf16.gmra.mrb[32].mxu1 %v14768_v35  ;;  %v1672_v35 = vrot.slane %v15324_v58, 1 }
 0x267   :  { %10211 = vmatprep.mubr.msk.bf16.mxu1 %vm13328_vm0, %v17790_v44  ;;  %10260 = vmatpush3.bf16.msra.mxu1 %v13252_v60  ;;  %v2599_v60 = vrot.slane %v15307_v38, 6 }
 0x268   :  { %10072 = vmatmul.mubr.bf16.gmra.mrb[60].mxu0 %v1671_v43  ;;  %10261 = vmatprep.subr.bf16.mxu1 %v17790_v44  ;;  %v1673_v41 = vsel %vm1664_vm8, %v1670_v37, %v1672_v35  ;;  %v13259_v37 = vld [vmem:[%s17557_s2 + $0x198] sm:$0xff]   ;;  %v13260_v43 = vld [vmem:[%s17557_s2 + $0x1a0] sm:$0xff]  }
 0x269   :  { %10075 = vmatprep.mubr.msk.bf16.mxu0 %vm13328_vm0, %v17790_v44 }
 0x26b   :  { %10262 = vmatpush3.bf16.msra.mxu1 %v13253_v34  ;;  %v2600_v34 = vsel %vm2593_vm2, %v2597_v15, %v2599_v60 }
 0x26c   :  { %10263 = vmatprep.subr.bf16.mxu1 %v17790_v44 }
 0x26e   :  { %10212 = vmatmul.mubr.bf16.gmra.mrb[36].mxu1 %v14796_v32  ;;  %v1675_v32 = vsel %vm1664_vm8, %v1672_v35, %v1674_v49  ;;  %v13261_v35 = vld [vmem:[%s17557_s2 + $0x1a8] sm:$0xff]   ;;  %v13263_v49 = vld [vmem:[%s17557_s2 + $0x1b8] sm:$0xff]  }
 0x26f   :  { %10215 = vmatprep.mubr.msk.bf16.mxu1 %vm13328_vm0, %v17790_v44  ;;  %10264 = vmatpush3.bf16.msra.mxu1 %v13254_v48  ;;  %v2601_v48 = vrot.slane %v15324_v58, 6 }
 0x270   :  { %10076 = vmatmul.mubr.bf16.gmra.mrb[64].mxu0 %v1673_v41  ;;  %10265 = vmatprep.subr.bf16.mxu1 %v17790_v44  ;;  %v13262_v41 = vld [vmem:[%s17557_s2 + $0x1b0] sm:$0xff]  }
 0x271   :  { %10079 = vmatprep.mubr.msk.bf16.mxu0 %vm13328_vm0, %v17790_v44 }
 0x273   :  { %10266 = vmatpush3.bf16.msra.mxu1 %v13255_v16  ;;  %v2602_v16 = vsel %vm2593_vm2, %v2599_v60, %v2601_v48  ;;  %v2615_v60 = vrot.slane %v15002_v50, 6 }
 0x274   :  { %10319 = vmatprep.subr.bf16.mxu1 %v17790_v44 }
 0x276   :  { %10216 = vmatmul.mubr.bf16.gmra.mrb[40].mxu1 %v14821_v22  ;;  %v17791_v22 = vrot.slane %v14843_v19, 1  ;;  %v2343_v19 = vshrl.u32 %v15055_v51, 16  ;;  %v13256_v51 = vld [vmem:[%s17557_s2 + $0x180] sm:$0xff]  }
 0x277   :  { %10219 = vmatprep.mubr.msk.bf16.mxu1 %vm13328_vm0, %v17790_v44 }
 0x278   :  { %10080 = vmatmul.mubr.bf16.gmra.mrb[68].mxu0 %v1675_v32  ;;  %v1679_v45 = vsel %vm1664_vm8, %v1676_v46, %v17791_v22  ;;  %v15430_v32 = vld [vmem:[#allocation2 + $0x28] sm:$0xff]  ;;  %v15437_v22 = vld [vmem:[#allocation2 + $0x30] sm:$0xff] }
 0x279   :  { %10083 = vmatprep.mubr.msk.bf16.mxu0 %vm13328_vm0, %v17790_v44  ;;  %v2603_v46 = vrot.slane %v15430_v32, 6 }
 0x27e   :  { %10220 = vmatmul.mubr.bf16.gmra.mrb[44].mxu1 %v14848_v40  ;;  %v2345_v40 = vrot.slane %v2343_v19, 5 }
 0x27f   :  { %10223 = vmatprep.mubr.msk.bf16.mxu1 %vm13328_vm0, %v17790_v44 }
 0x280   :  { %10084 = vmatmul.mubr.bf16.gmra.mrb[72].mxu0 %v1677_v30  ;;  %v2604_v30 = vsel %vm2593_vm2, %v2601_v48, %v2603_v46 }
 0x281   :  { %10087 = vmatprep.mubr.msk.bf16.mxu0 %vm13328_vm0, %v17790_v44 }
 0x286   :  { %10224 = vmatmul.mubr.bf16.gmra.mrb[48].mxu1 %v14880_v47  ;;  %v2348_v47 = vrot.slane %v2346_v28, 6  ;;  %v15443_v28 = vld [vmem:[#allocation2 + $0x38] sm:$0xff] }
 0x287   :  { %10227 = vmatprep.mubr.msk.bf16.mxu1 %vm13328_vm0, %v17790_v44 }
 0x288   :  { %10088 = vmatmul.mubr.bf16.gmra.mrb[76].mxu0 %v1679_v45  ;;  %v2605_v45 = vrot.slane %v15437_v22, 6 }
 0x28a   :  { %v2606_v19 = vsel %vm2593_vm2, %v2603_v46, %v2605_v45  ;;  %v2618_v46 = vsel %vm2593_vm2, %v2615_v60, %v2617_v62  ;;  %v2866_v62 = vrot.slane %v15289_v54, 2 }
 0x28e   :  { %10228 = vmatmul.mubr.bf16.gmra.mrb[0].mxu1 %v14925_v6  ;;  %v2349_v6 = vor.u32 %v2348_v47, %v2345_v40  ;;  %v2607_v40 = vrot.slane %v15443_v28, 6 }
 0x28f   :  { %10231 = vmatprep.mubr.msk.bf16.mxu1 %vm13328_vm0, %v17790_v44 }
 0x290   :  { %v2608_v47 = vsel %vm2593_vm2, %v2605_v45, %v2607_v40 }
 0x296   :  { %10232 = vmatmul.mubr.bf16.gmra.mrb[4].mxu1 %v14970_v36  ;;  %v2350_v36 = vsel %vm2225_vm12, %v15080_v29, %v2349_v6  ;;  %v13257_v29 = vld [vmem:[%s17557_s2 + $0x188] sm:$0xff]   ;;  %v2609_v6 = vrot.slane %v14875_v21, 6  ;;  %v2613_v21 = vrot.slane %v14955_v5, 6 }
 0x297   :  { %10235 = vmatprep.mubr.msk.bf16.mxu1 %vm13328_vm0, %v17790_v44 }
 0x298   :  { %v2616_v5 = vsel %vm2593_vm2, %v2613_v21, %v2615_v60  ;;  %v13266_v60 = vld [vmem:[%s17557_s2 + $0x1d0] sm:$0xff]  }
 0x29e   :  { %10236 = vmatmul.mubr.bf16.gmra.mrb[8].mxu1 %v15013_v52  ;;  %v2573_v52 = vld [vmem:[#allocation2] sm:$0xc0] }
 0x29f   :  { %10239 = vmatprep.mubr.msk.bf16.mxu1 %vm13328_vm0, %v17790_v44 }
 0x2a6   :  { %10240 = vmatmul.mubr.bf16.gmra.mrb[12].mxu1 %v15044_v18  ;;  %v2594_v18 = vrot.slane %v2573_v52, 6  ;;  %v2611_v52 = vrot.slane %v14916_v31, 6 }
 0x2a7   :  { %10243 = vmatprep.mubr.msk.bf16.mxu1 %vm13328_vm0, %v17790_v44 }
 0x2a8   :  { %v2614_v31 = vsel %vm2593_vm2, %v2611_v52, %v2613_v21 }
 0x2ae   :  { %10244 = vmatmul.mubr.bf16.gmra.mrb[16].mxu1 %v15088_v39  ;;  %v2596_v39 = vsel %vm2593_vm2, %v2594_v18, %v2595_v63 }
 0x2af   :  { %10247 = vmatprep.mubr.msk.bf16.mxu1 %vm13328_vm0, %v17790_v44 }
 0x2b6   :  { %10248 = vmatmul.mubr.bf16.gmra.mrb[20].mxu1 %v2350_v36  ;;  %v2610_v36 = vsel %vm2593_vm2, %v2607_v40, %v2609_v6 }
 0x2b7   :  { %10267 = vmatprep.mubr.msk.bf16.mxu1 %vm13328_vm0, %v17790_v44 }
 0x2be   :  { %10268 = vmatmul.mubr.bf16.vlgmr.msra.gmra.mrb[24].mxu1 %v2596_v39  ;;  %v2612_v39 = vsel %vm2593_vm2, %v2609_v6, %v2611_v52  ;;  %v13295_v6 = vld [vmem:[#allocation2 + $0x8] sm:$0xfc] }
 0x2bf   :  { %10320 = vmatpush3.bf16.msra.mxu1 %v13256_v51  ;;  %10271 = vmatprep.mubr.msk.bf16.mxu1 %vm13328_vm0, %v17790_v44 }
 0x2c0   :  { %10321 = vmatprep.subr.bf16.mxu1 %v17790_v44 }
 0x2c3   :  { %10322 = vmatpush3.bf16.msra.mxu1 %v13257_v29 }
 0x2c4   :  { %10323 = vmatprep.subr.bf16.mxu1 %v17790_v44 }
 0x2c6   :  { %10272 = vmatmul.mubr.bf16.gmra.mrb[28].mxu1 %v2598_v20 }
 0x2c7   :  { %10275 = vmatprep.mubr.msk.bf16.mxu1 %vm13328_vm0, %v17790_v44  ;;  %10324 = vmatpush3.bf16.msra.mxu1 %v13258_v33 }
 0x2c8   :  { %10325 = vmatprep.subr.bf16.mxu1 %v17790_v44 }
 0x2cb   :  { %10326 = vmatpush3.bf16.msra.mxu1 %v13259_v37 }
 0x2cc   :  { %10327 = vmatprep.subr.bf16.mxu1 %v17790_v44 }
 0x2ce   :  { %10276 = vmatmul.mubr.bf16.gmra.mrb[32].mxu1 %v2600_v34 }
 0x2cf   :  { %10279 = vmatprep.mubr.msk.bf16.mxu1 %vm13328_vm0, %v17790_v44  ;;  %10328 = vmatpush3.bf16.msra.mxu1 %v13260_v43 }
 0x2d0   :  { %10329 = vmatprep.subr.bf16.mxu1 %v17790_v44 }
 0x2d3   :  { %10330 = vmatpush3.bf16.msra.mxu1 %v13261_v35 }
 0x2d4   :  { %10331 = vmatprep.subr.bf16.mxu1 %v17790_v44 }
 0x2d6   :  { %10280 = vmatmul.mubr.bf16.gmra.mrb[36].mxu1 %v2602_v16 }
 0x2d7   :  { %10283 = vmatprep.mubr.msk.bf16.mxu1 %vm13328_vm0, %v17790_v44  ;;  %10332 = vmatpush3.bf16.msra.mxu1 %v13262_v41 }
 0x2d8   :  { %10333 = vmatprep.subr.bf16.mxu1 %v17790_v44 }
 0x2db   :  { %10334 = vmatpush3.bf16.msra.mxu1 %v13263_v49 }
 0x2dc   :  { %10387 = vmatprep.subr.bf16.mxu1 %v17790_v44 }
 0x2de   :  { %10284 = vmatmul.mubr.bf16.gmra.mrb[40].mxu1 %v2604_v30 }
 0x2df   :  { %10287 = vmatprep.mubr.msk.bf16.mxu1 %vm13328_vm0, %v17790_v44 }
 0x2e6   :  { %10288 = vmatmul.mubr.bf16.gmra.mrb[44].mxu1 %v2606_v19 }
 0x2e7   :  { %10291 = vmatprep.mubr.msk.bf16.mxu1 %vm13328_vm0, %v17790_v44 }
 0x2ee   :  { %10292 = vmatmul.mubr.bf16.gmra.mrb[48].mxu1 %v2608_v47 }
 0x2ef   :  { %10295 = vmatprep.mubr.msk.bf16.mxu1 %vm13328_vm0, %v17790_v44 }
 0x2f6   :  { %10296 = vmatmul.mubr.bf16.gmra.mrb[0].mxu1 %v2610_v36  ;;  %v2865_v36 = vrot.slane %v13295_v6, 2 }
 0x2f7   :  { %10299 = vmatprep.mubr.msk.bf16.mxu1 %vm13328_vm0, %v17790_v44 }
 0x2f8   :  { %v2867_v21 = vsel %vm2864_vm7, %v2865_v36, %v2866_v62 }
 0x2fb   :  { %v15454_v18 = vpop.f32.mrb[80].mxu0 }
 0x2fc   :  { %v10025_v63 = vpop.f32.mrb[81].mxu0 }
 0x2fd   :  { %v15456_v51 = vpop.f32.mrb[82].mxu0  ;;  %v13264_v63 = vld [vmem:[%s17557_s2 + $0x1c0] sm:$0xff]  }
 0x2fe   :  { %v10026_v29 = vpop.f32.mrb[83].mxu0  ;;  %10300 = vmatmul.mubr.bf16.gmra.mrb[4].mxu1 %v2612_v39 }
 0x2ff   :  { %10303 = vmatprep.mubr.msk.bf16.mxu1 %vm13328_vm0, %v17790_v44 }
 0x303   :  { %v15462_v15 = vpop.f32.mrb[84].mxu0 }
 0x304   :  { %v10029_v33 = vpop.f32.mrb[85].mxu0 }
 0x305   :  { %v15464_v20 = vpop.f32.mrb[86].mxu0 }
 0x306   :  { %v10030_v37 = vpop.f32.mrb[87].mxu0  ;;  %10304 = vmatmul.mubr.bf16.gmra.mrb[8].mxu1 %v2614_v31  ;;  %v2868_v31 = vrot.slane %v15307_v38, 2 }
 0x307   :  { %10307 = vmatprep.mubr.msk.bf16.mxu1 %vm13328_vm0, %v17790_v44 }
 0x30b   :  { %v15470_v43 = vpop.f32.mrb[88].mxu0 }
 0x30c   :  { %v10033_v34 = vpop.f32.mrb[89].mxu0 }
 0x30d   :  { %v15472_v35 = vpop.f32.mrb[90].mxu0 }
 0x30e   :  { %v10034_v48 = vpop.f32.mrb[91].mxu0  ;;  %10308 = vmatmul.mubr.bf16.gmra.mrb[12].mxu1 %v2616_v5 }
 0x30f   :  { %10311 = vmatprep.mubr.msk.bf16.mxu1 %vm13328_vm0, %v17790_v44  ;;  %v2869_v48 = vsel %vm2864_vm7, %v2866_v62, %v2868_v31 }
 0x313   :  { %v15477_v41 = vpop.f32.mrb[92].mxu0 }
 0x314   :  { %v10037_v16 = vpop.f32.mrb[93].mxu0 }
 0x315   :  { %v15479_v49 = vpop.f32.mrb[94].mxu0 }
 0x316   :  { %v10038_v30 = vpop.f32.mrb[95].mxu0  ;;  %10312 = vmatmul.mubr.bf16.gmra.mrb[16].mxu1 %v2618_v46  ;;  %v13267_v46 = vld [vmem:[%s17557_s2 + $0x1d8] sm:$0xff]  }
 0x317   :  { %10315 = vmatprep.mubr.msk.bf16.mxu1 %vm13328_vm0, %v17790_v44  ;;  %v2870_v30 = vrot.slane %v15324_v58, 2 }
 0x319   :  { %v2871_v62 = vsel %vm2864_vm7, %v2868_v31, %v2870_v30 }
 0x31b   :  { %v15486_v45 = vpop.f32.mrb[96].mxu0 }
 0x31c   :  { %v10041_v19 = vpop.f32.mrb[97].mxu0 }
 0x31d   :  { %v15488_v40 = vpop.f32.mrb[98].mxu0 }
 0x31e   :  { %v10042_v47 = vpop.f32.mrb[99].mxu0  ;;  %10316 = vmatmul.mubr.bf16.gmra.mrb[20].mxu1 %v15075_v14  ;;  %v13265_v14 = vld [vmem:[%s17557_s2 + $0x1c8] sm:$0xff]  }
 0x31f   :  { %10335 = vmatprep.mubr.msk.bf16.mxu1 %vm13328_vm0, %v17790_v44  ;;  %v13268_v47 = vld [vmem:[%s17557_s2 + $0x1e0] sm:$0xff]  }
 0x323   :  { %v15494_v52 = vpop.f32.mrb[100].mxu0 }
 0x324   :  { %v10045_v39 = vpop.f32.mrb[101].mxu0 }
 0x325   :  { %v1630_v29 = vpop.f32.mrb[102].mxu0  ;;  %v13269_v39 = vld [vmem:[%s17557_s2 + $0x1e8] sm:$0xff]  }
 0x326   :  { %v10046_v33 = vpop.f32.mrb[103].mxu0  ;;  %10336 = vmatmul.mubr.bf16.vlgmr.msra.gmra.mrb[24].mxu1 %v2867_v21  ;;  %v2872_v29 = vrot.slane %v15430_v32, 2 }
 0x327   :  { %10388 = vmatpush3.bf16.msra.mxu1 %v13264_v63  ;;  %10339 = vmatprep.mubr.msk.bf16.mxu1 %vm13328_vm0, %v17790_v44  ;;  %v13270_v33 = vld [vmem:[%s17557_s2 + $0x1f0] sm:$0xff]  }
 0x328   :  { %10389 = vmatprep.subr.bf16.mxu1 %v17790_v44 }
 0x32b   :  { %v15507_v37 = vpop.f32.mrb[52].mxu0  ;;  %10390 = vmatpush3.bf16.msra.mxu1 %v13265_v14 }
 0x32c   :  { %v10065_v34 = vpop.f32.mrb[53].mxu0  ;;  %10391 = vmatprep.subr.bf16.mxu1 %v17790_v44 }
 0x32d   :  { %v15513_v5 = vpop.f32.mrb[54].mxu0 }
 0x32e   :  { %v10066_v16 = vpop.f32.mrb[55].mxu0  ;;  %10340 = vmatmul.mubr.bf16.gmra.mrb[28].mxu1 %v2869_v48  ;;  %v13271_v48 = vld [vmem:[%s17557_s2 + $0x1f8] sm:$0xff]  }
 0x32f   :  { %10343 = vmatprep.mubr.msk.bf16.mxu1 %vm13328_vm0, %v17790_v44  ;;  %10392 = vmatpush3.bf16.msra.mxu1 %v13266_v60  ;;  %v2873_v60 = vsel %vm2864_vm7, %v2870_v30, %v2872_v29  ;;  %v2874_v16 = vrot.slane %v15437_v22, 2 }
 0x330   :  { %10393 = vmatprep.subr.bf16.mxu1 %v17790_v44 }
 0x333   :  { %v15523_v19 = vpop.f32.mrb[56].mxu0  ;;  %10394 = vmatpush3.bf16.msra.mxu1 %v13267_v46 }
 0x334   :  { %v10069_v6 = vpop.f32.mrb[57].mxu0  ;;  %10395 = vmatprep.subr.bf16.mxu1 %v17790_v44 }
 0x335   :  { %v15529_v36 = vpop.f32.mrb[58].mxu0  ;;  %v2875_v6 = vsel %vm2864_vm7, %v2872_v29, %v2874_v16  ;;  %v15571_v29 = vld [vmem:[#allocation2 + $0x40] sm:$0xff] }
 0x336   :  { %v10070_v63 = vpop.f32.mrb[59].mxu0  ;;  %10344 = vmatmul.mubr.bf16.gmra.mrb[32].mxu1 %v2871_v62 }
 0x337   :  { %10347 = vmatprep.mubr.msk.bf16.mxu1 %vm13328_vm0, %v17790_v44  ;;  %10396 = vmatpush3.bf16.msra.mxu1 %v13268_v47  ;;  %v2876_v63 = vrot.slane %v15443_v28, 2 }
 0x338   :  { %10397 = vmatprep.subr.bf16.mxu1 %v17790_v44 }
 0x33b   :  { %v15539_v21 = vpop.f32.mrb[60].mxu0  ;;  %10398 = vmatpush3.bf16.msra.mxu1 %v13269_v39 }
 0x33c   :  { %v10073_v14 = vpop.f32.mrb[61].mxu0  ;;  %10399 = vmatprep.subr.bf16.mxu1 %v17790_v44 }
 0x33d   :  { %v15545_v31 = vpop.f32.mrb[62].mxu0 }
 0x33e   :  { %v10074_v34 = vpop.f32.mrb[63].mxu0  ;;  %10348 = vmatmul.mubr.bf16.gmra.mrb[36].mxu1 %v2873_v60  ;;  %v2877_v60 = vsel %vm2864_vm7, %v2874_v16, %v2876_v63  ;;  %v15581_v16 = vld [vmem:[#allocation2 + $0x48] sm:$0xff] }
 0x33f   :  { %10351 = vmatprep.mubr.msk.bf16.mxu1 %vm13328_vm0, %v17790_v44  ;;  %10400 = vmatpush3.bf16.msra.mxu1 %v13270_v33 }
 0x340   :  { %10401 = vmatprep.subr.bf16.mxu1 %v17790_v44 }
 0x343   :  { %v15555_v46 = vpop.f32.mrb[64].mxu0  ;;  %10402 = vmatpush3.bf16.msra.mxu1 %v13271_v48  ;;  %v2878_v48 = vrot.slane %v15571_v29, 2 }
 0x344   :  { %v10077_v47 = vpop.f32.mrb[65].mxu0  ;;  %10455 = vmatprep.subr.bf16.mxu1 %v17790_v44 }
 0x345   :  { %v15558_v30 = vpop.f32.mrb[66].mxu0 }
 0x346   :  { %v10078_v62 = vpop.f32.mrb[67].mxu0  ;;  %10352 = vmatmul.mubr.bf16.gmra.mrb[40].mxu1 %v2875_v6 }
 0x347   :  { %10355 = vmatprep.mubr.msk.bf16.mxu1 %vm13328_vm0, %v17790_v44 }
 0x34b   :  { %v15564_v39 = vpop.f32.mrb[68].mxu0 }
 0x34c   :  { %v10081_v33 = vpop.f32.mrb[69].mxu0 }
 0x34d   :  { %v15566_v14 = vpop.f32.mrb[70].mxu0  ;;  %v2879_v33 = vsel %vm2864_vm7, %v2876_v63, %v2878_v48 }
 0x34e   :  { %v10082_v34 = vpop.f32.mrb[71].mxu0  ;;  %10356 = vmatmul.mubr.bf16.gmra.mrb[44].mxu1 %v2877_v60  ;;  %v2880_v60 = vrot.slane %v15581_v16, 2 }
 0x34f   :  { %10359 = vmatprep.mubr.msk.bf16.mxu1 %vm13328_vm0, %v17790_v44 }
 0x353   :  { %v15574_v47 = vpop.f32.mrb[72].mxu0 }
 0x354   :  { %v10085_v6 = vpop.f32.mrb[73].mxu0 }
 0x355   :  { %v15576_v62 = vpop.f32.mrb[74].mxu0  ;;  %v2881_v6 = vsel %vm2864_vm7, %v2878_v48, %v2880_v60 }
 0x356   :  { %v10086_v0 = vpop.f32.mrb[75].mxu0  ;;  %10360 = vmatmul.mubr.bf16.gmra.mrb[48].mxu1 %v2879_v33 }
 0x357   :  { %10363 = vmatprep.mubr.msk.bf16.mxu1 %vm13328_vm0, %v17790_v44  ;;  %v15591_v0 = vld [vmem:[#allocation2 + $0x50] sm:$0xff] }
 0x358   :  { %v2882_v63 = vrot.slane %v15591_v0, 2 }
 0x35a   :  { %v2883_v33 = vsel %vm2864_vm7, %v2880_v60, %v2882_v63 }
 0x35b   :  { %v15584_v34 = vpop.f32.mrb[76].mxu0 }
 0x35c   :  { %v10089_v26 = vpop.f32.mrb[77].mxu0 }
 0x35d   :  { %v15586_v13 = vpop.f32.mrb[78].mxu0  ;;  %v2884_v26 = vrot.slane %v15002_v50, 2 }
 0x35e   :  { %v10090_v12 = vpop.f32.mrb[79].mxu0  ;;  %10364 = vmatmul.mubr.bf16.gmra.mrb[0].mxu1 %v2881_v6  ;;  %v2844_v6 = vld [vmem:[#allocation2 + $0x68] sm:$0x3f] }
 0x35f   :  { %10367 = vmatprep.mubr.msk.bf16.mxu1 %vm13328_vm0, %v17790_v44  ;;  %v2885_v11 = vsel %vm2864_vm7, %v2882_v63, %v2884_v26  ;;  %v2886_v12 = vrot.slane %v15065_v53, 2  ;;  %v2888_v60 = vrot.slane %v2844_v6, 2  ;;  %v13273_v53 = vld [vmem:[%s17557_s2 + $0x208] sm:$0xff]   ;;  %v13274_v63 = vld [vmem:[%s17557_s2 + $0x210] sm:$0xff]  }
 0x361   :  { %v2887_v48 = vsel %vm2864_vm7, %v2884_v26, %v2886_v12  ;;  %v13276_v26 = vld [vmem:[%s17557_s2 + $0x220] sm:$0xff]  }
 0x366   :  { %10368 = vmatmul.mubr.bf16.gmra.mrb[4].mxu1 %v2883_v33  ;;  %v2889_v33 = vsel %vm2864_vm7, %v2886_v12, %v2888_v60  ;;  %v13278_v12 = vld [vmem:[%s17557_s2 + $0x230] sm:$0xff]  }
 0x367   :  { %10371 = vmatprep.mubr.msk.bf16.mxu1 %vm13328_vm0, %v17790_v44 }
 0x36e   :  { %10372 = vmatmul.mubr.bf16.gmra.mrb[8].mxu1 %v2885_v11  ;;  %v13272_v11 = vld [vmem:[%s17557_s2 + $0x200] sm:$0xff]  }
 0x36f   :  { %10375 = vmatprep.mubr.msk.bf16.mxu1 %vm13328_vm0, %v17790_v44 }
 0x376   :  { %10376 = vmatmul.mubr.bf16.gmra.mrb[12].mxu1 %v2887_v48 }
 0x377   :  { %10379 = vmatprep.mubr.msk.bf16.mxu1 %vm13328_vm0, %v17790_v44 }
 0x37e   :  { %10380 = vmatmul.mubr.bf16.gmra.mrb[16].mxu1 %v2889_v33 }
 0x37f   :  { %10383 = vmatprep.mubr.msk.bf16.mxu1 %vm13328_vm0, %v17790_v44 }
 0x386   :  { %10384 = vmatmul.mubr.bf16.gmra.mrb[20].mxu1 %v2888_v60 }
 0x387   :  { %10403 = vmatprep.mubr.msk.bf16.mxu1 %vm13328_vm0, %v17790_v44 }
 0x38e   :  { %10404 = vmatmul.mubr.bf16.vlgmr.msra.gmra.mrb[24].mxu1 %v14855_v25  ;;  %v13275_v25 = vld [vmem:[%s17557_s2 + $0x218] sm:$0xff]  }
 0x38f   :  { %10456 = vmatpush3.bf16.msra.mxu1 %v13272_v11  ;;  %10407 = vmatprep.mubr.msk.bf16.mxu1 %vm13328_vm0, %v17790_v44 }
 0x390   :  { %10457 = vmatprep.subr.bf16.mxu1 %v17790_v44 }
 0x393   :  { %10458 = vmatpush3.bf16.msra.mxu1 %v13273_v53 }
 0x394   :  { %10459 = vmatprep.subr.bf16.mxu1 %v17790_v44 }
 0x396   :  { %10408 = vmatmul.mubr.bf16.gmra.mrb[28].mxu1 %v14873_v57  ;;  %v13277_v57 = vld [vmem:[%s17557_s2 + $0x228] sm:$0xff]  }
 0x397   :  { %10411 = vmatprep.mubr.msk.bf16.mxu1 %vm13328_vm0, %v17790_v44  ;;  %10460 = vmatpush3.bf16.msra.mxu1 %v13274_v63  ;;  %v15738_v63 = vld [vmem:[%s17558_s3 + $0x3] ss:$0 sm:$0xff] }
 0x398   :  { %10461 = vmatprep.subr.bf16.mxu1 %v17790_v44 }
 0x39b   :  { %10462 = vmatpush3.bf16.msra.mxu1 %v13275_v25 }
 0x39c   :  { %10463 = vmatprep.subr.bf16.mxu1 %v17790_v44 }
 0x39e   :  { %10412 = vmatmul.mubr.bf16.gmra.mrb[32].mxu1 %v14961_v24  ;;  %v13279_v24 = vld [vmem:[%s17557_s2 + $0x238] sm:$0xff]  }
 0x39f   :  { %10415 = vmatprep.mubr.msk.bf16.mxu1 %vm13328_vm0, %v17790_v44  ;;  %10464 = vmatpush3.bf16.msra.mxu1 %v13276_v26 }
 0x3a0   :  { %10465 = vmatprep.subr.bf16.mxu1 %v17790_v44 }
 0x3a3   :  { %10466 = vmatpush3.bf16.msra.mxu1 %v13277_v57 }
 0x3a4   :  { %10467 = vmatprep.subr.bf16.mxu1 %v17790_v44 }
 0x3a6   :  { %10416 = vmatmul.mubr.bf16.gmra.mrb[36].mxu1 %v14965_v55  ;;  %v3414_v55 = vld [vmem:[#allocation2 + $0x8] sm:$0xf8] }
 0x3a7   :  { %10419 = vmatprep.mubr.msk.bf16.mxu1 %vm13328_vm0, %v17790_v44  ;;  %10468 = vmatpush3.bf16.msra.mxu1 %v13278_v12 }
 0x3a8   :  { %10469 = vmatprep.subr.bf16.mxu1 %v17790_v44 }
 0x3ab   :  { %10470 = vmatpush3.bf16.msra.mxu1 %v13279_v24 }
 0x3ae   :  { %10420 = vmatmul.mubr.bf16.gmra.mrb[40].mxu1 %v15009_v4  ;;  %v3435_v4 = vrot.slane %v3414_v55, 3 }
 0x3af   :  { %10423 = vmatprep.mubr.msk.bf16.mxu1 %vm13328_vm0, %v17790_v44 }
 0x3b6   :  { %10424 = vmatmul.mubr.bf16.gmra.mrb[44].mxu1 %v15036_v27  ;;  %v3436_v27 = vrot.slane %v15289_v54, 3  ;;  %v3444_v54 = vrot.slane %v15437_v22, 3  ;;  %v3450_v22 = vrot.slane %v15581_v16, 3  ;;  %v17793_v16 = vrot.slane %v15049_v1, 3 }
 0x3b7   :  { %10427 = vmatprep.mubr.msk.bf16.mxu1 %vm13328_vm0, %v17790_v44 }
 0x3be   :  { %10428 = vmatmul.mubr.bf16.gmra.mrb[48].mxu1 %v15047_v7  ;;  %v3437_v7 = vsel %vm3434_vm3, %v3435_v4, %v3436_v27 }
 0x3bf   :  { %10431 = vmatprep.mubr.msk.bf16.mxu1 %vm13328_vm0, %v17790_v44 }
 0x3c6   :  { %10432 = vmatmul.mubr.bf16.gmra.mrb[0].mxu1 %v15053_v42  ;;  %v3438_v42 = vrot.slane %v15307_v38, 3 }
 0x3c7   :  { %10435 = vmatprep.mubr.msk.bf16.mxu1 %vm13328_vm0, %v17790_v44 }
 0x3ce   :  { %10436 = vmatmul.mubr.bf16.gmra.mrb[4].mxu1 %v15058_v3  ;;  %v3439_v3 = vsel %vm3434_vm3, %v3436_v27, %v3438_v42 }
 0x3cf   :  { %10439 = vmatprep.mubr.msk.bf16.mxu1 %vm13328_vm0, %v17790_v44 }
 0x3d6   :  { %10440 = vmatmul.mubr.bf16.gmra.mrb[8].mxu1 %v15061_v59  ;;  %v3440_v59 = vrot.slane %v15324_v58, 3  ;;  %v3446_v58 = vrot.slane %v15443_v28, 3  ;;  %v3452_v28 = vrot.slane %v15591_v0, 3  ;;  %v15732_v0 = vld [vmem:[%s17558_s3 + $0x2] ss:$0 sm:$0xff] }
 0x3d7   :  { %10443 = vmatprep.mubr.msk.bf16.mxu1 %vm13328_vm0, %v17790_v44 }
 0x3d8   :  { %v3447_v48 = vsel %vm3434_vm3, %v3444_v54, %v3446_v58  ;;  %v3453_v33 = vsel %vm3434_vm3, %v3450_v22, %v3452_v28 }
 0x3de   :  { %10444 = vmatmul.mubr.bf16.gmra.mrb[12].mxu1 %v15094_v61  ;;  %v3442_v61 = vrot.slane %v15430_v32, 3  ;;  %v3448_v32 = vrot.slane %v15571_v29, 3  ;;  %v17792_v29 = vrot.slane %v15002_v50, 3 }
 0x3df   :  { %10447 = vmatprep.mubr.msk.bf16.mxu1 %vm13328_vm0, %v17790_v44 }
 0x3e0   :  { %v3445_v38 = vsel %vm3434_vm3, %v3442_v61, %v3444_v54  ;;  %v3449_v6 = vsel %vm3434_vm3, %v3446_v58, %v3448_v32  ;;  %v3451_v60 = vsel %vm3434_vm3, %v3448_v32, %v3450_v22  ;;  %v3455_v11 = vsel %vm3434_vm3, %v3452_v28, %v17792_v29 }
 0x3e6   :  { %10448 = vmatmul.mubr.bf16.gmra.mrb[16].mxu1 %v15098_v2  ;;  %v3443_v2 = vsel %vm3434_vm3, %v3440_v59, %v3442_v61 }
 0x3e7   :  { %10451 = vmatprep.mubr.msk.bf16.mxu1 %vm13328_vm0, %v17790_v44 }
 0x3ee   :  { %10452 = vmatmul.mubr.bf16.gmra.mrb[20].mxu1 %v15082_v23  ;;  %v3441_v23 = vsel %vm3434_vm3, %v3438_v42, %v3440_v59 }
 0x3ef   :  { %10471 = vmatprep.mubr.msk.bf16.mxu1 %vm13328_vm0, %v17790_v44 }
 0x3f6   :  { %10472 = vmatmul.mubr.bf16.vlgmr.msra.gmra.mrb[24].mxu1 %v3437_v7 }
 0x3f7   :  { %10475 = vmatprep.mubr.msk.bf16.mxu1 %vm13328_vm0, %v17790_v44 }
 0x3fe   :  { %10476 = vmatmul.mubr.bf16.gmra.mrb[28].mxu1 %v3439_v3 }
 0x3ff   :  { %10479 = vmatprep.mubr.msk.bf16.mxu1 %vm13328_vm0, %v17790_v44 }
 0x406   :  { %10480 = vmatmul.mubr.bf16.gmra.mrb[32].mxu1 %v3441_v23 }
 0x407   :  { %10483 = vmatprep.mubr.msk.bf16.mxu1 %vm13328_vm0, %v17790_v44 }
 0x40e   :  { %10484 = vmatmul.mubr.bf16.gmra.mrb[36].mxu1 %v3443_v2 }
 0x40f   :  { %10487 = vmatprep.mubr.msk.bf16.mxu1 %vm13328_vm0, %v17790_v44 }
 0x416   :  { %10488 = vmatmul.mubr.bf16.gmra.mrb[40].mxu1 %v3445_v38 }
 0x417   :  { %10491 = vmatprep.mubr.msk.bf16.mxu1 %vm13328_vm0, %v17790_v44 }
 0x41e   :  { %10492 = vmatmul.mubr.bf16.gmra.mrb[44].mxu1 %v3447_v48 }
 0x41f   :  { %10495 = vmatprep.mubr.msk.bf16.mxu1 %vm13328_vm0, %v17790_v44 }
 0x426   :  { %10496 = vmatmul.mubr.bf16.gmra.mrb[48].mxu1 %v3449_v6 }
 0x427   :  { %10499 = vmatprep.mubr.msk.bf16.mxu1 %vm13328_vm0, %v17790_v44 }
 0x42e   :  { %10500 = vmatmul.mubr.bf16.gmra.mrb[0].mxu1 %v3451_v60 }
 0x42f   :  { %10503 = vmatprep.mubr.msk.bf16.mxu1 %vm13328_vm0, %v17790_v44 }
 0x436   :  { %10504 = vmatmul.mubr.bf16.gmra.mrb[4].mxu1 %v3453_v33 }
 0x437   :  { %10507 = vmatprep.mubr.msk.bf16.mxu1 %vm13328_vm0, %v17790_v44 }
 0x43e   :  { %10508 = vmatmul.mubr.bf16.gmra.mrb[8].mxu1 %v3455_v11 }
 0x43f   :  { %10511 = vmatprep.mubr.msk.bf16.mxu1 %vm13328_vm0, %v17790_v44 }
 0x446   :  { %10512 = vmatmul.mubr.bf16.gmra.mrb[12].mxu1 %v15103_v17 }
 0x447   :  { %10515 = vmatprep.mubr.msk.bf16.mxu1 %vm13328_vm0, %v17790_v44 }
 0x44e   :  { %10516 = vmatmul.mubr.bf16.gmra.mrb[16].mxu1 %v15108_v56 }
 0x44f   :  { %10519 = vmatprep.mubr.msk.bf16.mxu1 %vm13328_vm0, %v17790_v44 }
 0x456   :  { %10520 = vmatmul.mubr.bf16.gmra.mrb[20].mxu1 %v17793_v16 }
 0x4c9   :  { %v3555_v50 = vpop.f32.mrb[24].mxu1 }
 0x4ca   :  { %v11963_v53 = vadd.f32 %v3555_v50, %v15507_v37  ;;  %v10473_v17 = vpop.f32.mrb[25].mxu1 }
 0x4cb   :  { %v3558_v56 = vpop.f32.mrb[26].mxu1 }
 0x4cc   :  { %v3687_v25 = vmul.f32 %v11963_v53, %v15732_v0  ;;  %v11964_v1 = vadd.f32 %v3558_v56, %v15513_v5  ;;  %v10474_v26 = vpop.f32.mrb[27].mxu1 }
 0x4ce   :  { %v3717_v57 = vadd.f32 %v15738_v63, %v3687_v25  ;;  %v3688_v12 = vmul.f32 %v11964_v1, %v15732_v0 }
 0x4d0   :  { %v3767_v24 = vmul.f32 0.01, %v3717_v57  ;;  %v3718_v55 = vadd.f32 %v15738_v63, %v3688_v12  ;;  %vm3742_vm9 = vcmp.ge.f32.partialorder %v3717_v57, 0.0 }
 0x4d1   :  { %v3563_v37 = vpop.f32.mrb[28].mxu1 }
 0x4d2   :  { %vm3743_vm10 = vcmp.ge.f32.partialorder %v3718_v55, 0.0  ;;  %v3768_v4 = vmul.f32 0.01, %v3718_v55  ;;  %v11965_v27 = vadd.f32 %v3563_v37, %v15523_v19  ;;  %v10477_v7 = vpop.f32.mrb[29].mxu1  ;;  %v3792_v3 = vsel %vm3742_vm9, %v3717_v57, %v3767_v24 }
 0x4d3   :  { %v3566_v42 = vpop.f32.mrb[30].mxu1 }
 0x4d4   :  { %v3793_v59 = vsel %vm3743_vm10, %v3718_v55, %v3768_v4  ;;  %v3689_v5 = vmul.f32 %v11965_v27, %v15732_v0  ;;  %v11966_v23 = vadd.f32 %v3566_v42, %v15529_v36  ;;  %v10478_v61 = vpop.f32.mrb[31].mxu1 }
 0x4d5   :  { %v3817_v2 = vpack.c.bf16 %v3793_v59, %v3792_v3 }
 0x4d6   :  { %v3719_v54 = vadd.f32 %v15738_v63, %v3689_v5  ;;  %v3690_v38 = vmul.f32 %v11966_v23, %v15732_v0 }
 0x4d7   :  { %3830 = vst [vmem:[#allocation3] sm:$0xff] %v3817_v2 }
 0x4d8   :  { %v3769_v58 = vmul.f32 0.01, %v3719_v54  ;;  %v3720_v48 = vadd.f32 %v15738_v63, %v3690_v38  ;;  %vm3744_vm11 = vcmp.ge.f32.partialorder %v3719_v54, 0.0 }
 0x4d9   :  { %v3571_v19 = vpop.f32.mrb[32].mxu1 }
 0x4da   :  { %vm3745_vm13 = vcmp.ge.f32.partialorder %v3720_v48, 0.0  ;;  %v3770_v32 = vmul.f32 0.01, %v3720_v48  ;;  %v11967_v6 = vadd.f32 %v3571_v19, %v15539_v21  ;;  %v10481_v22 = vpop.f32.mrb[33].mxu1  ;;  %v3794_v28 = vsel %vm3744_vm11, %v3719_v54, %v3769_v58 }
 0x4db   :  { %v3574_v60 = vpop.f32.mrb[34].mxu1 }
 0x4dc   :  { %v3795_v36 = vsel %vm3745_vm13, %v3720_v48, %v3770_v32  ;;  %v3691_v33 = vmul.f32 %v11967_v6, %v15732_v0  ;;  %v11968_v29 = vadd.f32 %v3574_v60, %v15545_v31  ;;  %v10482_v11 = vpop.f32.mrb[35].mxu1 }
 0x4dd   :  { %v3818_v16 = vpack.c.bf16 %v3795_v36, %v3794_v28 }
 0x4de   :  { %v3721_v50 = vadd.f32 %v15738_v63, %v3691_v33  ;;  %v3692_v53 = vmul.f32 %v11968_v29, %v15732_v0 }
 0x4df   :  { %3831 = vst [vmem:[#allocation3 + $0x8] sm:$0xff] %v3818_v16 }
 0x4e0   :  { %v3771_v17 = vmul.f32 0.01, %v3721_v50  ;;  %v3722_v56 = vadd.f32 %v15738_v63, %v3692_v53  ;;  %vm3746_vm14 = vcmp.ge.f32.partialorder %v3721_v50, 0.0 }
 0x4e1   :  { %v3579_v21 = vpop.f32.mrb[36].mxu1 }
 0x4e2   :  { %vm3747_vm15 = vcmp.ge.f32.partialorder %v3722_v56, 0.0  ;;  %v3772_v25 = vmul.f32 0.01, %v3722_v56  ;;  %v11969_v1 = vadd.f32 %v3579_v21, %v15555_v46  ;;  %v10485_v26 = vpop.f32.mrb[37].mxu1  ;;  %v3796_v12 = vsel %vm3746_vm14, %v3721_v50, %v3771_v17 }
 0x4e3   :  { %v3582_v57 = vpop.f32.mrb[38].mxu1 }
 0x4e4   :  { %v3797_v31 = vsel %vm3747_vm15, %v3722_v56, %v3772_v25  ;;  %v3693_v24 = vmul.f32 %v11969_v1, %v15732_v0  ;;  %v11970_v55 = vadd.f32 %v3582_v57, %v15558_v30  ;;  %v10486_v37 = vpop.f32.mrb[39].mxu1 }
 0x4e5   :  { %v3819_v4 = vpack.c.bf16 %v3797_v31, %v3796_v12 }
 0x4e6   :  { %v3723_v27 = vadd.f32 %v15738_v63, %v3693_v24  ;;  %v3694_v7 = vmul.f32 %v11970_v55, %v15732_v0 }
 0x4e7   :  { %3832 = vst [vmem:[#allocation3 + $0x10] sm:$0xff] %v3819_v4 }
 0x4e8   :  { %v3773_v42 = vmul.f32 0.01, %v3723_v27  ;;  %v3724_v3 = vadd.f32 %v15738_v63, %v3694_v7  ;;  %vm3748_vm1 = vcmp.ge.f32.partialorder %v3723_v27, 0.0 }
 0x4e9   :  { %v3587_v46 = vpop.f32.mrb[40].mxu1 }
 0x4ea   :  { %vm3749_vm9 = vcmp.ge.f32.partialorder %v3724_v3, 0.0  ;;  %v3774_v59 = vmul.f32 0.01, %v3724_v3  ;;  %v11971_v5 = vadd.f32 %v3587_v46, %v15564_v39  ;;  %v10489_v23 = vpop.f32.mrb[41].mxu1  ;;  %v3798_v2 = vsel %vm3748_vm1, %v3723_v27, %v3773_v42 }
 0x4eb   :  { %v3590_v61 = vpop.f32.mrb[42].mxu1 }
 0x4ec   :  { %v3799_v30 = vsel %vm3749_vm9, %v3724_v3, %v3774_v59  ;;  %v3695_v54 = vmul.f32 %v11971_v5, %v15732_v0  ;;  %v11972_v38 = vadd.f32 %v3590_v61, %v15566_v14  ;;  %v10490_v58 = vpop.f32.mrb[43].mxu1 }
 0x4ed   :  { %v3820_v48 = vpack.c.bf16 %v3799_v30, %v3798_v2 }
 0x4ee   :  { %v3725_v19 = vadd.f32 %v15738_v63, %v3695_v54  ;;  %v3696_v32 = vmul.f32 %v11972_v38, %v15732_v0 }
 0x4ef   :  { %3833 = vst [vmem:[#allocation3 + $0x18] sm:$0xff] %v3820_v48 }
 0x4f0   :  { %v3775_v6 = vmul.f32 0.01, %v3725_v19  ;;  %v3726_v22 = vadd.f32 %v15738_v63, %v3696_v32  ;;  %vm3750_vm10 = vcmp.ge.f32.partialorder %v3725_v19, 0.0 }
 0x4f1   :  { %v3595_v39 = vpop.f32.mrb[44].mxu1 }
 0x4f2   :  { %vm3751_vm11 = vcmp.ge.f32.partialorder %v3726_v22, 0.0  ;;  %v3776_v60 = vmul.f32 0.01, %v3726_v22  ;;  %v11973_v28 = vadd.f32 %v3595_v39, %v15574_v47  ;;  %v10493_v36 = vpop.f32.mrb[45].mxu1  ;;  %v3800_v29 = vsel %vm3750_vm10, %v3725_v19, %v3775_v6 }
 0x4f3   :  { %v3598_v33 = vpop.f32.mrb[46].mxu1 }
 0x4f4   :  { %v3801_v14 = vsel %vm3751_vm11, %v3726_v22, %v3776_v60  ;;  %v3697_v11 = vmul.f32 %v11973_v28, %v15732_v0  ;;  %v11974_v16 = vadd.f32 %v3598_v33, %v15576_v62  ;;  %v10494_v50 = vpop.f32.mrb[47].mxu1 }
 0x4f5   :  { %v3821_v53 = vpack.c.bf16 %v3801_v14, %v3800_v29 }
 0x4f6   :  { %v3727_v17 = vadd.f32 %v15738_v63, %v3697_v11  ;;  %v3698_v56 = vmul.f32 %v11974_v16, %v15732_v0 }
 0x4f7   :  { %3834 = vst [vmem:[#allocation3 + $0x20] sm:$0xff] %v3821_v53 }
 0x4f8   :  { %v3777_v21 = vmul.f32 0.01, %v3727_v17  ;;  %v3728_v25 = vadd.f32 %v15738_v63, %v3698_v56  ;;  %vm3752_vm13 = vcmp.ge.f32.partialorder %v3727_v17, 0.0 }
 0x4f9   :  { %v3603_v47 = vpop.f32.mrb[48].mxu1 }
 0x4fa   :  { %vm3753_vm14 = vcmp.ge.f32.partialorder %v3728_v25, 0.0  ;;  %v3778_v1 = vmul.f32 0.01, %v3728_v25  ;;  %v11975_v26 = vadd.f32 %v3603_v47, %v15584_v34  ;;  %v10497_v57 = vpop.f32.mrb[49].mxu1  ;;  %v3802_v31 = vsel %vm3752_vm13, %v3727_v17, %v3777_v21 }
 0x4fb   :  { %v3606_v12 = vpop.f32.mrb[50].mxu1 }
 0x4fc   :  { %v3803_v62 = vsel %vm3753_vm14, %v3728_v25, %v3778_v1  ;;  %v3699_v24 = vmul.f32 %v11975_v26, %v15732_v0  ;;  %v11976_v55 = vadd.f32 %v3606_v12, %v15586_v13  ;;  %v10498_v37 = vpop.f32.mrb[51].mxu1 }
 0x4fd   :  { %v3822_v4 = vpack.c.bf16 %v3803_v62, %v3802_v31 }
 0x4fe   :  { %v3729_v27 = vadd.f32 %v15738_v63, %v3699_v24  ;;  %v3700_v7 = vmul.f32 %v11976_v55, %v15732_v0 }
 0x4ff   :  { %3835 = vst [vmem:[#allocation3 + $0x28] sm:$0xff] %v3822_v4 }
 0x500   :  { %v3779_v42 = vmul.f32 0.01, %v3729_v27  ;;  %v3730_v3 = vadd.f32 %v15738_v63, %v3700_v7  ;;  %vm3754_vm15 = vcmp.ge.f32.partialorder %v3729_v27, 0.0 }
 0x501   :  { %v3611_v34 = vpop.f32.mrb[0].mxu1 }
 0x502   :  { %vm3755_vm1 = vcmp.ge.f32.partialorder %v3730_v3, 0.0  ;;  %v3780_v46 = vmul.f32 0.01, %v3730_v3  ;;  %v11977_v59 = vadd.f32 %v3611_v34, %v15454_v18  ;;  %v10501_v5 = vpop.f32.mrb[1].mxu1  ;;  %v3804_v61 = vsel %vm3754_vm15, %v3729_v27, %v3779_v42 }
 0x503   :  { %v3614_v23 = vpop.f32.mrb[2].mxu1 }
 0x504   :  { %v3805_v13 = vsel %vm3755_vm1, %v3730_v3, %v3780_v46  ;;  %v3701_v2 = vmul.f32 %v11977_v59, %v15732_v0  ;;  %v11978_v30 = vadd.f32 %v3614_v23, %v15456_v51  ;;  %v10502_v54 = vpop.f32.mrb[3].mxu1 }
 0x505   :  { %v3823_v38 = vpack.c.bf16 %v3805_v13, %v3804_v61 }
 0x506   :  { %v3731_v58 = vadd.f32 %v15738_v63, %v3701_v2  ;;  %v3702_v48 = vmul.f32 %v11978_v30, %v15732_v0 }
 0x507   :  { %3836 = vst [vmem:[#allocation3 + $0x30] sm:$0xff] %v3823_v38 }
 0x508   :  { %v3781_v19 = vmul.f32 0.01, %v3731_v58  ;;  %v3732_v32 = vadd.f32 %v15738_v63, %v3702_v48  ;;  %vm3756_vm9 = vcmp.ge.f32.partialorder %v3731_v58, 0.0 }
 0x509   :  { %v3619_v18 = vpop.f32.mrb[4].mxu1 }
 0x50a   :  { %vm3757_vm10 = vcmp.ge.f32.partialorder %v3732_v32, 0.0  ;;  %v3782_v6 = vmul.f32 0.01, %v3732_v32  ;;  %v11979_v22 = vadd.f32 %v3619_v18, %v15462_v15  ;;  %v10505_v39 = vpop.f32.mrb[5].mxu1  ;;  %v3806_v28 = vsel %vm3756_vm9, %v3731_v58, %v3781_v19 }
 0x50b   :  { %v3622_v60 = vpop.f32.mrb[6].mxu1 }
 0x50c   :  { %v3807_v51 = vsel %vm3757_vm10, %v3732_v32, %v3782_v6  ;;  %v3703_v36 = vmul.f32 %v11979_v22, %v15732_v0  ;;  %v11980_v33 = vadd.f32 %v3622_v60, %v15464_v20  ;;  %v10506_v29 = vpop.f32.mrb[7].mxu1 }
 0x50d   :  { %v3824_v14 = vpack.c.bf16 %v3807_v51, %v3806_v28 }
 0x50e   :  { %v3733_v11 = vadd.f32 %v15738_v63, %v3703_v36  ;;  %v3704_v16 = vmul.f32 %v11980_v33, %v15732_v0 }
 0x50f   :  { %3837 = vst [vmem:[#allocation3 + $0x38] sm:$0xff] %v3824_v14 }
 0x510   :  { %v3783_v50 = vmul.f32 0.01, %v3733_v11  ;;  %v3734_v53 = vadd.f32 %v15738_v63, %v3704_v16  ;;  %vm3758_vm11 = vcmp.ge.f32.partialorder %v3733_v11, 0.0 }
 0x511   :  { %v3627_v15 = vpop.f32.mrb[8].mxu1 }
 0x512   :  { %vm3759_vm13 = vcmp.ge.f32.partialorder %v3734_v53, 0.0  ;;  %v3784_v17 = vmul.f32 0.01, %v3734_v53  ;;  %v11981_v56 = vadd.f32 %v3627_v15, %v15470_v43  ;;  %v10509_v21 = vpop.f32.mrb[9].mxu1  ;;  %v3808_v47 = vsel %vm3758_vm11, %v3733_v11, %v3783_v50 }
 0x513   :  { %v3630_v25 = vpop.f32.mrb[10].mxu1 }
 0x514   :  { %v3809_v20 = vsel %vm3759_vm13, %v3734_v53, %v3784_v17  ;;  %v3705_v1 = vmul.f32 %v11981_v56, %v15732_v0  ;;  %v11982_v26 = vadd.f32 %v3630_v25, %v15472_v35  ;;  %v10510_v57 = vpop.f32.mrb[11].mxu1 }
 0x515   :  { %v3825_v12 = vpack.c.bf16 %v3809_v20, %v3808_v47 }
 0x516   :  { %v3735_v31 = vadd.f32 %v15738_v63, %v3705_v1  ;;  %v3706_v62 = vmul.f32 %v11982_v26, %v15732_v0 }
 0x517   :  { %3838 = vst [vmem:[#allocation3 + $0x40] sm:$0xff] %v3825_v12 }
 0x518   :  { %v3785_v24 = vmul.f32 0.01, %v3735_v31  ;;  %v3736_v55 = vadd.f32 %v15738_v63, %v3706_v62  ;;  %vm3760_vm14 = vcmp.ge.f32.partialorder %v3735_v31, 0.0 }
 0x519   :  { %v3635_v43 = vpop.f32.mrb[12].mxu1 }
 0x51a   :  { %vm3761_vm15 = vcmp.ge.f32.partialorder %v3736_v55, 0.0  ;;  %v3786_v37 = vmul.f32 0.01, %v3736_v55  ;;  %v11983_v4 = vadd.f32 %v3635_v43, %v15477_v41  ;;  %v10513_v27 = vpop.f32.mrb[13].mxu1  ;;  %v3810_v42 = vsel %vm3760_vm14, %v3735_v31, %v3785_v24 }
 0x51b   :  { %v3638_v7 = vpop.f32.mrb[14].mxu1 }
 0x51c   :  { %v3811_v35 = vsel %vm3761_vm15, %v3736_v55, %v3786_v37  ;;  %v3707_v3 = vmul.f32 %v11983_v4, %v15732_v0  ;;  %v11984_v34 = vadd.f32 %v3638_v7, %v15479_v49  ;;  %v10514_v46 = vpop.f32.mrb[15].mxu1 }
 0x51d   :  { %v3826_v59 = vpack.c.bf16 %v3811_v35, %v3810_v42 }
 0x51e   :  { %v3737_v5 = vadd.f32 %v15738_v63, %v3707_v3  ;;  %v3708_v23 = vmul.f32 %v11984_v34, %v15732_v0 }
 0x51f   :  { %3839 = vst [vmem:[#allocation3 + $0x48] sm:$0xff] %v3826_v59 }
 0x520   :  { %v3787_v61 = vmul.f32 0.01, %v3737_v5  ;;  %v3738_v13 = vadd.f32 %v15738_v63, %v3708_v23  ;;  %vm3762_vm1 = vcmp.ge.f32.partialorder %v3737_v5, 0.0 }
 0x521   :  { %v3643_v41 = vpop.f32.mrb[16].mxu1 }
 0x522   :  { %vm3763_vm9 = vcmp.ge.f32.partialorder %v3738_v13, 0.0  ;;  %v3788_v2 = vmul.f32 0.01, %v3738_v13  ;;  %v11985_v30 = vadd.f32 %v3643_v41, %v15486_v45  ;;  %v10517_v54 = vpop.f32.mrb[17].mxu1  ;;  %v3812_v58 = vsel %vm3762_vm1, %v3737_v5, %v3787_v61 }
 0x523   :  { %v3646_v38 = vpop.f32.mrb[18].mxu1 }
 0x524   :  { %v3813_v49 = vsel %vm3763_vm9, %v3738_v13, %v3788_v2  ;;  %v3709_v48 = vmul.f32 %v11985_v30, %v15732_v0  ;;  %v11986_v19 = vadd.f32 %v3646_v38, %v15488_v40  ;;  %v10518_v32 = vpop.f32.mrb[19].mxu1 }
 0x525   :  { %v3827_v18 = vpack.c.bf16 %v3813_v49, %v3812_v58 }
 0x526   :  { %v3739_v6 = vadd.f32 %v15738_v63, %v3709_v48  ;;  %v3710_v22 = vmul.f32 %v11986_v19, %v15732_v0 }
 0x527   :  { %3840 = vst [vmem:[#allocation3 + $0x50] sm:$0xff] %v3827_v18 }
 0x528   :  { %v3789_v39 = vmul.f32 0.01, %v3739_v6  ;;  %v3740_v60 = vadd.f32 %v15738_v63, %v3710_v22  ;;  %vm3764_vm10 = vcmp.ge.f32.partialorder %v3739_v6, 0.0 }
 0x529   :  { %v3651_v45 = vpop.f32.mrb[20].mxu1 }
 0x52a   :  { %vm3765_vm11 = vcmp.ge.f32.partialorder %v3740_v60, 0.0  ;;  %v3790_v28 = vmul.f32 0.01, %v3740_v60  ;;  %v11987_v51 = vadd.f32 %v3651_v45, %v15494_v52  ;;  %v10521_v36 = vpop.f32.mrb[21].mxu1  ;;  %v3814_v29 = vsel %vm3764_vm10, %v3739_v6, %v3789_v39 }
 0x52b   :  { %v3654_v33 = vpop.f32.mrb[22].mxu1 }
 0x52c   :  { %v3815_v40 = vsel %vm3765_vm11, %v3740_v60, %v3790_v28  ;;  %v3711_v14 = vmul.f32 %v11987_v51, %v15732_v0  ;;  %v10522_v11 = vpop.f32.mrb[23].mxu1 }
 0x52d   :  { %v3828_v16 = vpack.c.bf16 %v3815_v40, %v3814_v29 }
 0x52e   :  { %v3741_v50 = vadd.f32 %v15738_v63, %v3711_v14 }
 0x52f   :  { %3841 = vst [vmem:[#allocation3 + $0x58] sm:$0xff] %v3828_v16 }
 0x530   :  { %vm3766_vm13 = vcmp.ge.f32.partialorder %v3741_v50, 0.0  ;;  %v3791_v53 = vmul.f32 0.01, %v3741_v50 }
 0x532   :  { %v3816_v15 = vsel %vm3766_vm13, %v3741_v50, %v3791_v53 }
 0x533   :  { %v3829_v17 = vpack.c.bf16 %v3816_v15, %v3816_v15 }
 0x535   :  { %3842 = vst [vmem:[#allocation3 + $0x60] sm:$0xf] %v3829_v17 }
 0x536   :  { %13319 = dma.done.wait [#allocation10], 9216 }
 0x537   :  { %13320 = vsyncadd [#allocation10], 4294958080  ;;  %10539 = vmatprep.mubr.msk.bf16.mxu0 %vm13328_vm0, %v17790_v44  ;;  %10524 = vmatpush3.bf16.msra.mxu0 %v13418_v8  ;;  %v17794_v52 = vld [vmem:[#allocation27_spill] sm:$0xff]  ;;  %v15825_v0 = vld [vmem:[#allocation3] sm:$0xff] }
 0x538   :  { %10525 = vmatprep.subr.bf16.mxu0 %v17790_v44  ;;  %v17795_v63 = vld [vmem:[#allocation28_spill] sm:$0xff]  ;;  %v3882_v8 = vshll.u32 %v15825_v0, 16  ;;  %v15830_v56 = vld [vmem:[#allocation3 + $0x8] sm:$0xff]  ;;  %v17797_v47 = vld [vmem:[#allocation30_spill] sm:$0xff]  ;;  %11135 = vmatprep.subr.bf16.mxu1 %v17790_v44 }
 0x539   :  { %v3887_v25 = vshll.u32 %v15830_v56, 16  ;;  %v15840_v26 = vld [vmem:[#allocation3 + $0x10] sm:$0xff]  ;;  %v17798_v57 = vld [vmem:[#allocation31_spill] sm:$0xff]  ;;  %v3891_v31 = vshrl.u32 %v15830_v56, 16  ;;  %v15856_v37 = vld [vmem:[#allocation3 + $0x18] sm:$0xff] }
 0x53a   :  { %v3884_v21 = vrot.slane %v3882_v8, 1  ;;  %v15846_v62 = vshll.u32 %v15840_v26, 16  ;;  %v17799_v24 = vld [vmem:[#allocation19_spill] sm:$0xff]  ;;  %v17800_v27 = vld [vmem:[#allocation20_spill] sm:$0xff]  ;;  %v15861_v7 = vshrl.u32 %v15840_v26, 16  ;;  %v15864_v42 = vshll.u32 %v15856_v37, 16 }
 0x53b   :  { %10526 = vmatpush3.bf16.msra.mxu0 %v13423_v9  ;;  %v17796_v9 = vld [vmem:[#allocation29_spill] sm:$0xff]  ;;  %v3889_v1 = vrot.slane %v3887_v25, 1  ;;  %v15872_v46 = vld [vmem:[#allocation3 + $0x20] sm:$0xff]  ;;  %v15877_v5 = vshrl.u32 %v15856_v37, 16  ;;  %v17803_v2 = vld [vmem:[#allocation23_spill] sm:$0xff] }
 0x53c   :  { %10527 = vmatprep.subr.bf16.mxu0 %v17790_v44  ;;  %v3897_v43 = vrot.slane %v15846_v62, 1  ;;  %v3905_v3 = vrot.slane %v15864_v42, 1  ;;  %v17801_v34 = vld [vmem:[#allocation21_spill] sm:$0xff]  ;;  %v15880_v23 = vshll.u32 %v15872_v46, 16  ;;  %v17802_v61 = vld [vmem:[#allocation22_spill] sm:$0xff]  ;;  %v15889_v30 = vld [vmem:[#allocation3 + $0x28] sm:$0xff] }
 0x53d   :  { %v3893_v55 = vor.u32 %v3891_v31, %v3889_v1  ;;  %v15894_v38 = vshrl.u32 %v15872_v46, 16  ;;  %v15897_v58 = vshll.u32 %v15889_v30, 16  ;;  %v17804_v49 = vld [vmem:[#allocation24_spill] sm:$0xff]  ;;  %v17805_v32 = vld [vmem:[#allocation25_spill] sm:$0xff]  ;;  %v15911_v22 = vshrl.u32 %v15889_v30, 16  ;;  %v17806_v60 = vld [vmem:[#allocation26_spill] sm:$0xff] }
 0x53e   :  { %v3901_v35 = vor.u32 %v15861_v7, %v3897_v43  ;;  %v3909_v13 = vor.u32 %v15877_v5, %v3905_v3  ;;  %v3913_v41 = vrot.slane %v15880_v23, 1  ;;  %v15906_v18 = vld [vmem:[#allocation3 + $0x30] sm:$0xff]  ;;  %v15922_v51 = vld [vmem:[#allocation3 + $0x38] sm:$0xff]  ;;  %v15935_v11 = vld [vmem:[#allocation3 + $0x40] sm:$0xff] }
 0x53f   :  { %10528 = vmatpush3.bf16.msra.mxu0 %v13428_v10  ;;  %v3880_v10 = vshrl.u32 %v15825_v0, 16  ;;  %v3898_v4 = vsel %vm1148_vm5, %v3893_v55, %v3897_v43  ;;  %v3921_v19 = vrot.slane %v15897_v58, 1  ;;  %v15914_v39 = vshll.u32 %v15906_v18, 16  ;;  %v15974_v55 = vld [vmem:[#allocation3 + $0x58] sm:$0xff] }
 0x540   :  { %10529 = vmatprep.subr.bf16.mxu0 %v17790_v44  ;;  %v3906_v59 = vsel %vm1148_vm5, %v3901_v35, %v3905_v3  ;;  %v3914_v54 = vsel %vm1148_vm5, %v3909_v13, %v3913_v41  ;;  %v3917_v48 = vor.u32 %v15894_v38, %v3913_v41  ;;  %v15926_v33 = vshrl.u32 %v15906_v18, 16 }
 0x541   :  { %v3885_v20 = vor.u32 %v3884_v21, %v3880_v10  ;;  %v3925_v45 = vor.u32 %v15911_v22, %v3921_v19  ;;  %v3929_v28 = vrot.slane %v15914_v39, 1  ;;  %v15929_v29 = vshll.u32 %v15922_v51, 16 }
 0x542   :  { %v3922_v6 = vsel %vm1148_vm5, %v3917_v48, %v3921_v19  ;;  %v15939_v50 = vshrl.u32 %v15922_v51, 16  ;;  %v15942_v53 = vshll.u32 %v15935_v11, 16  ;;  %v15952_v8 = vshrl.u32 %v15935_v11, 16  ;;  %v17807_v19 = vld [vmem:[#allocation32_spill] sm:$0xff] }
 0x543   :  { %10530 = vmatpush3.bf16.msra.mxu0 %v17794_v52  ;;  %v3890_v12 = vsel %vm1148_vm5, %v3885_v20, %v3889_v1  ;;  %v3930_v36 = vsel %vm1148_vm5, %v3925_v45, %v3929_v28  ;;  %v3933_v40 = vor.u32 %v15926_v33, %v3929_v28  ;;  %v3937_v14 = vrot.slane %v15929_v29, 1  ;;  %v15948_v52 = vld [vmem:[#allocation3 + $0x48] sm:$0xff]  ;;  %v17812_v45 = vld [vmem:[#allocation37_spill] sm:$0xff]  ;;  %v17813_v28 = vld [vmem:[#allocation38_spill] sm:$0xff] }
 0x544   :  { %10531 = vmatprep.subr.bf16.mxu0 %v17790_v44  ;;  %v3945_v17 = vrot.slane %v15942_v53, 1  ;;  %v15965_v1 = vshrl.u32 %v15948_v52, 16 }
 0x545   :  { %v3938_v16 = vsel %vm1148_vm5, %v3933_v40, %v3937_v14  ;;  %v3941_v15 = vor.u32 %v15939_v50, %v3937_v14  ;;  %v3860_v40 = vld [vmem:[#allocation3 + $0x60] sm:$0xf] }
 0x546   :  { %v3949_v10 = vor.u32 %v15952_v8, %v3945_v17  ;;  %v4267_v14 = vld [vmem:[#allocation3] sm:$0xfe] }
 0x547   :  { %10532 = vmatpush3.bf16.msra.mxu0 %v17795_v63  ;;  %v3946_v63 = vsel %vm1148_vm5, %v3941_v15, %v3945_v17  ;;  %v4291_v15 = vrot.slane %v15830_v56, 1 }
 0x548   :  { %10533 = vmatprep.subr.bf16.mxu0 %v17790_v44 }
 0x54b   :  { %10534 = vmatpush3.bf16.msra.mxu0 %v17796_v9  ;;  %v15955_v9 = vshll.u32 %v15948_v52, 16 }
 0x54c   :  { %10535 = vmatprep.subr.bf16.mxu0 %v17790_v44 }
 0x54d   :  { %v3953_v21 = vrot.slane %v15955_v9, 1 }
 0x54f   :  { %10536 = vmatpush3.bf16.msra.mxu0 %v17797_v47  ;;  %v15961_v47 = vld [vmem:[#allocation3 + $0x50] sm:$0xff]  ;;  %v3954_v20 = vsel %vm1148_vm5, %v3949_v10, %v3953_v21  ;;  %v4293_v10 = vrot.slane %v15840_v26, 1 }
 0x550   :  { %10537 = vmatprep.subr.bf16.mxu0 %v17790_v44 }
 0x553   :  { %10538 = vmatpush3.bf16.msra.mxu0 %v17798_v57  ;;  %v15968_v57 = vshll.u32 %v15961_v47, 16 }
 0x554   :  { %10591 = vmatprep.subr.bf16.mxu0 %v17790_v44 }
 0x556   :  { %10540 = vmatmul.mubr.bf16.vlgmr.msra.gmra.mrb[104].mxu0 %v3890_v12  ;;  %v3957_v12 = vor.u32 %v15965_v1, %v3953_v21  ;;  %v4294_v21 = vsel %vm1664_vm8, %v4291_v15, %v4293_v10 }
 0x557   :  { %10592 = vmatpush3.bf16.msra.mxu0 %v17799_v24  ;;  %10543 = vmatprep.mubr.msk.bf16.mxu0 %vm13328_vm0, %v17790_v44  ;;  %v3961_v24 = vrot.slane %v15968_v57, 1 }
 0x558   :  { %10593 = vmatprep.subr.bf16.mxu0 %v17790_v44 }
 0x559   :  { %v3962_v43 = vsel %vm1148_vm5, %v3957_v12, %v3961_v24  ;;  %v4295_v12 = vrot.slane %v15856_v37, 1 }
 0x55b   :  { %10594 = vmatpush3.bf16.msra.mxu0 %v17800_v27  ;;  %v15981_v27 = vshll.u32 %v15974_v55, 16 }
 0x55c   :  { %10595 = vmatprep.subr.bf16.mxu0 %v17790_v44 }
 0x55d   :  { %v3969_v3 = vrot.slane %v15981_v27, 1 }
 0x55e   :  { %10544 = vmatmul.mubr.bf16.gmra.mrb[108].mxu0 %v3898_v4  ;;  %v15978_v4 = vshrl.u32 %v15961_v47, 16 }
 0x55f   :  { %10547 = vmatprep.mubr.msk.bf16.mxu0 %vm13328_vm0, %v17790_v44  ;;  %10596 = vmatpush3.bf16.msra.mxu0 %v17801_v34  ;;  %v15987_v34 = vld [vmem:[#allocation3 + $0x60] sm:$0x1f] }
 0x560   :  { %10597 = vmatprep.subr.bf16.mxu0 %v17790_v44  ;;  %v3965_v35 = vor.u32 %v15978_v4, %v3961_v24  ;;  %v3975_v13 = vshll.u32 %v15987_v34, 16  ;;  %v17817_v24 = vld [vmem:[#allocation42_spill] sm:$0xff] }
 0x563   :  { %10598 = vmatpush3.bf16.msra.mxu0 %v17802_v61  ;;  %v15991_v61 = vshrl.u32 %v15974_v55, 16 }
 0x564   :  { %10599 = vmatprep.subr.bf16.mxu0 %v17790_v44 }
 0x565   :  { %v3973_v41 = vor.u32 %v15991_v61, %v3969_v3 }
 0x566   :  { %10548 = vmatmul.mubr.bf16.gmra.mrb[112].mxu0 %v3906_v59  ;;  %v3970_v59 = vsel %vm1148_vm5, %v3965_v35, %v3969_v3  ;;  %v17818_v35 = vld [vmem:[#allocation43_spill] sm:$0xff]  ;;  %v4297_v3 = vrot.slane %v15872_v46, 1 }
 0x567   :  { %10551 = vmatprep.mubr.msk.bf16.mxu0 %vm13328_vm0, %v17790_v44  ;;  %10600 = vmatpush3.bf16.msra.mxu0 %v17803_v2  ;;  %v3977_v2 = vrot.slane %v3975_v13, 1 }
 0x568   :  { %10601 = vmatprep.subr.bf16.mxu0 %v17790_v44  ;;  %v4298_v13 = vsel %vm1664_vm8, %v4295_v12, %v4297_v3 }
 0x56b   :  { %10602 = vmatpush3.bf16.msra.mxu0 %v17804_v49  ;;  %v3979_v49 = vshrl.u32 %v15987_v34, 16 }
 0x56c   :  { %10603 = vmatprep.subr.bf16.mxu0 %v17790_v44 }
 0x56d   :  { %v3981_v48 = vor.u32 %v3979_v49, %v3977_v2 }
 0x56e   :  { %10552 = vmatmul.mubr.bf16.gmra.mrb[116].mxu0 %v3914_v54  ;;  %v3978_v54 = vsel %vm1148_vm5, %v3973_v41, %v3977_v2  ;;  %v17820_v41 = vld [vmem:[#allocation45_spill] sm:$0xff]  ;;  %v4299_v2 = vrot.slane %v15889_v30, 1 }
 0x56f   :  { %10555 = vmatprep.mubr.msk.bf16.mxu0 %vm13328_vm0, %v17790_v44  ;;  %10604 = vmatpush3.bf16.msra.mxu0 %v17805_v32  ;;  %v17808_v32 = vld [vmem:[#allocation33_spill] sm:$0xff] }
 0x570   :  { %10605 = vmatprep.subr.bf16.mxu0 %v17790_v44  ;;  %v4300_v49 = vsel %vm1664_vm8, %v4297_v3, %v4299_v2  ;;  %v4531_v3 = vrot.slane %v15856_v37, 5 }
 0x573   :  { %10606 = vmatpush3.bf16.msra.mxu0 %v17806_v60  ;;  %v17811_v60 = vld [vmem:[#allocation36_spill] sm:$0xff] }
 0x574   :  { %10659 = vmatprep.subr.bf16.mxu0 %v17790_v44 }
 0x576   :  { %10556 = vmatmul.mubr.bf16.gmra.mrb[120].mxu0 %v3922_v6  ;;  %v17809_v6 = vld [vmem:[#allocation34_spill] sm:$0xff] }
 0x577   :  { %10559 = vmatprep.mubr.msk.bf16.mxu0 %vm13328_vm0, %v17790_v44 }
 0x57e   :  { %10560 = vmatmul.mubr.bf16.gmra.mrb[124].mxu0 %v3930_v36  ;;  %v17814_v36 = vld [vmem:[#allocation39_spill] sm:$0xff] }
 0x57f   :  { %10563 = vmatprep.mubr.msk.bf16.mxu0 %vm13328_vm0, %v17790_v44 }
 0x586   :  { %10564 = vmatmul.mubr.bf16.gmra.mrb[128].mxu0 %v3938_v16  ;;  %v4290_v16 = vrot.slane %v4267_v14, 1 }
 0x587   :  { %10567 = vmatprep.mubr.msk.bf16.mxu0 %vm13328_vm0, %v17790_v44 }
 0x588   :  { %v4292_v17 = vsel %vm1664_vm8, %v4290_v16, %v4291_v15  ;;  %v4311_v16 = vrot.slane %v15974_v55, 1 }
 0x58e   :  { %10568 = vmatmul.mubr.bf16.gmra.mrb[132].mxu0 %v3946_v63  ;;  %v17815_v63 = vld [vmem:[#allocation40_spill] sm:$0xff] }
 0x58f   :  { %10571 = vmatprep.mubr.msk.bf16.mxu0 %vm13328_vm0, %v17790_v44 }
 0x596   :  { %10572 = vmatmul.mubr.bf16.gmra.mrb[136].mxu0 %v3954_v20  ;;  %v17816_v20 = vld [vmem:[#allocation41_spill] sm:$0xff] }
 0x597   :  { %10575 = vmatprep.mubr.msk.bf16.mxu0 %vm13328_vm0, %v17790_v44 }
 0x59e   :  { %10576 = vmatmul.mubr.bf16.gmra.mrb[140].mxu0 %v3962_v43  ;;  %v4296_v43 = vsel %vm1664_vm8, %v4293_v10, %v4295_v12  ;;  %v16121_v10 = vld [vmem:[#allocation3] sm:$0xe0] }
 0x59f   :  { %10579 = vmatprep.mubr.msk.bf16.mxu0 %vm13328_vm0, %v17790_v44 }
 0x5a6   :  { %10580 = vmatmul.mubr.bf16.gmra.mrb[144].mxu0 %v3970_v59  ;;  %v17819_v59 = vld [vmem:[#allocation44_spill] sm:$0xff] }
 0x5a7   :  { %10583 = vmatprep.mubr.msk.bf16.mxu0 %vm13328_vm0, %v17790_v44 }
 0x5ae   :  { %10584 = vmatmul.mubr.bf16.gmra.mrb[148].mxu0 %v3978_v54  ;;  %v17821_v54 = vld [vmem:[#allocation46_spill] sm:$0xff] }
 0x5af   :  { %10587 = vmatprep.mubr.msk.bf16.mxu0 %vm13328_vm0, %v17790_v44 }
 0x5b6   :  { %10588 = vmatmul.mubr.bf16.gmra.mrb[152].mxu0 %v3981_v48  ;;  %v17822_v48 = vld [vmem:[#allocation47_spill] sm:$0xff] }
 0x5b7   :  { %10607 = vmatprep.mubr.msk.bf16.mxu0 %vm13328_vm0, %v17790_v44 }
 0x5be   :  { %10608 = vmatmul.mubr.bf16.vlgmr.msra.gmra.mrb[104].mxu0 %v15825_v0  ;;  %v17810_v0 = vld [vmem:[#allocation35_spill] sm:$0xff] }
 0x5bf   :  { %10660 = vmatpush3.bf16.msra.mxu0 %v17807_v19  ;;  %10611 = vmatprep.mubr.msk.bf16.mxu0 %vm13328_vm0, %v17790_v44  ;;  %v4301_v19 = vrot.slane %v15906_v18, 1 }
 0x5c0   :  { %10661 = vmatprep.subr.bf16.mxu0 %v17790_v44 }
 0x5c3   :  { %10662 = vmatpush3.bf16.msra.mxu0 %v17808_v32  ;;  %v4302_v32 = vsel %vm1664_vm8, %v4299_v2, %v4301_v19  ;;  %v4533_v2 = vrot.slane %v15872_v46, 5 }
 0x5c4   :  { %10663 = vmatprep.subr.bf16.mxu0 %v17790_v44 }
 0x5c6   :  { %10612 = vmatmul.mubr.bf16.gmra.mrb[108].mxu0 %v15830_v56 }
 0x5c7   :  { %10615 = vmatprep.mubr.msk.bf16.mxu0 %vm13328_vm0, %v17790_v44  ;;  %10664 = vmatpush3.bf16.msra.mxu0 %v17809_v6  ;;  %v4303_v6 = vrot.slane %v15922_v51, 1 }
 0x5c8   :  { %10665 = vmatprep.subr.bf16.mxu0 %v17790_v44 }
 0x5cb   :  { %10666 = vmatpush3.bf16.msra.mxu0 %v17810_v0  ;;  %v4304_v0 = vsel %vm1664_vm8, %v4301_v19, %v4303_v6  ;;  %v4535_v19 = vrot.slane %v15889_v30, 5 }
 0x5cc   :  { %10667 = vmatprep.subr.bf16.mxu0 %v17790_v44 }
 0x5ce   :  { %10616 = vmatmul.mubr.bf16.gmra.mrb[112].mxu0 %v15840_v26 }
 0x5cf   :  { %10619 = vmatprep.mubr.msk.bf16.mxu0 %vm13328_vm0, %v17790_v44  ;;  %10668 = vmatpush3.bf16.msra.mxu0 %v17811_v60  ;;  %v4305_v60 = vrot.slane %v15935_v11, 1 }
 0x5d0   :  { %10669 = vmatprep.subr.bf16.mxu0 %v17790_v44 }
 0x5d3   :  { %10670 = vmatpush3.bf16.msra.mxu0 %v17812_v45  ;;  %v4306_v45 = vsel %vm1664_vm8, %v4303_v6, %v4305_v60  ;;  %v4536_v6 = vsel %vm1957_vm6, %v4533_v2, %v4535_v19 }
 0x5d4   :  { %10671 = vmatprep.subr.bf16.mxu0 %v17790_v44 }
 0x5d6   :  { %10620 = vmatmul.mubr.bf16.gmra.mrb[116].mxu0 %v15856_v37 }
 0x5d7   :  { %10623 = vmatprep.mubr.msk.bf16.mxu0 %vm13328_vm0, %v17790_v44  ;;  %10672 = vmatpush3.bf16.msra.mxu0 %v17813_v28  ;;  %v4307_v28 = vrot.slane %v15948_v52, 1 }
 0x5d8   :  { %10673 = vmatprep.subr.bf16.mxu0 %v17790_v44 }
 0x5db   :  { %10674 = vmatpush3.bf16.msra.mxu0 %v17814_v36  ;;  %v4308_v36 = vsel %vm1664_vm8, %v4305_v60, %v4307_v28  ;;  %v4537_v60 = vrot.slane %v15906_v18, 5 }
 0x5dc   :  { %10727 = vmatprep.subr.bf16.mxu0 %v17790_v44 }
 0x5de   :  { %10624 = vmatmul.mubr.bf16.gmra.mrb[120].mxu0 %v15872_v46 }
 0x5df   :  { %10627 = vmatprep.mubr.msk.bf16.mxu0 %vm13328_vm0, %v17790_v44 }
 0x5e6   :  { %10628 = vmatmul.mubr.bf16.gmra.mrb[124].mxu0 %v15889_v30 }
 0x5e7   :  { %10631 = vmatprep.mubr.msk.bf16.mxu0 %vm13328_vm0, %v17790_v44 }
 0x5ee   :  { %10632 = vmatmul.mubr.bf16.gmra.mrb[128].mxu0 %v15906_v18 }
 0x5ef   :  { %10635 = vmatprep.mubr.msk.bf16.mxu0 %vm13328_vm0, %v17790_v44 }
 0x5f6   :  { %10636 = vmatmul.mubr.bf16.gmra.mrb[132].mxu0 %v15922_v51 }
 0x5f7   :  { %10639 = vmatprep.mubr.msk.bf16.mxu0 %vm13328_vm0, %v17790_v44 }
 0x5fe   :  { %10640 = vmatmul.mubr.bf16.gmra.mrb[136].mxu0 %v15935_v11 }
 0x5ff   :  { %10643 = vmatprep.mubr.msk.bf16.mxu0 %vm13328_vm0, %v17790_v44 }
 0x606   :  { %10644 = vmatmul.mubr.bf16.gmra.mrb[140].mxu0 %v15948_v52 }
 0x607   :  { %10647 = vmatprep.mubr.msk.bf16.mxu0 %vm13328_vm0, %v17790_v44 }
 0x60e   :  { %10648 = vmatmul.mubr.bf16.gmra.mrb[144].mxu0 %v15961_v47 }
 0x60f   :  { %10651 = vmatprep.mubr.msk.bf16.mxu0 %vm13328_vm0, %v17790_v44 }
 0x616   :  { %10652 = vmatmul.mubr.bf16.gmra.mrb[148].mxu0 %v15974_v55 }
 0x617   :  { %10655 = vmatprep.mubr.msk.bf16.mxu0 %vm13328_vm0, %v17790_v44 }
 0x61e   :  { %10656 = vmatmul.mubr.bf16.gmra.mrb[152].mxu0 %v3860_v40  ;;  %v4309_v40 = vrot.slane %v15961_v47, 1 }
 0x61f   :  { %10675 = vmatprep.mubr.msk.bf16.mxu0 %vm13328_vm0, %v17790_v44 }
 0x620   :  { %v4310_v14 = vsel %vm1664_vm8, %v4307_v28, %v4309_v40  ;;  %v4312_v15 = vsel %vm1664_vm8, %v4309_v40, %v4311_v16  ;;  %v4539_v28 = vrot.slane %v15922_v51, 5  ;;  %v4541_v40 = vrot.slane %v15935_v11, 5 }
 0x626   :  { %10676 = vmatmul.mubr.bf16.vlgmr.msra.gmra.mrb[104].mxu0 %v4292_v17  ;;  %v4313_v17 = vrot.slane %v15987_v34, 1  ;;  %v17823_v34 = vld [vmem:[#allocation48_spill] sm:$0xff] }
 0x627   :  { %10728 = vmatpush3.bf16.msra.mxu0 %v17815_v63  ;;  %10679 = vmatprep.mubr.msk.bf16.mxu0 %vm13328_vm0, %v17790_v44 }
 0x628   :  { %10729 = vmatprep.subr.bf16.mxu0 %v17790_v44  ;;  %v4314_v63 = vsel %vm1664_vm8, %v4311_v16, %v4313_v17  ;;  %v4543_v16 = vrot.slane %v15948_v52, 5 }
 0x62b   :  { %10730 = vmatpush3.bf16.msra.mxu0 %v17816_v20  ;;  %v4527_v20 = vrot.slane %v15830_v56, 5 }
 0x62c   :  { %10731 = vmatprep.subr.bf16.mxu0 %v17790_v44 }
 0x62e   :  { %10680 = vmatmul.mubr.bf16.gmra.mrb[108].mxu0 %v4294_v21  ;;  %v4526_v21 = vrot.slane %v16121_v10, 5 }
 0x62f   :  { %10683 = vmatprep.mubr.msk.bf16.mxu0 %vm13328_vm0, %v17790_v44  ;;  %10732 = vmatpush3.bf16.msra.mxu0 %v17817_v24  ;;  %v4529_v24 = vrot.slane %v15840_v26, 5 }
 0x630   :  { %10733 = vmatprep.subr.bf16.mxu0 %v17790_v44  ;;  %v4528_v12 = vsel %vm1957_vm6, %v4526_v21, %v4527_v20  ;;  %v4547_v21 = vrot.slane %v15974_v55, 5 }
 0x633   :  { %10734 = vmatpush3.bf16.msra.mxu0 %v17818_v35  ;;  %v17824_v35 = vld [vmem:[#allocation49_spill] sm:$0xff] }
 0x634   :  { %10735 = vmatprep.subr.bf16.mxu0 %v17790_v44 }
 0x636   :  { %10684 = vmatmul.mubr.bf16.gmra.mrb[112].mxu0 %v4296_v43  ;;  %v4530_v43 = vsel %vm1957_vm6, %v4527_v20, %v4529_v24 }
 0x637   :  { %10687 = vmatprep.mubr.msk.bf16.mxu0 %vm13328_vm0, %v17790_v44  ;;  %10736 = vmatpush3.bf16.msra.mxu0 %v17819_v59  ;;  %v17825_v59 = vld [vmem:[#allocation50_spill] sm:$0xff] }
 0x638   :  { %10737 = vmatprep.subr.bf16.mxu0 %v17790_v44 }
 0x63b   :  { %10738 = vmatpush3.bf16.msra.mxu0 %v17820_v41  ;;  %v17826_v41 = vld [vmem:[#allocation51_spill] sm:$0xff] }
 0x63c   :  { %10739 = vmatprep.subr.bf16.mxu0 %v17790_v44 }
 0x63e   :  { %10688 = vmatmul.mubr.bf16.gmra.mrb[116].mxu0 %v4298_v13  ;;  %v4532_v13 = vsel %vm1957_vm6, %v4529_v24, %v4531_v3 }
 0x63f   :  { %10691 = vmatprep.mubr.msk.bf16.mxu0 %vm13328_vm0, %v17790_v44  ;;  %10740 = vmatpush3.bf16.msra.mxu0 %v17821_v54  ;;  %v17827_v54 = vld [vmem:[#allocation52_spill] sm:$0xff] }
 0x640   :  { %10741 = vmatprep.subr.bf16.mxu0 %v17790_v44 }
 0x643   :  { %10742 = vmatpush3.bf16.msra.mxu0 %v17822_v48  ;;  %v17828_v48 = vld [vmem:[#allocation53_spill] sm:$0xff] }
 0x644   :  { %10795 = vmatprep.subr.bf16.mxu0 %v17790_v44 }
 0x646   :  { %10692 = vmatmul.mubr.bf16.gmra.mrb[120].mxu0 %v4300_v49  ;;  %v4534_v49 = vsel %vm1957_vm6, %v4531_v3, %v4533_v2  ;;  %v4738_v3 = vshrl.u32 %v16121_v10, 16 }
 0x647   :  { %10695 = vmatprep.mubr.msk.bf16.mxu0 %vm13328_vm0, %v17790_v44 }
 0x64e   :  { %10696 = vmatmul.mubr.bf16.gmra.mrb[124].mxu0 %v4302_v32  ;;  %v17829_v32 = vld [vmem:[#allocation54_spill] sm:$0xff] }
 0x64f   :  { %10699 = vmatprep.mubr.msk.bf16.mxu0 %vm13328_vm0, %v17790_v44 }
 0x656   :  { %10700 = vmatmul.mubr.bf16.gmra.mrb[128].mxu0 %v4304_v0  ;;  %v17830_v0 = vld [vmem:[#allocation55_spill] sm:$0xff] }
 0x657   :  { %10703 = vmatprep.mubr.msk.bf16.mxu0 %vm13328_vm0, %v17790_v44 }
 0x65e   :  { %10704 = vmatmul.mubr.bf16.gmra.mrb[132].mxu0 %v4306_v45  ;;  %v4538_v45 = vsel %vm1957_vm6, %v4535_v19, %v4537_v60 }
 0x65f   :  { %10707 = vmatprep.mubr.msk.bf16.mxu0 %vm13328_vm0, %v17790_v44 }
 0x666   :  { %10708 = vmatmul.mubr.bf16.gmra.mrb[136].mxu0 %v4308_v36  ;;  %v4540_v36 = vsel %vm1957_vm6, %v4537_v60, %v4539_v28  ;;  %v17832_v60 = vld [vmem:[#allocation57_spill] sm:$0xff] }
 0x667   :  { %10711 = vmatprep.mubr.msk.bf16.mxu0 %vm13328_vm0, %v17790_v44 }
 0x66e   :  { %10712 = vmatmul.mubr.bf16.gmra.mrb[140].mxu0 %v4310_v14  ;;  %v4542_v14 = vsel %vm1957_vm6, %v4539_v28, %v4541_v40  ;;  %v4769_v28 = vrot.slane %v15864_v42, 6 }
 0x66f   :  { %10715 = vmatprep.mubr.msk.bf16.mxu0 %vm13328_vm0, %v17790_v44 }
 0x676   :  { %10716 = vmatmul.mubr.bf16.gmra.mrb[144].mxu0 %v4312_v15  ;;  %v4544_v15 = vsel %vm1957_vm6, %v4541_v40, %v4543_v16  ;;  %v17833_v40 = vld [vmem:[#allocation58_spill] sm:$0xff] }
 0x677   :  { %10719 = vmatprep.mubr.msk.bf16.mxu0 %vm13328_vm0, %v17790_v44 }
 0x67e   :  { %10720 = vmatmul.mubr.bf16.gmra.mrb[148].mxu0 %v4314_v63 }
 0x67f   :  { %10723 = vmatprep.mubr.msk.bf16.mxu0 %vm13328_vm0, %v17790_v44 }
 0x686   :  { %10724 = vmatmul.mubr.bf16.gmra.mrb[152].mxu0 %v4313_v17  ;;  %v4545_v17 = vrot.slane %v15961_v47, 5 }
 0x687   :  { %10743 = vmatprep.mubr.msk.bf16.mxu0 %vm13328_vm0, %v17790_v44 }
 0x688   :  { %v4546_v63 = vsel %vm1957_vm6, %v4543_v16, %v4545_v17  ;;  %v4548_v20 = vsel %vm1957_vm6, %v4545_v17, %v4547_v21  ;;  %v4775_v16 = vrot.slane %v15894_v38, 5  ;;  %v17834_v17 = vld [vmem:[#allocation59_spill] sm:$0xff] }
 0x68e   :  { %10744 = vmatmul.mubr.bf16.vlgmr.msra.gmra.mrb[104].mxu0 %v4528_v12  ;;  %v16184_v12 = vld [vmem:[#allocation3 + $0x60] sm:$0xff] }
 0x68f   :  { %10796 = vmatpush3.bf16.msra.mxu0 %v17823_v34  ;;  %10747 = vmatprep.mubr.msk.bf16.mxu0 %vm13328_vm0, %v17790_v44  ;;  %v4549_v34 = vrot.slane %v16184_v12, 5 }
 0x690   :  { %10797 = vmatprep.subr.bf16.mxu0 %v17790_v44 }
 0x691   :  { %v4550_v24 = vsel %vm1957_vm6, %v4547_v21, %v4549_v34  ;;  %v17835_v21 = vld [vmem:[#allocation60_spill] sm:$0xff] }
 0x693   :  { %10798 = vmatpush3.bf16.msra.mxu0 %v17824_v35 }
 0x694   :  { %10799 = vmatprep.subr.bf16.mxu0 %v17790_v44 }
 0x696   :  { %10748 = vmatmul.mubr.bf16.gmra.mrb[108].mxu0 %v4530_v43  ;;  %v4502_v43 = vld [vmem:[#allocation3 + $0x68] sm:$0x1] }
 0x697   :  { %10751 = vmatprep.mubr.msk.bf16.mxu0 %vm13328_vm0, %v17790_v44  ;;  %10800 = vmatpush3.bf16.msra.mxu0 %v17825_v59  ;;  %v4551_v35 = vrot.slane %v4502_v43, 5  ;;  %v4741_v59 = vshll.u32 %v16121_v10, 16  ;;  %v4757_v10 = vrot.slane %v15861_v7, 5  ;;  %v17836_v43 = vld [vmem:[#allocation61_spill] sm:$0xff] }
 0x698   :  { %10801 = vmatprep.subr.bf16.mxu0 %v17790_v44 }
 0x699   :  { %v4743_v2 = vrot.slane %v4741_v59, 6 }
 0x69b   :  { %10802 = vmatpush3.bf16.msra.mxu0 %v17826_v41  ;;  %v4740_v41 = vrot.slane %v4738_v3, 5  ;;  %v17837_v3 = vld [vmem:[#allocation62_spill] sm:$0xff] }
 0x69c   :  { %10803 = vmatprep.subr.bf16.mxu0 %v17790_v44 }
 0x69e   :  { %10752 = vmatmul.mubr.bf16.gmra.mrb[112].mxu0 %v4532_v13  ;;  %v4552_v13 = vsel %vm1957_vm6, %v4549_v34, %v4551_v35  ;;  %v4784_v34 = vrot.slane %v15911_v22, 5 }
 0x69f   :  { %10755 = vmatprep.mubr.msk.bf16.mxu0 %vm13328_vm0, %v17790_v44  ;;  %10804 = vmatpush3.bf16.msra.mxu0 %v17827_v54  ;;  %v4748_v54 = vrot.slane %v3891_v31, 5 }
 0x6a0   :  { %10805 = vmatprep.subr.bf16.mxu0 %v17790_v44 }
 0x6a3   :  { %10806 = vmatpush3.bf16.msra.mxu0 %v17828_v48  ;;  %v4744_v48 = vor.u32 %v4743_v2, %v4740_v41  ;;  %v4796_v41 = vrot.slane %v15914_v39, 6  ;;  %v17838_v2 = vld [vmem:[#allocation63_spill] sm:$0xff] }
 0x6a4   :  { %10807 = vmatprep.subr.bf16.mxu0 %v17790_v44 }
 0x6a6   :  { %10756 = vmatmul.mubr.bf16.gmra.mrb[116].mxu0 %v4534_v49  ;;  %v4751_v49 = vrot.slane %v3887_v25, 6 }
 0x6a7   :  { %10759 = vmatprep.mubr.msk.bf16.mxu0 %vm13328_vm0, %v17790_v44  ;;  %10808 = vmatpush3.bf16.msra.mxu0 %v17829_v32 }
 0x6a8   :  { %10809 = vmatprep.subr.bf16.mxu0 %v17790_v44  ;;  %v4752_v19 = vor.u32 %v4751_v49, %v4748_v54 }
 0x6aa   :  { %v4753_v32 = vsel %vm2225_vm12, %v4744_v48, %v4752_v19  ;;  %v4802_v48 = vrot.slane %v15939_v50, 5 }
 0x6ab   :  { %10810 = vmatpush3.bf16.msra.mxu0 %v17830_v0  ;;  %v17831_v0 = vld [vmem:[#allocation56_spill] sm:$0xff] }
 0x6ac   :  { %10863 = vmatprep.subr.bf16.mxu0 %v17790_v44 }
 0x6ae   :  { %10760 = vmatmul.mubr.bf16.gmra.mrb[120].mxu0 %v4536_v6  ;;  %v4760_v6 = vrot.slane %v15846_v62, 6 }
 0x6af   :  { %10763 = vmatprep.mubr.msk.bf16.mxu0 %vm13328_vm0, %v17790_v44 }
 0x6b0   :  { %v4761_v31 = vor.u32 %v4760_v6, %v4757_v10  ;;  %v4811_v6 = vrot.slane %v15952_v8, 5 }
 0x6b2   :  { %v4762_v25 = vsel %vm2225_vm12, %v4752_v19, %v4761_v31  ;;  %v4805_v19 = vrot.slane %v15929_v29, 6 }
 0x6b6   :  { %10764 = vmatmul.mubr.bf16.gmra.mrb[124].mxu0 %v4538_v45  ;;  %v4766_v45 = vrot.slane %v15877_v5, 5 }
 0x6b7   :  { %10767 = vmatprep.mubr.msk.bf16.mxu0 %vm13328_vm0, %v17790_v44 }
 0x6be   :  { %10768 = vmatmul.mubr.bf16.gmra.mrb[128].mxu0 %v4540_v36  ;;  %v4770_v36 = vor.u32 %v4769_v28, %v4766_v45  ;;  %v4823_v45 = vrot.slane %v15955_v9, 6 }
 0x6bf   :  { %10771 = vmatprep.mubr.msk.bf16.mxu0 %vm13328_vm0, %v17790_v44 }
 0x6c6   :  { %10772 = vmatmul.mubr.bf16.gmra.mrb[132].mxu0 %v4542_v14  ;;  %v4771_v14 = vsel %vm2225_vm12, %v4761_v31, %v4770_v36 }
 0x6c7   :  { %10775 = vmatprep.mubr.msk.bf16.mxu0 %vm13328_vm0, %v17790_v44 }
 0x6ce   :  { %10776 = vmatmul.mubr.bf16.gmra.mrb[136].mxu0 %v4544_v15  ;;  %v4778_v15 = vrot.slane %v15880_v23, 6 }
 0x6cf   :  { %10779 = vmatprep.mubr.msk.bf16.mxu0 %vm13328_vm0, %v17790_v44 }
 0x6d6   :  { %10780 = vmatmul.mubr.bf16.gmra.mrb[140].mxu0 %v4546_v63  ;;  %v4779_v63 = vor.u32 %v4778_v15, %v4775_v16 }
 0x6d7   :  { %10783 = vmatprep.mubr.msk.bf16.mxu0 %vm13328_vm0, %v17790_v44 }
 0x6de   :  { %10784 = vmatmul.mubr.bf16.gmra.mrb[144].mxu0 %v4548_v20  ;;  %v4780_v20 = vsel %vm2225_vm12, %v4770_v36, %v4779_v63 }
 0x6df   :  { %10787 = vmatprep.mubr.msk.bf16.mxu0 %vm13328_vm0, %v17790_v44 }
 0x6e6   :  { %10788 = vmatmul.mubr.bf16.gmra.mrb[148].mxu0 %v4550_v24  ;;  %v4787_v24 = vrot.slane %v15897_v58, 6 }
 0x6e7   :  { %10791 = vmatprep.mubr.msk.bf16.mxu0 %vm13328_vm0, %v17790_v44 }
 0x6e8   :  { %v4788_v35 = vor.u32 %v4787_v24, %v4784_v34  ;;  %v4848_v34 = vshll.u32 %v16184_v12, 16 }
 0x6ea   :  { %v4789_v59 = vsel %vm2225_vm12, %v4779_v63, %v4788_v35  ;;  %v4841_v63 = vrot.slane %v15981_v27, 6 }
 0x6ee   :  { %10792 = vmatmul.mubr.bf16.gmra.mrb[152].mxu0 %v4552_v13  ;;  %v4793_v13 = vrot.slane %v15926_v33, 5 }
 0x6ef   :  { %10811 = vmatprep.mubr.msk.bf16.mxu0 %vm13328_vm0, %v17790_v44 }
 0x6f0   :  { %v4797_v54 = vor.u32 %v4796_v41, %v4793_v13 }
 0x6f2   :  { %v4798_v49 = vsel %vm2225_vm12, %v4788_v35, %v4797_v54  ;;  %v4850_v35 = vrot.slane %v4848_v34, 6 }
 0x6f6   :  { %10812 = vmatmul.mubr.bf16.vlgmr.msra.gmra.mrb[104].mxu0 %v4753_v32  ;;  %v4806_v32 = vor.u32 %v4805_v19, %v4802_v48 }
 0x6f7   :  { %10864 = vmatpush3.bf16.msra.mxu0 %v17831_v0  ;;  %10815 = vmatprep.mubr.msk.bf16.mxu0 %vm13328_vm0, %v17790_v44  ;;  %v4814_v0 = vrot.slane %v15942_v53, 6 }
 0x6f8   :  { %10865 = vmatprep.subr.bf16.mxu0 %v17790_v44  ;;  %v4807_v10 = vsel %vm2225_vm12, %v4797_v54, %v4806_v32 }
 0x6f9   :  { %v4815_v31 = vor.u32 %v4814_v0, %v4811_v6  ;;  %v5049_v6 = vrot.slane %v15830_v56, 6  ;;  %v5053_v56 = vrot.slane %v15856_v37, 6 }
 0x6fb   :  { %10866 = vmatpush3.bf16.msra.mxu0 %v17832_v60  ;;  %v4820_v60 = vrot.slane %v15965_v1, 5 }
 0x6fc   :  { %10867 = vmatprep.subr.bf16.mxu0 %v17790_v44 }
 0x6fd   :  { %v4824_v28 = vor.u32 %v4823_v45, %v4820_v60  ;;  %v17840_v45 = vld [vmem:[#allocation65_spill] sm:$0xff] }
 0x6fe   :  { %10816 = vmatmul.mubr.bf16.gmra.mrb[108].mxu0 %v4762_v25  ;;  %v4816_v25 = vsel %vm2225_vm12, %v4806_v32, %v4815_v31  ;;  %v5036_v32 = vld [vmem:[#allocation3] sm:$0xc0] }
 0x6ff   :  { %10819 = vmatprep.mubr.msk.bf16.mxu0 %vm13328_vm0, %v17790_v44  ;;  %10868 = vmatpush3.bf16.msra.mxu0 %v17833_v40  ;;  %v4825_v36 = vsel %vm2225_vm12, %v4815_v31, %v4824_v28  ;;  %v4829_v40 = vrot.slane %v15978_v4, 5  ;;  %v17839_v31 = vld [vmem:[#allocation64_spill] sm:$0xff] }
 0x700   :  { %10869 = vmatprep.subr.bf16.mxu0 %v17790_v44 }
 0x703   :  { %10870 = vmatpush3.bf16.msra.mxu0 %v17834_v17  ;;  %v4838_v17 = vrot.slane %v15991_v61, 5 }
 0x704   :  { %10871 = vmatprep.subr.bf16.mxu0 %v17790_v44 }
 0x706   :  { %10820 = vmatmul.mubr.bf16.gmra.mrb[112].mxu0 %v4771_v14  ;;  %v4832_v14 = vrot.slane %v15968_v57, 6 }
 0x707   :  { %10823 = vmatprep.mubr.msk.bf16.mxu0 %vm13328_vm0, %v17790_v44  ;;  %10872 = vmatpush3.bf16.msra.mxu0 %v17835_v21  ;;  %v4842_v21 = vor.u32 %v4841_v63, %v4838_v17  ;;  %v17844_v17 = vld [vmem:[#allocation69_spill] sm:$0xff]  ;;  %v5057_v63 = vrot.slane %v15889_v30, 6 }
 0x708   :  { %10873 = vmatprep.subr.bf16.mxu0 %v17790_v44  ;;  %v4833_v16 = vor.u32 %v4832_v14, %v4829_v40  ;;  %v17842_v40 = vld [vmem:[#allocation67_spill] sm:$0xff]  ;;  %v5055_v14 = vrot.slane %v15872_v46, 6 }
 0x70a   :  { %v4834_v15 = vsel %vm2225_vm12, %v4824_v28, %v4833_v16  ;;  %v4843_v24 = vsel %vm2225_vm12, %v4833_v16, %v4842_v21  ;;  %v17841_v28 = vld [vmem:[#allocation66_spill] sm:$0xff]  ;;  %v17843_v16 = vld [vmem:[#allocation68_spill] sm:$0xff] }
 0x70b   :  { %10874 = vmatpush3.bf16.msra.mxu0 %v17836_v43 }
 0x70c   :  { %10875 = vmatprep.subr.bf16.mxu0 %v17790_v44 }
 0x70e   :  { %10824 = vmatmul.mubr.bf16.gmra.mrb[116].mxu0 %v4780_v20  ;;  %v4845_v20 = vshrl.u32 %v16184_v12, 16 }
 0x70f   :  { %10827 = vmatprep.mubr.msk.bf16.mxu0 %vm13328_vm0, %v17790_v44  ;;  %10876 = vmatpush3.bf16.msra.mxu0 %v17837_v3  ;;  %v16274_v3 = vld [vmem:[#allocation3 + $0x68] sm:$0x3] }
 0x710   :  { %10877 = vmatprep.subr.bf16.mxu0 %v17790_v44  ;;  %v4847_v43 = vrot.slane %v4845_v20, 5  ;;  %v4854_v13 = vshrl.u32 %v16274_v3, 16  ;;  %v4857_v41 = vshll.u32 %v16274_v3, 16 }
 0x712   :  { %v4856_v54 = vrot.slane %v4854_v13, 5  ;;  %v5061_v13 = vrot.slane %v15922_v51, 6 }
 0x713   :  { %10878 = vmatpush3.bf16.msra.mxu0 %v17838_v2 }
 0x714   :  { %10931 = vmatprep.subr.bf16.mxu0 %v17790_v44 }
 0x716   :  { %10828 = vmatmul.mubr.bf16.gmra.mrb[120].mxu0 %v4789_v59  ;;  %v4851_v59 = vor.u32 %v4850_v35, %v4847_v43  ;;  %v17846_v43 = vld [vmem:[#allocation71_spill] sm:$0xff]  ;;  %v5059_v35 = vrot.slane %v15906_v18, 6 }
 0x717   :  { %10831 = vmatprep.mubr.msk.bf16.mxu0 %vm13328_vm0, %v17790_v44 }
 0x718   :  { %v4852_v2 = vsel %vm2225_vm12, %v4842_v21, %v4851_v59  ;;  %v17845_v21 = vld [vmem:[#allocation70_spill] sm:$0xff] }
 0x71e   :  { %10832 = vmatmul.mubr.bf16.gmra.mrb[124].mxu0 %v4798_v49  ;;  %v4859_v49 = vrot.slane %v4857_v41, 6  ;;  %v5062_v41 = vsel %vm2593_vm2, %v5059_v35, %v5061_v13 }
 0x71f   :  { %10835 = vmatprep.mubr.msk.bf16.mxu0 %vm13328_vm0, %v17790_v44 }
 0x720   :  { %v4860_v48 = vor.u32 %v4859_v49, %v4856_v54  ;;  %v5065_v49 = vrot.slane %v15948_v52, 6 }
 0x722   :  { %v4861_v19 = vsel %vm2225_vm12, %v4851_v59, %v4860_v48  ;;  %v5060_v59 = vsel %vm2593_vm2, %v5057_v63, %v5059_v35  ;;  %v17853_v35 = vld [vmem:[#allocation78_spill] sm:$0xff] }
 0x726   :  { %10836 = vmatmul.mubr.bf16.gmra.mrb[128].mxu0 %v4807_v10  ;;  %v5048_v10 = vrot.slane %v5036_v32, 6 }
 0x727   :  { %10839 = vmatprep.mubr.msk.bf16.mxu0 %vm13328_vm0, %v17790_v44 }
 0x728   :  { %v5050_v0 = vsel %vm2593_vm2, %v5048_v10, %v5049_v6  ;;  %v5069_v10 = vrot.slane %v15974_v55, 6 }
 0x72e   :  { %10840 = vmatmul.mubr.bf16.gmra.mrb[132].mxu0 %v4816_v25  ;;  %v5051_v25 = vrot.slane %v15840_v26, 6 }
 0x72f   :  { %10843 = vmatprep.mubr.msk.bf16.mxu0 %vm13328_vm0, %v17790_v44 }
 0x730   :  { %v5052_v60 = vsel %vm2593_vm2, %v5049_v6, %v5051_v25 }
 0x736   :  { %10844 = vmatmul.mubr.bf16.gmra.mrb[136].mxu0 %v4825_v36  ;;  %v5054_v36 = vsel %vm2593_vm2, %v5051_v25, %v5053_v56  ;;  %v5073_v25 = vrot.slane %v16274_v3, 6  ;;  %v5265_v3 = vrot.slane %v15856_v37, 2 }
 0x737   :  { %10847 = vmatprep.mubr.msk.bf16.mxu0 %vm13328_vm0, %v17790_v44 }
 0x73e   :  { %10848 = vmatmul.mubr.bf16.gmra.mrb[140].mxu0 %v4834_v15  ;;  %v5056_v15 = vsel %vm2593_vm2, %v5053_v56, %v5055_v14 }
 0x73f   :  { %10851 = vmatprep.mubr.msk.bf16.mxu0 %vm13328_vm0, %v17790_v44 }
 0x746   :  { %10852 = vmatmul.mubr.bf16.gmra.mrb[144].mxu0 %v4843_v24  ;;  %v5058_v24 = vsel %vm2593_vm2, %v5055_v14, %v5057_v63  ;;  %v5269_v63 = vrot.slane %v15889_v30, 2 }
 0x747   :  { %10855 = vmatprep.mubr.msk.bf16.mxu0 %vm13328_vm0, %v17790_v44 }
 0x74e   :  { %10856 = vmatmul.mubr.bf16.gmra.mrb[148].mxu0 %v4852_v2  ;;  %v5063_v2 = vrot.slane %v15935_v11, 6 }
 0x74f   :  { %10859 = vmatprep.mubr.msk.bf16.mxu0 %vm13328_vm0, %v17790_v44 }
 0x750   :  { %v5064_v54 = vsel %vm2593_vm2, %v5061_v13, %v5063_v2  ;;  %v5066_v48 = vsel %vm2593_vm2, %v5063_v2, %v5065_v49  ;;  %v5273_v13 = vrot.slane %v15922_v51, 2  ;;  %v5279_v51 = vrot.slane %v15961_v47, 2 }
 0x756   :  { %10860 = vmatmul.mubr.bf16.gmra.mrb[152].mxu0 %v4861_v19  ;;  %v5067_v19 = vrot.slane %v15961_v47, 6 }
 0x757   :  { %10879 = vmatprep.mubr.msk.bf16.mxu0 %vm13328_vm0, %v17790_v44 }
 0x758   :  { %v5068_v32 = vsel %vm2593_vm2, %v5065_v49, %v5067_v19  ;;  %v5070_v6 = vsel %vm2593_vm2, %v5067_v19, %v5069_v10 }
 0x75e   :  { %10880 = vmatmul.mubr.bf16.vlgmr.msra.gmra.mrb[104].mxu0 %v5050_v0  ;;  %v5071_v0 = vrot.slane %v16184_v12, 6 }
 0x75f   :  { %10932 = vmatpush3.bf16.msra.mxu0 %v17839_v31  ;;  %10883 = vmatprep.mubr.msk.bf16.mxu0 %vm13328_vm0, %v17790_v44 }
 0x760   :  { %10933 = vmatprep.subr.bf16.mxu0 %v17790_v44  ;;  %v5072_v31 = vsel %vm2593_vm2, %v5069_v10, %v5071_v0  ;;  %v5250_v10 = vld [vmem:[#allocation3 + $0x68] sm:$0x3f] }
 0x761   :  { %v5285_v47 = vrot.slane %v5250_v10, 2  ;;  %v16491_v10 = vld [vmem:[#allocation3 + $0x68] sm:$0x7f] }
 0x763   :  { %10934 = vmatpush3.bf16.msra.mxu0 %v17840_v45  ;;  %v16352_v45 = vld [vmem:[#allocation3 + $0x8] sm:$0xfc] }
 0x764   :  { %10935 = vmatprep.subr.bf16.mxu0 %v17790_v44  ;;  %v5262_v56 = vrot.slane %v16352_v45, 2 }
 0x766   :  { %10884 = vmatmul.mubr.bf16.gmra.mrb[108].mxu0 %v5052_v60  ;;  %v5074_v60 = vsel %vm2593_vm2, %v5071_v0, %v5073_v25  ;;  %v5475_v0 = vshll.u32 %v16352_v45, 16 }
 0x767   :  { %10887 = vmatprep.mubr.msk.bf16.mxu0 %vm13328_vm0, %v17790_v44  ;;  %10936 = vmatpush3.bf16.msra.mxu0 %v17841_v28  ;;  %v5263_v28 = vrot.slane %v15840_v26, 2  ;;  %v5267_v26 = vrot.slane %v15872_v46, 2 }
 0x768   :  { %10937 = vmatprep.subr.bf16.mxu0 %v17790_v44  ;;  %v5477_v25 = vrot.slane %v5475_v0, 3 }
 0x769   :  { %v5266_v14 = vsel %vm2864_vm7, %v5263_v28, %v5265_v3  ;;  %v5268_v37 = vsel %vm2864_vm7, %v5265_v3, %v5267_v26  ;;  %v5270_v46 = vsel %vm2864_vm7, %v5267_v26, %v5269_v63  ;;  %v5483_v3 = vrot.slane %v15877_v5, 2  ;;  %v17857_v5 = vld [vmem:[#allocation82_spill] sm:$0xff] }
 0x76a   :  { %v5487_v26 = vrot.slane %v15894_v38, 2  ;;  %v17858_v38 = vld [vmem:[#allocation83_spill] sm:$0xff] }
 0x76b   :  { %10938 = vmatpush3.bf16.msra.mxu0 %v17842_v40  ;;  %v17847_v40 = vld [vmem:[#allocation72_spill] sm:$0xff] }
 0x76c   :  { %10939 = vmatprep.subr.bf16.mxu0 %v17790_v44 }
 0x76e   :  { %10888 = vmatmul.mubr.bf16.gmra.mrb[112].mxu0 %v5054_v36  ;;  %v5264_v36 = vsel %vm2864_vm7, %v5262_v56, %v5263_v28  ;;  %v5480_v56 = vrot.slane %v15846_v62, 3 }
 0x76f   :  { %10891 = vmatprep.mubr.msk.bf16.mxu0 %vm13328_vm0, %v17790_v44  ;;  %10940 = vmatpush3.bf16.msra.mxu0 %v17843_v16  ;;  %v17848_v16 = vld [vmem:[#allocation73_spill] sm:$0xff] }
 0x770   :  { %10941 = vmatprep.subr.bf16.mxu0 %v17790_v44 }
 0x773   :  { %10942 = vmatpush3.bf16.msra.mxu0 %v17844_v17  ;;  %v17850_v17 = vld [vmem:[#allocation75_spill] sm:$0xff] }
 0x774   :  { %10943 = vmatprep.subr.bf16.mxu0 %v17790_v44 }
 0x776   :  { %10892 = vmatmul.mubr.bf16.gmra.mrb[116].mxu0 %v5056_v15  ;;  %v17849_v15 = vld [vmem:[#allocation74_spill] sm:$0xff] }
 0x777   :  { %10895 = vmatprep.mubr.msk.bf16.mxu0 %vm13328_vm0, %v17790_v44  ;;  %10944 = vmatpush3.bf16.msra.mxu0 %v17845_v21  ;;  %v17851_v21 = vld [vmem:[#allocation76_spill] sm:$0xff] }
 0x778   :  { %10945 = vmatprep.subr.bf16.mxu0 %v17790_v44 }
 0x77b   :  { %10946 = vmatpush3.bf16.msra.mxu0 %v17846_v43  ;;  %v5271_v43 = vrot.slane %v15906_v18, 2  ;;  %v5275_v18 = vrot.slane %v15935_v11, 2  ;;  %v5281_v11 = vrot.slane %v15974_v55, 2  ;;  %v5472_v55 = vshrl.u32 %v16352_v45, 16  ;;  %v17855_v45 = vld [vmem:[#allocation80_spill] sm:$0xff] }
 0x77c   :  { %10999 = vmatprep.subr.bf16.mxu0 %v17790_v44 }
 0x77d   :  { %v5272_v30 = vsel %vm2864_vm7, %v5269_v63, %v5271_v43  ;;  %v5276_v2 = vsel %vm2864_vm7, %v5273_v13, %v5275_v18  ;;  %v5282_v19 = vsel %vm2864_vm7, %v5279_v51, %v5281_v11  ;;  %v5492_v63 = vrot.slane %v15897_v58, 3  ;;  %v17860_v58 = vld [vmem:[#allocation85_spill] sm:$0xff] }
 0x77e   :  { %10896 = vmatmul.mubr.bf16.gmra.mrb[120].mxu0 %v5058_v24  ;;  %v17852_v24 = vld [vmem:[#allocation77_spill] sm:$0xff] }
 0x77f   :  { %10899 = vmatprep.mubr.msk.bf16.mxu0 %vm13328_vm0, %v17790_v44 }
 0x786   :  { %10900 = vmatmul.mubr.bf16.gmra.mrb[124].mxu0 %v5060_v59  ;;  %v17854_v59 = vld [vmem:[#allocation79_spill] sm:$0xff] }
 0x787   :  { %10903 = vmatprep.mubr.msk.bf16.mxu0 %vm13328_vm0, %v17790_v44 }
 0x78e   :  { %10904 = vmatmul.mubr.bf16.gmra.mrb[128].mxu0 %v5062_v41  ;;  %v5274_v41 = vsel %vm2864_vm7, %v5271_v43, %v5273_v13 }
 0x78f   :  { %10907 = vmatprep.mubr.msk.bf16.mxu0 %vm13328_vm0, %v17790_v44 }
 0x796   :  { %10908 = vmatmul.mubr.bf16.gmra.mrb[132].mxu0 %v5064_v54  ;;  %v5277_v54 = vrot.slane %v15948_v52, 2  ;;  %v5283_v52 = vrot.slane %v16184_v12, 2 }
 0x797   :  { %10911 = vmatprep.mubr.msk.bf16.mxu0 %vm13328_vm0, %v17790_v44 }
 0x798   :  { %v5278_v49 = vsel %vm2864_vm7, %v5275_v18, %v5277_v54  ;;  %v5503_v18 = vrot.slane %v15952_v8, 2 }
 0x79e   :  { %10912 = vmatmul.mubr.bf16.gmra.mrb[136].mxu0 %v5066_v48  ;;  %v5280_v48 = vsel %vm2864_vm7, %v5277_v54, %v5279_v51  ;;  %v5507_v54 = vrot.slane %v15965_v1, 2 }
 0x79f   :  { %10915 = vmatprep.mubr.msk.bf16.mxu0 %vm13328_vm0, %v17790_v44 }
 0x7a6   :  { %10916 = vmatmul.mubr.bf16.gmra.mrb[140].mxu0 %v5068_v32  ;;  %v5284_v32 = vsel %vm2864_vm7, %v5281_v11, %v5283_v52 }
 0x7a7   :  { %10919 = vmatprep.mubr.msk.bf16.mxu0 %vm13328_vm0, %v17790_v44 }
 0x7ae   :  { %10920 = vmatmul.mubr.bf16.gmra.mrb[144].mxu0 %v5070_v6  ;;  %v5286_v6 = vsel %vm2864_vm7, %v5283_v52, %v5285_v47 }
 0x7af   :  { %10923 = vmatprep.mubr.msk.bf16.mxu0 %vm13328_vm0, %v17790_v44 }
 0x7b6   :  { %10924 = vmatmul.mubr.bf16.gmra.mrb[148].mxu0 %v5072_v31  ;;  %v5474_v31 = vrot.slane %v5472_v55, 2 }
 0x7b7   :  { %10927 = vmatprep.mubr.msk.bf16.mxu0 %vm13328_vm0, %v17790_v44 }
 0x7b8   :  { %v5478_v28 = vor.u32 %v5477_v25, %v5474_v31  ;;  %v5706_v31 = vld [vmem:[#allocation3 + $0x8] sm:$0xf8] }
 0x7b9   :  { %v5718_v25 = vrot.slane %v5706_v31, 3 }
 0x7be   :  { %10928 = vmatmul.mubr.bf16.gmra.mrb[152].mxu0 %v5074_v60  ;;  %v5479_v60 = vrot.slane %v15861_v7, 2 }
 0x7bf   :  { %10947 = vmatprep.mubr.msk.bf16.mxu0 %vm13328_vm0, %v17790_v44 }
 0x7c6   :  { %10948 = vmatmul.mubr.bf16.vlgmr.msra.gmra.mrb[104].mxu0 %v5264_v36  ;;  %v5481_v36 = vor.u32 %v5480_v56, %v5479_v60  ;;  %v13299_v60 = vld [vmem:[#allocation3 + $0x10] sm:$0xff] }
 0x7c7   :  { %11000 = vmatpush3.bf16.msra.mxu0 %v17847_v40  ;;  %10951 = vmatprep.mubr.msk.bf16.mxu0 %vm13328_vm0, %v17790_v44  ;;  %v5719_v56 = vrot.slane %v13299_v60, 3 }
 0x7c8   :  { %11001 = vmatprep.subr.bf16.mxu0 %v17790_v44  ;;  %v5482_v40 = vsel %vm3130_vm4, %v5478_v28, %v5481_v36 }
 0x7c9   :  { %v5720_v28 = vsel %vm3434_vm3, %v5718_v25, %v5719_v56 }
 0x7cb   :  { %11002 = vmatpush3.bf16.msra.mxu0 %v17848_v16  ;;  %v17856_v16 = vld [vmem:[#allocation81_spill] sm:$0xff] }
 0x7cc   :  { %11003 = vmatprep.subr.bf16.mxu0 %v17790_v44 }
 0x7ce   :  { %10952 = vmatmul.mubr.bf16.gmra.mrb[108].mxu0 %v5266_v14  ;;  %v5484_v14 = vrot.slane %v15864_v42, 3 }
 0x7cf   :  { %10955 = vmatprep.mubr.msk.bf16.mxu0 %vm13328_vm0, %v17790_v44  ;;  %11004 = vmatpush3.bf16.msra.mxu0 %v17849_v15  ;;  %v5488_v15 = vrot.slane %v15880_v23, 3 }
 0x7d0   :  { %11005 = vmatprep.subr.bf16.mxu0 %v17790_v44  ;;  %v5485_v7 = vor.u32 %v5484_v14, %v5483_v3  ;;  %v13301_v14 = vld [vmem:[#allocation3 + $0x20] sm:$0xff] }
 0x7d1   :  { %v5489_v42 = vor.u32 %v5488_v15, %v5487_v26  ;;  %v13303_v15 = vld [vmem:[#allocation3 + $0x30] sm:$0xff] }
 0x7d2   :  { %v5486_v62 = vsel %vm3130_vm4, %v5481_v36, %v5485_v7  ;;  %v13300_v36 = vld [vmem:[#allocation3 + $0x18] sm:$0xff] }
 0x7d3   :  { %11006 = vmatpush3.bf16.msra.mxu0 %v17850_v17  ;;  %v5491_v17 = vrot.slane %v15911_v22, 2  ;;  %v5496_v22 = vrot.slane %v15914_v39, 3  ;;  %v17862_v39 = vld [vmem:[#allocation87_spill] sm:$0xff] }
 0x7d4   :  { %11007 = vmatprep.subr.bf16.mxu0 %v17790_v44 }
 0x7d5   :  { %v5493_v23 = vor.u32 %v5492_v63, %v5491_v17 }
 0x7d6   :  { %10956 = vmatmul.mubr.bf16.gmra.mrb[112].mxu0 %v5268_v37  ;;  %v5490_v37 = vsel %vm3130_vm4, %v5485_v7, %v5489_v42 }
 0x7d7   :  { %10959 = vmatprep.mubr.msk.bf16.mxu0 %vm13328_vm0, %v17790_v44  ;;  %11008 = vmatpush3.bf16.msra.mxu0 %v17851_v21  ;;  %v17859_v21 = vld [vmem:[#allocation84_spill] sm:$0xff] }
 0x7d8   :  { %11009 = vmatprep.subr.bf16.mxu0 %v17790_v44 }
 0x7db   :  { %11010 = vmatpush3.bf16.msra.mxu0 %v17852_v24  ;;  %v5495_v24 = vrot.slane %v15926_v33, 2  ;;  %v5500_v33 = vrot.slane %v15929_v29, 3 }
 0x7dc   :  { %11011 = vmatprep.subr.bf16.mxu0 %v17790_v44 }
 0x7dd   :  { %v5497_v43 = vor.u32 %v5496_v22, %v5495_v24 }
 0x7de   :  { %10960 = vmatmul.mubr.bf16.gmra.mrb[116].mxu0 %v5270_v46  ;;  %v5494_v46 = vsel %vm3130_vm4, %v5489_v42, %v5493_v23  ;;  %v5727_v42 = vrot.slane %v13303_v15, 3 }
 0x7df   :  { %10963 = vmatprep.mubr.msk.bf16.mxu0 %vm13328_vm0, %v17790_v44  ;;  %11012 = vmatpush3.bf16.msra.mxu0 %v17853_v35  ;;  %v17861_v35 = vld [vmem:[#allocation86_spill] sm:$0xff] }
 0x7e0   :  { %11013 = vmatprep.subr.bf16.mxu0 %v17790_v44 }
 0x7e3   :  { %11014 = vmatpush3.bf16.msra.mxu0 %v17854_v59  ;;  %v5499_v59 = vrot.slane %v15939_v50, 2 }
 0x7e4   :  { %11067 = vmatprep.subr.bf16.mxu0 %v17790_v44 }
 0x7e5   :  { %v5501_v13 = vor.u32 %v5500_v33, %v5499_v59 }
 0x7e6   :  { %10964 = vmatmul.mubr.bf16.gmra.mrb[120].mxu0 %v5272_v30  ;;  %v5498_v30 = vsel %vm3130_vm4, %v5493_v23, %v5497_v43 }
 0x7e7   :  { %10967 = vmatprep.mubr.msk.bf16.mxu0 %vm13328_vm0, %v17790_v44 }
 0x7ee   :  { %10968 = vmatmul.mubr.bf16.gmra.mrb[124].mxu0 %v5274_v41  ;;  %v5502_v41 = vsel %vm3130_vm4, %v5497_v43, %v5501_v13 }
 0x7ef   :  { %10971 = vmatprep.mubr.msk.bf16.mxu0 %vm13328_vm0, %v17790_v44 }
 0x7f6   :  { %10972 = vmatmul.mubr.bf16.gmra.mrb[128].mxu0 %v5276_v2  ;;  %v5504_v2 = vrot.slane %v15942_v53, 3  ;;  %v5511_v53 = vrot.slane %v15978_v4, 2 }
 0x7f7   :  { %10975 = vmatprep.mubr.msk.bf16.mxu0 %vm13328_vm0, %v17790_v44 }
 0x7f8   :  { %v5505_v50 = vor.u32 %v5504_v2, %v5503_v18  ;;  %v16546_v2 = vld [vmem:[%s17558_s3 + $0x4] ss:$0 sm:$0xff] }
 0x7fa   :  { %v5506_v29 = vsel %vm3130_vm4, %v5501_v13, %v5505_v50 }
 0x7fe   :  { %10976 = vmatmul.mubr.bf16.gmra.mrb[132].mxu0 %v5278_v49  ;;  %v5508_v49 = vrot.slane %v15955_v9, 3  ;;  %v5515_v9 = vrot.slane %v15991_v61, 2  ;;  %v5524_v61 = vshrl.u32 %v16491_v10, 16 }
 0x7ff   :  { %10979 = vmatprep.mubr.msk.bf16.mxu0 %vm13328_vm0, %v17790_v44 }
 0x800   :  { %v5509_v51 = vor.u32 %v5508_v49, %v5507_v54  ;;  %v5526_v55 = vrot.slane %v5524_v61, 2 }
 0x802   :  { %v5510_v8 = vsel %vm3130_vm4, %v5505_v50, %v5509_v51  ;;  %v16551_v50 = vld [vmem:[%s17558_s3 + $0x5] ss:$0 sm:$0xff] }
 0x806   :  { %10980 = vmatmul.mubr.bf16.gmra.mrb[136].mxu0 %v5280_v48  ;;  %v5512_v48 = vrot.slane %v15968_v57, 3  ;;  %v5519_v57 = vrot.slane %v4845_v20, 2 }
 0x807   :  { %10983 = vmatprep.mubr.msk.bf16.mxu0 %vm13328_vm0, %v17790_v44 }
 0x808   :  { %v5513_v11 = vor.u32 %v5512_v48, %v5511_v53 }
 0x80a   :  { %v5514_v1 = vsel %vm3130_vm4, %v5509_v51, %v5513_v11 }
 0x80e   :  { %10984 = vmatmul.mubr.bf16.gmra.mrb[140].mxu0 %v5282_v19  ;;  %v5516_v19 = vrot.slane %v15981_v27, 3 }
 0x80f   :  { %10987 = vmatprep.mubr.msk.bf16.mxu0 %vm13328_vm0, %v17790_v44 }
 0x810   :  { %v5517_v52 = vor.u32 %v5516_v19, %v5515_v9 }
 0x812   :  { %v5518_v4 = vsel %vm3130_vm4, %v5513_v11, %v5517_v52 }
 0x816   :  { %10988 = vmatmul.mubr.bf16.gmra.mrb[144].mxu0 %v5284_v32  ;;  %v5520_v32 = vrot.slane %v4848_v34, 3 }
 0x817   :  { %10991 = vmatprep.mubr.msk.bf16.mxu0 %vm13328_vm0, %v17790_v44 }
 0x818   :  { %v5521_v27 = vor.u32 %v5520_v32, %v5519_v57 }
 0x81e   :  { %10992 = vmatmul.mubr.bf16.gmra.mrb[148].mxu0 %v5286_v6  ;;  %v5522_v6 = vsel %vm3130_vm4, %v5517_v52, %v5521_v27 }
 0x81f   :  { %10995 = vmatprep.mubr.msk.bf16.mxu0 %vm13328_vm0, %v17790_v44 }
 0x826   :  { %10996 = vmatmul.mubr.bf16.gmra.mrb[152].mxu0 %v5285_v47  ;;  %v5527_v47 = vshll.u32 %v16491_v10, 16 }
 0x827   :  { %11015 = vmatprep.mubr.msk.bf16.mxu0 %vm13328_vm0, %v17790_v44 }
 0x828   :  { %v5529_v0 = vrot.slane %v5527_v47, 3 }
 0x82a   :  { %v5530_v20 = vor.u32 %v5529_v0, %v5526_v55 }
 0x82c   :  { %v5531_v34 = vsel %vm3130_vm4, %v5521_v27, %v5530_v20 }
 0x82e   :  { %11016 = vmatmul.mubr.bf16.vlgmr.msra.gmra.mrb[104].mxu0 %v5482_v40  ;;  %v5721_v40 = vrot.slane %v13300_v36, 3 }
 0x82f   :  { %11068 = vmatpush3.bf16.msra.mxu0 %v17855_v45  ;;  %11019 = vmatprep.mubr.msk.bf16.mxu0 %vm13328_vm0, %v17790_v44  ;;  %v5723_v45 = vrot.slane %v13301_v14, 3 }
 0x830   :  { %11069 = vmatprep.subr.bf16.mxu0 %v17790_v44  ;;  %v5722_v3 = vsel %vm3434_vm3, %v5719_v56, %v5721_v40 }
 0x831   :  { %v5724_v7 = vsel %vm3434_vm3, %v5721_v40, %v5723_v45 }
 0x833   :  { %11070 = vmatpush3.bf16.msra.mxu0 %v17856_v16 }
 0x834   :  { %11071 = vmatprep.subr.bf16.mxu0 %v17790_v44 }
 0x836   :  { %11020 = vmatmul.mubr.bf16.gmra.mrb[108].mxu0 %v5486_v62  ;;  %v13302_v62 = vld [vmem:[#allocation3 + $0x28] sm:$0xff] }
 0x837   :  { %11023 = vmatprep.mubr.msk.bf16.mxu0 %vm13328_vm0, %v17790_v44  ;;  %11072 = vmatpush3.bf16.msra.mxu0 %v17857_v5  ;;  %v5725_v16 = vrot.slane %v13302_v62, 3 }
 0x838   :  { %11073 = vmatprep.subr.bf16.mxu0 %v17790_v44 }
 0x839   :  { %v5726_v26 = vsel %vm3434_vm3, %v5723_v45, %v5725_v16  ;;  %v5728_v5 = vsel %vm3434_vm3, %v5725_v16, %v5727_v42 }
 0x83b   :  { %11074 = vmatpush3.bf16.msra.mxu0 %v17858_v38  ;;  %v13305_v38 = vld [vmem:[#allocation3 + $0x40] sm:$0xff] }
 0x83c   :  { %11075 = vmatprep.subr.bf16.mxu0 %v17790_v44  ;;  %v5731_v23 = vrot.slane %v13305_v38, 3 }
 0x83e   :  { %11024 = vmatmul.mubr.bf16.gmra.mrb[112].mxu0 %v5490_v37  ;;  %v13304_v37 = vld [vmem:[#allocation3 + $0x38] sm:$0xff] }
 0x83f   :  { %11027 = vmatprep.mubr.msk.bf16.mxu0 %vm13328_vm0, %v17790_v44  ;;  %11076 = vmatpush3.bf16.msra.mxu0 %v17859_v21  ;;  %v5729_v17 = vrot.slane %v13304_v37, 3 }
 0x840   :  { %11077 = vmatprep.subr.bf16.mxu0 %v17790_v44 }
 0x841   :  { %v5730_v63 = vsel %vm3434_vm3, %v5727_v42, %v5729_v17  ;;  %v5732_v21 = vsel %vm3434_vm3, %v5729_v17, %v5731_v23 }
 0x843   :  { %11078 = vmatpush3.bf16.msra.mxu0 %v17860_v58  ;;  %v13307_v58 = vld [vmem:[#allocation3 + $0x50] sm:$0xff] }
 0x844   :  { %11079 = vmatprep.subr.bf16.mxu0 %v17790_v44  ;;  %v5735_v43 = vrot.slane %v13307_v58, 3 }
 0x846   :  { %11028 = vmatmul.mubr.bf16.gmra.mrb[116].mxu0 %v5494_v46  ;;  %v13306_v46 = vld [vmem:[#allocation3 + $0x48] sm:$0xff] }
 0x847   :  { %11031 = vmatprep.mubr.msk.bf16.mxu0 %vm13328_vm0, %v17790_v44  ;;  %11080 = vmatpush3.bf16.msra.mxu0 %v17861_v35  ;;  %v5733_v24 = vrot.slane %v13306_v46, 3 }
 0x848   :  { %11081 = vmatprep.subr.bf16.mxu0 %v17790_v44 }
 0x849   :  { %v5734_v22 = vsel %vm3434_vm3, %v5731_v23, %v5733_v24  ;;  %v5736_v35 = vsel %vm3434_vm3, %v5733_v24, %v5735_v43 }
 0x84b   :  { %11082 = vmatpush3.bf16.msra.mxu0 %v17862_v39  ;;  %v5739_v39 = vrot.slane %v16184_v12, 3 }
 0x84e   :  { %11032 = vmatmul.mubr.bf16.gmra.mrb[120].mxu0 %v5498_v30  ;;  %v13308_v30 = vld [vmem:[#allocation3 + $0x58] sm:$0xff] }
 0x84f   :  { %11035 = vmatprep.mubr.msk.bf16.mxu0 %vm13328_vm0, %v17790_v44  ;;  %v5737_v59 = vrot.slane %v13308_v30, 3 }
 0x851   :  { %v5738_v33 = vsel %vm3434_vm3, %v5735_v43, %v5737_v59  ;;  %v5740_v13 = vsel %vm3434_vm3, %v5737_v59, %v5739_v39 }
 0x856   :  { %11036 = vmatmul.mubr.bf16.gmra.mrb[124].mxu0 %v5502_v41  ;;  %v5741_v41 = vrot.slane %v16491_v10, 3 }
 0x857   :  { %11039 = vmatprep.mubr.msk.bf16.mxu0 %vm13328_vm0, %v17790_v44 }
 0x858   :  { %v5742_v18 = vsel %vm3434_vm3, %v5739_v39, %v5741_v41 }
 0x85e   :  { %11040 = vmatmul.mubr.bf16.gmra.mrb[128].mxu0 %v5506_v29 }
 0x85f   :  { %11043 = vmatprep.mubr.msk.bf16.mxu0 %vm13328_vm0, %v17790_v44 }
 0x866   :  { %11044 = vmatmul.mubr.bf16.gmra.mrb[132].mxu0 %v5510_v8 }
 0x867   :  { %11047 = vmatprep.mubr.msk.bf16.mxu0 %vm13328_vm0, %v17790_v44 }
 0x86e   :  { %11048 = vmatmul.mubr.bf16.gmra.mrb[136].mxu0 %v5514_v1 }
 0x86f   :  { %11051 = vmatprep.mubr.msk.bf16.mxu0 %vm13328_vm0, %v17790_v44 }
 0x876   :  { %11052 = vmatmul.mubr.bf16.gmra.mrb[140].mxu0 %v5518_v4 }
 0x877   :  { %11055 = vmatprep.mubr.msk.bf16.mxu0 %vm13328_vm0, %v17790_v44 }
 0x87e   :  { %11056 = vmatmul.mubr.bf16.gmra.mrb[144].mxu0 %v5522_v6 }
 0x87f   :  { %11059 = vmatprep.mubr.msk.bf16.mxu0 %vm13328_vm0, %v17790_v44 }
 0x886   :  { %11060 = vmatmul.mubr.bf16.gmra.mrb[148].mxu0 %v5531_v34 }
 0x887   :  { %11063 = vmatprep.mubr.msk.bf16.mxu0 %vm13328_vm0, %v17790_v44 }
 0x88e   :  { %11064 = vmatmul.mubr.bf16.gmra.mrb[152].mxu0 %v5530_v20 }
 0x88f   :  { %11083 = vmatprep.mubr.msk.bf16.mxu0 %vm13328_vm0, %v17790_v44 }
 0x896   :  { %11084 = vmatmul.mubr.bf16.vlgmr.msra.gmra.mrb[104].mxu0 %v5720_v28 }
 0x897   :  { %11087 = vmatprep.mubr.msk.bf16.mxu0 %vm13328_vm0, %v17790_v44 }
 0x89e   :  { %11088 = vmatmul.mubr.bf16.gmra.mrb[108].mxu0 %v5722_v3 }
 0x89f   :  { %11091 = vmatprep.mubr.msk.bf16.mxu0 %vm13328_vm0, %v17790_v44 }
 0x8a6   :  { %11092 = vmatmul.mubr.bf16.gmra.mrb[112].mxu0 %v5724_v7 }
 0x8a7   :  { %11095 = vmatprep.mubr.msk.bf16.mxu0 %vm13328_vm0, %v17790_v44 }
 0x8ae   :  { %11096 = vmatmul.mubr.bf16.gmra.mrb[116].mxu0 %v5726_v26 }
 0x8af   :  { %11099 = vmatprep.mubr.msk.bf16.mxu0 %vm13328_vm0, %v17790_v44 }
 0x8b6   :  { %11100 = vmatmul.mubr.bf16.gmra.mrb[120].mxu0 %v5728_v5 }
 0x8b7   :  { %11103 = vmatprep.mubr.msk.bf16.mxu0 %vm13328_vm0, %v17790_v44 }
 0x8be   :  { %11104 = vmatmul.mubr.bf16.gmra.mrb[124].mxu0 %v5730_v63 }
 0x8bf   :  { %11107 = vmatprep.mubr.msk.bf16.mxu0 %vm13328_vm0, %v17790_v44 }
 0x8c6   :  { %11108 = vmatmul.mubr.bf16.gmra.mrb[128].mxu0 %v5732_v21 }
 0x8c7   :  { %11111 = vmatprep.mubr.msk.bf16.mxu0 %vm13328_vm0, %v17790_v44 }
 0x8ce   :  { %11112 = vmatmul.mubr.bf16.gmra.mrb[132].mxu0 %v5734_v22 }
 0x8cf   :  { %11115 = vmatprep.mubr.msk.bf16.mxu0 %vm13328_vm0, %v17790_v44 }
 0x8d6   :  { %11116 = vmatmul.mubr.bf16.gmra.mrb[136].mxu0 %v5736_v35 }
 0x8d7   :  { %11119 = vmatprep.mubr.msk.bf16.mxu0 %vm13328_vm0, %v17790_v44 }
 0x8de   :  { %11120 = vmatmul.mubr.bf16.gmra.mrb[140].mxu0 %v5738_v33 }
 0x8df   :  { %11123 = vmatprep.mubr.msk.bf16.mxu0 %vm13328_vm0, %v17790_v44 }
 0x8e6   :  { %11124 = vmatmul.mubr.bf16.gmra.mrb[144].mxu0 %v5740_v13 }
 0x8e7   :  { %11127 = vmatprep.mubr.msk.bf16.mxu0 %vm13328_vm0, %v17790_v44 }
 0x8ee   :  { %11128 = vmatmul.mubr.bf16.gmra.mrb[148].mxu0 %v5742_v18 }
 0x8ef   :  { %11131 = vmatprep.mubr.msk.bf16.mxu0 %vm13328_vm0, %v17790_v44 }
 0x8f6   :  { %11132 = vmatmul.mubr.bf16.gmra.mrb[152].mxu0 %v5741_v41 }
 0x969   :  { %v5790_v12 = vpop.f32.mrb[104].mxu0 }
 0x96a   :  { %v5922_v29 = vmul.f32 %v16546_v2, %v5790_v12  ;;  %v11085_v54 = vpop.f32.mrb[105].mxu0 }
 0x96b   :  { %v5793_v49 = vpop.f32.mrb[106].mxu0 }
 0x96c   :  { %v5952_v51 = vadd.f32 %v16551_v50, %v5922_v29  ;;  %v5923_v8 = vmul.f32 %v16546_v2, %v5793_v49  ;;  %v11086_v53 = vpop.f32.mrb[107].mxu0 }
 0x96e   :  { %v6002_v48 = vmul.f32 0.01, %v5952_v51  ;;  %v5953_v11 = vadd.f32 %v16551_v50, %v5923_v8  ;;  %vm5977_vm14 = vcmp.ge.f32.partialorder %v5952_v51, 0.0 }
 0x970   :  { %vm5978_vm15 = vcmp.ge.f32.partialorder %v5953_v11, 0.0  ;;  %v6003_v1 = vmul.f32 0.01, %v5953_v11  ;;  %v6027_v19 = vsel %vm5977_vm14, %v5952_v51, %v6002_v48 }
 0x971   :  { %v5798_v9 = vpop.f32.mrb[108].mxu0 }
 0x972   :  { %v6028_v52 = vsel %vm5978_vm15, %v5953_v11, %v6003_v1  ;;  %v5924_v4 = vmul.f32 %v16546_v2, %v5798_v9  ;;  %v11089_v57 = vpop.f32.mrb[109].mxu0 }
 0x973   :  { %v6052_v32 = vpack.c.bf16 %v6028_v52, %v6027_v19  ;;  %v5801_v10 = vpop.f32.mrb[110].mxu0 }
 0x974   :  { %v5954_v27 = vadd.f32 %v16551_v50, %v5924_v4  ;;  %v5925_v61 = vmul.f32 %v16546_v2, %v5801_v10  ;;  %v11090_v47 = vpop.f32.mrb[111].mxu0 }
 0x975   :  { %6065 = vst [vmem:[#allocation4] sm:$0xff] %v6052_v32 }
 0x976   :  { %v6004_v6 = vmul.f32 0.01, %v5954_v27  ;;  %v5955_v55 = vadd.f32 %v16551_v50, %v5925_v61  ;;  %vm5979_vm1 = vcmp.ge.f32.partialorder %v5954_v27, 0.0 }
 0x978   :  { %vm5980_vm9 = vcmp.ge.f32.partialorder %v5955_v55, 0.0  ;;  %v6005_v0 = vmul.f32 0.01, %v5955_v55  ;;  %v6029_v34 = vsel %vm5979_vm1, %v5954_v27, %v6004_v6 }
 0x979   :  { %v5806_v20 = vpop.f32.mrb[112].mxu0 }
 0x97a   :  { %v6030_v31 = vsel %vm5980_vm9, %v5955_v55, %v6005_v0  ;;  %v5926_v25 = vmul.f32 %v16546_v2, %v5806_v20  ;;  %v11093_v60 = vpop.f32.mrb[113].mxu0 }
 0x97b   :  { %v6053_v56 = vpack.c.bf16 %v6030_v31, %v6029_v34  ;;  %v5809_v28 = vpop.f32.mrb[114].mxu0 }
 0x97c   :  { %v5956_v36 = vadd.f32 %v16551_v50, %v5926_v25  ;;  %v5927_v40 = vmul.f32 %v16546_v2, %v5809_v28  ;;  %v11094_v3 = vpop.f32.mrb[115].mxu0 }
 0x97d   :  { %6066 = vst [vmem:[#allocation4 + $0x8] sm:$0xff] %v6053_v56 }
 0x97e   :  { %v6006_v14 = vmul.f32 0.01, %v5956_v36  ;;  %v5957_v45 = vadd.f32 %v16551_v50, %v5927_v40  ;;  %vm5981_vm10 = vcmp.ge.f32.partialorder %v5956_v36, 0.0 }
 0x980   :  { %vm5982_vm11 = vcmp.ge.f32.partialorder %v5957_v45, 0.0  ;;  %v6007_v7 = vmul.f32 0.01, %v5957_v45  ;;  %v6031_v16 = vsel %vm5981_vm10, %v5956_v36, %v6006_v14 }
 0x981   :  { %v5814_v62 = vpop.f32.mrb[116].mxu0 }
 0x982   :  { %v6032_v26 = vsel %vm5982_vm11, %v5957_v45, %v6007_v7  ;;  %v5928_v15 = vmul.f32 %v16546_v2, %v5814_v62  ;;  %v11097_v42 = vpop.f32.mrb[117].mxu0 }
 0x983   :  { %v6054_v5 = vpack.c.bf16 %v6032_v26, %v6031_v16  ;;  %v5817_v37 = vpop.f32.mrb[118].mxu0 }
 0x984   :  { %v5958_v17 = vadd.f32 %v16551_v50, %v5928_v15  ;;  %v5929_v63 = vmul.f32 %v16546_v2, %v5817_v37  ;;  %v11098_v38 = vpop.f32.mrb[119].mxu0 }
 0x985   :  { %6067 = vst [vmem:[#allocation4 + $0x10] sm:$0xff] %v6054_v5 }
 0x986   :  { %v6008_v23 = vmul.f32 0.01, %v5958_v17  ;;  %v5959_v21 = vadd.f32 %v16551_v50, %v5929_v63  ;;  %vm5983_vm13 = vcmp.ge.f32.partialorder %v5958_v17, 0.0 }
 0x988   :  { %vm5984_vm14 = vcmp.ge.f32.partialorder %v5959_v21, 0.0  ;;  %v6009_v46 = vmul.f32 0.01, %v5959_v21  ;;  %v6033_v22 = vsel %vm5983_vm13, %v5958_v17, %v6008_v23 }
 0x989   :  { %v5822_v24 = vpop.f32.mrb[120].mxu0 }
 0x98a   :  { %v6034_v58 = vsel %vm5984_vm14, %v5959_v21, %v6009_v46  ;;  %v5930_v43 = vmul.f32 %v16546_v2, %v5822_v24  ;;  %v11101_v35 = vpop.f32.mrb[121].mxu0 }
 0x98b   :  { %v6055_v30 = vpack.c.bf16 %v6034_v58, %v6033_v22  ;;  %v5825_v59 = vpop.f32.mrb[122].mxu0 }
 0x98c   :  { %v5960_v33 = vadd.f32 %v16551_v50, %v5930_v43  ;;  %v5931_v39 = vmul.f32 %v16546_v2, %v5825_v59  ;;  %v11102_v13 = vpop.f32.mrb[123].mxu0 }
 0x98d   :  { %6068 = vst [vmem:[#allocation4 + $0x18] sm:$0xff] %v6055_v30 }
 0x98e   :  { %v6010_v41 = vmul.f32 0.01, %v5960_v33  ;;  %v5961_v18 = vadd.f32 %v16551_v50, %v5931_v39  ;;  %vm5985_vm15 = vcmp.ge.f32.partialorder %v5960_v33, 0.0 }
 0x990   :  { %vm5986_vm1 = vcmp.ge.f32.partialorder %v5961_v18, 0.0  ;;  %v6011_v12 = vmul.f32 0.01, %v5961_v18  ;;  %v6035_v54 = vsel %vm5985_vm15, %v5960_v33, %v6010_v41 }
 0x991   :  { %v5830_v29 = vpop.f32.mrb[124].mxu0 }
 0x992   :  { %v6036_v49 = vsel %vm5986_vm1, %v5961_v18, %v6011_v12  ;;  %v5932_v51 = vmul.f32 %v16546_v2, %v5830_v29  ;;  %v11105_v8 = vpop.f32.mrb[125].mxu0 }
 0x993   :  { %v6056_v53 = vpack.c.bf16 %v6036_v49, %v6035_v54  ;;  %v5833_v48 = vpop.f32.mrb[126].mxu0 }
 0x994   :  { %v5962_v11 = vadd.f32 %v16551_v50, %v5932_v51  ;;  %v5933_v1 = vmul.f32 %v16546_v2, %v5833_v48  ;;  %v11106_v9 = vpop.f32.mrb[127].mxu0 }
 0x995   :  { %6069 = vst [vmem:[#allocation4 + $0x20] sm:$0xff] %v6056_v53 }
 0x996   :  { %v6012_v19 = vmul.f32 0.01, %v5962_v11  ;;  %v5963_v52 = vadd.f32 %v16551_v50, %v5933_v1  ;;  %vm5987_vm9 = vcmp.ge.f32.partialorder %v5962_v11, 0.0 }
 0x998   :  { %vm5988_vm10 = vcmp.ge.f32.partialorder %v5963_v52, 0.0  ;;  %v6013_v4 = vmul.f32 0.01, %v5963_v52  ;;  %v6037_v32 = vsel %vm5987_vm9, %v5962_v11, %v6012_v19 }
 0x999   :  { %v5838_v57 = vpop.f32.mrb[128].mxu0 }
 0x99a   :  { %v6038_v10 = vsel %vm5988_vm10, %v5963_v52, %v6013_v4  ;;  %v5934_v27 = vmul.f32 %v16546_v2, %v5838_v57  ;;  %v11109_v61 = vpop.f32.mrb[129].mxu0 }
 0x99b   :  { %v6057_v47 = vpack.c.bf16 %v6038_v10, %v6037_v32  ;;  %v5841_v6 = vpop.f32.mrb[130].mxu0 }
 0x99c   :  { %v5964_v55 = vadd.f32 %v16551_v50, %v5934_v27  ;;  %v5935_v0 = vmul.f32 %v16546_v2, %v5841_v6  ;;  %v11110_v20 = vpop.f32.mrb[131].mxu0 }
 0x99d   :  { %6070 = vst [vmem:[#allocation4 + $0x28] sm:$0xff] %v6057_v47 }
 0x99e   :  { %v6014_v34 = vmul.f32 0.01, %v5964_v55  ;;  %v5965_v31 = vadd.f32 %v16551_v50, %v5935_v0  ;;  %vm5989_vm11 = vcmp.ge.f32.partialorder %v5964_v55, 0.0 }
 0x9a0   :  { %vm5990_vm13 = vcmp.ge.f32.partialorder %v5965_v31, 0.0  ;;  %v6015_v25 = vmul.f32 0.01, %v5965_v31  ;;  %v6039_v56 = vsel %vm5989_vm11, %v5964_v55, %v6014_v34 }
 0x9a1   :  { %v5846_v60 = vpop.f32.mrb[132].mxu0 }
 0x9a2   :  { %v6040_v28 = vsel %vm5990_vm13, %v5965_v31, %v6015_v25  ;;  %v5936_v36 = vmul.f32 %v16546_v2, %v5846_v60  ;;  %v11113_v40 = vpop.f32.mrb[133].mxu0 }
 0x9a3   :  { %v6058_v3 = vpack.c.bf16 %v6040_v28, %v6039_v56  ;;  %v5849_v14 = vpop.f32.mrb[134].mxu0 }
 0x9a4   :  { %v5966_v45 = vadd.f32 %v16551_v50, %v5936_v36  ;;  %v5937_v7 = vmul.f32 %v16546_v2, %v5849_v14  ;;  %v11114_v62 = vpop.f32.mrb[135].mxu0 }
 0x9a5   :  { %6071 = vst [vmem:[#allocation4 + $0x30] sm:$0xff] %v6058_v3 }
 0x9a6   :  { %v6016_v16 = vmul.f32 0.01, %v5966_v45  ;;  %v5967_v26 = vadd.f32 %v16551_v50, %v5937_v7  ;;  %vm5991_vm14 = vcmp.ge.f32.partialorder %v5966_v45, 0.0 }
 0x9a8   :  { %vm5992_vm15 = vcmp.ge.f32.partialorder %v5967_v26, 0.0  ;;  %v6017_v15 = vmul.f32 0.01, %v5967_v26  ;;  %v6041_v5 = vsel %vm5991_vm14, %v5966_v45, %v6016_v16 }
 0x9a9   :  { %v5854_v42 = vpop.f32.mrb[136].mxu0 }
 0x9aa   :  { %v6042_v37 = vsel %vm5992_vm15, %v5967_v26, %v6017_v15  ;;  %v5938_v17 = vmul.f32 %v16546_v2, %v5854_v42  ;;  %v11117_v63 = vpop.f32.mrb[137].mxu0 }
 0x9ab   :  { %v6059_v38 = vpack.c.bf16 %v6042_v37, %v6041_v5  ;;  %v5857_v23 = vpop.f32.mrb[138].mxu0 }
 0x9ac   :  { %v5968_v21 = vadd.f32 %v16551_v50, %v5938_v17  ;;  %v5939_v46 = vmul.f32 %v16546_v2, %v5857_v23  ;;  %v11118_v24 = vpop.f32.mrb[139].mxu0 }
 0x9ad   :  { %6072 = vst [vmem:[#allocation4 + $0x38] sm:$0xff] %v6059_v38 }
 0x9ae   :  { %v6018_v22 = vmul.f32 0.01, %v5968_v21  ;;  %v5969_v58 = vadd.f32 %v16551_v50, %v5939_v46  ;;  %vm5993_vm1 = vcmp.ge.f32.partialorder %v5968_v21, 0.0 }
 0x9b0   :  { %vm5994_vm9 = vcmp.ge.f32.partialorder %v5969_v58, 0.0  ;;  %v6019_v43 = vmul.f32 0.01, %v5969_v58  ;;  %v6043_v30 = vsel %vm5993_vm1, %v5968_v21, %v6018_v22 }
 0x9b1   :  { %v5862_v35 = vpop.f32.mrb[140].mxu0 }
 0x9b2   :  { %v6044_v59 = vsel %vm5994_vm9, %v5969_v58, %v6019_v43  ;;  %v5940_v33 = vmul.f32 %v16546_v2, %v5862_v35  ;;  %v11121_v39 = vpop.f32.mrb[141].mxu0 }
 0x9b3   :  { %v6060_v13 = vpack.c.bf16 %v6044_v59, %v6043_v30  ;;  %v5865_v41 = vpop.f32.mrb[142].mxu0 }
 0x9b4   :  { %v5970_v18 = vadd.f32 %v16551_v50, %v5940_v33  ;;  %v5941_v12 = vmul.f32 %v16546_v2, %v5865_v41  ;;  %v11122_v29 = vpop.f32.mrb[143].mxu0 }
 0x9b5   :  { %6073 = vst [vmem:[#allocation4 + $0x40] sm:$0xff] %v6060_v13 }
 0x9b6   :  { %v6020_v54 = vmul.f32 0.01, %v5970_v18  ;;  %v5971_v49 = vadd.f32 %v16551_v50, %v5941_v12  ;;  %vm5995_vm10 = vcmp.ge.f32.partialorder %v5970_v18, 0.0 }
 0x9b8   :  { %vm5996_vm11 = vcmp.ge.f32.partialorder %v5971_v49, 0.0  ;;  %v6021_v51 = vmul.f32 0.01, %v5971_v49  ;;  %v6045_v53 = vsel %vm5995_vm10, %v5970_v18, %v6020_v54 }
 0x9b9   :  { %v5870_v8 = vpop.f32.mrb[144].mxu0 }
 0x9ba   :  { %v6046_v48 = vsel %vm5996_vm11, %v5971_v49, %v6021_v51  ;;  %v5942_v11 = vmul.f32 %v16546_v2, %v5870_v8  ;;  %v11125_v1 = vpop.f32.mrb[145].mxu0 }
 0x9bb   :  { %v6061_v9 = vpack.c.bf16 %v6046_v48, %v6045_v53  ;;  %v5873_v19 = vpop.f32.mrb[146].mxu0 }
 0x9bc   :  { %v5972_v52 = vadd.f32 %v16551_v50, %v5942_v11  ;;  %v5943_v4 = vmul.f32 %v16546_v2, %v5873_v19  ;;  %v11126_v57 = vpop.f32.mrb[147].mxu0 }
 0x9bd   :  { %6074 = vst [vmem:[#allocation4 + $0x48] sm:$0xff] %v6061_v9 }
 0x9be   :  { %v6022_v32 = vmul.f32 0.01, %v5972_v52  ;;  %v5973_v10 = vadd.f32 %v16551_v50, %v5943_v4  ;;  %vm5997_vm13 = vcmp.ge.f32.partialorder %v5972_v52, 0.0 }
 0x9c0   :  { %vm5998_vm14 = vcmp.ge.f32.partialorder %v5973_v10, 0.0  ;;  %v6023_v27 = vmul.f32 0.01, %v5973_v10  ;;  %v6047_v47 = vsel %vm5997_vm13, %v5972_v52, %v6022_v32 }
 0x9c1   :  { %v5878_v61 = vpop.f32.mrb[148].mxu0 }
 0x9c2   :  { %v6048_v6 = vsel %vm5998_vm14, %v5973_v10, %v6023_v27  ;;  %v5944_v55 = vmul.f32 %v16546_v2, %v5878_v61  ;;  %v11129_v0 = vpop.f32.mrb[149].mxu0 }
 0x9c3   :  { %v6062_v20 = vpack.c.bf16 %v6048_v6, %v6047_v47  ;;  %v5881_v34 = vpop.f32.mrb[150].mxu0 }
 0x9c4   :  { %v5974_v31 = vadd.f32 %v16551_v50, %v5944_v55  ;;  %v5945_v25 = vmul.f32 %v16546_v2, %v5881_v34  ;;  %v11130_v60 = vpop.f32.mrb[151].mxu0 }
 0x9c5   :  { %6075 = vst [vmem:[#allocation4 + $0x50] sm:$0xff] %v6062_v20 }
 0x9c6   :  { %v6024_v56 = vmul.f32 0.01, %v5974_v31  ;;  %v5975_v28 = vadd.f32 %v16551_v50, %v5945_v25  ;;  %vm5999_vm15 = vcmp.ge.f32.partialorder %v5974_v31, 0.0 }
 0x9c8   :  { %vm6000_vm1 = vcmp.ge.f32.partialorder %v5975_v28, 0.0  ;;  %v6025_v36 = vmul.f32 0.01, %v5975_v28  ;;  %v6049_v3 = vsel %vm5999_vm15, %v5974_v31, %v6024_v56 }
 0x9c9   :  { %v5886_v40 = vpop.f32.mrb[152].mxu0 }
 0x9ca   :  { %v6050_v14 = vsel %vm6000_vm1, %v5975_v28, %v6025_v36  ;;  %v5946_v45 = vmul.f32 %v16546_v2, %v5886_v40  ;;  %v11133_v7 = vpop.f32.mrb[153].mxu0 }
 0x9cb   :  { %v6063_v62 = vpack.c.bf16 %v6050_v14, %v6049_v3  ;;  %v5889_v16 = vpop.f32.mrb[154].mxu0 }
 0x9cc   :  { %v5976_v26 = vadd.f32 %v16551_v50, %v5946_v45  ;;  %v11134_v15 = vpop.f32.mrb[155].mxu0 }
 0x9cd   :  { %6076 = vst [vmem:[#allocation4 + $0x58] sm:$0xff] %v6063_v62 }
 0x9ce   :  { %vm6001_vm9 = vcmp.ge.f32.partialorder %v5976_v26, 0.0  ;;  %v6026_v42 = vmul.f32 0.01, %v5976_v26 }
 0x9d0   :  { %v6051_v5 = vsel %vm6001_vm9, %v5976_v26, %v6026_v42 }
 0x9d1   :  { %v6064_v37 = vpack.c.bf16 %v6051_v5, %v6051_v5 }
 0x9d3   :  { %6077 = vst [vmem:[#allocation4 + $0x60] sm:$0xf] %v6064_v37 }
 0x9d4   :  { %13321 = dma.done.wait [#allocation10 + $0x1], 9216 }
 0x9d5   :  { %13322 = vsyncadd [#allocation10 + $0x1], 4294958080  ;;  %11151 = vmatprep.mubr.msk.bf16.mxu1 %vm13328_vm0, %v17790_v44  ;;  %v17863_v2 = vld [vmem:[#allocation96_spill] sm:$0xff]  ;;  %v17864_v17 = vld [vmem:[#allocation97_spill] sm:$0xff]  ;;  %11747 = vmatprep.subr.bf16.mxu0 %v17790_v44 }
 0x9d6   :  { %11136 = vmatpush3.bf16.msra.mxu1 %v17863_v2  ;;  %v17865_v50 = vld [vmem:[#allocation98_spill] sm:$0xff]  ;;  %v17866_v63 = vld [vmem:[#allocation99_spill] sm:$0xff]  ;;  %v16614_v38 = vld [vmem:[#allocation4] sm:$0xff] }
 0x9d7   :  { %11137 = vmatprep.subr.bf16.mxu1 %v17790_v44  ;;  %v17867_v23 = vld [vmem:[#allocation100_spill] sm:$0xff]  ;;  %v6114_v21 = vshll.u32 %v16614_v38, 16  ;;  %v16619_v46 = vld [vmem:[#allocation4 + $0x8] sm:$0xff]  ;;  %v6112_v22 = vshrl.u32 %v16614_v38, 16  ;;  %v17869_v35 = vld [vmem:[#allocation102_spill] sm:$0xff] }
 0x9d8   :  { %v17868_v24 = vld [vmem:[#allocation101_spill] sm:$0xff]  ;;  %v6119_v43 = vshll.u32 %v16619_v46, 16  ;;  %v16629_v33 = vld [vmem:[#allocation4 + $0x10] sm:$0xff]  ;;  %v17870_v39 = vld [vmem:[#allocation103_spill] sm:$0xff]  ;;  %v6123_v41 = vshrl.u32 %v16619_v46, 16 }
 0x9d9   :  { %v6116_v58 = vrot.slane %v6114_v21, 1  ;;  %v16635_v18 = vshll.u32 %v16629_v33, 16  ;;  %v17871_v12 = vld [vmem:[#allocation88_spill] sm:$0xff]  ;;  %v16645_v49 = vld [vmem:[#allocation4 + $0x18] sm:$0xff]  ;;  %v17872_v8 = vld [vmem:[#allocation89_spill] sm:$0xff]  ;;  %v16650_v53 = vshrl.u32 %v16629_v33, 16 }
 0x9da   :  { %11138 = vmatpush3.bf16.msra.mxu1 %v17864_v17  ;;  %v6121_v59 = vrot.slane %v6119_v43, 1  ;;  %v16653_v48 = vshll.u32 %v16645_v49, 16  ;;  %v17873_v9 = vld [vmem:[#allocation90_spill] sm:$0xff]  ;;  %v16661_v19 = vld [vmem:[#allocation4 + $0x20] sm:$0xff]  ;;  %v16666_v4 = vshrl.u32 %v16645_v49, 16  ;;  %v17874_v32 = vld [vmem:[#allocation91_spill] sm:$0xff] }
 0x9db   :  { %11139 = vmatprep.subr.bf16.mxu1 %v17790_v44  ;;  %v6117_v30 = vor.u32 %v6116_v58, %v6112_v22  ;;  %v6129_v54 = vrot.slane %v16635_v18, 1  ;;  %v16669_v57 = vshll.u32 %v16661_v19, 16  ;;  %v17875_v61 = vld [vmem:[#allocation92_spill] sm:$0xff]  ;;  %v16678_v47 = vld [vmem:[#allocation4 + $0x28] sm:$0xff]  ;;  %v16683_v55 = vshrl.u32 %v16661_v19, 16  ;;  %v17877_v25 = vld [vmem:[#allocation94_spill] sm:$0xff] }
 0x9dc   :  { %v6125_v29 = vor.u32 %v6123_v41, %v6121_v59  ;;  %v6137_v1 = vrot.slane %v16653_v48, 1  ;;  %v16686_v0 = vshll.u32 %v16678_v47, 16  ;;  %v17876_v20 = vld [vmem:[#allocation93_spill] sm:$0xff]  ;;  %v16695_v60 = vld [vmem:[#allocation4 + $0x30] sm:$0xff]  ;;  %v16700_v28 = vshrl.u32 %v16678_v47, 16  ;;  %v17878_v40 = vld [vmem:[#allocation95_spill] sm:$0xff] }
 0x9dd   :  { %v6122_v13 = vsel %vm1148_vm5, %v6117_v30, %v6121_v59  ;;  %v6133_v11 = vor.u32 %v16650_v53, %v6129_v54  ;;  %v6145_v27 = vrot.slane %v16669_v57, 1  ;;  %v16703_v36 = vshll.u32 %v16695_v60, 16  ;;  %v16711_v45 = vld [vmem:[#allocation4 + $0x38] sm:$0xff]  ;;  %v16724_v42 = vld [vmem:[#allocation4 + $0x40] sm:$0xff] }
 0x9de   :  { %11140 = vmatpush3.bf16.msra.mxu1 %v17865_v50  ;;  %v6130_v51 = vsel %vm1148_vm5, %v6125_v29, %v6129_v54  ;;  %v6141_v10 = vor.u32 %v16666_v4, %v6137_v1  ;;  %v6153_v31 = vrot.slane %v16686_v0, 1  ;;  %v16715_v62 = vshrl.u32 %v16695_v60, 16  ;;  %v16763_v29 = vld [vmem:[#allocation4 + $0x58] sm:$0xff] }
 0x9df   :  { %11141 = vmatprep.subr.bf16.mxu1 %v17790_v44  ;;  %v6138_v52 = vsel %vm1148_vm5, %v6133_v11, %v6137_v1  ;;  %v6149_v34 = vor.u32 %v16683_v55, %v6145_v27  ;;  %v6161_v14 = vrot.slane %v16703_v36, 1  ;;  %v16718_v16 = vshll.u32 %v16711_v45, 16 }
 0x9e0   :  { %v6146_v6 = vsel %vm1148_vm5, %v6141_v10, %v6145_v27  ;;  %v6157_v3 = vor.u32 %v16700_v28, %v6153_v31  ;;  %v16728_v37 = vshrl.u32 %v16711_v45, 16  ;;  %v16731_v2 = vshll.u32 %v16724_v42, 16 }
 0x9e1   :  { %v6154_v56 = vsel %vm1148_vm5, %v6149_v34, %v6153_v31  ;;  %v6165_v26 = vor.u32 %v16715_v62, %v6161_v14  ;;  %v6169_v15 = vrot.slane %v16718_v16, 1  ;;  %v16741_v21 = vshrl.u32 %v16724_v42, 16  ;;  %v17879_v31 = vld [vmem:[#allocation104_spill] sm:$0xff] }
 0x9e2   :  { %11142 = vmatpush3.bf16.msra.mxu1 %v17866_v63  ;;  %v6162_v7 = vsel %vm1148_vm5, %v6157_v3, %v6161_v14  ;;  %v6177_v50 = vrot.slane %v16731_v2, 1  ;;  %v16737_v63 = vld [vmem:[#allocation4 + $0x48] sm:$0xff]  ;;  %v17885_v14 = vld [vmem:[#allocation110_spill] sm:$0xff] }
 0x9e3   :  { %11143 = vmatprep.subr.bf16.mxu1 %v17790_v44  ;;  %v6170_v5 = vsel %vm1148_vm5, %v6165_v26, %v6169_v15  ;;  %v6173_v17 = vor.u32 %v16728_v37, %v6169_v15  ;;  %v16754_v59 = vshrl.u32 %v16737_v63, 16  ;;  %v17884_v3 = vld [vmem:[#allocation109_spill] sm:$0xff]  ;;  %v6092_v26 = vld [vmem:[#allocation4 + $0x60] sm:$0xf] }
 0x9e4   :  { %v6181_v22 = vor.u32 %v16741_v21, %v6177_v50  ;;  %v6499_v15 = vld [vmem:[#allocation4] sm:$0xfe] }
 0x9e6   :  { %11144 = vmatpush3.bf16.msra.mxu1 %v17867_v23  ;;  %v6178_v23 = vsel %vm1148_vm5, %v6173_v17, %v6177_v50  ;;  %v6523_v17 = vrot.slane %v16619_v46, 1 }
 0x9e7   :  { %11145 = vmatprep.subr.bf16.mxu1 %v17790_v44 }
 0x9ea   :  { %11146 = vmatpush3.bf16.msra.mxu1 %v17868_v24  ;;  %v16744_v24 = vshll.u32 %v16737_v63, 16 }
 0x9eb   :  { %11147 = vmatprep.subr.bf16.mxu1 %v17790_v44 }
 0x9ec   :  { %v6185_v58 = vrot.slane %v16744_v24, 1 }
 0x9ee   :  { %11148 = vmatpush3.bf16.msra.mxu1 %v17869_v35  ;;  %v16750_v35 = vld [vmem:[#allocation4 + $0x50] sm:$0xff]  ;;  %v6186_v30 = vsel %vm1148_vm5, %v6181_v22, %v6185_v58  ;;  %v6525_v22 = vrot.slane %v16629_v33, 1 }
 0x9ef   :  { %11149 = vmatprep.subr.bf16.mxu1 %v17790_v44 }
 0x9f2   :  { %11150 = vmatpush3.bf16.msra.mxu1 %v17870_v39  ;;  %v16757_v39 = vshll.u32 %v16750_v35, 16 }
 0x9f3   :  { %11203 = vmatprep.subr.bf16.mxu1 %v17790_v44 }
 0x9f5   :  { %11152 = vmatmul.mubr.bf16.vlgmr.msra.gmra.mrb[52].mxu1 %v6122_v13  ;;  %v6189_v13 = vor.u32 %v16754_v59, %v6185_v58  ;;  %v6526_v58 = vsel %vm1664_vm8, %v6523_v17, %v6525_v22 }
 0x9f6   :  { %11204 = vmatpush3.bf16.msra.mxu1 %v17871_v12  ;;  %11155 = vmatprep.mubr.msk.bf16.mxu1 %vm13328_vm0, %v17790_v44  ;;  %v6193_v12 = vrot.slane %v16757_v39, 1 }
 0x9f7   :  { %11205 = vmatprep.subr.bf16.mxu1 %v17790_v44 }
 0x9f8   :  { %v6194_v54 = vsel %vm1148_vm5, %v6189_v13, %v6193_v12  ;;  %v6527_v13 = vrot.slane %v16645_v49, 1 }
 0x9fa   :  { %11206 = vmatpush3.bf16.msra.mxu1 %v17872_v8  ;;  %v16770_v8 = vshll.u32 %v16763_v29, 16 }
 0x9fb   :  { %11207 = vmatprep.subr.bf16.mxu1 %v17790_v44 }
 0x9fc   :  { %v6201_v1 = vrot.slane %v16770_v8, 1 }
 0x9fd   :  { %11156 = vmatmul.mubr.bf16.gmra.mrb[56].mxu1 %v6130_v51  ;;  %v16767_v51 = vshrl.u32 %v16750_v35, 16 }
 0x9fe   :  { %11159 = vmatprep.mubr.msk.bf16.mxu1 %vm13328_vm0, %v17790_v44  ;;  %11208 = vmatpush3.bf16.msra.mxu1 %v17873_v9  ;;  %v16776_v9 = vld [vmem:[#allocation4 + $0x60] sm:$0x1f] }
 0x9ff   :  { %11209 = vmatprep.subr.bf16.mxu1 %v17790_v44  ;;  %v6197_v11 = vor.u32 %v16767_v51, %v6193_v12  ;;  %v6207_v10 = vshll.u32 %v16776_v9, 16  ;;  %v17889_v12 = vld [vmem:[#allocation114_spill] sm:$0xff] }
 0xa02   :  { %11210 = vmatpush3.bf16.msra.mxu1 %v17874_v32  ;;  %v16780_v32 = vshrl.u32 %v16763_v29, 16 }
 0xa03   :  { %11211 = vmatprep.subr.bf16.mxu1 %v17790_v44 }
 0xa04   :  { %v6205_v27 = vor.u32 %v16780_v32, %v6201_v1 }
 0xa05   :  { %11160 = vmatmul.mubr.bf16.gmra.mrb[60].mxu1 %v6138_v52  ;;  %v6202_v52 = vsel %vm1148_vm5, %v6197_v11, %v6201_v1  ;;  %v17890_v11 = vld [vmem:[#allocation115_spill] sm:$0xff]  ;;  %v6529_v1 = vrot.slane %v16661_v19, 1 }
 0xa06   :  { %11163 = vmatprep.mubr.msk.bf16.mxu1 %vm13328_vm0, %v17790_v44  ;;  %11212 = vmatpush3.bf16.msra.mxu1 %v17875_v61  ;;  %v6209_v61 = vrot.slane %v6207_v10, 1 }
 0xa07   :  { %11213 = vmatprep.subr.bf16.mxu1 %v17790_v44  ;;  %v6530_v10 = vsel %vm1664_vm8, %v6527_v13, %v6529_v1 }
 0xa0a   :  { %11214 = vmatpush3.bf16.msra.mxu1 %v17876_v20  ;;  %v6211_v20 = vshrl.u32 %v16776_v9, 16 }
 0xa0b   :  { %11215 = vmatprep.subr.bf16.mxu1 %v17790_v44 }
 0xa0c   :  { %v6213_v34 = vor.u32 %v6211_v20, %v6209_v61 }
 0xa0d   :  { %11164 = vmatmul.mubr.bf16.gmra.mrb[64].mxu1 %v6146_v6  ;;  %v6210_v6 = vsel %vm1148_vm5, %v6205_v27, %v6209_v61  ;;  %v17892_v27 = vld [vmem:[#allocation117_spill] sm:$0xff]  ;;  %v6531_v61 = vrot.slane %v16678_v47, 1 }
 0xa0e   :  { %11167 = vmatprep.mubr.msk.bf16.mxu1 %vm13328_vm0, %v17790_v44  ;;  %11216 = vmatpush3.bf16.msra.mxu1 %v17877_v25  ;;  %v17880_v25 = vld [vmem:[#allocation105_spill] sm:$0xff] }
 0xa0f   :  { %11217 = vmatprep.subr.bf16.mxu1 %v17790_v44  ;;  %v6532_v20 = vsel %vm1664_vm8, %v6529_v1, %v6531_v61  ;;  %v6763_v1 = vrot.slane %v16645_v49, 5 }
 0xa12   :  { %11218 = vmatpush3.bf16.msra.mxu1 %v17878_v40  ;;  %v17883_v40 = vld [vmem:[#allocation108_spill] sm:$0xff] }
 0xa13   :  { %11271 = vmatprep.subr.bf16.mxu1 %v17790_v44 }
 0xa15   :  { %11168 = vmatmul.mubr.bf16.gmra.mrb[68].mxu1 %v6154_v56  ;;  %v17881_v56 = vld [vmem:[#allocation106_spill] sm:$0xff] }
 0xa16   :  { %11171 = vmatprep.mubr.msk.bf16.mxu1 %vm13328_vm0, %v17790_v44 }
 0xa1d   :  { %11172 = vmatmul.mubr.bf16.gmra.mrb[72].mxu1 %v6162_v7  ;;  %v17886_v7 = vld [vmem:[#allocation111_spill] sm:$0xff] }
 0xa1e   :  { %11175 = vmatprep.mubr.msk.bf16.mxu1 %vm13328_vm0, %v17790_v44 }
 0xa25   :  { %11176 = vmatmul.mubr.bf16.gmra.mrb[76].mxu1 %v6170_v5  ;;  %v6522_v5 = vrot.slane %v6499_v15, 1 }
 0xa26   :  { %11179 = vmatprep.mubr.msk.bf16.mxu1 %vm13328_vm0, %v17790_v44 }
 0xa27   :  { %v6524_v50 = vsel %vm1664_vm8, %v6522_v5, %v6523_v17  ;;  %v6543_v5 = vrot.slane %v16763_v29, 1 }
 0xa2d   :  { %11180 = vmatmul.mubr.bf16.gmra.mrb[80].mxu1 %v6178_v23  ;;  %v17887_v23 = vld [vmem:[#allocation112_spill] sm:$0xff] }
 0xa2e   :  { %11183 = vmatprep.mubr.msk.bf16.mxu1 %vm13328_vm0, %v17790_v44 }
 0xa35   :  { %11184 = vmatmul.mubr.bf16.gmra.mrb[84].mxu1 %v6186_v30  ;;  %v17888_v30 = vld [vmem:[#allocation113_spill] sm:$0xff] }
 0xa36   :  { %11187 = vmatprep.mubr.msk.bf16.mxu1 %vm13328_vm0, %v17790_v44 }
 0xa3d   :  { %11188 = vmatmul.mubr.bf16.gmra.mrb[88].mxu1 %v6194_v54  ;;  %v6528_v54 = vsel %vm1664_vm8, %v6525_v22, %v6527_v13  ;;  %v16910_v22 = vld [vmem:[#allocation4] sm:$0xe0] }
 0xa3e   :  { %11191 = vmatprep.mubr.msk.bf16.mxu1 %vm13328_vm0, %v17790_v44 }
 0xa45   :  { %11192 = vmatmul.mubr.bf16.gmra.mrb[92].mxu1 %v6202_v52  ;;  %v17891_v52 = vld [vmem:[#allocation116_spill] sm:$0xff] }
 0xa46   :  { %11195 = vmatprep.mubr.msk.bf16.mxu1 %vm13328_vm0, %v17790_v44 }
 0xa4d   :  { %11196 = vmatmul.mubr.bf16.gmra.mrb[96].mxu1 %v6210_v6  ;;  %v17893_v6 = vld [vmem:[#allocation118_spill] sm:$0xff] }
 0xa4e   :  { %11199 = vmatprep.mubr.msk.bf16.mxu1 %vm13328_vm0, %v17790_v44 }
 0xa55   :  { %11200 = vmatmul.mubr.bf16.gmra.mrb[100].mxu1 %v6213_v34  ;;  %v17894_v34 = vld [vmem:[#allocation119_spill] sm:$0xff] }
 0xa56   :  { %11219 = vmatprep.mubr.msk.bf16.mxu1 %vm13328_vm0, %v17790_v44 }
 0xa5d   :  { %11220 = vmatmul.mubr.bf16.vlgmr.msra.gmra.mrb[52].mxu1 %v16614_v38  ;;  %v17882_v38 = vld [vmem:[#allocation107_spill] sm:$0xff] }
 0xa5e   :  { %11272 = vmatpush3.bf16.msra.mxu1 %v17879_v31  ;;  %11223 = vmatprep.mubr.msk.bf16.mxu1 %vm13328_vm0, %v17790_v44  ;;  %v6533_v31 = vrot.slane %v16695_v60, 1 }
 0xa5f   :  { %11273 = vmatprep.subr.bf16.mxu1 %v17790_v44 }
 0xa62   :  { %11274 = vmatpush3.bf16.msra.mxu1 %v17880_v25  ;;  %v6534_v25 = vsel %vm1664_vm8, %v6531_v61, %v6533_v31  ;;  %v6765_v61 = vrot.slane %v16661_v19, 5 }
 0xa63   :  { %11275 = vmatprep.subr.bf16.mxu1 %v17790_v44 }
 0xa65   :  { %11224 = vmatmul.mubr.bf16.gmra.mrb[56].mxu1 %v16619_v46 }
 0xa66   :  { %11227 = vmatprep.mubr.msk.bf16.mxu1 %vm13328_vm0, %v17790_v44  ;;  %11276 = vmatpush3.bf16.msra.mxu1 %v17881_v56  ;;  %v6535_v56 = vrot.slane %v16711_v45, 1 }
 0xa67   :  { %11277 = vmatprep.subr.bf16.mxu1 %v17790_v44 }
 0xa6a   :  { %11278 = vmatpush3.bf16.msra.mxu1 %v17882_v38  ;;  %v6536_v38 = vsel %vm1664_vm8, %v6533_v31, %v6535_v56  ;;  %v6767_v31 = vrot.slane %v16678_v47, 5 }
 0xa6b   :  { %11279 = vmatprep.subr.bf16.mxu1 %v17790_v44 }
 0xa6d   :  { %11228 = vmatmul.mubr.bf16.gmra.mrb[60].mxu1 %v16629_v33 }
 0xa6e   :  { %11231 = vmatprep.mubr.msk.bf16.mxu1 %vm13328_vm0, %v17790_v44  ;;  %11280 = vmatpush3.bf16.msra.mxu1 %v17883_v40  ;;  %v6537_v40 = vrot.slane %v16724_v42, 1 }
 0xa6f   :  { %11281 = vmatprep.subr.bf16.mxu1 %v17790_v44 }
 0xa72   :  { %11282 = vmatpush3.bf16.msra.mxu1 %v17884_v3  ;;  %v6538_v3 = vsel %vm1664_vm8, %v6535_v56, %v6537_v40  ;;  %v6768_v56 = vsel %vm1957_vm6, %v6765_v61, %v6767_v31 }
 0xa73   :  { %11283 = vmatprep.subr.bf16.mxu1 %v17790_v44 }
 0xa75   :  { %11232 = vmatmul.mubr.bf16.gmra.mrb[64].mxu1 %v16645_v49 }
 0xa76   :  { %11235 = vmatprep.mubr.msk.bf16.mxu1 %vm13328_vm0, %v17790_v44  ;;  %11284 = vmatpush3.bf16.msra.mxu1 %v17885_v14  ;;  %v6539_v14 = vrot.slane %v16737_v63, 1 }
 0xa77   :  { %11285 = vmatprep.subr.bf16.mxu1 %v17790_v44 }
 0xa7a   :  { %11286 = vmatpush3.bf16.msra.mxu1 %v17886_v7  ;;  %v6540_v7 = vsel %vm1664_vm8, %v6537_v40, %v6539_v14  ;;  %v6769_v40 = vrot.slane %v16695_v60, 5 }
 0xa7b   :  { %11339 = vmatprep.subr.bf16.mxu1 %v17790_v44 }
 0xa7d   :  { %11236 = vmatmul.mubr.bf16.gmra.mrb[68].mxu1 %v16661_v19 }
 0xa7e   :  { %11239 = vmatprep.mubr.msk.bf16.mxu1 %vm13328_vm0, %v17790_v44 }
 0xa85   :  { %11240 = vmatmul.mubr.bf16.gmra.mrb[72].mxu1 %v16678_v47 }
 0xa86   :  { %11243 = vmatprep.mubr.msk.bf16.mxu1 %vm13328_vm0, %v17790_v44 }
 0xa8d   :  { %11244 = vmatmul.mubr.bf16.gmra.mrb[76].mxu1 %v16695_v60 }
 0xa8e   :  { %11247 = vmatprep.mubr.msk.bf16.mxu1 %vm13328_vm0, %v17790_v44 }
 0xa95   :  { %11248 = vmatmul.mubr.bf16.gmra.mrb[80].mxu1 %v16711_v45 }
 0xa96   :  { %11251 = vmatprep.mubr.msk.bf16.mxu1 %vm13328_vm0, %v17790_v44 }
 0xa9d   :  { %11252 = vmatmul.mubr.bf16.gmra.mrb[84].mxu1 %v16724_v42 }
 0xa9e   :  { %11255 = vmatprep.mubr.msk.bf16.mxu1 %vm13328_vm0, %v17790_v44 }
 0xaa5   :  { %11256 = vmatmul.mubr.bf16.gmra.mrb[88].mxu1 %v16737_v63 }
 0xaa6   :  { %11259 = vmatprep.mubr.msk.bf16.mxu1 %vm13328_vm0, %v17790_v44 }
 0xaad   :  { %11260 = vmatmul.mubr.bf16.gmra.mrb[92].mxu1 %v16750_v35 }
 0xaae   :  { %11263 = vmatprep.mubr.msk.bf16.mxu1 %vm13328_vm0, %v17790_v44 }
 0xab5   :  { %11264 = vmatmul.mubr.bf16.gmra.mrb[96].mxu1 %v16763_v29 }
 0xab6   :  { %11267 = vmatprep.mubr.msk.bf16.mxu1 %vm13328_vm0, %v17790_v44 }
 0xabd   :  { %11268 = vmatmul.mubr.bf16.gmra.mrb[100].mxu1 %v6092_v26  ;;  %v6541_v26 = vrot.slane %v16750_v35, 1 }
 0xabe   :  { %11287 = vmatprep.mubr.msk.bf16.mxu1 %vm13328_vm0, %v17790_v44 }
 0xabf   :  { %v6542_v15 = vsel %vm1664_vm8, %v6539_v14, %v6541_v26  ;;  %v6544_v17 = vsel %vm1664_vm8, %v6541_v26, %v6543_v5  ;;  %v6771_v14 = vrot.slane %v16711_v45, 5  ;;  %v6773_v26 = vrot.slane %v16724_v42, 5 }
 0xac5   :  { %11288 = vmatmul.mubr.bf16.vlgmr.msra.gmra.mrb[52].mxu1 %v6524_v50  ;;  %v6545_v50 = vrot.slane %v16776_v9, 1  ;;  %v17895_v9 = vld [vmem:[#allocation120_spill] sm:$0xff] }
 0xac6   :  { %11340 = vmatpush3.bf16.msra.mxu1 %v17887_v23  ;;  %11291 = vmatprep.mubr.msk.bf16.mxu1 %vm13328_vm0, %v17790_v44 }
 0xac7   :  { %11341 = vmatprep.subr.bf16.mxu1 %v17790_v44  ;;  %v6546_v23 = vsel %vm1664_vm8, %v6543_v5, %v6545_v50  ;;  %v6775_v5 = vrot.slane %v16737_v63, 5 }
 0xaca   :  { %11342 = vmatpush3.bf16.msra.mxu1 %v17888_v30  ;;  %v6759_v30 = vrot.slane %v16619_v46, 5 }
 0xacb   :  { %11343 = vmatprep.subr.bf16.mxu1 %v17790_v44 }
 0xacd   :  { %11292 = vmatmul.mubr.bf16.gmra.mrb[56].mxu1 %v6526_v58  ;;  %v6758_v58 = vrot.slane %v16910_v22, 5 }
 0xace   :  { %11295 = vmatprep.mubr.msk.bf16.mxu1 %vm13328_vm0, %v17790_v44  ;;  %11344 = vmatpush3.bf16.msra.mxu1 %v17889_v12  ;;  %v6761_v12 = vrot.slane %v16629_v33, 5 }
 0xacf   :  { %11345 = vmatprep.subr.bf16.mxu1 %v17790_v44  ;;  %v6760_v13 = vsel %vm1957_vm6, %v6758_v58, %v6759_v30  ;;  %v6779_v58 = vrot.slane %v16763_v29, 5 }
 0xad2   :  { %11346 = vmatpush3.bf16.msra.mxu1 %v17890_v11  ;;  %v17896_v11 = vld [vmem:[#allocation121_spill] sm:$0xff] }
 0xad3   :  { %11347 = vmatprep.subr.bf16.mxu1 %v17790_v44 }
 0xad5   :  { %11296 = vmatmul.mubr.bf16.gmra.mrb[60].mxu1 %v6528_v54  ;;  %v6762_v54 = vsel %vm1957_vm6, %v6759_v30, %v6761_v12 }
 0xad6   :  { %11299 = vmatprep.mubr.msk.bf16.mxu1 %vm13328_vm0, %v17790_v44  ;;  %11348 = vmatpush3.bf16.msra.mxu1 %v17891_v52  ;;  %v17897_v52 = vld [vmem:[#allocation122_spill] sm:$0xff] }
 0xad7   :  { %11349 = vmatprep.subr.bf16.mxu1 %v17790_v44 }
 0xada   :  { %11350 = vmatpush3.bf16.msra.mxu1 %v17892_v27  ;;  %v17898_v27 = vld [vmem:[#allocation123_spill] sm:$0xff] }
 0xadb   :  { %11351 = vmatprep.subr.bf16.mxu1 %v17790_v44 }
 0xadd   :  { %11300 = vmatmul.mubr.bf16.gmra.mrb[64].mxu1 %v6530_v10  ;;  %v6764_v10 = vsel %vm1957_vm6, %v6761_v12, %v6763_v1 }
 0xade   :  { %11303 = vmatprep.mubr.msk.bf16.mxu1 %vm13328_vm0, %v17790_v44  ;;  %11352 = vmatpush3.bf16.msra.mxu1 %v17893_v6  ;;  %v17899_v6 = vld [vmem:[#allocation124_spill] sm:$0xff] }
 0xadf   :  { %11353 = vmatprep.subr.bf16.mxu1 %v17790_v44 }
 0xae2   :  { %11354 = vmatpush3.bf16.msra.mxu1 %v17894_v34  ;;  %v17900_v34 = vld [vmem:[#allocation125_spill] sm:$0xff] }
 0xae3   :  { %11407 = vmatprep.subr.bf16.mxu1 %v17790_v44 }
 0xae5   :  { %11304 = vmatmul.mubr.bf16.gmra.mrb[68].mxu1 %v6532_v20  ;;  %v6766_v20 = vsel %vm1957_vm6, %v6763_v1, %v6765_v61  ;;  %v6970_v1 = vshrl.u32 %v16910_v22, 16 }
 0xae6   :  { %11307 = vmatprep.mubr.msk.bf16.mxu1 %vm13328_vm0, %v17790_v44 }
 0xaed   :  { %11308 = vmatmul.mubr.bf16.gmra.mrb[72].mxu1 %v6534_v25  ;;  %v17901_v25 = vld [vmem:[#allocation126_spill] sm:$0xff] }
 0xaee   :  { %11311 = vmatprep.mubr.msk.bf16.mxu1 %vm13328_vm0, %v17790_v44 }
 0xaf5   :  { %11312 = vmatmul.mubr.bf16.gmra.mrb[76].mxu1 %v6536_v38  ;;  %v17902_v38 = vld [vmem:[#allocation127_spill] sm:$0xff] }
 0xaf6   :  { %11315 = vmatprep.mubr.msk.bf16.mxu1 %vm13328_vm0, %v17790_v44 }
 0xafd   :  { %11316 = vmatmul.mubr.bf16.gmra.mrb[80].mxu1 %v6538_v3  ;;  %v6770_v3 = vsel %vm1957_vm6, %v6767_v31, %v6769_v40 }
 0xafe   :  { %11319 = vmatprep.mubr.msk.bf16.mxu1 %vm13328_vm0, %v17790_v44 }
 0xb05   :  { %11320 = vmatmul.mubr.bf16.gmra.mrb[84].mxu1 %v6540_v7  ;;  %v6772_v7 = vsel %vm1957_vm6, %v6769_v40, %v6771_v14  ;;  %v17904_v40 = vld [vmem:[#allocation129_spill] sm:$0xff] }
 0xb06   :  { %11323 = vmatprep.mubr.msk.bf16.mxu1 %vm13328_vm0, %v17790_v44 }
 0xb0d   :  { %11324 = vmatmul.mubr.bf16.gmra.mrb[88].mxu1 %v6542_v15  ;;  %v6774_v15 = vsel %vm1957_vm6, %v6771_v14, %v6773_v26  ;;  %v7001_v14 = vrot.slane %v16653_v48, 6 }
 0xb0e   :  { %11327 = vmatprep.mubr.msk.bf16.mxu1 %vm13328_vm0, %v17790_v44 }
 0xb15   :  { %11328 = vmatmul.mubr.bf16.gmra.mrb[92].mxu1 %v6544_v17  ;;  %v6776_v17 = vsel %vm1957_vm6, %v6773_v26, %v6775_v5  ;;  %v17905_v26 = vld [vmem:[#allocation130_spill] sm:$0xff] }
 0xb16   :  { %11331 = vmatprep.mubr.msk.bf16.mxu1 %vm13328_vm0, %v17790_v44 }
 0xb1d   :  { %11332 = vmatmul.mubr.bf16.gmra.mrb[96].mxu1 %v6546_v23 }
 0xb1e   :  { %11335 = vmatprep.mubr.msk.bf16.mxu1 %vm13328_vm0, %v17790_v44 }
 0xb25   :  { %11336 = vmatmul.mubr.bf16.gmra.mrb[100].mxu1 %v6545_v50  ;;  %v6777_v50 = vrot.slane %v16750_v35, 5 }
 0xb26   :  { %11355 = vmatprep.mubr.msk.bf16.mxu1 %vm13328_vm0, %v17790_v44 }
 0xb27   :  { %v6778_v23 = vsel %vm1957_vm6, %v6775_v5, %v6777_v50  ;;  %v6780_v30 = vsel %vm1957_vm6, %v6777_v50, %v6779_v58  ;;  %v7007_v5 = vrot.slane %v16683_v55, 5  ;;  %v17906_v50 = vld [vmem:[#allocation131_spill] sm:$0xff] }
 0xb2d   :  { %11356 = vmatmul.mubr.bf16.vlgmr.msra.gmra.mrb[52].mxu1 %v6760_v13  ;;  %v16973_v13 = vld [vmem:[#allocation4 + $0x60] sm:$0xff] }
 0xb2e   :  { %11408 = vmatpush3.bf16.msra.mxu1 %v17895_v9  ;;  %11359 = vmatprep.mubr.msk.bf16.mxu1 %vm13328_vm0, %v17790_v44  ;;  %v6781_v9 = vrot.slane %v16973_v13, 5 }
 0xb2f   :  { %11409 = vmatprep.subr.bf16.mxu1 %v17790_v44 }
 0xb30   :  { %v6782_v12 = vsel %vm1957_vm6, %v6779_v58, %v6781_v9  ;;  %v17907_v58 = vld [vmem:[#allocation132_spill] sm:$0xff] }
 0xb32   :  { %11410 = vmatpush3.bf16.msra.mxu1 %v17896_v11 }
 0xb33   :  { %11411 = vmatprep.subr.bf16.mxu1 %v17790_v44 }
 0xb35   :  { %11360 = vmatmul.mubr.bf16.gmra.mrb[56].mxu1 %v6762_v54  ;;  %v6734_v54 = vld [vmem:[#allocation4 + $0x68] sm:$0x1] }
 0xb36   :  { %11363 = vmatprep.mubr.msk.bf16.mxu1 %vm13328_vm0, %v17790_v44  ;;  %11412 = vmatpush3.bf16.msra.mxu1 %v17897_v52  ;;  %v6783_v11 = vrot.slane %v6734_v54, 5  ;;  %v6973_v52 = vshll.u32 %v16910_v22, 16  ;;  %v6989_v22 = vrot.slane %v16650_v53, 5  ;;  %v17908_v54 = vld [vmem:[#allocation133_spill] sm:$0xff] }
 0xb37   :  { %11413 = vmatprep.subr.bf16.mxu1 %v17790_v44 }
 0xb38   :  { %v6975_v61 = vrot.slane %v6973_v52, 6 }
 0xb3a   :  { %11414 = vmatpush3.bf16.msra.mxu1 %v17898_v27  ;;  %v6972_v27 = vrot.slane %v6970_v1, 5  ;;  %v17909_v1 = vld [vmem:[#allocation134_spill] sm:$0xff] }
 0xb3b   :  { %11415 = vmatprep.subr.bf16.mxu1 %v17790_v44 }
 0xb3d   :  { %11364 = vmatmul.mubr.bf16.gmra.mrb[60].mxu1 %v6764_v10  ;;  %v6784_v10 = vsel %vm1957_vm6, %v6781_v9, %v6783_v11  ;;  %v7016_v9 = vrot.slane %v16700_v28, 5 }
 0xb3e   :  { %11367 = vmatprep.mubr.msk.bf16.mxu1 %vm13328_vm0, %v17790_v44  ;;  %11416 = vmatpush3.bf16.msra.mxu1 %v17899_v6  ;;  %v6980_v6 = vrot.slane %v6123_v41, 5 }
 0xb3f   :  { %11417 = vmatprep.subr.bf16.mxu1 %v17790_v44 }
 0xb42   :  { %11418 = vmatpush3.bf16.msra.mxu1 %v17900_v34  ;;  %v6976_v34 = vor.u32 %v6975_v61, %v6972_v27  ;;  %v7028_v27 = vrot.slane %v16703_v36, 6  ;;  %v17910_v61 = vld [vmem:[#allocation135_spill] sm:$0xff] }
 0xb43   :  { %11419 = vmatprep.subr.bf16.mxu1 %v17790_v44 }
 0xb45   :  { %11368 = vmatmul.mubr.bf16.gmra.mrb[64].mxu1 %v6766_v20  ;;  %v6983_v20 = vrot.slane %v6119_v43, 6 }
 0xb46   :  { %11371 = vmatprep.mubr.msk.bf16.mxu1 %vm13328_vm0, %v17790_v44  ;;  %11420 = vmatpush3.bf16.msra.mxu1 %v17901_v25 }
 0xb47   :  { %11421 = vmatprep.subr.bf16.mxu1 %v17790_v44  ;;  %v6984_v31 = vor.u32 %v6983_v20, %v6980_v6 }
 0xb49   :  { %v6985_v25 = vsel %vm2225_vm12, %v6976_v34, %v6984_v31  ;;  %v7034_v34 = vrot.slane %v16728_v37, 5 }
 0xb4a   :  { %11422 = vmatpush3.bf16.msra.mxu1 %v17902_v38  ;;  %v17903_v38 = vld [vmem:[#allocation128_spill] sm:$0xff] }
 0xb4b   :  { %11475 = vmatprep.subr.bf16.mxu1 %v17790_v44 }
 0xb4d   :  { %11372 = vmatmul.mubr.bf16.gmra.mrb[68].mxu1 %v6768_v56  ;;  %v6992_v56 = vrot.slane %v16635_v18, 6 }
 0xb4e   :  { %11375 = vmatprep.mubr.msk.bf16.mxu1 %vm13328_vm0, %v17790_v44 }
 0xb4f   :  { %v6993_v41 = vor.u32 %v6992_v56, %v6989_v22  ;;  %v7043_v56 = vrot.slane %v16741_v21, 5 }
 0xb51   :  { %v6994_v43 = vsel %vm2225_vm12, %v6984_v31, %v6993_v41  ;;  %v7037_v31 = vrot.slane %v16718_v16, 6 }
 0xb55   :  { %11376 = vmatmul.mubr.bf16.gmra.mrb[72].mxu1 %v6770_v3  ;;  %v6998_v3 = vrot.slane %v16666_v4, 5 }
 0xb56   :  { %11379 = vmatprep.mubr.msk.bf16.mxu1 %vm13328_vm0, %v17790_v44 }
 0xb5d   :  { %11380 = vmatmul.mubr.bf16.gmra.mrb[76].mxu1 %v6772_v7  ;;  %v7002_v7 = vor.u32 %v7001_v14, %v6998_v3  ;;  %v7055_v3 = vrot.slane %v16744_v24, 6 }
 0xb5e   :  { %11383 = vmatprep.mubr.msk.bf16.mxu1 %vm13328_vm0, %v17790_v44 }
 0xb65   :  { %11384 = vmatmul.mubr.bf16.gmra.mrb[80].mxu1 %v6774_v15  ;;  %v7003_v15 = vsel %vm2225_vm12, %v6993_v41, %v7002_v7 }
 0xb66   :  { %11387 = vmatprep.mubr.msk.bf16.mxu1 %vm13328_vm0, %v17790_v44 }
 0xb6d   :  { %11388 = vmatmul.mubr.bf16.gmra.mrb[84].mxu1 %v6776_v17  ;;  %v7010_v17 = vrot.slane %v16669_v57, 6 }
 0xb6e   :  { %11391 = vmatprep.mubr.msk.bf16.mxu1 %vm13328_vm0, %v17790_v44 }
 0xb75   :  { %11392 = vmatmul.mubr.bf16.gmra.mrb[88].mxu1 %v6778_v23  ;;  %v7011_v23 = vor.u32 %v7010_v17, %v7007_v5 }
 0xb76   :  { %11395 = vmatprep.mubr.msk.bf16.mxu1 %vm13328_vm0, %v17790_v44 }
 0xb7d   :  { %11396 = vmatmul.mubr.bf16.gmra.mrb[92].mxu1 %v6780_v30  ;;  %v7012_v30 = vsel %vm2225_vm12, %v7002_v7, %v7011_v23 }
 0xb7e   :  { %11399 = vmatprep.mubr.msk.bf16.mxu1 %vm13328_vm0, %v17790_v44 }
 0xb85   :  { %11400 = vmatmul.mubr.bf16.gmra.mrb[96].mxu1 %v6782_v12  ;;  %v7019_v12 = vrot.slane %v16686_v0, 6 }
 0xb86   :  { %11403 = vmatprep.mubr.msk.bf16.mxu1 %vm13328_vm0, %v17790_v44 }
 0xb87   :  { %v7020_v11 = vor.u32 %v7019_v12, %v7016_v9  ;;  %v7080_v9 = vshll.u32 %v16973_v13, 16 }
 0xb89   :  { %v7021_v52 = vsel %vm2225_vm12, %v7011_v23, %v7020_v11  ;;  %v7073_v23 = vrot.slane %v16770_v8, 6 }
 0xb8d   :  { %11404 = vmatmul.mubr.bf16.gmra.mrb[100].mxu1 %v6784_v10  ;;  %v7025_v10 = vrot.slane %v16715_v62, 5 }
 0xb8e   :  { %11423 = vmatprep.mubr.msk.bf16.mxu1 %vm13328_vm0, %v17790_v44 }
 0xb8f   :  { %v7029_v6 = vor.u32 %v7028_v27, %v7025_v10 }
 0xb91   :  { %v7030_v20 = vsel %vm2225_vm12, %v7020_v11, %v7029_v6  ;;  %v7082_v11 = vrot.slane %v7080_v9, 6 }
 0xb95   :  { %11424 = vmatmul.mubr.bf16.vlgmr.msra.gmra.mrb[52].mxu1 %v6985_v25  ;;  %v7038_v25 = vor.u32 %v7037_v31, %v7034_v34 }
 0xb96   :  { %11476 = vmatpush3.bf16.msra.mxu1 %v17903_v38  ;;  %11427 = vmatprep.mubr.msk.bf16.mxu1 %vm13328_vm0, %v17790_v44  ;;  %v7046_v38 = vrot.slane %v16731_v2, 6 }
 0xb97   :  { %11477 = vmatprep.subr.bf16.mxu1 %v17790_v44  ;;  %v7039_v22 = vsel %vm2225_vm12, %v7029_v6, %v7038_v25 }
 0xb98   :  { %v7047_v41 = vor.u32 %v7046_v38, %v7043_v56  ;;  %v7281_v56 = vrot.slane %v16619_v46, 6  ;;  %v7285_v46 = vrot.slane %v16645_v49, 6 }
 0xb9a   :  { %11478 = vmatpush3.bf16.msra.mxu1 %v17904_v40  ;;  %v7052_v40 = vrot.slane %v16754_v59, 5 }
 0xb9b   :  { %11479 = vmatprep.subr.bf16.mxu1 %v17790_v44 }
 0xb9c   :  { %v7056_v14 = vor.u32 %v7055_v3, %v7052_v40  ;;  %v17912_v3 = vld [vmem:[#allocation137_spill] sm:$0xff] }
 0xb9d   :  { %11428 = vmatmul.mubr.bf16.gmra.mrb[56].mxu1 %v6994_v43  ;;  %v7048_v43 = vsel %vm2225_vm12, %v7038_v25, %v7047_v41  ;;  %v7268_v25 = vld [vmem:[#allocation4] sm:$0xc0] }
 0xb9e   :  { %11431 = vmatprep.mubr.msk.bf16.mxu1 %vm13328_vm0, %v17790_v44  ;;  %11480 = vmatpush3.bf16.msra.mxu1 %v17905_v26  ;;  %v7057_v7 = vsel %vm2225_vm12, %v7047_v41, %v7056_v14  ;;  %v7061_v26 = vrot.slane %v16767_v51, 5  ;;  %v17911_v41 = vld [vmem:[#allocation136_spill] sm:$0xff] }
 0xb9f   :  { %11481 = vmatprep.subr.bf16.mxu1 %v17790_v44 }
 0xba2   :  { %11482 = vmatpush3.bf16.msra.mxu1 %v17906_v50  ;;  %v7070_v50 = vrot.slane %v16780_v32, 5 }
 0xba3   :  { %11483 = vmatprep.subr.bf16.mxu1 %v17790_v44 }
 0xba5   :  { %11432 = vmatmul.mubr.bf16.gmra.mrb[60].mxu1 %v7003_v15  ;;  %v7064_v15 = vrot.slane %v16757_v39, 6 }
 0xba6   :  { %11435 = vmatprep.mubr.msk.bf16.mxu1 %vm13328_vm0, %v17790_v44  ;;  %11484 = vmatpush3.bf16.msra.mxu1 %v17907_v58  ;;  %v7074_v58 = vor.u32 %v7073_v23, %v7070_v50  ;;  %v17916_v50 = vld [vmem:[#allocation141_spill] sm:$0xff]  ;;  %v7289_v23 = vrot.slane %v16678_v47, 6 }
 0xba7   :  { %11485 = vmatprep.subr.bf16.mxu1 %v17790_v44  ;;  %v7065_v5 = vor.u32 %v7064_v15, %v7061_v26  ;;  %v17914_v26 = vld [vmem:[#allocation139_spill] sm:$0xff]  ;;  %v7287_v15 = vrot.slane %v16661_v19, 6 }
 0xba9   :  { %v7066_v17 = vsel %vm2225_vm12, %v7056_v14, %v7065_v5  ;;  %v7075_v12 = vsel %vm2225_vm12, %v7065_v5, %v7074_v58  ;;  %v17913_v14 = vld [vmem:[#allocation138_spill] sm:$0xff]  ;;  %v17915_v5 = vld [vmem:[#allocation140_spill] sm:$0xff] }
 0xbaa   :  { %11486 = vmatpush3.bf16.msra.mxu1 %v17908_v54 }
 0xbab   :  { %11487 = vmatprep.subr.bf16.mxu1 %v17790_v44 }
 0xbad   :  { %11436 = vmatmul.mubr.bf16.gmra.mrb[64].mxu1 %v7012_v30  ;;  %v7077_v30 = vshrl.u32 %v16973_v13, 16 }
 0xbae   :  { %11439 = vmatprep.mubr.msk.bf16.mxu1 %vm13328_vm0, %v17790_v44  ;;  %11488 = vmatpush3.bf16.msra.mxu1 %v17909_v1  ;;  %v17063_v1 = vld [vmem:[#allocation4 + $0x68] sm:$0x3] }
 0xbaf   :  { %11489 = vmatprep.subr.bf16.mxu1 %v17790_v44  ;;  %v7079_v54 = vrot.slane %v7077_v30, 5  ;;  %v7086_v10 = vshrl.u32 %v17063_v1, 16  ;;  %v7089_v27 = vshll.u32 %v17063_v1, 16 }
 0xbb1   :  { %v7088_v6 = vrot.slane %v7086_v10, 5  ;;  %v7293_v10 = vrot.slane %v16711_v45, 6 }
 0xbb2   :  { %11490 = vmatpush3.bf16.msra.mxu1 %v17910_v61 }
 0xbb3   :  { %11543 = vmatprep.subr.bf16.mxu1 %v17790_v44 }
 0xbb5   :  { %11440 = vmatmul.mubr.bf16.gmra.mrb[68].mxu1 %v7021_v52  ;;  %v7083_v52 = vor.u32 %v7082_v11, %v7079_v54  ;;  %v17918_v54 = vld [vmem:[#allocation143_spill] sm:$0xff]  ;;  %v7291_v11 = vrot.slane %v16695_v60, 6 }
 0xbb6   :  { %11443 = vmatprep.mubr.msk.bf16.mxu1 %vm13328_vm0, %v17790_v44 }
 0xbb7   :  { %v7084_v61 = vsel %vm2225_vm12, %v7074_v58, %v7083_v52  ;;  %v17917_v58 = vld [vmem:[#allocation142_spill] sm:$0xff] }
 0xbbd   :  { %11444 = vmatmul.mubr.bf16.gmra.mrb[72].mxu1 %v7030_v20  ;;  %v7091_v20 = vrot.slane %v7089_v27, 6  ;;  %v7294_v27 = vsel %vm2593_vm2, %v7291_v11, %v7293_v10 }
 0xbbe   :  { %11447 = vmatprep.mubr.msk.bf16.mxu1 %vm13328_vm0, %v17790_v44 }
 0xbbf   :  { %v7092_v34 = vor.u32 %v7091_v20, %v7088_v6  ;;  %v7297_v20 = vrot.slane %v16737_v63, 6 }
 0xbc1   :  { %v7093_v31 = vsel %vm2225_vm12, %v7083_v52, %v7092_v34  ;;  %v7292_v52 = vsel %vm2593_vm2, %v7289_v23, %v7291_v11  ;;  %v17925_v11 = vld [vmem:[#allocation150_spill] sm:$0xff] }
 0xbc5   :  { %11448 = vmatmul.mubr.bf16.gmra.mrb[76].mxu1 %v7039_v22  ;;  %v7280_v22 = vrot.slane %v7268_v25, 6 }
 0xbc6   :  { %11451 = vmatprep.mubr.msk.bf16.mxu1 %vm13328_vm0, %v17790_v44 }
 0xbc7   :  { %v7282_v38 = vsel %vm2593_vm2, %v7280_v22, %v7281_v56  ;;  %v7301_v22 = vrot.slane %v16763_v29, 6 }
 0xbcd   :  { %11452 = vmatmul.mubr.bf16.gmra.mrb[80].mxu1 %v7048_v43  ;;  %v7283_v43 = vrot.slane %v16629_v33, 6 }
 0xbce   :  { %11455 = vmatprep.mubr.msk.bf16.mxu1 %vm13328_vm0, %v17790_v44 }
 0xbcf   :  { %v7284_v40 = vsel %vm2593_vm2, %v7281_v56, %v7283_v43 }
 0xbd5   :  { %11456 = vmatmul.mubr.bf16.gmra.mrb[84].mxu1 %v7057_v7  ;;  %v7286_v7 = vsel %vm2593_vm2, %v7283_v43, %v7285_v46  ;;  %v7305_v43 = vrot.slane %v17063_v1, 6  ;;  %v7497_v1 = vrot.slane %v16645_v49, 2 }
 0xbd6   :  { %11459 = vmatprep.mubr.msk.bf16.mxu1 %vm13328_vm0, %v17790_v44 }
 0xbdd   :  { %11460 = vmatmul.mubr.bf16.gmra.mrb[88].mxu1 %v7066_v17  ;;  %v7288_v17 = vsel %vm2593_vm2, %v7285_v46, %v7287_v15 }
 0xbde   :  { %11463 = vmatprep.mubr.msk.bf16.mxu1 %vm13328_vm0, %v17790_v44 }
 0xbe5   :  { %11464 = vmatmul.mubr.bf16.gmra.mrb[92].mxu1 %v7075_v12  ;;  %v7290_v12 = vsel %vm2593_vm2, %v7287_v15, %v7289_v23  ;;  %v7501_v23 = vrot.slane %v16678_v47, 2 }
 0xbe6   :  { %11467 = vmatprep.mubr.msk.bf16.mxu1 %vm13328_vm0, %v17790_v44 }
 0xbed   :  { %11468 = vmatmul.mubr.bf16.gmra.mrb[96].mxu1 %v7084_v61  ;;  %v7295_v61 = vrot.slane %v16724_v42, 6 }
 0xbee   :  { %11471 = vmatprep.mubr.msk.bf16.mxu1 %vm13328_vm0, %v17790_v44 }
 0xbef   :  { %v7296_v6 = vsel %vm2593_vm2, %v7293_v10, %v7295_v61  ;;  %v7298_v34 = vsel %vm2593_vm2, %v7295_v61, %v7297_v20  ;;  %v7505_v10 = vrot.slane %v16711_v45, 2  ;;  %v7511_v45 = vrot.slane %v16750_v35, 2 }
 0xbf5   :  { %11472 = vmatmul.mubr.bf16.gmra.mrb[100].mxu1 %v7093_v31  ;;  %v7299_v31 = vrot.slane %v16750_v35, 6 }
 0xbf6   :  { %11491 = vmatprep.mubr.msk.bf16.mxu1 %vm13328_vm0, %v17790_v44 }
 0xbf7   :  { %v7300_v25 = vsel %vm2593_vm2, %v7297_v20, %v7299_v31  ;;  %v7302_v56 = vsel %vm2593_vm2, %v7299_v31, %v7301_v22 }
 0xbfd   :  { %11492 = vmatmul.mubr.bf16.vlgmr.msra.gmra.mrb[52].mxu1 %v7282_v38  ;;  %v7303_v38 = vrot.slane %v16973_v13, 6 }
 0xbfe   :  { %11544 = vmatpush3.bf16.msra.mxu1 %v17911_v41  ;;  %11495 = vmatprep.mubr.msk.bf16.mxu1 %vm13328_vm0, %v17790_v44 }
 0xbff   :  { %11545 = vmatprep.subr.bf16.mxu1 %v17790_v44  ;;  %v7304_v41 = vsel %vm2593_vm2, %v7301_v22, %v7303_v38  ;;  %v7482_v22 = vld [vmem:[#allocation4 + $0x68] sm:$0x3f] }
 0xc00   :  { %v7517_v35 = vrot.slane %v7482_v22, 2  ;;  %v17280_v22 = vld [vmem:[#allocation4 + $0x68] sm:$0x7f] }
 0xc02   :  { %11546 = vmatpush3.bf16.msra.mxu1 %v17912_v3  ;;  %v17141_v3 = vld [vmem:[#allocation4 + $0x8] sm:$0xfc] }
 0xc03   :  { %11547 = vmatprep.subr.bf16.mxu1 %v17790_v44  ;;  %v7494_v46 = vrot.slane %v17141_v3, 2 }
 0xc05   :  { %11496 = vmatmul.mubr.bf16.gmra.mrb[56].mxu1 %v7284_v40  ;;  %v7306_v40 = vsel %vm2593_vm2, %v7303_v38, %v7305_v43  ;;  %v7707_v38 = vshll.u32 %v17141_v3, 16 }
 0xc06   :  { %11499 = vmatprep.mubr.msk.bf16.mxu1 %vm13328_vm0, %v17790_v44  ;;  %11548 = vmatpush3.bf16.msra.mxu1 %v17913_v14  ;;  %v7495_v14 = vrot.slane %v16629_v33, 2  ;;  %v7499_v33 = vrot.slane %v16661_v19, 2 }
 0xc07   :  { %11549 = vmatprep.subr.bf16.mxu1 %v17790_v44  ;;  %v7709_v43 = vrot.slane %v7707_v38, 3 }
 0xc08   :  { %v7498_v15 = vsel %vm2864_vm7, %v7495_v14, %v7497_v1  ;;  %v7500_v49 = vsel %vm2864_vm7, %v7497_v1, %v7499_v33  ;;  %v7502_v19 = vsel %vm2864_vm7, %v7499_v33, %v7501_v23  ;;  %v7715_v1 = vrot.slane %v16666_v4, 2  ;;  %v17929_v4 = vld [vmem:[#allocation154_spill] sm:$0xff] }
 0xc09   :  { %v7719_v33 = vrot.slane %v16683_v55, 2  ;;  %v17930_v55 = vld [vmem:[#allocation155_spill] sm:$0xff] }
 0xc0a   :  { %11550 = vmatpush3.bf16.msra.mxu1 %v17914_v26  ;;  %v17919_v26 = vld [vmem:[#allocation144_spill] sm:$0xff] }
 0xc0b   :  { %11551 = vmatprep.subr.bf16.mxu1 %v17790_v44 }
 0xc0d   :  { %11500 = vmatmul.mubr.bf16.gmra.mrb[60].mxu1 %v7286_v7  ;;  %v7496_v7 = vsel %vm2864_vm7, %v7494_v46, %v7495_v14  ;;  %v7712_v46 = vrot.slane %v16635_v18, 3 }
 0xc0e   :  { %11503 = vmatprep.mubr.msk.bf16.mxu1 %vm13328_vm0, %v17790_v44  ;;  %11552 = vmatpush3.bf16.msra.mxu1 %v17915_v5  ;;  %v17920_v5 = vld [vmem:[#allocation145_spill] sm:$0xff] }
 0xc0f   :  { %11553 = vmatprep.subr.bf16.mxu1 %v17790_v44 }
 0xc12   :  { %11554 = vmatpush3.bf16.msra.mxu1 %v17916_v50  ;;  %v17922_v50 = vld [vmem:[#allocation147_spill] sm:$0xff] }
 0xc13   :  { %11555 = vmatprep.subr.bf16.mxu1 %v17790_v44 }
 0xc15   :  { %11504 = vmatmul.mubr.bf16.gmra.mrb[64].mxu1 %v7288_v17  ;;  %v17921_v17 = vld [vmem:[#allocation146_spill] sm:$0xff] }
 0xc16   :  { %11507 = vmatprep.mubr.msk.bf16.mxu1 %vm13328_vm0, %v17790_v44  ;;  %11556 = vmatpush3.bf16.msra.mxu1 %v17917_v58  ;;  %v17923_v58 = vld [vmem:[#allocation148_spill] sm:$0xff] }
 0xc17   :  { %11557 = vmatprep.subr.bf16.mxu1 %v17790_v44 }
 0xc1a   :  { %11558 = vmatpush3.bf16.msra.mxu1 %v17918_v54  ;;  %v7503_v54 = vrot.slane %v16695_v60, 2  ;;  %v7507_v60 = vrot.slane %v16724_v42, 2  ;;  %v7513_v42 = vrot.slane %v16763_v29, 2  ;;  %v7704_v29 = vshrl.u32 %v17141_v3, 16  ;;  %v17927_v3 = vld [vmem:[#allocation152_spill] sm:$0xff] }
 0xc1b   :  { %11611 = vmatprep.subr.bf16.mxu1 %v17790_v44 }
 0xc1c   :  { %v7504_v47 = vsel %vm2864_vm7, %v7501_v23, %v7503_v54  ;;  %v7508_v61 = vsel %vm2864_vm7, %v7505_v10, %v7507_v60  ;;  %v7514_v31 = vsel %vm2864_vm7, %v7511_v45, %v7513_v42  ;;  %v7724_v23 = vrot.slane %v16686_v0, 3  ;;  %v17932_v0 = vld [vmem:[#allocation157_spill] sm:$0xff] }
 0xc1d   :  { %11508 = vmatmul.mubr.bf16.gmra.mrb[68].mxu1 %v7290_v12  ;;  %v17924_v12 = vld [vmem:[#allocation149_spill] sm:$0xff] }
 0xc1e   :  { %11511 = vmatprep.mubr.msk.bf16.mxu1 %vm13328_vm0, %v17790_v44 }
 0xc25   :  { %11512 = vmatmul.mubr.bf16.gmra.mrb[72].mxu1 %v7292_v52  ;;  %v17926_v52 = vld [vmem:[#allocation151_spill] sm:$0xff] }
 0xc26   :  { %11515 = vmatprep.mubr.msk.bf16.mxu1 %vm13328_vm0, %v17790_v44 }
 0xc2d   :  { %11516 = vmatmul.mubr.bf16.gmra.mrb[76].mxu1 %v7294_v27  ;;  %v7506_v27 = vsel %vm2864_vm7, %v7503_v54, %v7505_v10 }
 0xc2e   :  { %11519 = vmatprep.mubr.msk.bf16.mxu1 %vm13328_vm0, %v17790_v44 }
 0xc35   :  { %11520 = vmatmul.mubr.bf16.gmra.mrb[80].mxu1 %v7296_v6  ;;  %v7509_v6 = vrot.slane %v16737_v63, 2  ;;  %v7515_v63 = vrot.slane %v16973_v13, 2 }
 0xc36   :  { %11523 = vmatprep.mubr.msk.bf16.mxu1 %vm13328_vm0, %v17790_v44 }
 0xc37   :  { %v7510_v20 = vsel %vm2864_vm7, %v7507_v60, %v7509_v6  ;;  %v7735_v60 = vrot.slane %v16741_v21, 2 }
 0xc3d   :  { %11524 = vmatmul.mubr.bf16.gmra.mrb[84].mxu1 %v7298_v34  ;;  %v7512_v34 = vsel %vm2864_vm7, %v7509_v6, %v7511_v45  ;;  %v7739_v6 = vrot.slane %v16754_v59, 2 }
 0xc3e   :  { %11527 = vmatprep.mubr.msk.bf16.mxu1 %vm13328_vm0, %v17790_v44 }
 0xc45   :  { %11528 = vmatmul.mubr.bf16.gmra.mrb[88].mxu1 %v7300_v25  ;;  %v7516_v25 = vsel %vm2864_vm7, %v7513_v42, %v7515_v63 }
 0xc46   :  { %11531 = vmatprep.mubr.msk.bf16.mxu1 %vm13328_vm0, %v17790_v44 }
 0xc4d   :  { %11532 = vmatmul.mubr.bf16.gmra.mrb[92].mxu1 %v7302_v56  ;;  %v7518_v56 = vsel %vm2864_vm7, %v7515_v63, %v7517_v35 }
 0xc4e   :  { %11535 = vmatprep.mubr.msk.bf16.mxu1 %vm13328_vm0, %v17790_v44 }
 0xc55   :  { %11536 = vmatmul.mubr.bf16.gmra.mrb[96].mxu1 %v7304_v41  ;;  %v7706_v41 = vrot.slane %v7704_v29, 2 }
 0xc56   :  { %11539 = vmatprep.mubr.msk.bf16.mxu1 %vm13328_vm0, %v17790_v44 }
 0xc57   :  { %v7710_v14 = vor.u32 %v7709_v43, %v7706_v41  ;;  %v7938_v41 = vld [vmem:[#allocation4 + $0x8] sm:$0xf8] }
 0xc58   :  { %v7950_v43 = vrot.slane %v7938_v41, 3 }
 0xc5d   :  { %11540 = vmatmul.mubr.bf16.gmra.mrb[100].mxu1 %v7306_v40  ;;  %v7711_v40 = vrot.slane %v16650_v53, 2 }
 0xc5e   :  { %11559 = vmatprep.mubr.msk.bf16.mxu1 %vm13328_vm0, %v17790_v44 }
 0xc65   :  { %11560 = vmatmul.mubr.bf16.vlgmr.msra.gmra.mrb[52].mxu1 %v7496_v7  ;;  %v7713_v7 = vor.u32 %v7712_v46, %v7711_v40  ;;  %v13309_v40 = vld [vmem:[#allocation4 + $0x10] sm:$0xff] }
 0xc66   :  { %11612 = vmatpush3.bf16.msra.mxu1 %v17919_v26  ;;  %11563 = vmatprep.mubr.msk.bf16.mxu1 %vm13328_vm0, %v17790_v44  ;;  %v7951_v46 = vrot.slane %v13309_v40, 3 }
 0xc67   :  { %11613 = vmatprep.subr.bf16.mxu1 %v17790_v44  ;;  %v7714_v26 = vsel %vm3130_vm4, %v7710_v14, %v7713_v7 }
 0xc68   :  { %v7952_v14 = vsel %vm3434_vm3, %v7950_v43, %v7951_v46 }
 0xc6a   :  { %11614 = vmatpush3.bf16.msra.mxu1 %v17920_v5  ;;  %v17928_v5 = vld [vmem:[#allocation153_spill] sm:$0xff] }
 0xc6b   :  { %11615 = vmatprep.subr.bf16.mxu1 %v17790_v44 }
 0xc6d   :  { %11564 = vmatmul.mubr.bf16.gmra.mrb[56].mxu1 %v7498_v15  ;;  %v7716_v15 = vrot.slane %v16653_v48, 3 }
 0xc6e   :  { %11567 = vmatprep.mubr.msk.bf16.mxu1 %vm13328_vm0, %v17790_v44  ;;  %11616 = vmatpush3.bf16.msra.mxu1 %v17921_v17  ;;  %v7720_v17 = vrot.slane %v16669_v57, 3 }
 0xc6f   :  { %11617 = vmatprep.subr.bf16.mxu1 %v17790_v44  ;;  %v7717_v53 = vor.u32 %v7716_v15, %v7715_v1  ;;  %v13311_v15 = vld [vmem:[#allocation4 + $0x20] sm:$0xff] }
 0xc70   :  { %v7721_v48 = vor.u32 %v7720_v17, %v7719_v33  ;;  %v13313_v17 = vld [vmem:[#allocation4 + $0x30] sm:$0xff] }
 0xc71   :  { %v7718_v18 = vsel %vm3130_vm4, %v7713_v7, %v7717_v53  ;;  %v13310_v7 = vld [vmem:[#allocation4 + $0x18] sm:$0xff] }
 0xc72   :  { %11618 = vmatpush3.bf16.msra.mxu1 %v17922_v50  ;;  %v7723_v50 = vrot.slane %v16700_v28, 2  ;;  %v7728_v28 = vrot.slane %v16703_v36, 3  ;;  %v17934_v36 = vld [vmem:[#allocation159_spill] sm:$0xff] }
 0xc73   :  { %11619 = vmatprep.subr.bf16.mxu1 %v17790_v44 }
 0xc74   :  { %v7725_v57 = vor.u32 %v7724_v23, %v7723_v50 }
 0xc75   :  { %11568 = vmatmul.mubr.bf16.gmra.mrb[60].mxu1 %v7500_v49  ;;  %v7722_v49 = vsel %vm3130_vm4, %v7717_v53, %v7721_v48 }
 0xc76   :  { %11571 = vmatprep.mubr.msk.bf16.mxu1 %vm13328_vm0, %v17790_v44  ;;  %11620 = vmatpush3.bf16.msra.mxu1 %v17923_v58  ;;  %v17931_v58 = vld [vmem:[#allocation156_spill] sm:$0xff] }
 0xc77   :  { %11621 = vmatprep.subr.bf16.mxu1 %v17790_v44 }
 0xc7a   :  { %11622 = vmatpush3.bf16.msra.mxu1 %v17924_v12  ;;  %v7727_v12 = vrot.slane %v16715_v62, 2  ;;  %v7732_v62 = vrot.slane %v16718_v16, 3 }
 0xc7b   :  { %11623 = vmatprep.subr.bf16.mxu1 %v17790_v44 }
 0xc7c   :  { %v7729_v54 = vor.u32 %v7728_v28, %v7727_v12 }
 0xc7d   :  { %11572 = vmatmul.mubr.bf16.gmra.mrb[64].mxu1 %v7502_v19  ;;  %v7726_v19 = vsel %vm3130_vm4, %v7721_v48, %v7725_v57  ;;  %v7959_v48 = vrot.slane %v13313_v17, 3 }
 0xc7e   :  { %11575 = vmatprep.mubr.msk.bf16.mxu1 %vm13328_vm0, %v17790_v44  ;;  %11624 = vmatpush3.bf16.msra.mxu1 %v17925_v11  ;;  %v17933_v11 = vld [vmem:[#allocation158_spill] sm:$0xff] }
 0xc7f   :  { %11625 = vmatprep.subr.bf16.mxu1 %v17790_v44 }
 0xc82   :  { %11626 = vmatpush3.bf16.msra.mxu1 %v17926_v52  ;;  %v7731_v52 = vrot.slane %v16728_v37, 2 }
 0xc83   :  { %11679 = vmatprep.subr.bf16.mxu1 %v17790_v44 }
 0xc84   :  { %v7733_v10 = vor.u32 %v7732_v62, %v7731_v52 }
 0xc85   :  { %11576 = vmatmul.mubr.bf16.gmra.mrb[68].mxu1 %v7504_v47  ;;  %v7730_v47 = vsel %vm3130_vm4, %v7725_v57, %v7729_v54 }
 0xc86   :  { %11579 = vmatprep.mubr.msk.bf16.mxu1 %vm13328_vm0, %v17790_v44 }
 0xc8d   :  { %11580 = vmatmul.mubr.bf16.gmra.mrb[72].mxu1 %v7506_v27  ;;  %v7734_v27 = vsel %vm3130_vm4, %v7729_v54, %v7733_v10 }
 0xc8e   :  { %11583 = vmatprep.mubr.msk.bf16.mxu1 %vm13328_vm0, %v17790_v44 }
 0xc95   :  { %11584 = vmatmul.mubr.bf16.gmra.mrb[76].mxu1 %v7508_v61  ;;  %v7736_v61 = vrot.slane %v16731_v2, 3  ;;  %v7743_v2 = vrot.slane %v16767_v51, 2 }
 0xc96   :  { %11587 = vmatprep.mubr.msk.bf16.mxu1 %vm13328_vm0, %v17790_v44 }
 0xc97   :  { %v7737_v37 = vor.u32 %v7736_v61, %v7735_v60  ;;  %v17335_v61 = vld [vmem:[%s17558_s3 + $0x6] ss:$0 sm:$0xff] }
 0xc99   :  { %v7738_v16 = vsel %vm3130_vm4, %v7733_v10, %v7737_v37 }
 0xc9d   :  { %11588 = vmatmul.mubr.bf16.gmra.mrb[80].mxu1 %v7510_v20  ;;  %v7740_v20 = vrot.slane %v16744_v24, 3  ;;  %v7747_v24 = vrot.slane %v16780_v32, 2  ;;  %v7756_v32 = vshrl.u32 %v17280_v22, 16 }
 0xc9e   :  { %11591 = vmatprep.mubr.msk.bf16.mxu1 %vm13328_vm0, %v17790_v44 }
 0xc9f   :  { %v7741_v45 = vor.u32 %v7740_v20, %v7739_v6  ;;  %v7758_v29 = vrot.slane %v7756_v32, 2 }
 0xca1   :  { %v7742_v21 = vsel %vm3130_vm4, %v7737_v37, %v7741_v45  ;;  %v17340_v37 = vld [vmem:[%s17558_s3 + $0x7] ss:$0 sm:$0xff] }
 0xca5   :  { %11592 = vmatmul.mubr.bf16.gmra.mrb[84].mxu1 %v7512_v34  ;;  %v7744_v34 = vrot.slane %v16757_v39, 3  ;;  %v7751_v39 = vrot.slane %v7077_v30, 2 }
 0xca6   :  { %11595 = vmatprep.mubr.msk.bf16.mxu1 %vm13328_vm0, %v17790_v44 }
 0xca7   :  { %v7745_v42 = vor.u32 %v7744_v34, %v7743_v2 }
 0xca9   :  { %v7746_v59 = vsel %vm3130_vm4, %v7741_v45, %v7745_v42 }
 0xcad   :  { %11596 = vmatmul.mubr.bf16.gmra.mrb[88].mxu1 %v7514_v31  ;;  %v7748_v31 = vrot.slane %v16770_v8, 3 }
 0xcae   :  { %11599 = vmatprep.mubr.msk.bf16.mxu1 %vm13328_vm0, %v17790_v44 }
 0xcaf   :  { %v7749_v63 = vor.u32 %v7748_v31, %v7747_v24 }
 0xcb1   :  { %v7750_v51 = vsel %vm3130_vm4, %v7745_v42, %v7749_v63 }
 0xcb5   :  { %11600 = vmatmul.mubr.bf16.gmra.mrb[92].mxu1 %v7516_v25  ;;  %v7752_v25 = vrot.slane %v7080_v9, 3 }
 0xcb6   :  { %11603 = vmatprep.mubr.msk.bf16.mxu1 %vm13328_vm0, %v17790_v44 }
 0xcb7   :  { %v7753_v8 = vor.u32 %v7752_v25, %v7751_v39 }
 0xcbd   :  { %11604 = vmatmul.mubr.bf16.gmra.mrb[96].mxu1 %v7518_v56  ;;  %v7754_v56 = vsel %vm3130_vm4, %v7749_v63, %v7753_v8 }
 0xcbe   :  { %11607 = vmatprep.mubr.msk.bf16.mxu1 %vm13328_vm0, %v17790_v44 }
 0xcc5   :  { %11608 = vmatmul.mubr.bf16.gmra.mrb[100].mxu1 %v7517_v35  ;;  %v7759_v35 = vshll.u32 %v17280_v22, 16 }
 0xcc6   :  { %11627 = vmatprep.mubr.msk.bf16.mxu1 %vm13328_vm0, %v17790_v44 }
 0xcc7   :  { %v7761_v38 = vrot.slane %v7759_v35, 3 }
 0xcc9   :  { %v7762_v30 = vor.u32 %v7761_v38, %v7758_v29 }
 0xccb   :  { %v7763_v9 = vsel %vm3130_vm4, %v7753_v8, %v7762_v30 }
 0xccd   :  { %11628 = vmatmul.mubr.bf16.vlgmr.msra.gmra.mrb[52].mxu1 %v7714_v26  ;;  %v7953_v26 = vrot.slane %v13310_v7, 3 }
 0xcce   :  { %11680 = vmatpush3.bf16.msra.mxu1 %v17927_v3  ;;  %11631 = vmatprep.mubr.msk.bf16.mxu1 %vm13328_vm0, %v17790_v44  ;;  %v7955_v3 = vrot.slane %v13311_v15, 3 }
 0xccf   :  { %11681 = vmatprep.subr.bf16.mxu1 %v17790_v44  ;;  %v7954_v1 = vsel %vm3434_vm3, %v7951_v46, %v7953_v26 }
 0xcd0   :  { %v7956_v53 = vsel %vm3434_vm3, %v7953_v26, %v7955_v3 }
 0xcd2   :  { %11682 = vmatpush3.bf16.msra.mxu1 %v17928_v5 }
 0xcd3   :  { %11683 = vmatprep.subr.bf16.mxu1 %v17790_v44 }
 0xcd5   :  { %11632 = vmatmul.mubr.bf16.gmra.mrb[56].mxu1 %v7718_v18  ;;  %v13312_v18 = vld [vmem:[#allocation4 + $0x28] sm:$0xff] }
 0xcd6   :  { %11635 = vmatprep.mubr.msk.bf16.mxu1 %vm13328_vm0, %v17790_v44  ;;  %11684 = vmatpush3.bf16.msra.mxu1 %v17929_v4  ;;  %v7957_v5 = vrot.slane %v13312_v18, 3 }
 0xcd7   :  { %11685 = vmatprep.subr.bf16.mxu1 %v17790_v44 }
 0xcd8   :  { %v7958_v33 = vsel %vm3434_vm3, %v7955_v3, %v7957_v5  ;;  %v7960_v4 = vsel %vm3434_vm3, %v7957_v5, %v7959_v48 }
 0xcda   :  { %11686 = vmatpush3.bf16.msra.mxu1 %v17930_v55  ;;  %v13315_v55 = vld [vmem:[#allocation4 + $0x40] sm:$0xff] }
 0xcdb   :  { %11687 = vmatprep.subr.bf16.mxu1 %v17790_v44  ;;  %v7963_v57 = vrot.slane %v13315_v55, 3 }
 0xcdd   :  { %11636 = vmatmul.mubr.bf16.gmra.mrb[60].mxu1 %v7722_v49  ;;  %v13314_v49 = vld [vmem:[#allocation4 + $0x38] sm:$0xff] }
 0xcde   :  { %11639 = vmatprep.mubr.msk.bf16.mxu1 %vm13328_vm0, %v17790_v44  ;;  %11688 = vmatpush3.bf16.msra.mxu1 %v17931_v58  ;;  %v7961_v50 = vrot.slane %v13314_v49, 3 }
 0xcdf   :  { %11689 = vmatprep.subr.bf16.mxu1 %v17790_v44 }
 0xce0   :  { %v7962_v23 = vsel %vm3434_vm3, %v7959_v48, %v7961_v50  ;;  %v7964_v58 = vsel %vm3434_vm3, %v7961_v50, %v7963_v57 }
 0xce2   :  { %11690 = vmatpush3.bf16.msra.mxu1 %v17932_v0  ;;  %v13317_v0 = vld [vmem:[#allocation4 + $0x50] sm:$0xff] }
 0xce3   :  { %11691 = vmatprep.subr.bf16.mxu1 %v17790_v44  ;;  %v7967_v54 = vrot.slane %v13317_v0, 3 }
 0xce5   :  { %11640 = vmatmul.mubr.bf16.gmra.mrb[64].mxu1 %v7726_v19  ;;  %v13316_v19 = vld [vmem:[#allocation4 + $0x48] sm:$0xff] }
 0xce6   :  { %11643 = vmatprep.mubr.msk.bf16.mxu1 %vm13328_vm0, %v17790_v44  ;;  %11692 = vmatpush3.bf16.msra.mxu1 %v17933_v11  ;;  %v7965_v12 = vrot.slane %v13316_v19, 3 }
 0xce7   :  { %11693 = vmatprep.subr.bf16.mxu1 %v17790_v44 }
 0xce8   :  { %v7966_v28 = vsel %vm3434_vm3, %v7963_v57, %v7965_v12  ;;  %v7968_v11 = vsel %vm3434_vm3, %v7965_v12, %v7967_v54 }
 0xcea   :  { %11694 = vmatpush3.bf16.msra.mxu1 %v17934_v36  ;;  %v7971_v36 = vrot.slane %v16973_v13, 3 }
 0xced   :  { %11644 = vmatmul.mubr.bf16.gmra.mrb[68].mxu1 %v7730_v47  ;;  %v13318_v47 = vld [vmem:[#allocation4 + $0x58] sm:$0xff] }
 0xcee   :  { %11647 = vmatprep.mubr.msk.bf16.mxu1 %vm13328_vm0, %v17790_v44  ;;  %v7969_v52 = vrot.slane %v13318_v47, 3 }
 0xcf0   :  { %v7970_v62 = vsel %vm3434_vm3, %v7967_v54, %v7969_v52  ;;  %v7972_v10 = vsel %vm3434_vm3, %v7969_v52, %v7971_v36 }
 0xcf5   :  { %11648 = vmatmul.mubr.bf16.gmra.mrb[72].mxu1 %v7734_v27  ;;  %v7973_v27 = vrot.slane %v17280_v22, 3 }
 0xcf6   :  { %11651 = vmatprep.mubr.msk.bf16.mxu1 %vm13328_vm0, %v17790_v44 }
 0xcf7   :  { %v7974_v60 = vsel %vm3434_vm3, %v7971_v36, %v7973_v27 }
 0xcfd   :  { %11652 = vmatmul.mubr.bf16.gmra.mrb[76].mxu1 %v7738_v16 }
 0xcfe   :  { %11655 = vmatprep.mubr.msk.bf16.mxu1 %vm13328_vm0, %v17790_v44 }
 0xd05   :  { %11656 = vmatmul.mubr.bf16.gmra.mrb[80].mxu1 %v7742_v21 }
 0xd06   :  { %11659 = vmatprep.mubr.msk.bf16.mxu1 %vm13328_vm0, %v17790_v44 }
 0xd0d   :  { %11660 = vmatmul.mubr.bf16.gmra.mrb[84].mxu1 %v7746_v59 }
 0xd0e   :  { %11663 = vmatprep.mubr.msk.bf16.mxu1 %vm13328_vm0, %v17790_v44 }
 0xd15   :  { %11664 = vmatmul.mubr.bf16.gmra.mrb[88].mxu1 %v7750_v51 }
 0xd16   :  { %11667 = vmatprep.mubr.msk.bf16.mxu1 %vm13328_vm0, %v17790_v44 }
 0xd1d   :  { %11668 = vmatmul.mubr.bf16.gmra.mrb[92].mxu1 %v7754_v56 }
 0xd1e   :  { %11671 = vmatprep.mubr.msk.bf16.mxu1 %vm13328_vm0, %v17790_v44 }
 0xd25   :  { %11672 = vmatmul.mubr.bf16.gmra.mrb[96].mxu1 %v7763_v9 }
 0xd26   :  { %11675 = vmatprep.mubr.msk.bf16.mxu1 %vm13328_vm0, %v17790_v44 }
 0xd2d   :  { %11676 = vmatmul.mubr.bf16.gmra.mrb[100].mxu1 %v7762_v30 }
 0xd2e   :  { %11695 = vmatprep.mubr.msk.bf16.mxu1 %vm13328_vm0, %v17790_v44 }
 0xd35   :  { %11696 = vmatmul.mubr.bf16.vlgmr.msra.gmra.mrb[52].mxu1 %v7952_v14 }
 0xd36   :  { %11699 = vmatprep.mubr.msk.bf16.mxu1 %vm13328_vm0, %v17790_v44 }
 0xd3d   :  { %11700 = vmatmul.mubr.bf16.gmra.mrb[56].mxu1 %v7954_v1 }
 0xd3e   :  { %11703 = vmatprep.mubr.msk.bf16.mxu1 %vm13328_vm0, %v17790_v44 }
 0xd45   :  { %11704 = vmatmul.mubr.bf16.gmra.mrb[60].mxu1 %v7956_v53 }
 0xd46   :  { %11707 = vmatprep.mubr.msk.bf16.mxu1 %vm13328_vm0, %v17790_v44 }
 0xd4d   :  { %11708 = vmatmul.mubr.bf16.gmra.mrb[64].mxu1 %v7958_v33 }
 0xd4e   :  { %11711 = vmatprep.mubr.msk.bf16.mxu1 %vm13328_vm0, %v17790_v44 }
 0xd55   :  { %11712 = vmatmul.mubr.bf16.gmra.mrb[68].mxu1 %v7960_v4 }
 0xd56   :  { %11715 = vmatprep.mubr.msk.bf16.mxu1 %vm13328_vm0, %v17790_v44 }
 0xd5d   :  { %11716 = vmatmul.mubr.bf16.gmra.mrb[72].mxu1 %v7962_v23 }
 0xd5e   :  { %11719 = vmatprep.mubr.msk.bf16.mxu1 %vm13328_vm0, %v17790_v44 }
 0xd65   :  { %11720 = vmatmul.mubr.bf16.gmra.mrb[76].mxu1 %v7964_v58 }
 0xd66   :  { %11723 = vmatprep.mubr.msk.bf16.mxu1 %vm13328_vm0, %v17790_v44 }
 0xd6d   :  { %11724 = vmatmul.mubr.bf16.gmra.mrb[80].mxu1 %v7966_v28 }
 0xd6e   :  { %11727 = vmatprep.mubr.msk.bf16.mxu1 %vm13328_vm0, %v17790_v44 }
 0xd75   :  { %11728 = vmatmul.mubr.bf16.gmra.mrb[84].mxu1 %v7968_v11 }
 0xd76   :  { %11731 = vmatprep.mubr.msk.bf16.mxu1 %vm13328_vm0, %v17790_v44 }
 0xd7d   :  { %11732 = vmatmul.mubr.bf16.gmra.mrb[88].mxu1 %v7970_v62 }
 0xd7e   :  { %11735 = vmatprep.mubr.msk.bf16.mxu1 %vm13328_vm0, %v17790_v44 }
 0xd85   :  { %11736 = vmatmul.mubr.bf16.gmra.mrb[92].mxu1 %v7972_v10 }
 0xd86   :  { %11739 = vmatprep.mubr.msk.bf16.mxu1 %vm13328_vm0, %v17790_v44 }
 0xd8d   :  { %11740 = vmatmul.mubr.bf16.gmra.mrb[96].mxu1 %v7974_v60 }
 0xd8e   :  { %11743 = vmatprep.mubr.msk.bf16.mxu1 %vm13328_vm0, %v17790_v44 }
 0xd95   :  { %11744 = vmatmul.mubr.bf16.gmra.mrb[100].mxu1 %v7973_v27 }
 0xe08   :  { %v8022_v13 = vpop.f32.mrb[52].mxu1 }
 0xe09   :  { %v8154_v16 = vmul.f32 %v17335_v61, %v8022_v13  ;;  %v11697_v6 = vpop.f32.mrb[53].mxu1 }
 0xe0a   :  { %v8025_v20 = vpop.f32.mrb[54].mxu1 }
 0xe0b   :  { %v8184_v45 = vadd.f32 %v17340_v37, %v8154_v16  ;;  %v8155_v21 = vmul.f32 %v17335_v61, %v8025_v20  ;;  %v11698_v2 = vpop.f32.mrb[55].mxu1 }
 0xe0d   :  { %vm8209_vm5 = vcmp.ge.f32.partialorder %v8184_v45, 0.0  ;;  %v8234_v34 = vmul.f32 0.01, %v8184_v45  ;;  %v8185_v42 = vadd.f32 %v17340_v37, %v8155_v21 }
 0xe0f   :  { %v8259_v59 = vsel %vm8209_vm5, %v8184_v45, %v8234_v34  ;;  %vm8210_vm12 = vcmp.ge.f32.partialorder %v8185_v42, 0.0  ;;  %v8235_v24 = vmul.f32 0.01, %v8185_v42 }
 0xe10   :  { %8284 = vst [vmem:[#allocation5] sm:$0xff] %v8259_v59  ;;  %v8030_v31 = vpop.f32.mrb[56].mxu1 }
 0xe11   :  { %v8260_v63 = vsel %vm8210_vm12, %v8185_v42, %v8235_v24  ;;  %v8156_v51 = vmul.f32 %v17335_v61, %v8030_v31  ;;  %v11701_v39 = vpop.f32.mrb[57].mxu1 }
 0xe12   :  { %8285 = vst [vmem:[#allocation5 + $0x8] sm:$0xff] %v8260_v63  ;;  %v8033_v25 = vpop.f32.mrb[58].mxu1 }
 0xe13   :  { %v8186_v22 = vadd.f32 %v17340_v37, %v8156_v51  ;;  %v11702_v8 = vpop.f32.mrb[59].mxu1 }
 0xe15   :  { %vm8211_vm4 = vcmp.ge.f32.partialorder %v8186_v22, 0.0  ;;  %v8236_v32 = vmul.f32 0.01, %v8186_v22 }
 0xe17   :  { %v8261_v35 = vsel %vm8211_vm4, %v8186_v22, %v8236_v32 }
 0xe18   :  { %8286 = vst [vmem:[#allocation5 + $0x10] sm:$0xff] %v8261_v35  ;;  %v8038_v56 = vpop.f32.mrb[60].mxu1 }
 0xe19   :  { %v11705_v29 = vpop.f32.mrb[61].mxu1 }
 0xe1a   :  { %v8041_v38 = vpop.f32.mrb[62].mxu1 }
 0xe1b   :  { %v11706_v30 = vpop.f32.mrb[63].mxu1 }
 0xe20   :  { %v8046_v9 = vpop.f32.mrb[64].mxu1 }
 0xe21   :  { %v11709_v41 = vpop.f32.mrb[65].mxu1 }
 0xe22   :  { %v8049_v43 = vpop.f32.mrb[66].mxu1 }
 0xe23   :  { %v11710_v40 = vpop.f32.mrb[67].mxu1 }
 0xe28   :  { %v8054_v46 = vpop.f32.mrb[68].mxu1 }
 0xe29   :  { %v11713_v14 = vpop.f32.mrb[69].mxu1 }
 0xe2a   :  { %v8057_v7 = vpop.f32.mrb[70].mxu1 }
 0xe2b   :  { %v11714_v26 = vpop.f32.mrb[71].mxu1 }
 0xe30   :  { %v8062_v1 = vpop.f32.mrb[72].mxu1 }
 0xe31   :  { %v11717_v15 = vpop.f32.mrb[73].mxu1 }
 0xe32   :  { %v8065_v3 = vpop.f32.mrb[74].mxu1 }
 0xe33   :  { %v11718_v53 = vpop.f32.mrb[75].mxu1 }
 0xe38   :  { %v8070_v18 = vpop.f32.mrb[76].mxu1 }
 0xe39   :  { %v8166_v5 = vmul.f32 %v17335_v61, %v8070_v18  ;;  %v11721_v33 = vpop.f32.mrb[77].mxu1 }
 0xe3a   :  { %v8073_v17 = vpop.f32.mrb[78].mxu1 }
 0xe3b   :  { %v8196_v48 = vadd.f32 %v17340_v37, %v8166_v5  ;;  %v8167_v4 = vmul.f32 %v17335_v61, %v8073_v17  ;;  %v11722_v49 = vpop.f32.mrb[79].mxu1 }
 0xe3d   :  { %vm8221_vm8 = vcmp.ge.f32.partialorder %v8196_v48, 0.0  ;;  %v8246_v50 = vmul.f32 0.01, %v8196_v48  ;;  %v8197_v23 = vadd.f32 %v17340_v37, %v8167_v4 }
 0xe3f   :  { %v8271_v55 = vsel %vm8221_vm8, %v8196_v48, %v8246_v50  ;;  %vm8222_vm2 = vcmp.ge.f32.partialorder %v8197_v23, 0.0  ;;  %v8247_v57 = vmul.f32 0.01, %v8197_v23 }
 0xe40   :  { %8296 = vst [vmem:[#allocation5 + $0x60] sm:$0xff] %v8271_v55  ;;  %v8078_v58 = vpop.f32.mrb[80].mxu1 }
 0xe41   :  { %v8272_v19 = vsel %vm8222_vm2, %v8197_v23, %v8247_v57  ;;  %v8168_v12 = vmul.f32 %v17335_v61, %v8078_v58  ;;  %v11725_v28 = vpop.f32.mrb[81].mxu1 }
 0xe42   :  { %8297 = vst [vmem:[#allocation5 + $0x68] sm:$0xff] %v8272_v19  ;;  %v8081_v0 = vpop.f32.mrb[82].mxu1 }
 0xe43   :  { %v8198_v54 = vadd.f32 %v17340_v37, %v8168_v12  ;;  %v8169_v11 = vmul.f32 %v17335_v61, %v8081_v0  ;;  %v11726_v47 = vpop.f32.mrb[83].mxu1 }
 0xe45   :  { %vm8223_vm3 = vcmp.ge.f32.partialorder %v8198_v54, 0.0  ;;  %v8248_v52 = vmul.f32 0.01, %v8198_v54  ;;  %v8199_v62 = vadd.f32 %v17340_v37, %v8169_v11 }
 0xe47   :  { %v8273_v36 = vsel %vm8223_vm3, %v8198_v54, %v8248_v52  ;;  %vm8224_vm6 = vcmp.ge.f32.partialorder %v8199_v62, 0.0  ;;  %v8249_v10 = vmul.f32 0.01, %v8199_v62 }
 0xe48   :  { %8298 = vst [vmem:[#allocation5 + $0x70] sm:$0xff] %v8273_v36  ;;  %v8086_v27 = vpop.f32.mrb[84].mxu1 }
 0xe49   :  { %v8274_v60 = vsel %vm8224_vm6, %v8199_v62, %v8249_v10  ;;  %v11729_v13 = vpop.f32.mrb[85].mxu1 }
 0xe4a   :  { %8299 = vst [vmem:[#allocation5 + $0x78] sm:$0xff] %v8274_v60  ;;  %v8089_v16 = vpop.f32.mrb[86].mxu1 }
 0xe4b   :  { %v11730_v6 = vpop.f32.mrb[87].mxu1 }
 0xe50   :  { %v8094_v20 = vpop.f32.mrb[88].mxu1 }
 0xe51   :  { %v11733_v45 = vpop.f32.mrb[89].mxu1 }
 0xe52   :  { %v8097_v21 = vpop.f32.mrb[90].mxu1 }
 0xe53   :  { %v11734_v2 = vpop.f32.mrb[91].mxu1 }
 0xe58   :  { %v8102_v61 = vpop.f32.mrb[92].mxu1 }
 0xe59   :  { %v11737_v34 = vpop.f32.mrb[93].mxu1 }
 0xe5a   :  { %v8105_v42 = vpop.f32.mrb[94].mxu1 }
 0xe5b   :  { %v11738_v59 = vpop.f32.mrb[95].mxu1 }
 0xe60   :  { %v8110_v24 = vpop.f32.mrb[96].mxu1 }
 0xe61   :  { %v11741_v37 = vpop.f32.mrb[97].mxu1 }
 0xe62   :  { %v8113_v31 = vpop.f32.mrb[98].mxu1 }
 0xe63   :  { %v11742_v63 = vpop.f32.mrb[99].mxu1 }
 0xe68   :  { %v8118_v51 = vpop.f32.mrb[100].mxu1 }
 0xe69   :  { %v11745_v39 = vpop.f32.mrb[101].mxu1 }
 0xe6a   :  { %v8121_v25 = vpop.f32.mrb[102].mxu1 }
 0xe6b   :  { %v11746_v22 = vpop.f32.mrb[103].mxu1 }
 0xe6c   :  { %13323 = dma.done.wait [#allocation10 + $0x2], 9216 }
 0xe6d   :  { %13324 = vsyncadd [#allocation10 + $0x2], 4294958080  ;;  %11763 = vmatprep.mubr.msk.bf16.mxu0 %vm13328_vm0, %v17790_v44  ;;  %v17935_v8 = vld [vmem:[#allocation168_spill] sm:$0xff]  ;;  %v17936_v32 = vld [vmem:[#allocation169_spill] sm:$0xff] }
 0xe6e   :  { %11748 = vmatpush3.bf16.msra.mxu0 %v17935_v8  ;;  %v17937_v35 = vld [vmem:[#allocation170_spill] sm:$0xff]  ;;  %v17938_v56 = vld [vmem:[#allocation171_spill] sm:$0xff]  ;;  %v17939_v29 = vld [vmem:[#allocation172_spill] sm:$0xff] }
 0xe6f   :  { %11749 = vmatprep.subr.bf16.mxu0 %v17790_v44  ;;  %v17940_v38 = vld [vmem:[#allocation173_spill] sm:$0xff]  ;;  %v17941_v30 = vld [vmem:[#allocation174_spill] sm:$0xff]  ;;  %v17942_v43 = vld [vmem:[#allocation175_spill] sm:$0xff] }
 0xe70   :  { %v8322_v9 = vld [vmem:[#allocation5 + $0x1] ss:$100 sm:$0x3]  ;;  %v17943_v40 = vld [vmem:[#allocation160_spill] sm:$0xff]  ;;  %v17944_v46 = vld [vmem:[#allocation161_spill] sm:$0xff] }
 0xe71   :  { %v8323_v41 = vpack.c.bf16 %v8322_v9, %v8322_v9  ;;  %v17945_v14 = vld [vmem:[#allocation162_spill] sm:$0xff]  ;;  %v17946_v7 = vld [vmem:[#allocation163_spill] sm:$0xff]  ;;  %v17947_v26 = vld [vmem:[#allocation164_spill] sm:$0xff] }
 0xe72   :  { %11750 = vmatpush3.bf16.msra.mxu0 %v17936_v32  ;;  %v17948_v1 = vld [vmem:[#allocation165_spill] sm:$0xff]  ;;  %v17949_v15 = vld [vmem:[#allocation166_spill] sm:$0xff]  ;;  %v17950_v18 = vld [vmem:[#allocation167_spill] sm:$0xff] }
 0xe73   :  { %11751 = vmatprep.subr.bf16.mxu0 %v17790_v44  ;;  %v8311_v3 = vld [vmem:[#allocation5] ss:$100 sm:$0x3]  ;;  %v17951_v5 = vld [vmem:[#allocation176_spill] sm:$0xff]  ;;  %v17952_v33 = vld [vmem:[#allocation177_spill] sm:$0xff] }
 0xe74   :  { %v8312_v53 = vpack.c.bf16 %v8311_v3, %v8311_v3  ;;  %v17953_v17 = vld [vmem:[#allocation178_spill] sm:$0xff]  ;;  %v17954_v48 = vld [vmem:[#allocation179_spill] sm:$0xff]  ;;  %v17955_v4 = vld [vmem:[#allocation180_spill] sm:$0xff] }
 0xe75   :  { %v17956_v49 = vld [vmem:[#allocation181_spill] sm:$0xff]  ;;  %v17957_v50 = vld [vmem:[#allocation182_spill] sm:$0xff]  ;;  %v17958_v57 = vld [vmem:[#allocation183_spill] sm:$0xff] }
 0xe76   :  { %11752 = vmatpush3.bf16.msra.mxu0 %v17937_v35  ;;  %v8414_v23 = vld [vmem:[#allocation5 + $0x2] ss:$100 sm:$0x3]  ;;  %v17959_v58 = vld [vmem:[#allocation184_spill] sm:$0xff]  ;;  %v17960_v19 = vld [vmem:[#allocation185_spill] sm:$0xff] }
 0xe77   :  { %11753 = vmatprep.subr.bf16.mxu0 %v17790_v44  ;;  %v8415_v55 = vpack.c.bf16 %v8414_v23, %v8414_v23  ;;  %v17961_v12 = vld [vmem:[#allocation186_spill] sm:$0xff]  ;;  %v17962_v28 = vld [vmem:[#allocation187_spill] sm:$0xff]  ;;  %v17963_v0 = vld [vmem:[#allocation188_spill] sm:$0xff] }
 0xe78   :  { %v17964_v54 = vld [vmem:[#allocation189_spill] sm:$0xff]  ;;  %v17965_v11 = vld [vmem:[#allocation190_spill] sm:$0xff]  ;;  %v8467_v47 = vld [vmem:[#allocation5 + $0xa] ss:$100 sm:$0x3] }
 0xe79   :  { %v8468_v52 = vpack.c.bf16 %v8467_v47, %v8467_v47  ;;  %v17966_v62 = vld [vmem:[#allocation191_spill] sm:$0xff]  ;;  %v17967_v36 = vld [vmem:[#allocation192_spill] sm:$0xff]  ;;  %v17968_v10 = vld [vmem:[#allocation193_spill] sm:$0xff] }
 0xe7a   :  { %11754 = vmatpush3.bf16.msra.mxu0 %v17938_v56  ;;  %v17969_v27 = vld [vmem:[#allocation194_spill] sm:$0xff]  ;;  %v17970_v60 = vld [vmem:[#allocation195_spill] sm:$0xff]  ;;  %v17971_v13 = vld [vmem:[#allocation196_spill] sm:$0xff] }
 0xe7b   :  { %11755 = vmatprep.subr.bf16.mxu0 %v17790_v44  ;;  %v17972_v16 = vld [vmem:[#allocation197_spill] sm:$0xff]  ;;  %v17973_v6 = vld [vmem:[#allocation198_spill] sm:$0xff]  ;;  %v8520_v20 = vld [vmem:[#allocation5 + $0xb] ss:$100 sm:$0x3] }
 0xe7c   :  { %v8521_v45 = vpack.c.bf16 %v8520_v20, %v8520_v20  ;;  %v17974_v21 = vld [vmem:[#allocation199_spill] sm:$0xff]  ;;  %v17975_v2 = vld [vmem:[#allocation200_spill] sm:$0xff]  ;;  %v17976_v61 = vld [vmem:[#allocation201_spill] sm:$0xff] }
 0xe7d   :  { %v17977_v34 = vld [vmem:[#allocation202_spill] sm:$0xff]  ;;  %v17978_v42 = vld [vmem:[#allocation203_spill] sm:$0xff]  ;;  %v17979_v59 = vld [vmem:[#allocation204_spill] sm:$0xff] }
 0xe7e   :  { %11756 = vmatpush3.bf16.msra.mxu0 %v17939_v29  ;;  %v17980_v24 = vld [vmem:[#allocation205_spill] sm:$0xff]  ;;  %v17981_v37 = vld [vmem:[#allocation206_spill] sm:$0xff]  ;;  %v8573_v31 = vld [vmem:[#allocation5 + $0xc] ss:$100 sm:$0x3] }
 0xe7f   :  { %11757 = vmatprep.subr.bf16.mxu0 %v17790_v44  ;;  %v8574_v63 = vpack.c.bf16 %v8573_v31, %v8573_v31  ;;  %v17982_v51 = vld [vmem:[#allocation207_spill] sm:$0xff]  ;;  %v17983_v39 = vld [vmem:[#allocation208_spill] sm:$0xff]  ;;  %v17984_v25 = vld [vmem:[#allocation209_spill] sm:$0xff] }
 0xe80   :  { %v17985_v22 = vld [vmem:[#allocation210_spill] sm:$0xff]  ;;  %v17986_v8 = vld [vmem:[#allocation211_spill] sm:$0xff]  ;;  %v17987_v32 = vld [vmem:[#allocation212_spill] sm:$0xff] }
 0xe81   :  { %v17988_v35 = vld [vmem:[#allocation213_spill] sm:$0xff]  ;;  %v17989_v56 = vld [vmem:[#allocation214_spill] sm:$0xff]  ;;  %v17991_v9 = vld [vmem:[#allocation216_spill] sm:$0xff] }
 0xe82   :  { %11758 = vmatpush3.bf16.msra.mxu0 %v17940_v38  ;;  %v8626_v29 = vld [vmem:[#allocation5 + $0x14] ss:$100 sm:$0x3]  ;;  %v17997_v3 = vld [vmem:[#allocation222_spill] sm:$0xff] }
 0xe83   :  { %11759 = vmatprep.subr.bf16.mxu0 %v17790_v44  ;;  %v8627_v38 = vpack.c.bf16 %v8626_v29, %v8626_v29  ;;  %v9157_v29 = vld [vmem:[%s17558_s3 + $0x8] ss:$0 sm:$0xff] }
 0xe86   :  { %11760 = vmatpush3.bf16.msra.mxu0 %v17941_v30  ;;  %v17990_v30 = vld [vmem:[#allocation215_spill] sm:$0xff] }
 0xe87   :  { %11761 = vmatprep.subr.bf16.mxu0 %v17790_v44 }
 0xe8a   :  { %11762 = vmatpush3.bf16.msra.mxu0 %v17942_v43  ;;  %v17993_v43 = vld [vmem:[#allocation218_spill] sm:$0xff] }
 0xe8b   :  { %11767 = vmatprep.subr.bf16.mxu0 %v17790_v44 }
 0xe8d   :  { %11764 = vmatmul.mubr.bf16.vlgmr.msra.gmra.mrb[156].mxu0 %v8323_v41  ;;  %v17992_v41 = vld [vmem:[#allocation217_spill] sm:$0xff] }
 0xe8e   :  { %11768 = vmatpush3.bf16.msra.mxu0 %v17943_v40  ;;  %11783 = vmatprep.mubr.msk.bf16.mxu0 %vm13328_vm0, %v17790_v44  ;;  %v17994_v40 = vld [vmem:[#allocation219_spill] sm:$0xff] }
 0xe8f   :  { %11769 = vmatprep.subr.bf16.mxu0 %v17790_v44 }
 0xe92   :  { %11770 = vmatpush3.bf16.msra.mxu0 %v17944_v46  ;;  %v17995_v46 = vld [vmem:[#allocation220_spill] sm:$0xff] }
 0xe93   :  { %11771 = vmatprep.subr.bf16.mxu0 %v17790_v44 }
 0xe96   :  { %11772 = vmatpush3.bf16.msra.mxu0 %v17945_v14 }
 0xe97   :  { %11773 = vmatprep.subr.bf16.mxu0 %v17790_v44 }
 0xe9a   :  { %11774 = vmatpush3.bf16.msra.mxu0 %v17946_v7 }
 0xe9b   :  { %11775 = vmatprep.subr.bf16.mxu0 %v17790_v44 }
 0xe9e   :  { %11776 = vmatpush3.bf16.msra.mxu0 %v17947_v26 }
 0xe9f   :  { %11777 = vmatprep.subr.bf16.mxu0 %v17790_v44 }
 0xea2   :  { %11778 = vmatpush3.bf16.msra.mxu0 %v17948_v1  ;;  %v17996_v1 = vld [vmem:[#allocation221_spill] sm:$0xff] }
 0xea3   :  { %11779 = vmatprep.subr.bf16.mxu0 %v17790_v44 }
 0xea6   :  { %11780 = vmatpush3.bf16.msra.mxu0 %v17949_v15 }
 0xea7   :  { %11781 = vmatprep.subr.bf16.mxu0 %v17790_v44 }
 0xeaa   :  { %11782 = vmatpush3.bf16.msra.mxu0 %v17950_v18 }
 0xeab   :  { %11787 = vmatprep.subr.bf16.mxu0 %v17790_v44 }
 0xead   :  { %11784 = vmatmul.mubr.bf16.vlgmr.msra.gmra.mrb[160].mxu0 %v8312_v53  ;;  %v8679_v53 = vld [vmem:[#allocation5 + $0x15] ss:$100 sm:$0x3] }
 0xeae   :  { %11788 = vmatpush3.bf16.msra.mxu0 %v17951_v5  ;;  %11803 = vmatprep.mubr.msk.bf16.mxu0 %vm13328_vm0, %v17790_v44  ;;  %v8680_v18 = vpack.c.bf16 %v8679_v53, %v8679_v53  ;;  %v17998_v5 = vld [vmem:[#allocation223_spill] sm:$0xff] }
 0xeaf   :  { %11789 = vmatprep.subr.bf16.mxu0 %v17790_v44 }
 0xeb2   :  { %11790 = vmatpush3.bf16.msra.mxu0 %v17952_v33  ;;  %v17999_v33 = vld [vmem:[#allocation224_spill] sm:$0xff] }
 0xeb3   :  { %11791 = vmatprep.subr.bf16.mxu0 %v17790_v44 }
 0xeb6   :  { %11792 = vmatpush3.bf16.msra.mxu0 %v17953_v17  ;;  %v18000_v17 = vld [vmem:[#allocation225_spill] sm:$0xff] }
 0xeb7   :  { %11793 = vmatprep.subr.bf16.mxu0 %v17790_v44 }
 0xeba   :  { %11794 = vmatpush3.bf16.msra.mxu0 %v17954_v48  ;;  %v18001_v48 = vld [vmem:[#allocation226_spill] sm:$0xff] }
 0xebb   :  { %11795 = vmatprep.subr.bf16.mxu0 %v17790_v44 }
 0xebe   :  { %11796 = vmatpush3.bf16.msra.mxu0 %v17955_v4  ;;  %v18002_v4 = vld [vmem:[#allocation227_spill] sm:$0xff] }
 0xebf   :  { %11797 = vmatprep.subr.bf16.mxu0 %v17790_v44 }
 0xec2   :  { %11798 = vmatpush3.bf16.msra.mxu0 %v17956_v49  ;;  %v18003_v49 = vld [vmem:[#allocation228_spill] sm:$0xff] }
 0xec3   :  { %11799 = vmatprep.subr.bf16.mxu0 %v17790_v44 }
 0xec6   :  { %11800 = vmatpush3.bf16.msra.mxu0 %v17957_v50 }
 0xec7   :  { %11801 = vmatprep.subr.bf16.mxu0 %v17790_v44 }
 0xeca   :  { %11802 = vmatpush3.bf16.msra.mxu0 %v17958_v57 }
 0xecb   :  { %11807 = vmatprep.subr.bf16.mxu0 %v17790_v44 }
 0xecd   :  { %11804 = vmatmul.mubr.bf16.vlgmr.msra.gmra.mrb[164].mxu0 %v8415_v55 }
 0xece   :  { %11808 = vmatpush3.bf16.msra.mxu0 %v17959_v58  ;;  %11823 = vmatprep.mubr.msk.bf16.mxu0 %vm13328_vm0, %v17790_v44  ;;  %v18004_v58 = vld [vmem:[#allocation229_spill] sm:$0xff] }
 0xecf   :  { %11809 = vmatprep.subr.bf16.mxu0 %v17790_v44 }
 0xed2   :  { %11810 = vmatpush3.bf16.msra.mxu0 %v17960_v19 }
 0xed3   :  { %11811 = vmatprep.subr.bf16.mxu0 %v17790_v44 }
 0xed6   :  { %11812 = vmatpush3.bf16.msra.mxu0 %v17961_v12  ;;  %v18005_v12 = vld [vmem:[#allocation230_spill] sm:$0xff] }
 0xed7   :  { %11813 = vmatprep.subr.bf16.mxu0 %v17790_v44 }
 0xeda   :  { %11814 = vmatpush3.bf16.msra.mxu0 %v17962_v28  ;;  %v8732_v28 = vld [vmem:[#allocation5 + $0x16] ss:$100 sm:$0x3] }
 0xedb   :  { %11815 = vmatprep.subr.bf16.mxu0 %v17790_v44 }
 0xede   :  { %11816 = vmatpush3.bf16.msra.mxu0 %v17963_v0  ;;  %v8733_v0 = vpack.c.bf16 %v8732_v28, %v8732_v28 }
 0xedf   :  { %11817 = vmatprep.subr.bf16.mxu0 %v17790_v44 }
 0xee2   :  { %11818 = vmatpush3.bf16.msra.mxu0 %v17964_v54  ;;  %v18006_v54 = vld [vmem:[#allocation231_spill] sm:$0xff] }
 0xee3   :  { %11819 = vmatprep.subr.bf16.mxu0 %v17790_v44 }
 0xee6   :  { %11820 = vmatpush3.bf16.msra.mxu0 %v17965_v11 }
 0xee7   :  { %11821 = vmatprep.subr.bf16.mxu0 %v17790_v44 }
 0xeea   :  { %11822 = vmatpush3.bf16.msra.mxu0 %v17966_v62 }
 0xeeb   :  { %11827 = vmatprep.subr.bf16.mxu0 %v17790_v44 }
 0xeed   :  { %11824 = vmatmul.mubr.bf16.vlgmr.msra.gmra.mrb[168].mxu0 %v8468_v52 }
 0xeee   :  { %11828 = vmatpush3.bf16.msra.mxu0 %v17967_v36  ;;  %11843 = vmatprep.mubr.msk.bf16.mxu0 %vm13328_vm0, %v17790_v44 }
 0xeef   :  { %11829 = vmatprep.subr.bf16.mxu0 %v17790_v44 }
 0xef2   :  { %11830 = vmatpush3.bf16.msra.mxu0 %v17968_v10 }
 0xef3   :  { %11831 = vmatprep.subr.bf16.mxu0 %v17790_v44 }
 0xef6   :  { %11832 = vmatpush3.bf16.msra.mxu0 %v17969_v27 }
 0xef7   :  { %11833 = vmatprep.subr.bf16.mxu0 %v17790_v44 }
 0xefa   :  { %11834 = vmatpush3.bf16.msra.mxu0 %v17970_v60 }
 0xefb   :  { %11835 = vmatprep.subr.bf16.mxu0 %v17790_v44 }
 0xefe   :  { %11836 = vmatpush3.bf16.msra.mxu0 %v17971_v13 }
 0xeff   :  { %11837 = vmatprep.subr.bf16.mxu0 %v17790_v44 }
 0xf02   :  { %11838 = vmatpush3.bf16.msra.mxu0 %v17972_v16 }
 0xf03   :  { %11839 = vmatprep.subr.bf16.mxu0 %v17790_v44 }
 0xf06   :  { %11840 = vmatpush3.bf16.msra.mxu0 %v17973_v6 }
 0xf07   :  { %11841 = vmatprep.subr.bf16.mxu0 %v17790_v44 }
 0xf0a   :  { %11842 = vmatpush3.bf16.msra.mxu0 %v17974_v21 }
 0xf0b   :  { %11847 = vmatprep.subr.bf16.mxu0 %v17790_v44 }
 0xf0d   :  { %11844 = vmatmul.mubr.bf16.vlgmr.msra.gmra.mrb[172].mxu0 %v8521_v45 }
 0xf0e   :  { %11848 = vmatpush3.bf16.msra.mxu0 %v17975_v2  ;;  %11863 = vmatprep.mubr.msk.bf16.mxu0 %vm13328_vm0, %v17790_v44 }
 0xf0f   :  { %11849 = vmatprep.subr.bf16.mxu0 %v17790_v44 }
 0xf12   :  { %11850 = vmatpush3.bf16.msra.mxu0 %v17976_v61 }
 0xf13   :  { %11851 = vmatprep.subr.bf16.mxu0 %v17790_v44 }
 0xf16   :  { %11852 = vmatpush3.bf16.msra.mxu0 %v17977_v34 }
 0xf17   :  { %11853 = vmatprep.subr.bf16.mxu0 %v17790_v44 }
 0xf1a   :  { %11854 = vmatpush3.bf16.msra.mxu0 %v17978_v42 }
 0xf1b   :  { %11855 = vmatprep.subr.bf16.mxu0 %v17790_v44 }
 0xf1e   :  { %11856 = vmatpush3.bf16.msra.mxu0 %v17979_v59 }
 0xf1f   :  { %11857 = vmatprep.subr.bf16.mxu0 %v17790_v44 }
 0xf22   :  { %11858 = vmatpush3.bf16.msra.mxu0 %v17980_v24 }
 0xf23   :  { %11859 = vmatprep.subr.bf16.mxu0 %v17790_v44 }
 0xf26   :  { %11860 = vmatpush3.bf16.msra.mxu0 %v17981_v37 }
 0xf27   :  { %11861 = vmatprep.subr.bf16.mxu0 %v17790_v44 }
 0xf2a   :  { %11862 = vmatpush3.bf16.msra.mxu0 %v17982_v51 }
 0xf2b   :  { %11867 = vmatprep.subr.bf16.mxu0 %v17790_v44 }
 0xf2d   :  { %11864 = vmatmul.mubr.bf16.vlgmr.msra.gmra.mrb[176].mxu0 %v8574_v63 }
 0xf2e   :  { %11868 = vmatpush3.bf16.msra.mxu0 %v17983_v39  ;;  %11883 = vmatprep.mubr.msk.bf16.mxu0 %vm13328_vm0, %v17790_v44 }
 0xf2f   :  { %11869 = vmatprep.subr.bf16.mxu0 %v17790_v44 }
 0xf32   :  { %11870 = vmatpush3.bf16.msra.mxu0 %v17984_v25 }
 0xf33   :  { %11871 = vmatprep.subr.bf16.mxu0 %v17790_v44 }
 0xf36   :  { %11872 = vmatpush3.bf16.msra.mxu0 %v17985_v22 }
 0xf37   :  { %11873 = vmatprep.subr.bf16.mxu0 %v17790_v44 }
 0xf3a   :  { %11874 = vmatpush3.bf16.msra.mxu0 %v17986_v8 }
 0xf3b   :  { %11875 = vmatprep.subr.bf16.mxu0 %v17790_v44 }
 0xf3e   :  { %11876 = vmatpush3.bf16.msra.mxu0 %v17987_v32 }
 0xf3f   :  { %11877 = vmatprep.subr.bf16.mxu0 %v17790_v44 }
 0xf42   :  { %11878 = vmatpush3.bf16.msra.mxu0 %v17988_v35 }
 0xf43   :  { %11879 = vmatprep.subr.bf16.mxu0 %v17790_v44 }
 0xf46   :  { %11880 = vmatpush3.bf16.msra.mxu0 %v17989_v56 }
 0xf47   :  { %11881 = vmatprep.subr.bf16.mxu0 %v17790_v44 }
 0xf4a   :  { %11882 = vmatpush3.bf16.msra.mxu0 %v17990_v30 }
 0xf4b   :  { %11887 = vmatprep.subr.bf16.mxu0 %v17790_v44 }
 0xf4d   :  { %11884 = vmatmul.mubr.bf16.vlgmr.msra.gmra.mrb[180].mxu0 %v8627_v38 }
 0xf4e   :  { %11888 = vmatpush3.bf16.msra.mxu0 %v17991_v9  ;;  %11903 = vmatprep.mubr.msk.bf16.mxu0 %vm13328_vm0, %v17790_v44 }
 0xf4f   :  { %11889 = vmatprep.subr.bf16.mxu0 %v17790_v44 }
 0xf52   :  { %11890 = vmatpush3.bf16.msra.mxu0 %v17992_v41 }
 0xf53   :  { %11891 = vmatprep.subr.bf16.mxu0 %v17790_v44 }
 0xf56   :  { %11892 = vmatpush3.bf16.msra.mxu0 %v17993_v43 }
 0xf57   :  { %11893 = vmatprep.subr.bf16.mxu0 %v17790_v44 }
 0xf5a   :  { %11894 = vmatpush3.bf16.msra.mxu0 %v17994_v40 }
 0xf5b   :  { %11895 = vmatprep.subr.bf16.mxu0 %v17790_v44 }
 0xf5e   :  { %11896 = vmatpush3.bf16.msra.mxu0 %v17995_v46  ;;  %v9158_v46 = vld [vmem:[%s17558_s3 + $0x9] ss:$0 sm:$0xff] }
 0xf5f   :  { %11897 = vmatprep.subr.bf16.mxu0 %v17790_v44 }
 0xf60   :  { %v8367_v14 = vpop.f32.mrb[156].mxu0 }
 0xf61   :  { %v11765_v7 = vpop.f32.mrb[157].mxu0 }
 0xf62   :  { %v8370_v26 = vpop.f32.mrb[158].mxu0  ;;  %11898 = vmatpush3.bf16.msra.mxu0 %v17996_v1  ;;  %v9159_v7 = vld [vmem:[%s17558_s3 + $0xa] ss:$0 sm:$0xff] }
 0xf63   :  { %v11766_v15 = vpop.f32.mrb[159].mxu0  ;;  %11899 = vmatprep.subr.bf16.mxu0 %v17790_v44 }
 0xf66   :  { %11900 = vmatpush3.bf16.msra.mxu0 %v17997_v3 }
 0xf67   :  { %11901 = vmatprep.subr.bf16.mxu0 %v17790_v44 }
 0xf6a   :  { %11902 = vmatpush3.bf16.msra.mxu0 %v17998_v5 }
 0xf6b   :  { %11907 = vmatprep.subr.bf16.mxu0 %v17790_v44 }
 0xf6d   :  { %11904 = vmatmul.mubr.bf16.vlgmr.msra.gmra.mrb[184].mxu0 %v8680_v18 }
 0xf6e   :  { %11908 = vmatpush3.bf16.msra.mxu0 %v17999_v33  ;;  %11923 = vmatprep.mubr.msk.bf16.mxu0 %vm13328_vm0, %v17790_v44 }
 0xf6f   :  { %11909 = vmatprep.subr.bf16.mxu0 %v17790_v44 }
 0xf72   :  { %11910 = vmatpush3.bf16.msra.mxu0 %v18000_v17 }
 0xf73   :  { %11911 = vmatprep.subr.bf16.mxu0 %v17790_v44 }
 0xf76   :  { %11912 = vmatpush3.bf16.msra.mxu0 %v18001_v48 }
 0xf77   :  { %11913 = vmatprep.subr.bf16.mxu0 %v17790_v44 }
 0xf7a   :  { %11914 = vmatpush3.bf16.msra.mxu0 %v18002_v4 }
 0xf7b   :  { %11915 = vmatprep.subr.bf16.mxu0 %v17790_v44 }
 0xf7e   :  { %11916 = vmatpush3.bf16.msra.mxu0 %v18003_v49 }
 0xf7f   :  { %11917 = vmatprep.subr.bf16.mxu0 %v17790_v44 }
 0xf80   :  { %v8407_v50 = vpop.f32.mrb[160].mxu0 }
 0xf81   :  { %v8408_v23 = vadd.f32 %v8407_v50, %v8367_v14  ;;  %v11785_v55 = vpop.f32.mrb[161].mxu0 }
 0xf82   :  { %v8410_v57 = vpop.f32.mrb[162].mxu0  ;;  %11918 = vmatpush3.bf16.msra.mxu0 %v18004_v58 }
 0xf83   :  { %v11786_v19 = vpop.f32.mrb[163].mxu0  ;;  %11919 = vmatprep.subr.bf16.mxu0 %v17790_v44 }
 0xf86   :  { %11920 = vmatpush3.bf16.msra.mxu0 %v18005_v12 }
 0xf87   :  { %11921 = vmatprep.subr.bf16.mxu0 %v17790_v44 }
 0xf8a   :  { %11922 = vmatpush3.bf16.msra.mxu0 %v18006_v54 }
 0xf8b   :  { %11927 = vmatprep.subr.bf16.mxu0 %v17790_v44 }
 0xf8d   :  { %11924 = vmatmul.mubr.bf16.vlgmr.msra.gmra.mrb[188].mxu0 %v8733_v0 }
 0xf8e   :  { %11943 = vmatprep.mubr.msk.bf16.mxu0 %vm13328_vm0, %v17790_v44 }
 0xfa0   :  { %v8459_v11 = vpop.f32.mrb[164].mxu0 }
 0xfa1   :  { %v8465_v47 = vadd.f32 %v8459_v11, %v8408_v23  ;;  %v11805_v52 = vpop.f32.mrb[165].mxu0 }
 0xfa2   :  { %v8462_v62 = vpop.f32.mrb[166].mxu0 }
 0xfa3   :  { %v11806_v36 = vpop.f32.mrb[167].mxu0 }
 0xfc0   :  { %v8512_v10 = vpop.f32.mrb[168].mxu0 }
 0xfc1   :  { %v8518_v27 = vadd.f32 %v8512_v10, %v8465_v47  ;;  %v11825_v60 = vpop.f32.mrb[169].mxu0 }
 0xfc2   :  { %v8515_v13 = vpop.f32.mrb[170].mxu0 }
 0xfc3   :  { %v11826_v16 = vpop.f32.mrb[171].mxu0 }
 0xfe0   :  { %v8565_v6 = vpop.f32.mrb[172].mxu0 }
 0xfe1   :  { %v8571_v20 = vadd.f32 %v8565_v6, %v8518_v27  ;;  %v11845_v45 = vpop.f32.mrb[173].mxu0 }
 0xfe2   :  { %v8568_v21 = vpop.f32.mrb[174].mxu0 }
 0xfe3   :  { %v11846_v2 = vpop.f32.mrb[175].mxu0 }
0x1000   :  { %v8618_v61 = vpop.f32.mrb[176].mxu0 }
0x1001   :  { %v8624_v34 = vadd.f32 %v8618_v61, %v8571_v20  ;;  %v11865_v42 = vpop.f32.mrb[177].mxu0 }
0x1002   :  { %v8621_v59 = vpop.f32.mrb[178].mxu0 }
0x1003   :  { %v11866_v24 = vpop.f32.mrb[179].mxu0 }
0x1020   :  { %v8671_v37 = vpop.f32.mrb[180].mxu0 }
0x1021   :  { %v8677_v31 = vadd.f32 %v8671_v37, %v8624_v34  ;;  %v11885_v63 = vpop.f32.mrb[181].mxu0 }
0x1022   :  { %v8674_v51 = vpop.f32.mrb[182].mxu0 }
0x1023   :  { %v11886_v39 = vpop.f32.mrb[183].mxu0 }
0x1040   :  { %v8724_v25 = vpop.f32.mrb[184].mxu0 }
0x1041   :  { %v8730_v22 = vadd.f32 %v8724_v25, %v8677_v31  ;;  %v11905_v8 = vpop.f32.mrb[185].mxu0 }
0x1042   :  { %v8727_v32 = vpop.f32.mrb[186].mxu0 }
0x1043   :  { %v11906_v35 = vpop.f32.mrb[187].mxu0 }
0x1060   :  { %v8777_v56 = vpop.f32.mrb[188].mxu0 }
0x1061   :  { %v8783_v38 = vadd.f32 %v8777_v56, %v8730_v22  ;;  %v11925_v30 = vpop.f32.mrb[189].mxu0 }
0x1062   :  { %v8780_v9 = vpop.f32.mrb[190].mxu0 }
0x1063   :  { %v8789_v41 = vadd.f32 %v9157_v29, %v8783_v38  ;;  %v11926_v43 = vpop.f32.mrb[191].mxu0 }
0x1065   :  { %vm8790_vm7 = vcmp.ge.f32.partialorder %v8789_v41, 0.0  ;;  %v8791_v40 = vmul.f32 0.01, %v8789_v41 }
0x1067   :  { %v8792_v14 = vsel %vm8790_vm7, %v8789_v41, %v8791_v40 }
0x1068   :  { %v8798_v26 = vmul.f32 %v9158_v46, %v8792_v14 }
0x106a   :  { %v8804_v1 = vadd.f32 %v9159_v7, %v8798_v26 }
0x106b   :  { %13325 = dma.done.wait [#allocation10 + $0x3], 1024 }
0x106c   :  { %13326 = vsyncadd [#allocation10 + $0x3], 4294966272  ;;  %v18007_v15 = vld [vmem:[#allocation232_spill] sm:$0xff]  ;;  %8818 = vst [vmem:[%s17563_s8] sm:$0xff] %v17790_v44  ;;  %v18008_v3 = vld [vmem:[#allocation233_spill] sm:$0xff]  ;;  %v8809_v48 = vpack.c.bf16 %v8804_v1, %v8804_v1 }
0x106d   :  { %11928 = vmatpush3.bf16.msra.mxu0 %v18007_v15  ;;  %v18009_v53 = vld [vmem:[#allocation234_spill] sm:$0xff]  ;;  %v18010_v18 = vld [vmem:[#allocation235_spill] sm:$0xff]  ;;  %v18011_v5 = vld [vmem:[#allocation236_spill] sm:$0xff] }
0x106e   :  { %11929 = vmatprep.subr.bf16.mxu0 %v17790_v44  ;;  %v18012_v33 = vld [vmem:[#allocation237_spill] sm:$0xff]  ;;  %v18013_v17 = vld [vmem:[#allocation238_spill] sm:$0xff]  ;;  %v18014_v4 = vld [vmem:[#allocation239_spill] sm:$0xff] }
0x106f   :  { %v9160_v49 = vld [vmem:[%s17558_s3 + $0xb] ss:$0 sm:$0xff] }
0x1071   :  { %11930 = vmatpush3.bf16.msra.mxu0 %v18008_v3 }
0x1072   :  { %11931 = vmatprep.subr.bf16.mxu0 %v17790_v44 }
0x1075   :  { %11932 = vmatpush3.bf16.msra.mxu0 %v18009_v53 }
0x1076   :  { %11933 = vmatprep.subr.bf16.mxu0 %v17790_v44 }
0x1079   :  { %11934 = vmatpush3.bf16.msra.mxu0 %v18010_v18 }
0x107a   :  { %11935 = vmatprep.subr.bf16.mxu0 %v17790_v44 }
0x107d   :  { %11936 = vmatpush3.bf16.msra.mxu0 %v18011_v5 }
0x107e   :  { %11937 = vmatprep.subr.bf16.mxu0 %v17790_v44 }
0x1081   :  { %11938 = vmatpush3.bf16.msra.mxu0 %v18012_v33 }
0x1082   :  { %11939 = vmatprep.subr.bf16.mxu0 %v17790_v44 }
0x1085   :  { %11940 = vmatpush3.bf16.msra.mxu0 %v18013_v17 }
0x1086   :  { %11941 = vmatprep.subr.bf16.mxu0 %v17790_v44 }
0x1089   :  { %11942 = vmatpush3.bf16.msra.mxu0 %v18014_v4 }
0x108c   :  { %11944 = vmatmul.mubr.bf16.vlgmr.msra.gmra.mrb[192].mxu0 %v8809_v48 }
0x115f   :  { %v8858_v50 = vpop.f32.mrb[192].mxu0 }
0x1160   :  { %v8859_v23 = vadd.f32 %v9160_v49, %v8858_v50  ;;  %v11945_v55 = vpop.f32.mrb[193].mxu0 }
0x1161   :  { %v8861_v57 = vpop.f32.mrb[194].mxu0 }
0x1162   :  { %8864 = vst [vmem:[%s17563_s8] sm:$0x3] %v8859_v23  ;;  %v11946_v58 = vpop.f32.mrb[195].mxu0 }
0x1163   :  { %8869 = vsyncmov [#allocation10] }
0x1166   :  { %s8870_s19 = vpop.sfrf %8869 }
0x1167   :  { %p9161_p0 = scmp.ne.s32.totalorder %s8870_s19, 0 }
0x1169   :  { %8874 = shalt.err (%p9161_p0)  }
0x116a   :  { %8876 = vsyncmov [#allocation10 + $0x1] }
0x116d   :  { %s8877_s20 = vpop.sfrf %8876 }
0x116e   :  { %p9162_p1 = scmp.ne.s32.totalorder %s8877_s20, 0 }
0x1170   :  { %8881 = shalt.err (%p9162_p1)  }
0x1171   :  { %8883 = vsyncmov [#allocation10 + $0x2] }
0x1174   :  { %s8884_s21 = vpop.sfrf %8883 }
0x1175   :  { %p9163_p2 = scmp.ne.s32.totalorder %s8884_s21, 0 }
0x1177   :  { %8888 = shalt.err (%p9163_p2)  }
0x1178   :  { %8890 = vsyncmov [#allocation10 + $0x3] }
0x117b   :  { %s8891_s3 = vpop.sfrf %8890 }
0x117c   :  { %p9164_p3 = scmp.ne.s32.totalorder %s8891_s3, 0 }
0x117e   :  { %8895 = shalt.err (%p9164_p3)  }

</bundles_post_ra>
